<compile_context>
chip_gen: v7x
topology: tpu7x:2x2x1
jax: 0.10.0
libtpu: 0.0.40
codegen_flags: <defaults>
</compile_context>

<pallas_src>
import jax
import jax.numpy as jnp
from jax import lax
from jax.experimental import pallas as pl
from jax.experimental.pallas import tpu as pltpu


# ------------------------------ Pallas kernel -------------------------------

def _lenet_fused_kernel(x_ref, w1_ref, b1_ref, w2_ref, b2_ref,
                        fw1_ref, fb1_ref, fw2_ref, fb2_ref,
                        fw3_ref, fb3_ref, o_ref):
    """Whole CNN_Layout1 forward.

    x_ref  : [B, 8, 1024] f32   3 real channels + 5 zero rows, lane = h*32 + w
    w1_ref : [8, 200]  bf16     conv1, col = (5*kh+kw)*8 + cin
    b1_ref : [8, 1]    f32
    w2_ref : [16, 200] bf16     conv2, col = (5*kh+kw)*8 + cin
    b2_ref : [16, 1]   f32
    fw1_ref: [120, 512] bf16    fc1,  col = 32*oc + (5*ho+wo)
    fb1_ref: [120, 1]  f32
    fw2_ref: [84, 120] bf16     fc2
    fb2_ref: [84, 1]   f32
    fw3_ref: [10, 84]  bf16     fc3
    fb3_ref: [10, 1]   f32
    o_ref  : [10, B]   f32
    """
    B = x_ref.shape[0]
    L = B * 1024

    # Input repack: [B, 8, 1024] -> [8, B*1024] (aligned lane concat only).
    x = jnp.concatenate([x_ref[b] for b in range(B)], axis=1)          # [8, L]

    def shifted(v, d):
        # result[:, m] = v[:, m + d]; wrapped lanes are never valid outputs.
        return pltpu.roll(v, shift=(-d) % L, axis=1) if d else v

    # ---- conv1 (5x5 valid) + bias + ReLU: one stacked-K matmul ----
    xs1 = jnp.concatenate(
        [shifted(x, 32 * kh + kw) for kh in range(5) for kw in range(5)],
        axis=0).astype(jnp.bfloat16)                                   # [200, L]
    c1 = jnp.dot(w1_ref[...], xs1, preferred_element_type=jnp.float32)
    c1 = jnp.maximum(c1 + b1_ref[...], 0.0)                            # [8, L] f32

    # ---- maxpool1 2x2/2, in place on the 32x32 lane grid ----
    p1 = jnp.maximum(jnp.maximum(c1, shifted(c1, 1)),
                     jnp.maximum(shifted(c1, 32), shifted(c1, 33)))    # [8, L]

    # ---- conv2 (5x5 on the stride-2 pooled grid): one stacked-K matmul ----
    xs2 = jnp.concatenate(
        [shifted(p1, 64 * kh + 2 * kw) for kh in range(5) for kw in range(5)],
        axis=0).astype(jnp.bfloat16)                                   # [200, L]
    c2 = jnp.dot(w2_ref[...], xs2, preferred_element_type=jnp.float32)
    c2 = jnp.maximum(c2 + b2_ref[...], 0.0)                            # [16, L] f32

    # ---- maxpool2 2x2/2 (conv2 grid has stride-2 lanes) ----
    p2 = jnp.maximum(jnp.maximum(c2, shifted(c2, 2)),
                     jnp.maximum(shifted(c2, 64), shifted(c2, 66)))    # [16, L]
    p2 = p2.astype(jnp.bfloat16)

    # ---- compact the 25 valid pooled lanes per image (selection matmul) ----
    # valid lanes within an image: 128*ho + 4*wo (ho, wo in 0..4) -> col 5*ho+wo
    li = lax.broadcasted_iota(jnp.int32, (640, 128), 0)
    ci = lax.broadcasted_iota(jnp.int32, (640, 128), 1)
    sel = ((li & 3) == 0) & ((li & 127) < 20) \
        & (ci == 5 * (li >> 7) + ((li & 127) >> 2))
    sel = jnp.where(sel, 1.0, 0.0).astype(jnp.bfloat16)                # [640, 128]
    g = jnp.concatenate(
        [jnp.dot(p2[:, b * 1024:b * 1024 + 640], sel,
                 preferred_element_type=jnp.float32) for b in range(B)],
        axis=1)                                                        # [16, 128*B]

    # ---- (oc, pos) -> 512-wide feature axis: expand (MXU) + mask + reduce ----
    er = lax.broadcasted_iota(jnp.int32, (512, 16), 0)
    ec = lax.broadcasted_iota(jnp.int32, (512, 16), 1)
    expand = jnp.where(ec == (er >> 5), 1.0, 0.0).astype(jnp.bfloat16)  # [512, 16]
    r = jnp.dot(expand, g.astype(jnp.bfloat16),
                preferred_element_type=jnp.float32)                    # [512, 128*B]
    fr = lax.broadcasted_iota(jnp.int32, (512, 128 * B), 0)
    fc = lax.broadcasted_iota(jnp.int32, (512, 128 * B), 1)
    r = jnp.where((fc & 127) == (fr & 31), r, 0.0)
    xf = jnp.concatenate(
        [jnp.sum(r[:, 128 * b:128 * (b + 1)], axis=1, keepdims=True)
         for b in range(B)], axis=1)                                   # [512, B] f32

    # ---- FC chain (transposed form z = W @ x), f32 accumulation ----
    z = jnp.dot(fw1_ref[...], xf.astype(jnp.bfloat16),
                preferred_element_type=jnp.float32) + fb1_ref[...]
    z = jnp.maximum(z, 0.0)                                            # [120, B]
    z = jnp.dot(fw2_ref[...], z.astype(jnp.bfloat16),
                preferred_element_type=jnp.float32) + fb2_ref[...]
    z = jnp.maximum(z, 0.0)                                            # [84, B]
    o_ref[...] = (jnp.dot(fw3_ref[...], z.astype(jnp.bfloat16),
                          preferred_element_type=jnp.float32) + fb3_ref[...])


# -------------------------------- Wrapper ------------------------------------

def lenet_forward(x_pad, packed):
    """x_pad: [B, 8, 1024] f32 (channels padded 3->8).  Returns [10, B]."""
    (w1p, b1p, w2p, b2p, fw1, fb1, fw2, fb2, fw3, fb3) = packed
    B = x_pad.shape[0]
    return pl.pallas_call(
        _lenet_fused_kernel,
        out_shape=jax.ShapeDtypeStruct((10, B), jnp.float32),
        grid=(1,),
        in_specs=[
            pl.BlockSpec((B, 8, 1024), lambda i: (0, 0, 0)),
            pl.BlockSpec((8, 200), lambda i: (0, 0)),
            pl.BlockSpec((8, 1), lambda i: (0, 0)),
            pl.BlockSpec((16, 200), lambda i: (0, 0)),
            pl.BlockSpec((16, 1), lambda i: (0, 0)),
            pl.BlockSpec((120, 512), lambda i: (0, 0)),
            pl.BlockSpec((120, 1), lambda i: (0, 0)),
            pl.BlockSpec((84, 120), lambda i: (0, 0)),
            pl.BlockSpec((84, 1), lambda i: (0, 0)),
            pl.BlockSpec((10, 84), lambda i: (0, 0)),
            pl.BlockSpec((10, 1), lambda i: (0, 0)),
        ],
        out_specs=pl.BlockSpec((10, B), lambda i: (0, 0)),
    )(x_pad, w1p, b1p, w2p, b2p, fw1, fb1, fw2, fb2, fw3, fb3)


# ------------------------------ Model params ---------------------------------

def init_params(key):
    ks = jax.random.split(key, 10)
    scale = 0.1
    w1 = scale * jax.random.normal(ks[0], (6, 3, 5, 5), jnp.float32)    # Conv2d(3,6,5)
    b1 = scale * jax.random.normal(ks[1], (6,), jnp.float32)
    w2 = scale * jax.random.normal(ks[2], (16, 6, 5, 5), jnp.float32)   # Conv2d(6,16,5)
    b2 = scale * jax.random.normal(ks[3], (16,), jnp.float32)
    wf1 = scale * jax.random.normal(ks[4], (120, 400), jnp.float32)     # Linear(400,120)
    bf1 = scale * jax.random.normal(ks[5], (120,), jnp.float32)
    wf2 = scale * jax.random.normal(ks[6], (84, 120), jnp.float32)      # Linear(120,84)
    bf2 = scale * jax.random.normal(ks[7], (84,), jnp.float32)
    wf3 = scale * jax.random.normal(ks[8], (10, 84), jnp.float32)       # Linear(84,10)
    bf3 = scale * jax.random.normal(ks[9], (10,), jnp.float32)
    return (w1, b1, w2, b2, wf1, bf1, wf2, bf2, wf3, bf3)


def prepare_params(params):
    """One-time repack of weights into kernel-friendly (stacked-K, bf16) layouts."""
    (w1, b1, w2, b2, wf1, bf1, wf2, bf2, wf3, bf3) = params
    # conv1 [6,3,5,5] -> [8, 200]: row = out_ch (pad->8), col = (5*kh+kw)*8 + cin.
    w1p = jnp.transpose(w1, (0, 2, 3, 1))                    # [6,5,5,3]
    w1p = jnp.pad(w1p, ((0, 2), (0, 0), (0, 0), (0, 5)))     # [8,5,5,8]
    w1p = w1p.reshape(8, 200).astype(jnp.bfloat16)
    # conv2 [16,6,5,5] -> [16, 200]
    w2p = jnp.transpose(w2, (0, 2, 3, 1))                    # [16,5,5,6]
    w2p = jnp.pad(w2p, ((0, 0), (0, 0), (0, 0), (0, 2)))     # [16,5,5,8]
    w2p = w2p.reshape(16, 200).astype(jnp.bfloat16)
    # fc1 [120, 400] -> [120, 512]: col = 32*oc + (5*ho+wo); cols 25..31 zero.
    fw1 = jnp.pad(wf1.reshape(120, 16, 25), ((0, 0), (0, 0), (0, 7)))
    fw1 = fw1.reshape(120, 512).astype(jnp.bfloat16)
    return (w1p, jnp.pad(b1, (0, 2)).reshape(8, 1),
            w2p, b2.reshape(16, 1),
            fw1, bf1.reshape(120, 1),
            wf2.astype(jnp.bfloat16), bf2.reshape(84, 1),
            wf3.astype(jnp.bfloat16), bf3.reshape(10, 1))


# ------------------------------ Model forward --------------------------------

@jax.jit
def cnn_layout1_forward(x_nchw, packed):
    B = x_nchw.shape[0]
    # Pad channels 3 -> 8 (keeps every in-kernel sublane concat tile-aligned)
    # and collapse H,W.  Only XLA ops left: this pad/reshape and the tiny
    # [10,B] -> [B,10] transpose of the result.
    x_pad = jnp.pad(x_nchw, ((0, 0), (0, 5), (0, 0), (0, 0))).reshape(B, 8, 32 * 32)
    out_t = lenet_forward(x_pad, packed)      # [10, B]
    return out_t.T                            # [B, 10]


# ---------------------------------- Main --------------------------------------

if __name__ == "__main__":
    key = jax.random.PRNGKey(0)
    k_x, k_p = jax.random.split(key)

    # 32x32 spatial input so the 16*5*5 flatten matches nn.Linear(400, 120).
    x = jax.random.normal(k_x, (2, 3, 32, 32), jnp.float32)
    params = init_params(k_p)
    packed = prepare_params(params)

    out = cnn_layout1_forward(x, packed)
    out = jax.block_until_ready(out)

    assert out.shape == (2, 10), out.shape
    assert out.dtype == jnp.float32
    print("KERNEL_OK")
</pallas_src>

<mosaic_0001>
module attributes {stable_mosaic.version = 11 : i64} {
  func.func @_lenet_fused_kernel(%arg0: i32, %arg1: memref<2x8x1024xf32, #tpu.memory_space<vmem>>, %arg2: memref<8x200xbf16, #tpu.memory_space<vmem>>, %arg3: memref<8x1xf32, #tpu.memory_space<vmem>>, %arg4: memref<16x200xbf16, #tpu.memory_space<vmem>>, %arg5: memref<16x1xf32, #tpu.memory_space<vmem>>, %arg6: memref<120x512xbf16, #tpu.memory_space<vmem>>, %arg7: memref<120x1xf32, #tpu.memory_space<vmem>>, %arg8: memref<84x120xbf16, #tpu.memory_space<vmem>>, %arg9: memref<84x1xf32, #tpu.memory_space<vmem>>, %arg10: memref<10x84xbf16, #tpu.memory_space<vmem>>, %arg11: memref<10x1xf32, #tpu.memory_space<vmem>>, %arg12: memref<10x2xf32, #tpu.memory_space<vmem>>) attributes {dimension_semantics = [#tpu.dimension_semantics<arbitrary>], iteration_bounds = array<i64: 1>, scalar_prefetch = 0 : i64, scratch_operands = 0 : i64, tpu.core_type = #tpu.core_type<tc>, window_params = [{pipeline_mode = #tpu.pipeline_mode<synchronous>, transform_indices = @transform_0, window_bounds = array<i64: 2, 8, 1024>}, {pipeline_mode = #tpu.pipeline_mode<synchronous>, transform_indices = @transform_1, window_bounds = array<i64: 8, 200>}, {pipeline_mode = #tpu.pipeline_mode<synchronous>, transform_indices = @transform_2, window_bounds = array<i64: 8, 1>}, {pipeline_mode = #tpu.pipeline_mode<synchronous>, transform_indices = @transform_3, window_bounds = array<i64: 16, 200>}, {pipeline_mode = #tpu.pipeline_mode<synchronous>, transform_indices = @transform_4, window_bounds = array<i64: 16, 1>}, {pipeline_mode = #tpu.pipeline_mode<synchronous>, transform_indices = @transform_5, window_bounds = array<i64: 120, 512>}, {pipeline_mode = #tpu.pipeline_mode<synchronous>, transform_indices = @transform_6, window_bounds = array<i64: 120, 1>}, {pipeline_mode = #tpu.pipeline_mode<synchronous>, transform_indices = @transform_7, window_bounds = array<i64: 84, 120>}, {pipeline_mode = #tpu.pipeline_mode<synchronous>, transform_indices = @transform_8, window_bounds = array<i64: 84, 1>}, {pipeline_mode = #tpu.pipeline_mode<synchronous>, transform_indices = @transform_9, window_bounds = array<i64: 10, 84>}, {pipeline_mode = #tpu.pipeline_mode<synchronous>, transform_indices = @transform_10, window_bounds = array<i64: 10, 1>}, {pipeline_mode = #tpu.pipeline_mode<synchronous>, transform_indices = @transform_11, window_bounds = array<i64: 10, 2>}]} {
    %c0 = arith.constant 0 : index
    %c0_0 = arith.constant 0 : index
    %c0_1 = arith.constant 0 : index
    %0 = vector.load %arg1[%c0, %c0_0, %c0_1] : memref<2x8x1024xf32, #tpu.memory_space<vmem>>, vector<1x8x1024xf32>
    %1 = vector.shape_cast %0 : vector<1x8x1024xf32> to vector<8x1024xf32>
    %c1 = arith.constant 1 : index
    %c0_2 = arith.constant 0 : index
    %c0_3 = arith.constant 0 : index
    %2 = vector.load %arg1[%c1, %c0_2, %c0_3] : memref<2x8x1024xf32, #tpu.memory_space<vmem>>, vector<1x8x1024xf32>
    %3 = vector.shape_cast %2 : vector<1x8x1024xf32> to vector<8x1024xf32>
    %4 = tpu.concatenate %1, %3 in 1 : vector<8x1024xf32>, vector<8x1024xf32> -> vector<8x2048xf32>
    %c2047_i32 = arith.constant 2047 : i32
    %5 = tpu.dynamic_rotate %4 by %c2047_i32 dim 1 : vector<8x2048xf32>, i32 -> vector<8x2048xf32>
    %c2046_i32 = arith.constant 2046 : i32
    %6 = tpu.dynamic_rotate %4 by %c2046_i32 dim 1 : vector<8x2048xf32>, i32 -> vector<8x2048xf32>
    %c2045_i32 = arith.constant 2045 : i32
    %7 = tpu.dynamic_rotate %4 by %c2045_i32 dim 1 : vector<8x2048xf32>, i32 -> vector<8x2048xf32>
    %c2044_i32 = arith.constant 2044 : i32
    %8 = tpu.dynamic_rotate %4 by %c2044_i32 dim 1 : vector<8x2048xf32>, i32 -> vector<8x2048xf32>
    %c2016_i32 = arith.constant 2016 : i32
    %9 = tpu.dynamic_rotate %4 by %c2016_i32 dim 1 : vector<8x2048xf32>, i32 -> vector<8x2048xf32>
    %c2015_i32 = arith.constant 2015 : i32
    %10 = tpu.dynamic_rotate %4 by %c2015_i32 dim 1 : vector<8x2048xf32>, i32 -> vector<8x2048xf32>
    %c2014_i32 = arith.constant 2014 : i32
    %11 = tpu.dynamic_rotate %4 by %c2014_i32 dim 1 : vector<8x2048xf32>, i32 -> vector<8x2048xf32>
    %c2013_i32 = arith.constant 2013 : i32
    %12 = tpu.dynamic_rotate %4 by %c2013_i32 dim 1 : vector<8x2048xf32>, i32 -> vector<8x2048xf32>
    %c2012_i32 = arith.constant 2012 : i32
    %13 = tpu.dynamic_rotate %4 by %c2012_i32 dim 1 : vector<8x2048xf32>, i32 -> vector<8x2048xf32>
    %c1984_i32 = arith.constant 1984 : i32
    %14 = tpu.dynamic_rotate %4 by %c1984_i32 dim 1 : vector<8x2048xf32>, i32 -> vector<8x2048xf32>
    %c1983_i32 = arith.constant 1983 : i32
    %15 = tpu.dynamic_rotate %4 by %c1983_i32 dim 1 : vector<8x2048xf32>, i32 -> vector<8x2048xf32>
    %c1982_i32 = arith.constant 1982 : i32
    %16 = tpu.dynamic_rotate %4 by %c1982_i32 dim 1 : vector<8x2048xf32>, i32 -> vector<8x2048xf32>
    %c1981_i32 = arith.constant 1981 : i32
    %17 = tpu.dynamic_rotate %4 by %c1981_i32 dim 1 : vector<8x2048xf32>, i32 -> vector<8x2048xf32>
    %c1980_i32 = arith.constant 1980 : i32
    %18 = tpu.dynamic_rotate %4 by %c1980_i32 dim 1 : vector<8x2048xf32>, i32 -> vector<8x2048xf32>
    %c1952_i32 = arith.constant 1952 : i32
    %19 = tpu.dynamic_rotate %4 by %c1952_i32 dim 1 : vector<8x2048xf32>, i32 -> vector<8x2048xf32>
    %c1951_i32 = arith.constant 1951 : i32
    %20 = tpu.dynamic_rotate %4 by %c1951_i32 dim 1 : vector<8x2048xf32>, i32 -> vector<8x2048xf32>
    %c1950_i32 = arith.constant 1950 : i32
    %21 = tpu.dynamic_rotate %4 by %c1950_i32 dim 1 : vector<8x2048xf32>, i32 -> vector<8x2048xf32>
    %c1949_i32 = arith.constant 1949 : i32
    %22 = tpu.dynamic_rotate %4 by %c1949_i32 dim 1 : vector<8x2048xf32>, i32 -> vector<8x2048xf32>
    %c1948_i32 = arith.constant 1948 : i32
    %23 = tpu.dynamic_rotate %4 by %c1948_i32 dim 1 : vector<8x2048xf32>, i32 -> vector<8x2048xf32>
    %c1920_i32 = arith.constant 1920 : i32
    %24 = tpu.dynamic_rotate %4 by %c1920_i32 dim 1 : vector<8x2048xf32>, i32 -> vector<8x2048xf32>
    %c1919_i32 = arith.constant 1919 : i32
    %25 = tpu.dynamic_rotate %4 by %c1919_i32 dim 1 : vector<8x2048xf32>, i32 -> vector<8x2048xf32>
    %c1918_i32 = arith.constant 1918 : i32
    %26 = tpu.dynamic_rotate %4 by %c1918_i32 dim 1 : vector<8x2048xf32>, i32 -> vector<8x2048xf32>
    %c1917_i32 = arith.constant 1917 : i32
    %27 = tpu.dynamic_rotate %4 by %c1917_i32 dim 1 : vector<8x2048xf32>, i32 -> vector<8x2048xf32>
    %c1916_i32 = arith.constant 1916 : i32
    %28 = tpu.dynamic_rotate %4 by %c1916_i32 dim 1 : vector<8x2048xf32>, i32 -> vector<8x2048xf32>
    %29 = tpu.concatenate %4, %5, %6, %7, %8, %9, %10, %11, %12, %13, %14, %15, %16, %17, %18, %19 in 0 : vector<8x2048xf32>, vector<8x2048xf32>, vector<8x2048xf32>, vector<8x2048xf32>, vector<8x2048xf32>, vector<8x2048xf32>, vector<8x2048xf32>, vector<8x2048xf32>, vector<8x2048xf32>, vector<8x2048xf32>, vector<8x2048xf32>, vector<8x2048xf32>, vector<8x2048xf32>, vector<8x2048xf32>, vector<8x2048xf32>, vector<8x2048xf32> -> vector<128x2048xf32>
    %30 = tpu.concatenate %20, %21, %22, %23, %24, %25, %26, %27, %28 in 0 : vector<8x2048xf32>, vector<8x2048xf32>, vector<8x2048xf32>, vector<8x2048xf32>, vector<8x2048xf32>, vector<8x2048xf32>, vector<8x2048xf32>, vector<8x2048xf32>, vector<8x2048xf32> -> vector<72x2048xf32>
    %31 = tpu.concatenate %29, %30 in 0 : vector<128x2048xf32>, vector<72x2048xf32> -> vector<200x2048xf32>
    %32 = arith.truncf %31 : vector<200x2048xf32> to vector<200x2048xbf16>
    %c0_4 = arith.constant 0 : index
    %c0_5 = arith.constant 0 : index
    %33 = vector.load %arg2[%c0_4, %c0_5] : memref<8x200xbf16, #tpu.memory_space<vmem>>, vector<8x200xbf16>
    %cst = arith.constant dense<0.000000e+00> : vector<8x2048xf32>
    %34 = tpu.matmul %33, %32, %cst {dimension_numbers = #tpu.dot_dimension_numbers<[1], [0], [0], [1], [0, 0, 1, 1], [], []>} : vector<8x200xbf16>, vector<200x2048xbf16>, vector<8x2048xf32> -> vector<8x2048xf32>
    %c0_6 = arith.constant 0 : index
    %c0_7 = arith.constant 0 : index
    %35 = vector.load %arg3[%c0_6, %c0_7] : memref<8x1xf32, #tpu.memory_space<vmem>>, vector<8x1xf32>
    %36 = vector.broadcast %35 : vector<8x1xf32> to vector<8x2048xf32>
    %37 = arith.addf %34, %36 : vector<8x2048xf32>
    %cst_8 = arith.constant 0.000000e+00 : f32
    %38 = vector.broadcast %cst_8 : f32 to vector<8x2048xf32>
    %39 = arith.maximumf %37, %38 : vector<8x2048xf32>
    %c2047_i32_9 = arith.constant 2047 : i32
    %40 = tpu.dynamic_rotate %39 by %c2047_i32_9 dim 1 : vector<8x2048xf32>, i32 -> vector<8x2048xf32>
    %41 = arith.maximumf %39, %40 : vector<8x2048xf32>
    %c2016_i32_10 = arith.constant 2016 : i32
    %42 = tpu.dynamic_rotate %39 by %c2016_i32_10 dim 1 : vector<8x2048xf32>, i32 -> vector<8x2048xf32>
    %c2015_i32_11 = arith.constant 2015 : i32
    %43 = tpu.dynamic_rotate %39 by %c2015_i32_11 dim 1 : vector<8x2048xf32>, i32 -> vector<8x2048xf32>
    %44 = arith.maximumf %42, %43 : vector<8x2048xf32>
    %45 = arith.maximumf %41, %44 : vector<8x2048xf32>
    %c2046_i32_12 = arith.constant 2046 : i32
    %46 = tpu.dynamic_rotate %45 by %c2046_i32_12 dim 1 : vector<8x2048xf32>, i32 -> vector<8x2048xf32>
    %c2044_i32_13 = arith.constant 2044 : i32
    %47 = tpu.dynamic_rotate %45 by %c2044_i32_13 dim 1 : vector<8x2048xf32>, i32 -> vector<8x2048xf32>
    %c2042_i32 = arith.constant 2042 : i32
    %48 = tpu.dynamic_rotate %45 by %c2042_i32 dim 1 : vector<8x2048xf32>, i32 -> vector<8x2048xf32>
    %c2040_i32 = arith.constant 2040 : i32
    %49 = tpu.dynamic_rotate %45 by %c2040_i32 dim 1 : vector<8x2048xf32>, i32 -> vector<8x2048xf32>
    %c1984_i32_14 = arith.constant 1984 : i32
    %50 = tpu.dynamic_rotate %45 by %c1984_i32_14 dim 1 : vector<8x2048xf32>, i32 -> vector<8x2048xf32>
    %c1982_i32_15 = arith.constant 1982 : i32
    %51 = tpu.dynamic_rotate %45 by %c1982_i32_15 dim 1 : vector<8x2048xf32>, i32 -> vector<8x2048xf32>
    %c1980_i32_16 = arith.constant 1980 : i32
    %52 = tpu.dynamic_rotate %45 by %c1980_i32_16 dim 1 : vector<8x2048xf32>, i32 -> vector<8x2048xf32>
    %c1978_i32 = arith.constant 1978 : i32
    %53 = tpu.dynamic_rotate %45 by %c1978_i32 dim 1 : vector<8x2048xf32>, i32 -> vector<8x2048xf32>
    %c1976_i32 = arith.constant 1976 : i32
    %54 = tpu.dynamic_rotate %45 by %c1976_i32 dim 1 : vector<8x2048xf32>, i32 -> vector<8x2048xf32>
    %c1920_i32_17 = arith.constant 1920 : i32
    %55 = tpu.dynamic_rotate %45 by %c1920_i32_17 dim 1 : vector<8x2048xf32>, i32 -> vector<8x2048xf32>
    %c1918_i32_18 = arith.constant 1918 : i32
    %56 = tpu.dynamic_rotate %45 by %c1918_i32_18 dim 1 : vector<8x2048xf32>, i32 -> vector<8x2048xf32>
    %c1916_i32_19 = arith.constant 1916 : i32
    %57 = tpu.dynamic_rotate %45 by %c1916_i32_19 dim 1 : vector<8x2048xf32>, i32 -> vector<8x2048xf32>
    %c1914_i32 = arith.constant 1914 : i32
    %58 = tpu.dynamic_rotate %45 by %c1914_i32 dim 1 : vector<8x2048xf32>, i32 -> vector<8x2048xf32>
    %c1912_i32 = arith.constant 1912 : i32
    %59 = tpu.dynamic_rotate %45 by %c1912_i32 dim 1 : vector<8x2048xf32>, i32 -> vector<8x2048xf32>
    %c1856_i32 = arith.constant 1856 : i32
    %60 = tpu.dynamic_rotate %45 by %c1856_i32 dim 1 : vector<8x2048xf32>, i32 -> vector<8x2048xf32>
    %c1854_i32 = arith.constant 1854 : i32
    %61 = tpu.dynamic_rotate %45 by %c1854_i32 dim 1 : vector<8x2048xf32>, i32 -> vector<8x2048xf32>
    %c1852_i32 = arith.constant 1852 : i32
    %62 = tpu.dynamic_rotate %45 by %c1852_i32 dim 1 : vector<8x2048xf32>, i32 -> vector<8x2048xf32>
    %c1850_i32 = arith.constant 1850 : i32
    %63 = tpu.dynamic_rotate %45 by %c1850_i32 dim 1 : vector<8x2048xf32>, i32 -> vector<8x2048xf32>
    %c1848_i32 = arith.constant 1848 : i32
    %64 = tpu.dynamic_rotate %45 by %c1848_i32 dim 1 : vector<8x2048xf32>, i32 -> vector<8x2048xf32>
    %c1792_i32 = arith.constant 1792 : i32
    %65 = tpu.dynamic_rotate %45 by %c1792_i32 dim 1 : vector<8x2048xf32>, i32 -> vector<8x2048xf32>
    %c1790_i32 = arith.constant 1790 : i32
    %66 = tpu.dynamic_rotate %45 by %c1790_i32 dim 1 : vector<8x2048xf32>, i32 -> vector<8x2048xf32>
    %c1788_i32 = arith.constant 1788 : i32
    %67 = tpu.dynamic_rotate %45 by %c1788_i32 dim 1 : vector<8x2048xf32>, i32 -> vector<8x2048xf32>
    %c1786_i32 = arith.constant 1786 : i32
    %68 = tpu.dynamic_rotate %45 by %c1786_i32 dim 1 : vector<8x2048xf32>, i32 -> vector<8x2048xf32>
    %c1784_i32 = arith.constant 1784 : i32
    %69 = tpu.dynamic_rotate %45 by %c1784_i32 dim 1 : vector<8x2048xf32>, i32 -> vector<8x2048xf32>
    %70 = tpu.concatenate %45, %46, %47, %48, %49, %50, %51, %52, %53, %54, %55, %56, %57, %58, %59, %60 in 0 : vector<8x2048xf32>, vector<8x2048xf32>, vector<8x2048xf32>, vector<8x2048xf32>, vector<8x2048xf32>, vector<8x2048xf32>, vector<8x2048xf32>, vector<8x2048xf32>, vector<8x2048xf32>, vector<8x2048xf32>, vector<8x2048xf32>, vector<8x2048xf32>, vector<8x2048xf32>, vector<8x2048xf32>, vector<8x2048xf32>, vector<8x2048xf32> -> vector<128x2048xf32>
    %71 = tpu.concatenate %61, %62, %63, %64, %65, %66, %67, %68, %69 in 0 : vector<8x2048xf32>, vector<8x2048xf32>, vector<8x2048xf32>, vector<8x2048xf32>, vector<8x2048xf32>, vector<8x2048xf32>, vector<8x2048xf32>, vector<8x2048xf32>, vector<8x2048xf32> -> vector<72x2048xf32>
    %72 = tpu.concatenate %70, %71 in 0 : vector<128x2048xf32>, vector<72x2048xf32> -> vector<200x2048xf32>
    %73 = arith.truncf %72 : vector<200x2048xf32> to vector<200x2048xbf16>
    %c0_20 = arith.constant 0 : index
    %c0_21 = arith.constant 0 : index
    %74 = vector.load %arg4[%c0_20, %c0_21] : memref<16x200xbf16, #tpu.memory_space<vmem>>, vector<16x200xbf16>
    %cst_22 = arith.constant dense<0.000000e+00> : vector<16x2048xf32>
    %75 = tpu.matmul %74, %73, %cst_22 {dimension_numbers = #tpu.dot_dimension_numbers<[1], [0], [0], [1], [0, 0, 1, 1], [], []>} : vector<16x200xbf16>, vector<200x2048xbf16>, vector<16x2048xf32> -> vector<16x2048xf32>
    %c0_23 = arith.constant 0 : index
    %c0_24 = arith.constant 0 : index
    %76 = vector.load %arg5[%c0_23, %c0_24] : memref<16x1xf32, #tpu.memory_space<vmem>>, vector<16x1xf32>
    %77 = vector.broadcast %76 : vector<16x1xf32> to vector<16x2048xf32>
    %78 = arith.addf %75, %77 : vector<16x2048xf32>
    %cst_25 = arith.constant 0.000000e+00 : f32
    %79 = vector.broadcast %cst_25 : f32 to vector<16x2048xf32>
    %80 = arith.maximumf %78, %79 : vector<16x2048xf32>
    %c2046_i32_26 = arith.constant 2046 : i32
    %81 = tpu.dynamic_rotate %80 by %c2046_i32_26 dim 1 : vector<16x2048xf32>, i32 -> vector<16x2048xf32>
    %82 = arith.maximumf %80, %81 : vector<16x2048xf32>
    %c1984_i32_27 = arith.constant 1984 : i32
    %83 = tpu.dynamic_rotate %80 by %c1984_i32_27 dim 1 : vector<16x2048xf32>, i32 -> vector<16x2048xf32>
    %c1982_i32_28 = arith.constant 1982 : i32
    %84 = tpu.dynamic_rotate %80 by %c1982_i32_28 dim 1 : vector<16x2048xf32>, i32 -> vector<16x2048xf32>
    %85 = arith.maximumf %83, %84 : vector<16x2048xf32>
    %86 = arith.maximumf %82, %85 : vector<16x2048xf32>
    %87 = arith.truncf %86 : vector<16x2048xf32> to vector<16x2048xbf16>
    %88 = tpu.iota {dimensions = array<i32: 0>} : vector<640x128xi32>
    %89 = tpu.iota {dimensions = array<i32: 1>} : vector<640x128xi32>
    %c3_i32 = arith.constant 3 : i32
    %90 = vector.broadcast %c3_i32 : i32 to vector<640x128xi32>
    %91 = arith.andi %88, %90 : vector<640x128xi32>
    %c0_i32 = arith.constant 0 : i32
    %92 = vector.broadcast %c0_i32 : i32 to vector<640x128xi32>
    %93 = arith.cmpi eq, %91, %92 : vector<640x128xi32>
    %c127_i32 = arith.constant 127 : i32
    %94 = vector.broadcast %c127_i32 : i32 to vector<640x128xi32>
    %95 = arith.andi %88, %94 : vector<640x128xi32>
    %c20_i32 = arith.constant 20 : i32
    %96 = vector.broadcast %c20_i32 : i32 to vector<640x128xi32>
    %97 = arith.cmpi slt, %95, %96 : vector<640x128xi32>
    %98 = arith.andi %93, %97 : vector<640x128xi1>
    %c7_i32 = arith.constant 7 : i32
    %99 = vector.broadcast %c7_i32 : i32 to vector<640x128xi32>
    %100 = arith.shrsi %88, %99 : vector<640x128xi32>
    %c5_i32 = arith.constant 5 : i32
    %101 = vector.broadcast %c5_i32 : i32 to vector<640x128xi32>
    %102 = arith.muli %101, %100 : vector<640x128xi32>
    %c127_i32_29 = arith.constant 127 : i32
    %103 = vector.broadcast %c127_i32_29 : i32 to vector<640x128xi32>
    %104 = arith.andi %88, %103 : vector<640x128xi32>
    %c2_i32 = arith.constant 2 : i32
    %105 = vector.broadcast %c2_i32 : i32 to vector<640x128xi32>
    %106 = arith.shrsi %104, %105 : vector<640x128xi32>
    %107 = arith.addi %102, %106 : vector<640x128xi32>
    %108 = arith.cmpi eq, %89, %107 : vector<640x128xi32>
    %109 = arith.andi %98, %108 : vector<640x128xi1>
    %cst_30 = arith.constant 1.000000e+00 : f32
    %cst_31 = arith.constant 0.000000e+00 : f32
    %110 = vector.broadcast %cst_30 : f32 to vector<640x128xf32>
    %111 = vector.broadcast %cst_31 : f32 to vector<640x128xf32>
    %112 = arith.select %109, %110, %111 : vector<640x128xi1>, vector<640x128xf32>
    %113 = arith.truncf %112 : vector<640x128xf32> to vector<640x128xbf16>
    %114 = vector.extract_strided_slice %87 {offsets = [0, 0], sizes = [16, 640], strides = [1, 1]} : vector<16x2048xbf16> to vector<16x640xbf16>
    %cst_32 = arith.constant dense<0.000000e+00> : vector<16x128xf32>
    %115 = tpu.matmul %114, %113, %cst_32 {dimension_numbers = #tpu.dot_dimension_numbers<[1], [0], [0], [1], [0, 0, 1, 1], [], []>} : vector<16x640xbf16>, vector<640x128xbf16>, vector<16x128xf32> -> vector<16x128xf32>
    %116 = vector.extract_strided_slice %87 {offsets = [0, 1024], sizes = [16, 640], strides = [1, 1]} : vector<16x2048xbf16> to vector<16x640xbf16>
    %cst_33 = arith.constant dense<0.000000e+00> : vector<16x128xf32>
    %117 = tpu.matmul %116, %113, %cst_33 {dimension_numbers = #tpu.dot_dimension_numbers<[1], [0], [0], [1], [0, 0, 1, 1], [], []>} : vector<16x640xbf16>, vector<640x128xbf16>, vector<16x128xf32> -> vector<16x128xf32>
    %118 = tpu.concatenate %115, %117 in 1 : vector<16x128xf32>, vector<16x128xf32> -> vector<16x256xf32>
    %119 = tpu.iota {dimensions = array<i32: 0>} : vector<512x16xi32>
    %120 = tpu.iota {dimensions = array<i32: 1>} : vector<512x16xi32>
    %c5_i32_34 = arith.constant 5 : i32
    %121 = vector.broadcast %c5_i32_34 : i32 to vector<512x16xi32>
    %122 = arith.shrsi %119, %121 : vector<512x16xi32>
    %123 = arith.cmpi eq, %120, %122 : vector<512x16xi32>
    %cst_35 = arith.constant 1.000000e+00 : f32
    %cst_36 = arith.constant 0.000000e+00 : f32
    %124 = vector.broadcast %cst_35 : f32 to vector<512x16xf32>
    %125 = vector.broadcast %cst_36 : f32 to vector<512x16xf32>
    %126 = arith.select %123, %124, %125 : vector<512x16xi1>, vector<512x16xf32>
    %127 = arith.truncf %126 : vector<512x16xf32> to vector<512x16xbf16>
    %128 = arith.truncf %118 : vector<16x256xf32> to vector<16x256xbf16>
    %cst_37 = arith.constant dense<0.000000e+00> : vector<512x256xf32>
    %129 = tpu.matmul %127, %128, %cst_37 {dimension_numbers = #tpu.dot_dimension_numbers<[1], [0], [0], [1], [0, 0, 1, 1], [], []>} : vector<512x16xbf16>, vector<16x256xbf16>, vector<512x256xf32> -> vector<512x256xf32>
    %130 = tpu.iota {dimensions = array<i32: 0>} : vector<512x256xi32>
    %131 = tpu.iota {dimensions = array<i32: 1>} : vector<512x256xi32>
    %c127_i32_38 = arith.constant 127 : i32
    %132 = vector.broadcast %c127_i32_38 : i32 to vector<512x256xi32>
    %133 = arith.andi %131, %132 : vector<512x256xi32>
    %c31_i32 = arith.constant 31 : i32
    %134 = vector.broadcast %c31_i32 : i32 to vector<512x256xi32>
    %135 = arith.andi %130, %134 : vector<512x256xi32>
    %136 = arith.cmpi eq, %133, %135 : vector<512x256xi32>
    %cst_39 = arith.constant 0.000000e+00 : f32
    %137 = vector.broadcast %cst_39 : f32 to vector<512x256xf32>
    %138 = arith.select %136, %129, %137 : vector<512x256xi1>, vector<512x256xf32>
    %139 = vector.extract_strided_slice %138 {offsets = [0, 0], sizes = [512, 128], strides = [1, 1]} : vector<512x256xf32> to vector<512x128xf32>
    %cst_40 = arith.constant dense<0.000000e+00> : vector<512xf32>
    %140 = vector.multi_reduction <add>, %139, %cst_40 [1] : vector<512x128xf32> to vector<512xf32>
    %141 = vector.shape_cast %140 : vector<512xf32> to vector<512x1xf32>
    %142 = vector.extract_strided_slice %138 {offsets = [0, 128], sizes = [512, 128], strides = [1, 1]} : vector<512x256xf32> to vector<512x128xf32>
    %cst_41 = arith.constant dense<0.000000e+00> : vector<512xf32>
    %143 = vector.multi_reduction <add>, %142, %cst_41 [1] : vector<512x128xf32> to vector<512xf32>
    %144 = vector.shape_cast %143 : vector<512xf32> to vector<512x1xf32>
    %145 = tpu.concatenate %141, %144 in 1 : vector<512x1xf32>, vector<512x1xf32> -> vector<512x2xf32>
    %c0_42 = arith.constant 0 : index
    %c0_43 = arith.constant 0 : index
    %146 = vector.load %arg6[%c0_42, %c0_43] : memref<120x512xbf16, #tpu.memory_space<vmem>>, vector<120x512xbf16>
    %147 = arith.truncf %145 : vector<512x2xf32> to vector<512x2xbf16>
    %cst_44 = arith.constant dense<0.000000e+00> : vector<120x2xf32>
    %148 = tpu.matmul %146, %147, %cst_44 {dimension_numbers = #tpu.dot_dimension_numbers<[1], [0], [0], [1], [0, 0, 1, 1], [], []>} : vector<120x512xbf16>, vector<512x2xbf16>, vector<120x2xf32> -> vector<120x2xf32>
    %c0_45 = arith.constant 0 : index
    %c0_46 = arith.constant 0 : index
    %149 = vector.load %arg7[%c0_45, %c0_46] : memref<120x1xf32, #tpu.memory_space<vmem>>, vector<120x1xf32>
    %150 = vector.broadcast %149 : vector<120x1xf32> to vector<120x2xf32>
    %151 = arith.addf %148, %150 : vector<120x2xf32>
    %cst_47 = arith.constant 0.000000e+00 : f32
    %152 = vector.broadcast %cst_47 : f32 to vector<120x2xf32>
    %153 = arith.maximumf %151, %152 : vector<120x2xf32>
    %c0_48 = arith.constant 0 : index
    %c0_49 = arith.constant 0 : index
    %154 = vector.load %arg8[%c0_48, %c0_49] : memref<84x120xbf16, #tpu.memory_space<vmem>>, vector<84x120xbf16>
    %155 = arith.truncf %153 : vector<120x2xf32> to vector<120x2xbf16>
    %cst_50 = arith.constant dense<0.000000e+00> : vector<84x2xf32>
    %156 = tpu.matmul %154, %155, %cst_50 {dimension_numbers = #tpu.dot_dimension_numbers<[1], [0], [0], [1], [0, 0, 1, 1], [], []>} : vector<84x120xbf16>, vector<120x2xbf16>, vector<84x2xf32> -> vector<84x2xf32>
    %c0_51 = arith.constant 0 : index
    %c0_52 = arith.constant 0 : index
    %157 = vector.load %arg9[%c0_51, %c0_52] : memref<84x1xf32, #tpu.memory_space<vmem>>, vector<84x1xf32>
    %158 = vector.broadcast %157 : vector<84x1xf32> to vector<84x2xf32>
    %159 = arith.addf %156, %158 : vector<84x2xf32>
    %cst_53 = arith.constant 0.000000e+00 : f32
    %160 = vector.broadcast %cst_53 : f32 to vector<84x2xf32>
    %161 = arith.maximumf %159, %160 : vector<84x2xf32>
    %c0_54 = arith.constant 0 : index
    %c0_55 = arith.constant 0 : index
    %162 = vector.load %arg10[%c0_54, %c0_55] : memref<10x84xbf16, #tpu.memory_space<vmem>>, vector<10x84xbf16>
    %163 = arith.truncf %161 : vector<84x2xf32> to vector<84x2xbf16>
    %cst_56 = arith.constant dense<0.000000e+00> : vector<10x2xf32>
    %164 = tpu.matmul %162, %163, %cst_56 {dimension_numbers = #tpu.dot_dimension_numbers<[1], [0], [0], [1], [0, 0, 1, 1], [], []>} : vector<10x84xbf16>, vector<84x2xbf16>, vector<10x2xf32> -> vector<10x2xf32>
    %c0_57 = arith.constant 0 : index
    %c0_58 = arith.constant 0 : index
    %165 = vector.load %arg11[%c0_57, %c0_58] : memref<10x1xf32, #tpu.memory_space<vmem>>, vector<10x1xf32>
    %166 = vector.broadcast %165 : vector<10x1xf32> to vector<10x2xf32>
    %167 = arith.addf %164, %166 : vector<10x2xf32>
    %c0_59 = arith.constant 0 : index
    %c0_60 = arith.constant 0 : index
    %168 = vector.load %arg12[%c0_59, %c0_60] : memref<10x2xf32, #tpu.memory_space<vmem>>, vector<10x2xf32>
    tpu.vector_store %arg12[%c0_59, %c0_60], %167 {strides = array<i32>} : memref<10x2xf32, #tpu.memory_space<vmem>>, vector<10x2xf32>,
    return
  }
  func.func @transform_0(%arg0: i32) -> (i32, i32, i32) {
    %c0_i32 = arith.constant 0 : i32
    %c0_i32_0 = arith.constant 0 : i32
    %c0_i32_1 = arith.constant 0 : i32
    %c0_i32_2 = arith.constant 0 : i32
    return %c0_i32, %c0_i32_0, %c0_i32_1 : i32, i32, i32
  }
  func.func @transform_1(%arg0: i32) -> (i32, i32) {
    %c0_i32 = arith.constant 0 : i32
    %c0_i32_0 = arith.constant 0 : i32
    %c0_i32_1 = arith.constant 0 : i32
    return %c0_i32, %c0_i32_0 : i32, i32
  }
  func.func @transform_2(%arg0: i32) -> (i32, i32) {
    %c0_i32 = arith.constant 0 : i32
    %c0_i32_0 = arith.constant 0 : i32
    %c0_i32_1 = arith.constant 0 : i32
    return %c0_i32, %c0_i32_0 : i32, i32
  }
  func.func @transform_3(%arg0: i32) -> (i32, i32) {
    %c0_i32 = arith.constant 0 : i32
    %c0_i32_0 = arith.constant 0 : i32
    %c0_i32_1 = arith.constant 0 : i32
    return %c0_i32, %c0_i32_0 : i32, i32
  }
  func.func @transform_4(%arg0: i32) -> (i32, i32) {
    %c0_i32 = arith.constant 0 : i32
    %c0_i32_0 = arith.constant 0 : i32
    %c0_i32_1 = arith.constant 0 : i32
    return %c0_i32, %c0_i32_0 : i32, i32
  }
  func.func @transform_5(%arg0: i32) -> (i32, i32) {
    %c0_i32 = arith.constant 0 : i32
    %c0_i32_0 = arith.constant 0 : i32
    %c0_i32_1 = arith.constant 0 : i32
    return %c0_i32, %c0_i32_0 : i32, i32
  }
  func.func @transform_6(%arg0: i32) -> (i32, i32) {
    %c0_i32 = arith.constant 0 : i32
    %c0_i32_0 = arith.constant 0 : i32
    %c0_i32_1 = arith.constant 0 : i32
    return %c0_i32, %c0_i32_0 : i32, i32
  }
  func.func @transform_7(%arg0: i32) -> (i32, i32) {
    %c0_i32 = arith.constant 0 : i32
    %c0_i32_0 = arith.constant 0 : i32
    %c0_i32_1 = arith.constant 0 : i32
    return %c0_i32, %c0_i32_0 : i32, i32
  }
  func.func @transform_8(%arg0: i32) -> (i32, i32) {
    %c0_i32 = arith.constant 0 : i32
    %c0_i32_0 = arith.constant 0 : i32
    %c0_i32_1 = arith.constant 0 : i32
    return %c0_i32, %c0_i32_0 : i32, i32
  }
  func.func @transform_9(%arg0: i32) -> (i32, i32) {
    %c0_i32 = arith.constant 0 : i32
    %c0_i32_0 = arith.constant 0 : i32
    %c0_i32_1 = arith.constant 0 : i32
    return %c0_i32, %c0_i32_0 : i32, i32
  }
  func.func @transform_10(%arg0: i32) -> (i32, i32) {
    %c0_i32 = arith.constant 0 : i32
    %c0_i32_0 = arith.constant 0 : i32
    %c0_i32_1 = arith.constant 0 : i32
    return %c0_i32, %c0_i32_0 : i32, i32
  }
  func.func @transform_11(%arg0: i32) -> (i32, i32) {
    %c0_i32 = arith.constant 0 : i32
    %c0_i32_0 = arith.constant 0 : i32
    %c0_i32_1 = arith.constant 0 : i32
    return %c0_i32, %c0_i32_0 : i32, i32
  }
}

</mosaic_0001>

<bundles_post_ra>
// kernel: cnn_layout1_forward.1
= control target key start
LH: loop header
LB: loop body
LE: loop exit
PB: predicated region body
PF: predicated region fallthrough
CT: control target
= control target key end

     0   :  { %s14932_s25 = smov 126   ;;  %s14995_s26 = smov 127   ;;  %vm1178_vm0 = vcmask 588800   ;;  %v14914_v14 = vlaneseq  ;;  %s14884_s0 = inlined_call_operand.vmem [shape: f32[2,8,1024], index: 0, kind: input, shape index: {}]   ;;  %s14885_s1 = inlined_call_operand.vmem [shape: bf16[8,200], index: 1, kind: input, shape index: {}]   ;;  %s14886_s2 = inlined_call_operand.vmem [shape: f32[8,1], index: 2, kind: input, shape index: {}]   ;;  %s14887_s3 = inlined_call_operand.vmem [shape: bf16[16,200], index: 3, kind: input, shape index: {}]   ;;  %s14888_s4 = inlined_call_operand.vmem [shape: f32[16,1], index: 4, kind: input, shape index: {}]   ;;  %s14889_s5 = inlined_call_operand.vmem [shape: bf16[120,512], index: 5, kind: input, shape index: {}]   ;;  %s14890_s6 = inlined_call_operand.vmem [shape: f32[120,1], index: 6, kind: input, shape index: {}]   ;;  %s14891_s8 = inlined_call_operand.vmem [shape: f32[84,1], index: 8, kind: input, shape index: {}]   ;;  %s14892_s10 = inlined_call_operand.vmem [shape: f32[10,1], index: 10, kind: input, shape index: {}]   ;;  %s14893_s7 = inlined_call_operand.vmem [shape: bf16[84,120], index: 7, kind: input, shape index: {}]   ;;  %s14894_s9 = inlined_call_operand.vmem [shape: bf16[10,84], index: 9, kind: input, shape index: {}]   ;;  %s14895_s11 = inlined_call_operand.vmem [shape: f32[10,2], index: 11, kind: output, shape index: {}]  }
   0x1   :  { %v8214_v0 = vld [vmem:[%s14884_s0 + $0x8] sm:$0xff]  ;;  %v8219_v1 = vld [vmem:[%s14884_s0 + $0x10] sm:$0xff]  ;;  %v8224_v2 = vld [vmem:[%s14884_s0] sm:$0xff]  ;;  %s14992_s27 = smov 125   ;;  %s14906_s28 = smov 96  }
   0x2   :  { %v8228_v3 = vpack.i.bf16 %v8219_v1, %v8214_v0  ;;  %v8233_v4 = vld [vmem:[%s14884_s0 + $0x18] sm:$0xff]  ;;  %s14902_s29 = smov 124   ;;  %s14900_s30 = smov 94   ;;  %v43_v6 = vld [vmem:[%s14884_s0 + $0x20] sm:$0xff]  ;;  %v44_v7 = vld [vmem:[%s14884_s0 + $0x28] sm:$0xff]  ;;  %v8381_v15 = vand.u32 127, %v14914_v14 }
   0x3   :  { %v8241_v5 = vpack.i.bf16 %v8233_v4, %v8224_v2  ;;  %s14898_s12 = smov 95   ;;  %s14904_s13 = smov 92   ;;  %v8285_v8 = vpack.i.bf16 %v44_v7, %v43_v6  ;;  %v45_v9 = vld [vmem:[%s14884_s0 + $0x30] sm:$0xff]  ;;  %v46_v10 = vld [vmem:[%s14884_s0 + $0x38] sm:$0xff]  ;;  %v8356_v11 = vld [vmem:[%s14885_s1] sm:$0xff] }
   0x4   :  { %6808 = vrot.lane.b32.xlu1 %v8228_v3, %s14932_s25  ;;  %6798 = vrot.lane.b32.xlu0 %v8228_v3, %s14995_s26  ;;  %s14896_s14 = smov 93   ;;  %s8130_s19 = smov 63   ;;  %v8360_v12 = vcombine.high %v8356_v11, %v8356_v11  ;;  %v8366_v13 = vpack.i.bf16 %v46_v10, %v45_v9  ;;  %vm90_vm1 = vcmp.lt.s32.totalorder %v8381_v15, 127  ;;  %vm15149_vm2 = vcmp.lt.s32.totalorder %v8381_v15, 126  ;;  %v6365_v52 = vld [vmem:[%s14884_s0 + $0x40] sm:$0xff]  ;;  %v6366_v53 = vld [vmem:[%s14884_s0 + $0x48] sm:$0xff] }
   0x5   :  { %s14930_s20 = smov 64   ;;  %s14928_s21 = smov 62   ;;  %vm188_vm3 = vcmp.lt.s32.totalorder %v8381_v15, 125  ;;  %vm14946_vm4 = vcmp.lt.s32.totalorder %v8381_v15, 124  ;;  %vm14944_vm5 = vcmp.lt.s32.totalorder %v8381_v15, 96  ;;  %v8502_v56 = vpack.i.bf16 %v6366_v53, %v6365_v52 }
   0x6   :  { %s8133_s22 = smov 61   ;;  %s14997_s23 = smov 60   ;;  %6376 = vmatprep.mubr.msk.bf16.mxu0 %vm1178_vm0, %v8360_v12  ;;  %6378 = vmatprep.mubr.msk.bf16.mxu1 %vm1178_vm0, %v8360_v12  ;;  %vm14956_vm6 = vcmp.lt.s32.totalorder %v8381_v15, 95  ;;  %vm14957_vm7 = vcmp.lt.s32.totalorder %v8381_v15, 94  ;;  %vm433_vm8 = vcmp.lt.s32.totalorder %v8381_v15, 93  ;;  %vm482_vm9 = vcmp.lt.s32.totalorder %v8381_v15, 92 }
   0x7   :  { %s14993_s24 = smov 32   ;;  %s14964_s15 = smov 31   ;;  %vm14977_vm10 = vcmp.lt.s32.totalorder %v8381_v15, 64  ;;  %vm580_vm11 = vcmp.lt.s32.totalorder %v8381_v15, 63  ;;  %vm629_vm12 = vcmp.lt.s32.totalorder %v8381_v15, 62  ;;  %vm678_vm13 = vcmp.lt.s32.totalorder %v8381_v15, 61 }
   0x8   :  { %6813 = vrot.lane.b32.xlu1 %v8228_v3, %s14992_s27  ;;  %6803 = vrot.lane.b32.xlu0 %v8241_v5, %s14995_s26  ;;  %s14912_s16 = smov 30   ;;  %s14910_s17 = smov 29   ;;  %vm727_vm14 = vcmp.lt.s32.totalorder %v8381_v15, 60  ;;  %vm776_vm15 = vcmp.lt.s32.totalorder %v8381_v15, 32 }
   0x9   :  { %s14908_s18 = smov 28   ;;  %s15171_s1 = smov 96  }
   0xc   :  { %6823 = vrot.lane.b32.xlu1 %v8241_v5, %s14992_s27  ;;  %6818 = vrot.lane.b32.xlu0 %v8241_v5, %s14932_s25 }
  0x10   :  { %6833 = vrot.lane.b32.xlu1 %v8228_v3, %s14906_s28  ;;  %6828 = vrot.lane.b32.xlu0 %v8228_v3, %s14902_s29 }
  0x14   :  { %6843 = vrot.lane.b32.xlu1 %v8241_v5, %s14906_s28  ;;  %6838 = vrot.lane.b32.xlu0 %v8241_v5, %s14902_s29 }
  0x18   :  { %6853 = vrot.lane.b32.xlu1 %v8228_v3, %s14900_s30  ;;  %6848 = vrot.lane.b32.xlu0 %v8228_v3, %s14898_s12 }
  0x1c   :  { %6863 = vrot.lane.b32.xlu1 %v8241_v5, %s14900_s30  ;;  %6858 = vrot.lane.b32.xlu0 %v8241_v5, %s14898_s12 }
  0x20   :  { %6873 = vrot.lane.b32.xlu1 %v8228_v3, %s14904_s13  ;;  %6868 = vrot.lane.b32.xlu0 %v8228_v3, %s14896_s14 }
  0x24   :  { %6883 = vrot.lane.b32.xlu1 %v8241_v5, %s14904_s13  ;;  %6878 = vrot.lane.b32.xlu0 %v8241_v5, %s14896_s14 }
  0x28   :  { %6893 = vrot.lane.b32.xlu1 %v8228_v3, %s8130_s19  ;;  %6888 = vrot.lane.b32.xlu0 %v8228_v3, %s14930_s20 }
  0x2c   :  { %6903 = vrot.lane.b32.xlu1 %v8241_v5, %s14930_s20  ;;  %6898 = vrot.lane.b32.xlu0 %v8285_v8, %s14995_s26 }
  0x30   :  { %6913 = vrot.lane.b32.xlu1 %v8228_v3, %s14928_s21  ;;  %6908 = vrot.lane.b32.xlu0 %v8241_v5, %s8130_s19 }
  0x34   :  { %6923 = vrot.lane.b32.xlu1 %v8285_v8, %s14932_s25  ;;  %6918 = vrot.lane.b32.xlu0 %v8228_v3, %s8133_s22 }
  0x38   :  { %6933 = vrot.lane.b32.xlu1 %v8241_v5, %s14928_s21  ;;  %6928 = vrot.lane.b32.xlu0 %v8285_v8, %s14992_s27 }
  0x3c   :  { %6943 = vrot.lane.b32.xlu1 %v8228_v3, %s14997_s23  ;;  %6938 = vrot.lane.b32.xlu0 %v8241_v5, %s8133_s22 }
  0x40   :  { %6953 = vrot.lane.b32.xlu1 %v8285_v8, %s14902_s29  ;;  %6948 = vrot.lane.b32.xlu0 %v8228_v3, %s14993_s24  ;;  %s15174_s29 = smov 94  }
  0x44   :  { %6963 = vrot.lane.b32.xlu1 %v8241_v5, %s14997_s23  ;;  %6958 = vrot.lane.b32.xlu0 %v8285_v8, %s14906_s28  ;;  %s15172_s28 = smov 124  }
  0x48   :  { %6973 = vrot.lane.b32.xlu1 %v8228_v3, %s14964_s15  ;;  %6968 = vrot.lane.b32.xlu0 %v8241_v5, %s14993_s24 }
  0x4c   :  { %6983 = vrot.lane.b32.xlu1 %v8285_v8, %s14898_s12  ;;  %6978 = vrot.lane.b32.xlu0 %v8228_v3, %s14912_s16  ;;  %s15177_s12 = smov 92  }
  0x50   :  { %6993 = vrot.lane.b32.xlu1 %v8241_v5, %s14964_s15  ;;  %6988 = vrot.lane.b32.xlu0 %v8285_v8, %s14900_s30  ;;  %s15175_s30 = smov 95  }
  0x54   :  { %7003 = vrot.lane.b32.xlu1 %v8228_v3, %s14910_s17  ;;  %6998 = vrot.lane.b32.xlu0 %v8241_v5, %s14912_s16 }
  0x58   :  { %7013 = vrot.lane.b32.xlu1 %v8285_v8, %s14896_s14  ;;  %7008 = vrot.lane.b32.xlu0 %v8228_v3, %s14908_s18 }
  0x5c   :  { %7023 = vrot.lane.b32.xlu1 %v8241_v5, %s14910_s17  ;;  %7018 = vrot.lane.b32.xlu0 %v8285_v8, %s14904_s13  ;;  %s15178_s13 = smov 93  }
  0x60   :  { %7033 = vrot.lane.b32.xlu1 %v8285_v8, %s14930_s20  ;;  %7028 = vrot.lane.b32.xlu0 %v8241_v5, %s14908_s18 }
  0x64   :  { %7043 = vrot.lane.b32.xlu1 %v8285_v8, %s14928_s21  ;;  %7038 = vrot.lane.b32.xlu0 %v8285_v8, %s8130_s19 }
  0x68   :  { %7053 = vrot.lane.b32.xlu1 %v8285_v8, %s14997_s23  ;;  %7048 = vrot.lane.b32.xlu0 %v8285_v8, %s8133_s22 }
  0x6c   :  { %7063 = vrot.lane.b32.xlu1 %v8366_v13, %s14995_s26  ;;  %7058 = vrot.lane.b32.xlu0 %v8285_v8, %s14993_s24 }
  0x70   :  { %7073 = vrot.lane.b32.xlu1 %v8285_v8, %s14912_s16  ;;  %7068 = vrot.lane.b32.xlu0 %v8285_v8, %s14964_s15  ;;  %s15185_s16 = smov 30  }
  0x74   :  { %7083 = vrot.lane.b32.xlu1 %v8366_v13, %s14992_s27  ;;  %7078 = vrot.lane.b32.xlu0 %v8366_v13, %s14932_s25 }
  0x76   :  { %v8387_v16 = vpop.permute.xlu1 %6808  ;;  %v8389_v17 = vpop.permute.xlu0 %6798 }
  0x77   :  { %v6811_v18 = vunpack.i.h.bf16 %v8387_v16  ;;  %v6810_v19 = vunpack.i.l.bf16 %v8387_v16  ;;  %v6801_v20 = vunpack.i.h.bf16 %v8389_v17  ;;  %v6800_v21 = vunpack.i.l.bf16 %v8389_v17 }
  0x78   :  { %7093 = vrot.lane.b32.xlu1 %v8285_v8, %s14908_s18  ;;  %7088 = vrot.lane.b32.xlu0 %v8285_v8, %s14910_s17  ;;  %s15187_s17 = smov 29   ;;  %s15188_s18 = smov 28  }
  0x79   :  { %v104_v22 = vsel %vm90_vm1, %v6800_v21, %v6801_v20  ;;  %v153_v29 = vsel %vm15149_vm2, %v6810_v19, %v6811_v18 }
  0x7a   :  { %v8405_v23 = vpop.permute.xlu1 %6813  ;;  %v8407_v24 = vpop.permute.xlu0 %6803  ;;  %v8410_v25 = vpack.c.bf16 %v104_v22, %v8214_v0 }
  0x7b   :  { %v6816_v26 = vunpack.i.h.bf16 %v8405_v23  ;;  %v6815_v27 = vunpack.i.l.bf16 %v8405_v23  ;;  %v14925_v28 = vunpack.i.l.bf16 %v8407_v24 }
  0x7c   :  { %1231 = vmatprep.subr.bf16.mxu0 %v8410_v25  ;;  %7103 = vrot.lane.b32.xlu1 %v8366_v13, %s15171_s1 }
  0x7d   :  { %7098 = vrot.lane.b32.xlu0 %v8366_v13, %s15172_s28  ;;  %v105_v30 = vsel %vm90_vm1, %v14925_v28, %v6800_v21  ;;  %v202_v31 = vsel %vm188_vm3, %v6815_v27, %v6816_v26 }
  0x7e   :  { %v8433_v32 = vpop.permute.xlu1 %6823  ;;  %v8435_v33 = vpop.permute.xlu0 %6818  ;;  %v8438_v34 = vpack.c.bf16 %v105_v30, %v8224_v2  ;;  %v8440_v35 = vpack.c.bf16 %v202_v31, %v153_v29 }
  0x7f   :  { %v14923_v36 = vunpack.i.l.bf16 %v8433_v32  ;;  %v14924_v37 = vunpack.i.l.bf16 %v8435_v33 }
  0x80   :  { %15173 = vst [vmem:[#allocation2_spill] sm:$0xff] %v8438_v34  ;;  %7113 = vrot.lane.b32.xlu1 %v8366_v13, %s15174_s29  ;;  %1232 = vmatpush1.bf16.msra.mxu0 %v8438_v34 }
  0x81   :  { %7108 = vrot.lane.b32.xlu0 %v8366_v13, %s15175_s30  ;;  %1233 = vmatprep.subr.bf16.mxu0 %v8440_v35  ;;  %v154_v38 = vsel %vm15149_vm2, %v14924_v37, %v6810_v19  ;;  %v203_v39 = vsel %vm188_vm3, %v14923_v36, %v6815_v27 }
  0x82   :  { %v8458_v40 = vpop.permute.xlu1 %6833  ;;  %v8460_v41 = vpop.permute.xlu0 %6828  ;;  %v8462_v42 = vpack.c.bf16 %v203_v39, %v154_v38 }
  0x83   :  { %v6836_v43 = vunpack.i.h.bf16 %v8458_v40  ;;  %v6835_v44 = vunpack.i.l.bf16 %v8458_v40  ;;  %v6831_v45 = vunpack.i.h.bf16 %v8460_v41  ;;  %v6830_v46 = vunpack.i.l.bf16 %v8460_v41 }
  0x84   :  { %15176 = vst [vmem:[#allocation3_spill] sm:$0xff] %v8462_v42  ;;  %7123 = vrot.lane.b32.xlu1 %v8366_v13, %s15177_s12  ;;  %1234 = vmatpush1.bf16.msra.mxu0 %v8462_v42 }
  0x85   :  { %7118 = vrot.lane.b32.xlu0 %v8366_v13, %s15178_s13  ;;  %v8479_v47 = vsel %vm14946_vm4, %v6830_v46, %v6831_v45  ;;  %v300_v48 = vsel %vm14944_vm5, %v6835_v44, %v6836_v43 }
  0x86   :  { %v8485_v49 = vpop.permute.xlu1 %6843  ;;  %v8487_v50 = vpop.permute.xlu0 %6838  ;;  %v1022_v51 = vpack.c.bf16 %v300_v48, %v8479_v47 }
  0x87   :  { %v14922_v54 = vunpack.i.l.bf16 %v8485_v49  ;;  %v14919_v55 = vunpack.i.l.bf16 %v8487_v50 }
  0x88   :  { %7133 = vrot.lane.b32.xlu1 %v8366_v13, %s8130_s19  ;;  %1235 = vmatprep.subr.bf16.mxu0 %v1022_v51 }
  0x89   :  { %7128 = vrot.lane.b32.xlu0 %v8366_v13, %s14930_s20  ;;  %v8508_v57 = vsel %vm14946_vm4, %v14919_v55, %v6830_v46  ;;  %v301_v58 = vsel %vm14944_vm5, %v14922_v54, %v6835_v44 }
  0x8a   :  { %15179 = vst [vmem:[#allocation4_spill] sm:$0xff] %v8508_v57  ;;  %v8514_v59 = vpop.permute.xlu1 %6853  ;;  %v8516_v60 = vpop.permute.xlu0 %6848  ;;  %v1021_v61 = vpack.c.bf16 %v301_v58, %v8508_v57 }
  0x8b   :  { %v14952_v62 = vunpack.i.h.bf16 %v8514_v59  ;;  %v6855_v63 = vunpack.i.l.bf16 %v8514_v59  ;;  %v6851_v0 = vunpack.i.h.bf16 %v8516_v60  ;;  %v6850_v2 = vunpack.i.l.bf16 %v8516_v60 }
  0x8c   :  { %7143 = vrot.lane.b32.xlu1 %v8366_v13, %s14928_s21  ;;  %1236 = vmatpush1.bf16.msra.mxu0 %v1021_v61 }
  0x8d   :  { %7138 = vrot.lane.b32.xlu0 %v8502_v56, %s14995_s26  ;;  %v349_v3 = vsel %vm14956_vm6, %v6850_v2, %v6851_v0  ;;  %v398_v5 = vsel %vm14957_vm7, %v6855_v63, %v14952_v62 }
  0x8e   :  { %v8537_v6 = vpop.permute.xlu1 %6863  ;;  %v8539_v7 = vpop.permute.xlu0 %6858  ;;  %v1038_v8 = vpack.c.bf16 %v398_v5, %v349_v3 }
  0x8f   :  { %15180 = vst [vmem:[#allocation5_spill] sm:$0xff] %v8537_v6  ;;  %15181 = vst [vmem:[#allocation6_spill] sm:$0xff] %v8539_v7  ;;  %v14918_v9 = vunpack.i.l.bf16 %v8537_v6  ;;  %v14917_v10 = vunpack.i.l.bf16 %v8539_v7 }
  0x90   :  { %7153 = vrot.lane.b32.xlu1 %v8502_v56, %s14932_s25  ;;  %1237 = vmatprep.subr.bf16.mxu0 %v1038_v8  ;;  %s15190_s25 = smov 126  }
  0x91   :  { %7148 = vrot.lane.b32.xlu0 %v8366_v13, %s8133_s22  ;;  %v350_v19 = vsel %vm14956_vm6, %v14917_v10, %v6850_v2  ;;  %v399_v21 = vsel %vm14957_vm7, %v14918_v9, %v6855_v63 }
  0x92   :  { %v8555_v22 = vpop.permute.xlu1 %6873  ;;  %v8557_v27 = vpop.permute.xlu0 %6868  ;;  %v1037_v29 = vpack.c.bf16 %v399_v21, %v350_v19 }
  0x93   :  { %v14942_v30 = vunpack.i.h.bf16 %v8555_v22  ;;  %v6875_v31 = vunpack.i.l.bf16 %v8555_v22  ;;  %v14951_v38 = vunpack.i.h.bf16 %v8557_v27  ;;  %v6870_v39 = vunpack.i.l.bf16 %v8557_v27 }
  0x94   :  { %7163 = vrot.lane.b32.xlu1 %v8366_v13, %s14997_s23  ;;  %1238 = vmatpush1.bf16.msra.mxu0 %v1037_v29  ;;  %v15195_v34 = vunpack.i.h.bf16 %v8555_v22  ;;  %v8939_v22 = vld [vmem:[%s14884_s0 + $0x60] sm:$0xff] }
  0x95   :  { %7158 = vrot.lane.b32.xlu0 %v8502_v56, %s14992_s27  ;;  %v447_v44 = vsel %vm433_vm8, %v6870_v39, %v14951_v38  ;;  %v496_v46 = vsel %vm482_vm9, %v6875_v31, %v14942_v30 }
  0x96   :  { %v8577_v48 = vpop.permute.xlu1 %6883  ;;  %v8579_v51 = vpop.permute.xlu0 %6878  ;;  %v1054_v52 = vpack.c.bf16 %v496_v46, %v447_v44 }
  0x97   :  { %15182 = vst [vmem:[#allocation7_spill] sm:$0xff] %v8577_v48  ;;  %15183 = vst [vmem:[#allocation8_spill] sm:$0xff] %v8579_v51  ;;  %v14916_v53 = vunpack.i.l.bf16 %v8577_v48  ;;  %v14915_v58 = vunpack.i.l.bf16 %v8579_v51 }
  0x98   :  { %7173 = vrot.lane.b32.xlu1 %v8502_v56, %s15172_s28  ;;  %1239 = vmatprep.subr.bf16.mxu0 %v1054_v52 }
  0x99   :  { %7168 = vrot.lane.b32.xlu0 %v8366_v13, %s14993_s24  ;;  %v448_v61 = vsel %vm433_vm8, %v14915_v58, %v6870_v39  ;;  %v497_v63 = vsel %vm482_vm9, %v14916_v53, %v6875_v31  ;;  %v6806_v39 = vunpack.i.h.bf16 %v8407_v24 }
  0x9a   :  { %v8595_v2 = vpop.permute.xlu1 %6893  ;;  %v8597_v3 = vpop.permute.xlu0 %6888  ;;  %v1053_v5 = vpack.c.bf16 %v497_v63, %v448_v61 }
  0x9b   :  { %v14941_v8 = vunpack.i.h.bf16 %v8595_v2  ;;  %v6895_v19 = vunpack.i.l.bf16 %v8595_v2  ;;  %v14940_v21 = vunpack.i.h.bf16 %v8597_v3  ;;  %v6890_v29 = vunpack.i.l.bf16 %v8597_v3 }
  0x9c   :  { %7183 = vrot.lane.b32.xlu1 %v8366_v13, %s14964_s15  ;;  %1240 = vmatpush1.bf16.msra.mxu0 %v1053_v5  ;;  %v103_v5 = vsel %vm90_vm1, %v6801_v20, %v6806_v39 }
  0x9d   :  { %7178 = vrot.lane.b32.xlu0 %v8502_v56, %s15171_s1  ;;  %v545_v31 = vsel %vm14977_vm10, %v6890_v29, %v14940_v21  ;;  %v594_v44 = vsel %vm580_vm11, %v6895_v19, %v14941_v8  ;;  %v8647_v10 = vpack.c.bf16 %v103_v5, %v8219_v1 }
  0x9e   :  { %v8618_v46 = vpop.permute.xlu1 %6903  ;;  %v8620_v52 = vpop.permute.xlu0 %6898  ;;  %v1070_v61 = vpack.c.bf16 %v594_v44, %v545_v31 }
  0x9f   :  { %15184 = vst [vmem:[#allocation9_spill] sm:$0xff] %v8618_v46  ;;  %v14926_v63 = vunpack.i.l.bf16 %v8620_v52  ;;  %v14920_v14 = vunpack.i.l.bf16 %v8618_v46 }
  0xa0   :  { %7193 = vrot.lane.b32.xlu1 %v8502_v56, %s15175_s30  ;;  %1241 = vmatprep.subr.bf16.mxu0 %v1070_v61 }
  0xa1   :  { %7188 = vrot.lane.b32.xlu0 %v8366_v13, %s15185_s16  ;;  %v102_v31 = vsel %vm90_vm1, %v6806_v39, %v14926_v63 }
  0xa2   :  { %v8636_v44 = vpop.permute.xlu1 %6913  ;;  %v8638_v58 = vpop.permute.xlu0 %6908  ;;  %v8641_v61 = vpack.c.bf16 %v102_v31, %v8233_v4  ;;  %v546_v4 = vsel %vm14977_vm10, %v14920_v14, %v6890_v29  ;;  %v6826_v14 = vunpack.i.h.bf16 %v8433_v32 }
  0xa3   :  { %15186 = vst [vmem:[#allocation10_spill] sm:$0xff] %v8638_v58  ;;  %v14927_v17 = vunpack.i.h.bf16 %v8636_v44  ;;  %v6915_v20 = vunpack.i.l.bf16 %v8636_v44  ;;  %v14921_v53 = vunpack.i.l.bf16 %v8638_v58 }
  0xa4   :  { %7203 = vrot.lane.b32.xlu1 %v8366_v13, %s15187_s17  ;;  %1272 = vmatprep.subr.bf16.mxu1 %v8641_v61 }
  0xa5   :  { %7198 = vrot.lane.b32.xlu0 %v8502_v56, %s15174_s29  ;;  %1273 = vmatpush1.bf16.msra.mxu1 %v8647_v10  ;;  %v595_v1 = vsel %vm580_vm11, %v14921_v53, %v6895_v19  ;;  %v643_v29 = vsel %vm629_vm12, %v6915_v20, %v14927_v17  ;;  %v6821_v19 = vunpack.i.h.bf16 %v8435_v33 }
  0xa6   :  { %v8664_v39 = vpop.permute.xlu1 %6923  ;;  %v8666_v5 = vpop.permute.xlu0 %6918  ;;  %v1069_v31 = vpack.c.bf16 %v595_v1, %v546_v4 }
  0xa7   :  { %v14939_v9 = vunpack.i.h.bf16 %v8666_v5  ;;  %v6920_v55 = vunpack.i.l.bf16 %v8666_v5  ;;  %v14937_v4 = vunpack.i.l.bf16 %v8664_v39 }
  0xa8   :  { %7213 = vrot.lane.b32.xlu1 %v8502_v56, %s15178_s13  ;;  %1242 = vmatpush1.bf16.msra.mxu0 %v1069_v31  ;;  %v201_v31 = vsel %vm188_vm3, %v6816_v26, %v6826_v14 }
  0xa9   :  { %7208 = vrot.lane.b32.xlu0 %v8366_v13, %s15188_s18  ;;  %v692_v1 = vsel %vm678_vm13, %v6920_v55, %v14939_v9  ;;  %v152_v13 = vsel %vm15149_vm2, %v6811_v18, %v6821_v19 }
  0xaa   :  { %v8686_v53 = vpop.permute.xlu1 %6933  ;;  %v8688_v54 = vpop.permute.xlu0 %6928  ;;  %v1086_v36 = vpack.c.bf16 %v692_v1, %v643_v29  ;;  %v8721_v17 = vpack.c.bf16 %v201_v31, %v152_v13  ;;  %v6367_v13 = vld [vmem:[%s14884_s0 + $0x50] sm:$0xff]  ;;  %v6368_v31 = vld [vmem:[%s14884_s0 + $0x58] sm:$0xff] }
  0xab   :  { %v14934_v37 = vunpack.i.l.bf16 %v8688_v54  ;;  %v14935_v28 = vunpack.i.l.bf16 %v8686_v53 }
  0xac   :  { %7223 = vrot.lane.b32.xlu1 %v8502_v56, %s14930_s20  ;;  %1243 = vmatprep.subr.bf16.mxu0 %v1086_v36  ;;  %v151_v36 = vsel %vm15149_vm2, %v6821_v19, %v14937_v4  ;;  %v6841_v4 = vunpack.i.h.bf16 %v8487_v50  ;;  %s15199_s20 = smov 62  }
  0xad   :  { %7218 = vrot.lane.b32.xlu0 %v8502_v56, %s15177_s12  ;;  %v200_v16 = vsel %vm188_vm3, %v6826_v14, %v14934_v37  ;;  %v644_v14 = vsel %vm629_vm12, %v14935_v28, %v6915_v20 }
  0xae   :  { %v8712_v18 = vpop.permute.xlu1 %6943  ;;  %v8714_v23 = vpop.permute.xlu0 %6938  ;;  %v8716_v26 = vpack.c.bf16 %v200_v16, %v151_v36 }
  0xaf   :  { %15189 = vst [vmem:[#allocation11_spill] sm:$0xff] %v8714_v23  ;;  %v14938_v29 = vunpack.i.h.bf16 %v8712_v18  ;;  %v6945_v1 = vunpack.i.l.bf16 %v8712_v18  ;;  %v14936_v63 = vunpack.i.l.bf16 %v8714_v23 }
  0xb0   :  { %7233 = vrot.lane.b32.xlu1 %v8502_v56, %s14928_s21  ;;  %1274 = vmatprep.subr.bf16.mxu1 %v8716_v26  ;;  %s15212_s21 = smov 31  }
  0xb1   :  { %7228 = vrot.lane.b32.xlu0 %v8502_v56, %s8130_s19  ;;  %1275 = vmatpush1.bf16.msra.mxu1 %v8721_v17  ;;  %v693_v19 = vsel %vm678_vm13, %v14936_v63, %v6920_v55  ;;  %v741_v55 = vsel %vm727_vm14, %v6945_v1, %v14938_v29  ;;  %v6846_v63 = vunpack.i.h.bf16 %v8485_v49 }
  0xb2   :  { %v8744_v36 = vpop.permute.xlu1 %6953  ;;  %v8746_v16 = vpop.permute.xlu0 %6948  ;;  %v1085_v37 = vpack.c.bf16 %v693_v19, %v644_v14  ;;  %v8759_v14 = vpack.i.bf16 %v6368_v31, %v6367_v13 }
  0xb3   :  { %v14943_v20 = vunpack.i.h.bf16 %v8746_v16  ;;  %v6950_v28 = vunpack.i.l.bf16 %v8746_v16  ;;  %v14947_v19 = vunpack.i.l.bf16 %v8744_v36  ;;  %v299_v13 = vsel %vm14944_vm5, %v6836_v43, %v6846_v63 }
  0xb4   :  { %7243 = vrot.lane.b32.xlu1 %v8502_v56, %s14997_s23  ;;  %1244 = vmatpush1.bf16.msra.mxu0 %v1085_v37  ;;  %v8779_v37 = vsel %vm14946_vm4, %v6831_v45, %v6841_v4 }
  0xb5   :  { %7238 = vrot.lane.b32.xlu0 %v8502_v56, %s8133_s22  ;;  %v790_v29 = vsel %vm776_vm15, %v6950_v28, %v14943_v20 }
  0xb6   :  { %v8768_v9 = vpop.permute.xlu1 %6963  ;;  %v8770_v21 = vpop.permute.xlu0 %6958  ;;  %v1102_v8 = vpack.c.bf16 %v790_v29, %v741_v55 }
  0xb7   :  { %v14945_v30 = vunpack.i.l.bf16 %v8770_v21  ;;  %v14948_v31 = vunpack.i.l.bf16 %v8768_v9 }
  0xb8   :  { %7253 = vrot.lane.b32.xlu1 %v8759_v14, %s14995_s26  ;;  %1245 = vmatprep.subr.bf16.mxu0 %v1102_v8  ;;  %v8792_v8 = vsel %vm14946_vm4, %v6841_v4, %v14947_v19  ;;  %v1023_v4 = vpack.c.bf16 %v299_v13, %v8779_v37  ;;  %vm15048_vm4 = vcmp.lt.s32.totalorder %v8381_v15, 30 }
  0xb9   :  { %7248 = vrot.lane.b32.xlu0 %v8502_v56, %s14993_s24  ;;  %v298_v41 = vsel %vm14944_vm5, %v6846_v63, %v14945_v30  ;;  %vm14988_vm5 = vcmp.lt.s32.totalorder %v8381_v15, 31  ;;  %v742_v63 = vsel %vm727_vm14, %v14948_v31, %v6945_v1  ;;  %v6866_v31 = vunpack.i.h.bf16 %v8537_v6 }
  0xba   :  { %v8798_v40 = vpop.permute.xlu1 %6973  ;;  %v8800_v45 = vpop.permute.xlu0 %6968  ;;  %v1024_v43 = vpack.c.bf16 %v298_v41, %v8792_v8 }
  0xbb   :  { %v14950_v29 = vunpack.i.h.bf16 %v8798_v40  ;;  %v6975_v55 = vunpack.i.l.bf16 %v8798_v40  ;;  %v14949_v20 = vunpack.i.l.bf16 %v8800_v45 }
  0xbc   :  { %7263 = vrot.lane.b32.xlu1 %v8502_v56, %s15185_s16  ;;  %1276 = vmatprep.subr.bf16.mxu1 %v1024_v43 }
  0xbd   :  { %7258 = vrot.lane.b32.xlu0 %v8502_v56, %s14964_s15  ;;  %1277 = vmatpush1.bf16.msra.mxu1 %v1023_v4  ;;  %v791_v13 = vsel %vm776_vm15, %v14949_v20, %v6950_v28  ;;  %v839_v1 = vsel %vm14988_vm5, %v6975_v55, %v14950_v29  ;;  %v6861_v28 = vunpack.i.h.bf16 %v8539_v7  ;;  %s15197_s15 = smov 64  }
  0xbe   :  { %v8820_v41 = vpop.permute.xlu1 %6983  ;;  %v8822_v30 = vpop.permute.xlu0 %6978  ;;  %v1101_v43 = vpack.c.bf16 %v791_v13, %v742_v63  ;;  %v15191_v63 = vunpack.i.h.bf16 %v8514_v59 }
  0xbf   :  { %v14953_v19 = vunpack.i.h.bf16 %v8822_v30  ;;  %v6980_v4 = vunpack.i.l.bf16 %v8822_v30 }
  0xc0   :  { %7273 = vrot.lane.b32.xlu1 %v8759_v14, %s14992_s27  ;;  %1246 = vmatpush1.bf16.msra.mxu0 %v1101_v43  ;;  %v348_v43 = vsel %vm14956_vm6, %v6851_v0, %v6861_v28 }
  0xc1   :  { %7268 = vrot.lane.b32.xlu0 %v8759_v14, %s15190_s25  ;;  %v888_v13 = vsel %vm15048_vm4, %v6980_v4, %v14953_v19  ;;  %v397_v19 = vsel %vm14957_vm7, %v15191_v63, %v6866_v31 }
  0xc2   :  { %v8842_v20 = vpop.permute.xlu1 %6993  ;;  %v8844_v29 = vpop.permute.xlu0 %6988  ;;  %v1118_v38 = vpack.c.bf16 %v888_v13, %v839_v1  ;;  %v15192_v1 = vunpack.i.l.bf16 %v8820_v41  ;;  %v1039_v42 = vpack.c.bf16 %v397_v19, %v348_v43 }
  0xc3   :  { %v14959_v62 = vunpack.i.l.bf16 %v8844_v29 }
  0xc4   :  { %7283 = vrot.lane.b32.xlu1 %v8502_v56, %s15188_s18  ;;  %1247 = vmatprep.subr.bf16.mxu0 %v1118_v38  ;;  %v347_v38 = vsel %vm14956_vm6, %v6861_v28, %v15192_v1  ;;  %vm14989_vm6 = vcmp.lt.s32.totalorder %v8381_v15, 29 }
  0xc5   :  { %7278 = vrot.lane.b32.xlu0 %v8502_v56, %s15187_s17  ;;  %v396_v60 = vsel %vm14957_vm7, %v6866_v31, %v14959_v62  ;;  %v15193_v31 = vunpack.i.l.bf16 %v8842_v20  ;;  %vm14986_vm7 = vcmp.lt.s32.totalorder %v8381_v15, 28 }
  0xc6   :  { %v8868_v0 = vpop.permute.xlu1 %7003  ;;  %v8870_v59 = vpop.permute.xlu0 %6998  ;;  %v1040_v63 = vpack.c.bf16 %v396_v60, %v347_v38 }
  0xc7   :  { %v14960_v13 = vunpack.i.h.bf16 %v8868_v0  ;;  %v7005_v57 = vunpack.i.l.bf16 %v8868_v0  ;;  %v14958_v56 = vunpack.i.l.bf16 %v8870_v59  ;;  %v840_v28 = vsel %vm14988_vm5, %v15193_v31, %v6975_v55 }
  0xc8   :  { %7293 = vrot.lane.b32.xlu1 %v8759_v14, %s15171_s1  ;;  %1278 = vmatprep.subr.bf16.mxu1 %v1040_v63  ;;  %v6886_v63 = vunpack.i.h.bf16 %v8577_v48  ;;  %v14970_v48 = vmov 0  }
  0xc9   :  { %7288 = vrot.lane.b32.xlu0 %v8759_v14, %s15172_s28  ;;  %1279 = vmatpush1.bf16.msra.mxu1 %v1039_v42  ;;  %v889_v19 = vsel %vm15048_vm4, %v14958_v56, %v6980_v4  ;;  %v937_v55 = vsel %vm14989_vm6, %v7005_v57, %v14960_v13  ;;  %v6881_v4 = vunpack.i.h.bf16 %v8579_v51 }
  0xca   :  { %v8888_v43 = vpop.permute.xlu1 %7013  ;;  %v8890_v1 = vpop.permute.xlu0 %7008  ;;  %v1117_v38 = vpack.c.bf16 %v889_v19, %v840_v28  ;;  %7477 = vset.pattern.permute.xlu0 %v14970_v48  ;;  %7868 = vset.pattern.permute.xlu1 %v14970_v48  ;;  %v15201_v48 = vunpack.i.h.bf16 %v8595_v2  ;;  %v15203_v2 = vunpack.i.h.bf16 %v8666_v5 }
  0xcb   :  { %v14962_v60 = vunpack.i.h.bf16 %v8890_v1  ;;  %v7010_v42 = vunpack.i.l.bf16 %v8890_v1 }
  0xcc   :  { %7303 = vrot.lane.b32.xlu1 %v8759_v14, %s15174_s29  ;;  %1248 = vmatpush1.bf16.msra.mxu0 %v1117_v38  ;;  %v15194_v38 = vunpack.i.h.bf16 %v8557_v27 }
  0xcd   :  { %7298 = vrot.lane.b32.xlu0 %v8759_v14, %s15175_s30  ;;  %v986_v28 = vsel %vm14986_vm7, %v7010_v42, %v14962_v60  ;;  %v495_v60 = vsel %vm482_vm9, %v15195_v34, %v6886_v63  ;;  %v8944_v34 = vld [vmem:[%s14884_s0 + $0x68] sm:$0xff] }
  0xce   :  { %v8910_v19 = vpop.permute.xlu1 %7023  ;;  %v8912_v56 = vpop.permute.xlu0 %7018  ;;  %v1134_v62 = vpack.c.bf16 %v986_v28, %v937_v55  ;;  %v446_v31 = vsel %vm433_vm8, %v15194_v38, %v6881_v4  ;;  %v15196_v55 = vunpack.i.l.bf16 %v8888_v43 }
  0xcf   :  { %v14966_v13 = vunpack.i.l.bf16 %v8912_v56  ;;  %v1055_v51 = vpack.c.bf16 %v495_v60, %v446_v31 }
  0xd0   :  { %7313 = vrot.lane.b32.xlu1 %v8759_v14, %s15177_s12  ;;  %1249 = vmatprep.subr.bf16.mxu0 %v1134_v62  ;;  %v445_v62 = vsel %vm433_vm8, %v6881_v4, %v15196_v55 }
  0xd1   :  { %7308 = vrot.lane.b32.xlu0 %v8759_v14, %s15178_s13  ;;  %v494_v27 = vsel %vm482_vm9, %v6886_v63, %v14966_v13  ;;  %v8955_v63 = vpack.i.bf16 %v8944_v34, %v8939_v22  ;;  %v6911_v13 = vunpack.i.h.bf16 %v8638_v58 }
  0xd2   :  { %v8946_v28 = vpop.permute.xlu1 %7033  ;;  %v8948_v38 = vpop.permute.xlu0 %7028  ;;  %v1056_v4 = vpack.c.bf16 %v494_v27, %v445_v62  ;;  %v15198_v62 = vunpack.i.l.bf16 %v8910_v19 }
  0xd3   :  { %v14972_v55 = vunpack.i.l.bf16 %v8948_v38 }
  0xd4   :  { %7323 = vrot.lane.b32.xlu1 %v8759_v14, %s8130_s19  ;;  %1280 = vmatprep.subr.bf16.mxu1 %v1056_v4  ;;  %v938_v60 = vsel %vm14989_vm6, %v15198_v62, %v7005_v57  ;;  %v6941_v57 = vunpack.i.h.bf16 %v8714_v23  ;;  %v15200_v62 = vunpack.i.l.bf16 %v8946_v28  ;;  %v6936_v23 = vunpack.i.h.bf16 %v8686_v53 }
  0xd5   :  { %7318 = vrot.lane.b32.xlu0 %v8759_v14, %s15197_s15  ;;  %1281 = vmatpush1.bf16.msra.mxu1 %v1055_v51  ;;  %v987_v31 = vsel %vm14986_vm7, %v14972_v55, %v7010_v42  ;;  %v6906_v51 = vunpack.i.h.bf16 %v8618_v46 }
  0xd6   :  { %v8969_v27 = vpop.permute.xlu1 %7043  ;;  %v8971_v4 = vpop.permute.xlu0 %7038  ;;  %v1133_v58 = vpack.c.bf16 %v987_v31, %v938_v60 }
  0xd7   :  { %v14976_v7 = vunpack.i.l.bf16 %v8971_v4  ;;  %v543_v60 = vsel %vm14977_vm10, %v6906_v51, %v15200_v62  ;;  %v15202_v62 = vunpack.i.h.bf16 %v8597_v3  ;;  %v6971_v3 = vunpack.i.h.bf16 %v8800_v45 }
  0xd8   :  { %7333 = vrot.lane.b32.xlu1 %v8759_v14, %s15199_s20  ;;  %1250 = vmatpush1.bf16.msra.mxu0 %v1133_v58  ;;  %v593_v58 = vsel %vm580_vm11, %v15201_v48, %v6911_v13 }
  0xd9   :  { %7328 = vrot.lane.b32.xlu0 %v8955_v63, %s14995_s26  ;;  %1251 = vmatprep.subr.bf16.mxu0 %v8647_v10  ;;  %v592_v31 = vsel %vm580_vm11, %v6911_v13, %v14976_v7  ;;  %v544_v6 = vsel %vm14977_vm10, %v15202_v62, %v6906_v51  ;;  %v6901_v7 = vunpack.i.h.bf16 %v8620_v52  ;;  %v691_v13 = vsel %vm678_vm13, %v15203_v2, %v6941_v57  ;;  %s15235_s26 = smov 32  }
  0xda   :  { %v8996_v55 = vpop.permute.xlu1 %7053  ;;  %v8998_v42 = vpop.permute.xlu0 %7048  ;;  %v1072_v10 = vpack.c.bf16 %v592_v31, %v543_v60  ;;  %v1071_v48 = vpack.c.bf16 %v593_v58, %v544_v6  ;;  %v1149_v60 = vpack.c.bf16 %v8479_v47, %v8479_v47  ;;  %v15204_v31 = vunpack.i.l.bf16 %v8969_v27 }
  0xdb   :  { %v14985_v46 = vunpack.i.l.bf16 %v8998_v42  ;;  %v14980_v51 = vunpack.i.l.bf16 %v8996_v55  ;;  %vm15142_vm10 = vcmask 1043456   ;;  %v6966_v62 = vunpack.i.h.bf16 %v8768_v9 }
  0xdc   :  { %7343 = vrot.lane.b32.xlu1 %v8955_v63, %s15190_s25  ;;  %1252 = vmatpush1.bf16.msra.mxu0 %v8410_v25  ;;  %v641_v25 = vsel %vm629_vm12, %v6936_v23, %v15204_v31 }
  0xdd   :  { %7338 = vrot.lane.b32.xlu0 %v8759_v14, %s8133_s22  ;;  %1282 = vmatprep.subr.bf16.mxu1 %v1072_v10  ;;  %v690_v6 = vsel %vm678_vm13, %v6941_v57, %v14985_v46  ;;  %v9035_v10 = vcombine.low %v8356_v11, %v8356_v11  ;;  %v15205_v57 = vunpack.i.h.bf16 %v8636_v44  ;;  %v1150_v11 = vpack.c.bf16 %v8779_v37, %v8779_v37 }
  0xde   :  { %1253 = vmatprep.subr.bf16.mxu0 %v8721_v17  ;;  %1283 = vmatpush1.bf16.msra.mxu1 %v1071_v48  ;;  %v9029_v47 = vpop.permute.xlu1 %7063  ;;  %v9031_v5 = vpop.permute.xlu0 %7058  ;;  %v1088_v58 = vpack.c.bf16 %v690_v6, %v641_v25  ;;  %v15206_v48 = vunpack.i.l.bf16 %v8620_v52  ;;  %v1184_v44 = vsel %vm15142_vm10, %v1149_v60, 0  ;;  %v739_v52 = vsel %vm727_vm14, %v6966_v62, %v14980_v51 }
  0xdf   :  { %v7065_v2 = vunpack.i.l.bf16 %v9029_v47  ;;  %v14978_v31 = vunpack.i.l.bf16 %v9031_v5  ;;  %v642_v17 = vsel %vm629_vm12, %v15205_v57, %v6936_v23  ;;  %v15207_v37 = vunpack.i.h.bf16 %v8746_v16 }
  0xe0   :  { %v101_v25 = vsel %vm90_vm1, %v15206_v48, %v6901_v7  ;;  %7353 = vrot.lane.b32.xlu1 %v8759_v14, %s14997_s23  ;;  %1254 = vmatpush1.bf16.msra.mxu0 %v8440_v35  ;;  %v1087_v6 = vpack.c.bf16 %v691_v13, %v642_v17  ;;  %v6926_v13 = vunpack.i.h.bf16 %v8664_v39  ;;  %v6996_v48 = vunpack.i.h.bf16 %v8842_v20 }
  0xe1   :  { %7348 = vrot.lane.b32.xlu0 %v8955_v63, %s14992_s27  ;;  %1284 = vmatprep.subr.bf16.mxu1 %v1088_v58  ;;  %v788_v23 = vsel %vm776_vm15, %v6971_v3, %v14978_v31  ;;  %v789_v35 = vsel %vm776_vm15, %v15207_v37, %v6971_v3  ;;  %v7001_v58 = vunpack.i.h.bf16 %v8870_v59  ;;  %v100_v16 = vsel %vm90_vm1, %v6901_v7, %v7065_v2  ;;  %v8107_v7 = vld [vmem:[%s14884_s0 + $0x28] sm:$0xff]  ;;  %s15270_s27 = smov 60  }
  0xe2   :  { %6375 = vmatprep.subr.msk.bf16.mxu0 %vm15142_vm10, %v1150_v11  ;;  %1285 = vmatpush1.bf16.msra.mxu1 %v1087_v6  ;;  %v9071_v60 = vpop.permute.xlu1 %7073  ;;  %v9073_v57 = vpop.permute.xlu0 %7068  ;;  %v1104_v17 = vpack.c.bf16 %v788_v23, %v739_v52  ;;  %v15208_v31 = vunpack.i.h.bf16 %v8712_v18  ;;  %v6931_v6 = vunpack.i.h.bf16 %v8688_v54  ;;  %v9092_v23 = vpack.c.bf16 %v100_v16, %v8107_v7 }
  0xe3   :  { %v14981_v3 = vunpack.i.l.bf16 %v9071_v60  ;;  %v14979_v37 = vunpack.i.l.bf16 %v9073_v57  ;;  %v15209_v16 = vunpack.i.h.bf16 %v8822_v30 }
  0xe4   :  { %v740_v11 = vsel %vm727_vm14, %v15208_v31, %v6966_v62  ;;  %7363 = vrot.lane.b32.xlu1 %v8955_v63, %s15172_s28  ;;  %1256 = vmatpush1.bf16.msra.mxu0 %v1184_v44 }
  0xe5   :  { %v1103_v52 = vpack.c.bf16 %v789_v35, %v740_v11  ;;  %7358 = vrot.lane.b32.xlu0 %v8759_v14, %s14993_s24  ;;  %1286 = vmatprep.subr.bf16.mxu1 %v1104_v17  ;;  %v837_v18 = vsel %vm14988_vm5, %v6996_v48, %v14979_v37  ;;  %v886_v44 = vsel %vm15048_vm4, %v7001_v58, %v14981_v3  ;;  %v8108_v35 = vld [vmem:[%s14884_s0 + $0x20] sm:$0xff]  ;;  %v15211_v3 = vunpack.i.l.bf16 %v8688_v54  ;;  %s15232_s24 = smov 127  }
  0xe6   :  { %1313 = vmatprep.subr.bf16.mxu0 %v9092_v23  ;;  %v9101_v62 = vpop.permute.xlu1 %7083  ;;  %v9103_v31 = vpop.permute.xlu0 %7078  ;;  %v993_v17 = vpack.c.bf16 %v101_v25, %v8108_v35  ;;  %v887_v11 = vsel %vm15048_vm4, %v15209_v16, %v7001_v58  ;;  %v1120_v30 = vpack.c.bf16 %v886_v44, %v837_v18  ;;  %v7031_v35 = vunpack.i.h.bf16 %v8948_v38 }
  0xe7   :  { %1287 = vmatpush1.bf16.msra.mxu1 %v1103_v52  ;;  %v15210_v52 = vunpack.i.l.bf16 %v8664_v39  ;;  %v14983_v37 = vunpack.i.l.bf16 %v9101_v62  ;;  %v14982_v51 = vunpack.i.l.bf16 %v9103_v31  ;;  %1264 = vmatmul.mubr.bf16.vlgmr.msra.gmra.mrb[0].mxu0 %v9035_v10  ;;  %v199_v25 = vsel %vm188_vm3, %v15211_v3, %v6931_v6 }
  0xe8   :  { %7373 = vrot.lane.b32.xlu1 %v8759_v14, %s15212_s21  ;;  %1314 = vmatpush1.bf16.msra.mxu0 %v993_v17  ;;  %v15213_v39 = vunpack.i.h.bf16 %v8798_v40  ;;  %v7026_v44 = vunpack.i.h.bf16 %v8910_v19 }
  0xe9   :  { %v150_v7 = vsel %vm15149_vm2, %v15210_v52, %v6926_v13  ;;  %7368 = vrot.lane.b32.xlu0 %v8955_v63, %s15171_s1  ;;  %v149_v54 = vsel %vm15149_vm2, %v6926_v13, %v14982_v51  ;;  %v198_v3 = vsel %vm188_vm3, %v6931_v6, %v14983_v37  ;;  %1288 = vmatprep.subr.bf16.mxu1 %v1120_v30  ;;  %v6956_v6 = vunpack.i.h.bf16 %v8744_v36 }
  0xea   :  { %v838_v58 = vsel %vm14988_vm5, %v15213_v39, %v6996_v48  ;;  %v9144_v40 = vpop.permute.xlu1 %7093  ;;  %v9146_v48 = vpop.permute.xlu0 %7088  ;;  %v9148_v18 = vpack.c.bf16 %v198_v3, %v149_v54  ;;  %6380 = vmatprep.mubr.msk.bf16.mxu0 %vm1178_vm0, %v8360_v12  ;;  %v1009_v52 = vpack.c.bf16 %v199_v25, %v150_v7  ;;  %v6961_v30 = vunpack.i.h.bf16 %v8770_v21 }
  0xeb   :  { %v1119_v16 = vpack.c.bf16 %v887_v11, %v838_v58  ;;  %v14987_v13 = vunpack.i.l.bf16 %v9144_v40  ;;  %v14984_v11 = vunpack.i.l.bf16 %v9146_v48  ;;  %v15214_v7 = vunpack.i.h.bf16 %v8890_v1 }
  0xec   :  { %7383 = vrot.lane.b32.xlu1 %v8955_v63, %s15175_s30  ;;  %1315 = vmatprep.subr.bf16.mxu0 %v9148_v18  ;;  %v15215_v37 = vunpack.i.h.bf16 %v8868_v0  ;;  %vm15219_vm5 = vcmp.lt.s32.totalorder %v8381_v15, 96 }
  0xed   :  { %1289 = vmatpush1.bf16.msra.mxu1 %v1119_v16  ;;  %7378 = vrot.lane.b32.xlu0 %v8759_v14, %s15185_s16  ;;  %v935_v39 = vsel %vm14989_vm6, %v7026_v44, %v14984_v11  ;;  %v985_v25 = vsel %vm14986_vm7, %v15214_v7, %v7031_v35  ;;  %v984_v16 = vsel %vm14986_vm7, %v7031_v35, %v14987_v13  ;;  %v6986_v11 = vunpack.i.h.bf16 %v8820_v41 }
  0xee   :  { %1316 = vmatpush1.bf16.msra.mxu0 %v1009_v52  ;;  %v9170_v58 = vpop.permute.xlu1 %7103  ;;  %v1136_v51 = vpack.c.bf16 %v984_v16, %v935_v39  ;;  %v936_v1 = vsel %vm14989_vm6, %v15215_v37, %v7026_v44  ;;  %v15216_v35 = vunpack.i.l.bf16 %v8744_v36  ;;  %vm15217_vm7 = vcmp.lt.s32.totalorder %v8381_v15, 124  ;;  %vm15220_vm6 = vmmov %vm15219_vm5 }
  0xef   :  { %v7105_v54 = vunpack.i.l.bf16 %v9170_v58  ;;  %v9177_v3 = vpop.permute.xlu0 %7098  ;;  %v1135_v46 = vpack.c.bf16 %v985_v25, %v936_v1  ;;  %v15218_v39 = vunpack.i.l.bf16 %v8770_v21  ;;  %v6991_v37 = vunpack.i.h.bf16 %v8844_v29 }
  0xf0   :  { %v15004_v7 = vunpack.i.l.bf16 %v9177_v3  ;;  %7393 = vrot.lane.b32.xlu1 %v8759_v14, %s15187_s17  ;;  %v248_v13 = vsel %vm15217_vm7, %v15216_v35, %v6956_v6  ;;  %1290 = vmatprep.subr.bf16.mxu1 %v1136_v51  ;;  %v15221_v1 = vunpack.i.l.bf16 %v8820_v41 }
  0xf1   :  { %v297_v0 = vsel %vm15219_vm5, %v15218_v39, %v6961_v30  ;;  %7388 = vrot.lane.b32.xlu0 %v8955_v63, %s15174_s29  ;;  %v296_v44 = vsel %vm15220_vm6, %v6961_v30, %v7105_v54  ;;  %1291 = vmatpush1.bf16.msra.mxu1 %v1135_v46  ;;  %vm15222_vm5 = vcmp.lt.s32.totalorder %v8381_v15, 95  ;;  %vm15224_vm6 = vcmp.lt.s32.totalorder %v8381_v15, 94 }
  0xf2   :  { %v9202_v36 = vpop.permute.xlu1 %7113  ;;  %v9208_v21 = vsel %vm15217_vm7, %v6956_v6, %v15004_v7  ;;  %1292 = vmatprep.subr.bf16.mxu1 %v993_v17  ;;  %v346_v46 = vsel %vm15222_vm5, %v15221_v1, %v6986_v11  ;;  %v1025_v35 = vpack.c.bf16 %v297_v0, %v248_v13  ;;  %v15223_v6 = vunpack.i.l.bf16 %v8844_v29  ;;  %vm15225_vm7 = vmmov %vm15224_vm6 }
  0xf3   :  { %v14990_v25 = vunpack.i.l.bf16 %v9202_v36  ;;  %v9211_v16 = vpop.permute.xlu0 %7108  ;;  %v1026_v51 = vpack.c.bf16 %v296_v44, %v9208_v21  ;;  %v7016_v17 = vunpack.i.h.bf16 %v8888_v43  ;;  %v7021_v44 = vunpack.i.h.bf16 %v8912_v56 }
  0xf4   :  { %v14991_v30 = vunpack.i.l.bf16 %v9211_v16  ;;  %7403 = vrot.lane.b32.xlu1 %v8955_v63, %s15178_s13  ;;  %v395_v39 = vsel %vm15224_vm6, %v15223_v6, %v6991_v37  ;;  %vm15229_vm6 = vcmp.lt.s32.totalorder %v8381_v15, 64  ;;  %v7061_v7 = vunpack.i.h.bf16 %v9031_v5 }
  0xf5   :  { %7398 = vrot.lane.b32.xlu0 %v8759_v14, %s15188_s18  ;;  %1317 = vmatprep.subr.bf16.mxu0 %v1026_v51  ;;  %v394_v41 = vsel %vm15225_vm7, %v6991_v37, %v14990_v25  ;;  %v1152_v37 = vpack.c.bf16 %v248_v13, %v248_v13  ;;  %v15226_v25 = vunpack.i.l.bf16 %v8888_v43  ;;  %v7041_v43 = vunpack.i.h.bf16 %v8971_v4  ;;  %vm15231_vm7 = vmmov %vm15229_vm6 }
  0xf6   :  { %1293 = vmatpush1.bf16.msra.mxu1 %v8641_v61  ;;  %1318 = vmatpush1.bf16.msra.mxu0 %v1025_v35  ;;  %v9234_v29 = vpop.permute.xlu1 %7123  ;;  %v345_v0 = vsel %vm15222_vm5, %v6986_v11, %v14991_v30  ;;  %v1041_v61 = vpack.c.bf16 %v395_v39, %v346_v46  ;;  %v1151_v35 = vpack.c.bf16 %v8792_v8, %v8792_v8  ;;  %v15227_v30 = vunpack.i.l.bf16 %v8912_v56 }
  0xf7   :  { %v15003_v1 = vunpack.i.l.bf16 %v9234_v29  ;;  %v9241_v6 = vpop.permute.xlu0 %7118  ;;  %1294 = vmatprep.subr.bf16.mxu1 %v1009_v52  ;;  %v1042_v14 = vpack.c.bf16 %v394_v41, %v345_v0  ;;  %v444_v11 = vsel %vm433_vm8, %v15226_v25, %v7016_v17  ;;  %v7036_v8 = vunpack.i.h.bf16 %v8946_v28 }
  0xf8   :  { %v15002_v51 = vunpack.i.l.bf16 %v9241_v6  ;;  %7413 = vrot.lane.b32.xlu1 %v8955_v63, %s15197_s15  ;;  %v493_v52 = vsel %vm482_vm9, %v15227_v30, %v7021_v44  ;;  %v7066_v41 = vunpack.i.h.bf16 %v9029_v47  ;;  %vm15241_vm5 = vcmp.lt.s32.totalorder %v8381_v15, 96 }
  0xf9   :  { %7408 = vrot.lane.b32.xlu0 %v8955_v63, %s15177_s12  ;;  %1319 = vmatprep.subr.bf16.mxu0 %v1042_v14  ;;  %v492_v13 = vsel %vm482_vm9, %v7021_v44, %v15003_v1  ;;  %v9289_v14 = vld [vmem:[%s14884_s0 + $0x70] sm:$0xff]  ;;  %v7056_v1 = vunpack.i.h.bf16 %v8996_v55 }
  0xfa   :  { %1295 = vmatpush1.bf16.msra.mxu1 %v8716_v26  ;;  %1320 = vmatpush1.bf16.msra.mxu0 %v1041_v61  ;;  %v9265_v56 = vpop.permute.xlu1 %7133  ;;  %v443_v25 = vsel %vm433_vm8, %v7016_v17, %v15002_v51  ;;  %v1057_v26 = vpack.c.bf16 %v493_v52, %v444_v11  ;;  %v1190_v17 = vsel %vm15142_vm10, %v1151_v35, 0  ;;  %v9294_v61 = vld [vmem:[%s14884_s0 + $0x78] sm:$0xff]  ;;  %v15230_v35 = vunpack.i.l.bf16 %v8971_v4 }
  0xfb   :  { %v15001_v46 = vunpack.i.l.bf16 %v9265_v56  ;;  %v9272_v30 = vpop.permute.xlu0 %7128  ;;  %6377 = vmatprep.subr.msk.bf16.mxu1 %vm15142_vm10, %v1152_v37  ;;  %v1058_v39 = vpack.c.bf16 %v492_v13, %v443_v25  ;;  %v7427_v4 = vpack.i.bf16 %v9294_v61, %v9289_v14 }
  0xfc   :  { %v15000_v44 = vunpack.i.l.bf16 %v9272_v30  ;;  %7423 = vrot.lane.b32.xlu1 %v8955_v63, %s15199_s20  ;;  %v591_v11 = vsel %vm580_vm11, %v15230_v35, %v7041_v43 }
  0xfd   :  { %7418 = vrot.lane.b32.xlu0 %v8955_v63, %s8130_s19  ;;  %1321 = vmatprep.subr.bf16.mxu0 %v1058_v39  ;;  %v590_v0 = vsel %vm580_vm11, %v7041_v43, %v15001_v46  ;;  %v15228_v63 = vunpack.i.l.bf16 %v8946_v28  ;;  %v7046_v43 = vunpack.i.h.bf16 %v8969_v27 }
  0xfe   :  { %1297 = vmatpush1.bf16.msra.mxu1 %v1190_v17  ;;  %1322 = vmatpush1.bf16.msra.mxu0 %v1057_v26  ;;  %v9304_v52 = vpop.permute.xlu1 %7143  ;;  %v541_v13 = vsel %vm15231_vm7, %v7036_v8, %v15000_v44  ;;  %v7051_v26 = vunpack.i.h.bf16 %v8998_v42  ;;  %v7081_v44 = vunpack.i.h.bf16 %v9103_v31 }
  0xff   :  { %v542_v37 = vsel %vm15229_vm6, %v15228_v63, %v7036_v8  ;;  %v9310_v25 = vpop.permute.xlu0 %7138  ;;  %v1074_v28 = vpack.c.bf16 %v590_v0, %v541_v13  ;;  %v99_v8 = vsel %vm90_vm1, %v7065_v2, %v7066_v41  ;;  %v15005_v0 = vunpack.i.l.bf16 %v9304_v52  ;;  %v8109_v2 = vld [vmem:[%s14884_s0 + $0x38] sm:$0xff] }
 0x100   :  { %v14999_v39 = vunpack.i.l.bf16 %v9310_v25  ;;  %719 = vrot.lane.b32.xlu1 %v8939_v22, %s14997_s23  ;;  %v1073_v17 = vpack.c.bf16 %v591_v11, %v542_v37  ;;  %s15238_s23 = smov 125   ;;  %vm15243_vm6 = vcmp.lt.s32.totalorder %v8381_v15, 124 }
 0x101   :  { %670 = vrot.lane.b32.xlu0 %v8939_v22, %s8133_s22  ;;  %1305 = vmatmul.mubr.bf16.vlgmr.msra.gmra.mrb[0].mxu1 %v9035_v10  ;;  %vm15245_vm7 = vmmov %vm15243_vm6 }
 0x102   :  { %1323 = vmatprep.subr.bf16.mxu0 %v1074_v28  ;;  %v9327_v63 = vpop.permute.xlu1 %7153  ;;  %v98_v35 = vsel %vm90_vm1, %v7066_v41, %v14999_v39  ;;  %6382 = vmatprep.mubr.msk.bf16.mxu1 %vm1178_vm0, %v8360_v12  ;;  %v8110_v41 = vld [vmem:[%s14884_s0 + $0x30] sm:$0xff]  ;;  %v15233_v28 = vunpack.i.l.bf16 %v8969_v27  ;;  %v15234_v39 = vunpack.i.l.bf16 %v8998_v42  ;;  %v639_v42 = vsel %vm629_vm12, %v7046_v43, %v15005_v0 }
 0x103   :  { %1324 = vmatpush1.bf16.msra.mxu0 %v1073_v17  ;;  %v9335_v47 = vpop.permute.xlu0 %7148  ;;  %v9340_v37 = vpack.c.bf16 %v98_v35, %v8109_v2  ;;  %v9347_v13 = vpack.c.bf16 %v99_v8, %v8110_v41  ;;  %v7086_v2 = vunpack.i.h.bf16 %v9101_v62  ;;  %v15006_v8 = vunpack.i.l.bf16 %v9327_v63 }
 0x104   :  { %v15008_v11 = vunpack.i.l.bf16 %v9335_v47  ;;  %7428 = vrot.lane.b32.xlu1 %v7427_v4, %s15232_s24  ;;  %v640_v17 = vsel %vm629_vm12, %v15233_v28, %v7046_v43  ;;  %v689_v35 = vsel %vm678_vm13, %v15234_v39, %v7051_v26  ;;  %v15236_v43 = vunpack.i.l.bf16 %v9101_v62 }
 0x105   :  { %768 = vrot.lane.b32.xlu0 %v8939_v22, %s15235_s26  ;;  %1354 = vmatprep.subr.bf16.mxu1 %v9340_v37  ;;  %v1089_v51 = vpack.c.bf16 %v689_v35, %v640_v17  ;;  %v147_v62 = vsel %vm15149_vm2, %v7081_v44, %v15006_v8  ;;  %v15240_v8 = vunpack.i.l.bf16 %v9031_v5 }
 0x106   :  { %1355 = vmatpush1.bf16.msra.mxu1 %v9347_v13  ;;  %v9364_v27 = vpop.permute.xlu1 %7163  ;;  %v688_v39 = vsel %vm678_vm13, %v7051_v26, %v15008_v11  ;;  %v197_v0 = vsel %vm188_vm3, %v15236_v43, %v7086_v2  ;;  %v15237_v26 = vunpack.i.l.bf16 %v9103_v31  ;;  %v7076_v11 = vunpack.i.h.bf16 %v9071_v60 }
 0x107   :  { %v9374_v41 = vpop.permute.xlu0 %7158  ;;  %v1090_v28 = vpack.c.bf16 %v688_v39, %v639_v42  ;;  %v15011_v17 = vunpack.i.l.bf16 %v9364_v27 }
 0x108   :  { %v15007_v46 = vunpack.i.l.bf16 %v9374_v41  ;;  %866 = vrot.lane.b32.xlu1 %v8939_v22, %s15185_s16  ;;  %v148_v42 = vsel %vm15149_vm2, %v15237_v26, %v7081_v44  ;;  %v15239_v26 = vunpack.i.l.bf16 %v8996_v55 }
 0x109   :  { %817 = vrot.lane.b32.xlu0 %v8939_v22, %s15212_s21  ;;  %1325 = vmatprep.subr.bf16.mxu0 %v1090_v28  ;;  %v737_v5 = vsel %vm727_vm14, %v7056_v1, %v15011_v17  ;;  %v7096_v17 = vunpack.i.h.bf16 %v9144_v40 }
 0x10a   :  { %1326 = vmatpush1.bf16.msra.mxu0 %v1089_v51  ;;  %v9392_v35 = vpop.permute.xlu1 %7173  ;;  %v196_v31 = vsel %vm188_vm3, %v7086_v2, %v15007_v46  ;;  %v9408_v51 = vpack.c.bf16 %v197_v0, %v148_v42  ;;  %v738_v44 = vsel %vm727_vm14, %v15239_v26, %v7056_v1  ;;  %v787_v2 = vsel %vm776_vm15, %v15240_v8, %v7061_v7 }
 0x10b   :  { %v9402_v39 = vpop.permute.xlu0 %7168  ;;  %v9404_v43 = vpack.c.bf16 %v196_v31, %v147_v62  ;;  %v7106_v46 = vunpack.i.h.bf16 %v9170_v58  ;;  %v7101_v62 = vunpack.i.h.bf16 %v9177_v3  ;;  %v1105_v26 = vpack.c.bf16 %v787_v2, %v738_v44 }
 0x10c   :  { %v15010_v28 = vunpack.i.l.bf16 %v9402_v39  ;;  %7438 = vrot.lane.b32.xlu1 %v7427_v4, %s15238_s23  ;;  %v7071_v0 = vunpack.i.h.bf16 %v9073_v57  ;;  %v15244_v58 = vunpack.i.l.bf16 %v9392_v35 }
 0x10d   :  { %7433 = vrot.lane.b32.xlu0 %v7427_v4, %s15190_s25  ;;  %1356 = vmatprep.subr.bf16.mxu1 %v9404_v43  ;;  %v295_v1 = vsel %vm15241_vm5, %v7105_v54, %v7106_v46 }
 0x10e   :  { %1357 = vmatpush1.bf16.msra.mxu1 %v9408_v51  ;;  %v9424_v55 = vpop.permute.xlu1 %7183  ;;  %v786_v8 = vsel %vm776_vm15, %v7061_v7, %v15010_v28  ;;  %v15242_v7 = vunpack.i.l.bf16 %v9177_v3  ;;  %v9460_v54 = vsel %vm15245_vm7, %v7101_v62, %v15244_v58  ;;  %v15247_v58 = vunpack.i.l.bf16 %v9073_v57 }
 0x10f   :  { %v9434_v42 = vpop.permute.xlu0 %7178  ;;  %v1106_v4 = vpack.c.bf16 %v786_v8, %v737_v5  ;;  %v15012_v44 = vunpack.i.l.bf16 %v9424_v55 }
 0x110   :  { %v15009_v31 = vunpack.i.l.bf16 %v9434_v42  ;;  %964 = vrot.lane.b32.xlu1 %v8939_v22, %s15188_s18  ;;  %v9449_v5 = vsel %vm15243_vm6, %v15242_v7, %v7101_v62  ;;  %v15246_v7 = vunpack.i.l.bf16 %v9071_v60  ;;  %vm15248_vm6 = vcmp.lt.s32.totalorder %v8381_v15, 31 }
 0x111   :  { %915 = vrot.lane.b32.xlu0 %v8939_v22, %s15187_s17  ;;  %1327 = vmatprep.subr.bf16.mxu0 %v1106_v4  ;;  %vm15249_vm7 = vmmov %vm15248_vm6 }
 0x112   :  { %1328 = vmatpush1.bf16.msra.mxu0 %v1105_v26  ;;  %v9454_v2 = vpop.permute.xlu1 %7193  ;;  %v294_v3 = vsel %vm15241_vm5, %v7106_v46, %v15009_v31  ;;  %v1027_v26 = vpack.c.bf16 %v295_v1, %v9449_v5  ;;  %v885_v62 = vsel %vm15048_vm4, %v15246_v7, %v7076_v11  ;;  %v836_v46 = vsel %vm15248_vm6, %v15247_v58, %v7071_v0 }
 0x113   :  { %v9466_v8 = vpop.permute.xlu0 %7188  ;;  %v1028_v22 = vpack.c.bf16 %v294_v3, %v9460_v54  ;;  %v7116_v31 = vunpack.i.h.bf16 %v9202_v36  ;;  %v7111_v3 = vunpack.i.h.bf16 %v9211_v16  ;;  %v835_v57 = vsel %vm15249_vm7, %v7071_v0, %v15012_v44 }
 0x114   :  { %v15013_v4 = vunpack.i.l.bf16 %v9466_v8  ;;  %282 = vrot.lane.b32.xlu1 %v9289_v14, %s15171_s1  ;;  %v7091_v1 = vunpack.i.h.bf16 %v9146_v48  ;;  %v15250_v0 = vunpack.i.l.bf16 %v9202_v36  ;;  %vm15251_vm5 = vcmp.lt.s32.totalorder %v8381_v15, 94 }
 0x115   :  { %233 = vrot.lane.b32.xlu0 %v9289_v14, %s15172_s28  ;;  %1358 = vmatprep.subr.bf16.mxu1 %v1028_v22  ;;  %vm15253_vm6 = vcmp.lt.s32.totalorder %v8381_v15, 95 }
 0x116   :  { %1359 = vmatpush1.bf16.msra.mxu1 %v1027_v26  ;;  %v9486_v60 = vpop.permute.xlu1 %7203  ;;  %v884_v7 = vsel %vm15048_vm4, %v7076_v11, %v15013_v4  ;;  %v1121_v26 = vpack.c.bf16 %v885_v62, %v836_v46  ;;  %v393_v44 = vsel %vm15251_vm5, %v15250_v0, %v7116_v31  ;;  %v15252_v11 = vunpack.i.l.bf16 %v9211_v16  ;;  %vm15255_vm7 = vmmov %vm15253_vm6 }
 0x117   :  { %v9496_v58 = vpop.permute.xlu0 %7198  ;;  %v1122_v28 = vpack.c.bf16 %v884_v7, %v835_v57  ;;  %v15254_v7 = vunpack.i.l.bf16 %v9454_v2  ;;  %v15256_v4 = vunpack.i.l.bf16 %v9144_v40 }
 0x118   :  { %v15014_v22 = vunpack.i.l.bf16 %v9496_v58  ;;  %380 = vrot.lane.b32.xlu1 %v9289_v14, %s15174_s29  ;;  %v344_v57 = vsel %vm15253_vm6, %v15252_v11, %v7111_v3  ;;  %vm15257_vm6 = vcmp.lt.s32.totalorder %v8381_v15, 28 }
 0x119   :  { %331 = vrot.lane.b32.xlu0 %v9289_v14, %s15175_s30  ;;  %1329 = vmatprep.subr.bf16.mxu0 %v1122_v28  ;;  %v343_v36 = vsel %vm15255_vm7, %v7111_v3, %v15254_v7  ;;  %v983_v62 = vsel %vm15257_vm6, %v15256_v4, %v7096_v17  ;;  %v15258_v3 = vunpack.i.l.bf16 %v9146_v48  ;;  %vm15259_vm7 = vcmp.lt.s32.totalorder %v8381_v15, 29 }
 0x11a   :  { %1330 = vmatpush1.bf16.msra.mxu0 %v1121_v26  ;;  %v9514_v46 = vpop.permute.xlu1 %7213  ;;  %v392_v16 = vsel %vm15251_vm5, %v7116_v31, %v15014_v22  ;;  %v1043_v26 = vpack.c.bf16 %v393_v44, %v344_v57  ;;  %v7126_v31 = vunpack.i.h.bf16 %v9234_v29  ;;  %v15260_v4 = vunpack.i.l.bf16 %v9486_v60  ;;  %vm15261_vm5 = vmmov %vm15259_vm7 }
 0x11b   :  { %v9524_v0 = vpop.permute.xlu0 %7208  ;;  %v1044_v11 = vpack.c.bf16 %v392_v16, %v343_v36  ;;  %v934_v7 = vsel %vm15259_vm7, %v15258_v3, %v7091_v1  ;;  %v7121_v36 = vunpack.i.h.bf16 %v9241_v6  ;;  %v15016_v44 = vunpack.i.l.bf16 %v9514_v46 }
 0x11c   :  { %v15015_v28 = vunpack.i.l.bf16 %v9524_v0  ;;  %478 = vrot.lane.b32.xlu1 %v9289_v14, %s15177_s12  ;;  %v933_v48 = vsel %vm15261_vm5, %v7091_v1, %v15260_v4  ;;  %v9559_v22 = vpack.i.bf16 %v9289_v14, %v8944_v34  ;;  %v15262_v1 = vunpack.i.l.bf16 %v9234_v29 }
 0x11d   :  { %429 = vrot.lane.b32.xlu0 %v9289_v14, %s15178_s13  ;;  %1360 = vmatprep.subr.bf16.mxu1 %v1044_v11  ;;  %vm15266_vm7 = vcmp.lt.s32.totalorder %v8381_v15, 64 }
 0x11e   :  { %1361 = vmatpush1.bf16.msra.mxu1 %v1043_v26  ;;  %v9542_v40 = vpop.permute.xlu1 %7223  ;;  %v982_v57 = vsel %vm15257_vm6, %v7096_v17, %v15015_v28  ;;  %v1137_v26 = vpack.c.bf16 %v983_v62, %v934_v7  ;;  %v491_v4 = vsel %vm482_vm9, %v15262_v1, %v7126_v31  ;;  %v15263_v17 = vunpack.i.l.bf16 %v9241_v6  ;;  %vm15267_vm5 = vmmov %vm15266_vm7 }
 0x11f   :  { %v9552_v16 = vpop.permute.xlu0 %7218  ;;  %v1138_v3 = vpack.c.bf16 %v982_v57, %v933_v48  ;;  %v7136_v57 = vunpack.i.h.bf16 %v9265_v56  ;;  %v7131_v28 = vunpack.i.h.bf16 %v9272_v30  ;;  %v7225_v34 = vunpack.i.l.bf16 %v9542_v40 }
 0x120   :  { %v15017_v11 = vunpack.i.l.bf16 %v9552_v16  ;;  %576 = vrot.lane.b32.xlu1 %v9289_v14, %s8130_s19  ;;  %v442_v48 = vsel %vm433_vm8, %v15263_v17, %v7121_v36  ;;  %v441_v6 = vsel %vm433_vm8, %v7121_v36, %v15016_v44  ;;  %v15264_v17 = vunpack.i.l.bf16 %v9265_v56 }
 0x121   :  { %527 = vrot.lane.b32.xlu0 %v9289_v14, %s15197_s15  ;;  %1331 = vmatprep.subr.bf16.mxu0 %v1138_v3  ;;  %v15265_v44 = vunpack.i.l.bf16 %v9272_v30  ;;  %v539_v30 = vsel %vm15267_vm5, %v7131_v28, %v7225_v34  ;;  %vm15275_vm6 = vcmp.lt.s32.totalorder %v8381_v15, 31  ;;  %vm15281_vm5 = vcmp.lt.s32.totalorder %v8381_v15, 29 }
 0x122   :  { %1332 = vmatpush1.bf16.msra.mxu0 %v1137_v26  ;;  %v9574_v29 = vpop.permute.xlu1 %7233  ;;  %v490_v62 = vsel %vm482_vm9, %v7126_v31, %v15017_v11  ;;  %v1059_v26 = vpack.c.bf16 %v491_v4, %v442_v48  ;;  %v589_v36 = vsel %vm580_vm11, %v15264_v17, %v7136_v57  ;;  %v7146_v11 = vunpack.i.h.bf16 %v9304_v52 }
 0x123   :  { %v9584_v7 = vpop.permute.xlu0 %7228  ;;  %1333 = vmatprep.subr.bf16.mxu0 %v9347_v13  ;;  %v1060_v3 = vpack.c.bf16 %v490_v62, %v441_v6  ;;  %v540_v31 = vsel %vm15266_vm7, %v15265_v44, %v7131_v28  ;;  %v7151_v13 = vunpack.i.h.bf16 %v9335_v47  ;;  %v7235_v4 = vunpack.i.l.bf16 %v9574_v29  ;;  %vm15277_vm7 = vmmov %vm15275_vm6 }
 0x124   :  { %v7230_v1 = vunpack.i.l.bf16 %v9584_v7  ;;  %7443 = vrot.lane.b32.xlu1 %v9559_v22, %s8133_s22  ;;  %v7141_v6 = vunpack.i.h.bf16 %v9310_v25  ;;  %v1075_v28 = vpack.c.bf16 %v589_v36, %v540_v31  ;;  %v7166_v17 = vunpack.i.h.bf16 %v9364_v27 }
 0x125   :  { %625 = vrot.lane.b32.xlu0 %v9289_v14, %s15199_s20  ;;  %1362 = vmatprep.subr.bf16.mxu1 %v1060_v3  ;;  %v1153_v3 = vpack.c.bf16 %v9208_v21, %v9208_v21 }
 0x126   :  { %1334 = vmatpush1.bf16.msra.mxu0 %v9092_v23  ;;  %1363 = vmatpush1.bf16.msra.mxu1 %v1059_v26  ;;  %v9604_v56 = vpop.permute.xlu1 %7243  ;;  %v588_v44 = vsel %vm580_vm11, %v7136_v57, %v7230_v1  ;;  %v1154_v23 = vpack.c.bf16 %v9449_v5, %v9449_v5  ;;  %v15268_v57 = vunpack.i.l.bf16 %v9304_v52  ;;  %v15269_v26 = vunpack.i.l.bf16 %v9335_v47 }
 0x127   :  { %v9614_v48 = vpop.permute.xlu0 %7238  ;;  %1335 = vmatprep.subr.bf16.mxu0 %v9408_v51  ;;  %v1076_v14 = vpack.c.bf16 %v588_v44, %v539_v30  ;;  %v7171_v30 = vunpack.i.h.bf16 %v9402_v39  ;;  %v15022_v21 = vunpack.i.l.bf16 %v9604_v56  ;;  %v637_v47 = vsel %vm629_vm12, %v7146_v11, %v7235_v4 }
 0x128   :  { %v15018_v62 = vunpack.i.l.bf16 %v9614_v48  ;;  %7453 = vrot.lane.b32.xlu1 %v9559_v22, %s15235_s26  ;;  %v638_v51 = vsel %vm629_vm12, %v15268_v57, %v7146_v11  ;;  %v687_v5 = vsel %vm678_vm13, %v15269_v26, %v7151_v13  ;;  %v1196_v11 = vsel %vm15142_vm10, %v1153_v3, 0 }
 0x129   :  { %7448 = vrot.lane.b32.xlu0 %v9559_v22, %s15270_s27  ;;  %1364 = vmatprep.subr.bf16.mxu1 %v1076_v14  ;;  %v15271_v14 = vunpack.i.l.bf16 %v9310_v25  ;;  %v15272_v26 = vunpack.i.l.bf16 %v9364_v27  ;;  %v7191_v27 = vunpack.i.h.bf16 %v9466_v8 }
 0x12a   :  { %1336 = vmatpush1.bf16.msra.mxu0 %v9148_v18  ;;  %1365 = vmatpush1.bf16.msra.mxu1 %v1075_v28  ;;  %v9639_v52 = vpop.permute.xlu1 %7253  ;;  %v686_v36 = vsel %vm678_vm13, %v7151_v13, %v15018_v62  ;;  %v1091_v13 = vpack.c.bf16 %v687_v5, %v638_v51 }
 0x12b   :  { %v7255_v31 = vunpack.i.l.bf16 %v9639_v52  ;;  %v9650_v44 = vpop.permute.xlu0 %7248  ;;  %6379 = vmatprep.subr.msk.bf16.mxu0 %vm15142_vm10, %v1154_v23  ;;  %v1092_v18 = vpack.c.bf16 %v686_v36, %v637_v47  ;;  %v97_v28 = vsel %vm90_vm1, %v15271_v14, %v7141_v6  ;;  %v736_v62 = vsel %vm727_vm14, %v15272_v26, %v7166_v17 }
 0x12c   :  { %v15019_v57 = vunpack.i.l.bf16 %v9650_v44  ;;  %284 = vrot.lane.b32.xlu1 %v9294_v61, %s15171_s1  ;;  %v15273_v23 = vunpack.i.l.bf16 %v9402_v39  ;;  %v7186_v47 = vunpack.i.h.bf16 %v9424_v55  ;;  %v735_v39 = vsel %vm727_vm14, %v7166_v17, %v15022_v21 }
 0x12d   :  { %235 = vrot.lane.b32.xlu0 %v9294_v61, %s15172_s28  ;;  %1366 = vmatprep.subr.bf16.mxu1 %v1092_v18  ;;  %v96_v3 = vsel %vm90_vm1, %v7141_v6, %v7255_v31  ;;  %v8111_v6 = vld [vmem:[%s14884_s0 + $0x48] sm:$0xff]  ;;  %v7161_v17 = vunpack.i.h.bf16 %v9374_v41  ;;  %v15280_v21 = vunpack.i.l.bf16 %v9486_v60 }
 0x12e   :  { %v785_v25 = vsel %vm776_vm15, %v15273_v23, %v7171_v30  ;;  %1338 = vmatpush1.bf16.msra.mxu0 %v1196_v11  ;;  %1367 = vmatpush1.bf16.msra.mxu1 %v1091_v13  ;;  %v9677_v51 = vpop.permute.xlu1 %7263  ;;  %v784_v5 = vsel %vm776_vm15, %v7171_v30, %v15019_v57  ;;  %v9690_v36 = vpack.c.bf16 %v96_v3, %v8111_v6  ;;  %v7156_v13 = vunpack.i.h.bf16 %v9327_v63  ;;  %v8112_v30 = vld [vmem:[%s14884_s0 + $0x40] sm:$0xff] }
 0x12f   :  { %v15021_v18 = vunpack.i.l.bf16 %v9677_v51  ;;  %v9693_v14 = vpop.permute.xlu0 %7258  ;;  %v1108_v11 = vpack.c.bf16 %v784_v5, %v735_v39  ;;  %v997_v23 = vpack.c.bf16 %v97_v28, %v8112_v30  ;;  %v1107_v3 = vpack.c.bf16 %v785_v25, %v736_v62 }
 0x130   :  { %v15020_v26 = vunpack.i.l.bf16 %v9693_v14  ;;  %7463 = vrot.lane.b32.xlu1 %v9559_v22, %s15185_s16  ;;  %1395 = vmatprep.subr.bf16.mxu0 %v9690_v36  ;;  %v15274_v5 = vunpack.i.l.bf16 %v9424_v55  ;;  %v15276_v57 = vunpack.i.l.bf16 %v9466_v8  ;;  %v15278_v8 = vunpack.i.l.bf16 %v9327_v63 }
 0x131   :  { %7458 = vrot.lane.b32.xlu0 %v9559_v22, %s15212_s21  ;;  %1346 = vmatmul.mubr.bf16.vlgmr.msra.gmra.mrb[4].mxu0 %v9035_v10  ;;  %v882_v39 = vsel %vm15048_vm4, %v7191_v27, %v15021_v18 }
 0x132   :  { %v834_v6 = vsel %vm15275_vm6, %v15274_v5, %v7186_v47  ;;  %v883_v28 = vsel %vm15048_vm4, %v15276_v57, %v7191_v27  ;;  %1368 = vmatprep.subr.bf16.mxu1 %v1108_v11  ;;  %1396 = vmatpush1.bf16.msra.mxu0 %v997_v23  ;;  %v9719_v30 = vpop.permute.xlu1 %7273  ;;  %v833_v62 = vsel %vm15277_vm7, %v7186_v47, %v15020_v26  ;;  %v15279_v27 = vunpack.i.l.bf16 %v9374_v41 }
 0x133   :  { %1369 = vmatpush1.bf16.msra.mxu1 %v1107_v3  ;;  %v7275_v55 = vunpack.i.l.bf16 %v9719_v30  ;;  %v9726_v25 = vpop.permute.xlu0 %7268  ;;  %v1124_v5 = vpack.c.bf16 %v882_v39, %v833_v62  ;;  %6384 = vmatprep.mubr.msk.bf16.mxu0 %vm1178_vm0, %v8360_v12  ;;  %v146_v57 = vsel %vm15149_vm2, %v15278_v8, %v7156_v13  ;;  %v7206_v3 = vunpack.i.h.bf16 %v9486_v60 }
 0x134   :  { %v195_v11 = vsel %vm188_vm3, %v15279_v27, %v7161_v17  ;;  %v15024_v47 = vunpack.i.l.bf16 %v9726_v25  ;;  %382 = vrot.lane.b32.xlu1 %v9294_v61, %s15174_s29  ;;  %v7211_v39 = vunpack.i.h.bf16 %v9524_v0  ;;  %v1123_v63 = vpack.c.bf16 %v883_v28, %v834_v6  ;;  %s8143_s29 = smov 58  }
 0x135   :  { %333 = vrot.lane.b32.xlu0 %v9294_v61, %s15175_s30  ;;  %1370 = vmatprep.subr.bf16.mxu1 %v1124_v5  ;;  %v194_v41 = vsel %vm188_vm3, %v7161_v17, %v7275_v55  ;;  %v7176_v6 = vunpack.i.h.bf16 %v9392_v35  ;;  %v1013_v17 = vpack.c.bf16 %v195_v11, %v146_v57  ;;  %v7181_v5 = vunpack.i.h.bf16 %v9434_v42 }
 0x136   :  { %v9749_v62 = vpop.permute.xlu1 %7283  ;;  %v145_v8 = vsel %vm15149_vm2, %v7156_v13, %v15024_v47  ;;  %v932_v13 = vsel %vm15281_vm5, %v15280_v21, %v7206_v3  ;;  %vm15283_vm6 = vcmp.lt.s32.totalorder %v8381_v15, 28 }
 0x137   :  { %1371 = vmatpush1.bf16.msra.mxu1 %v1123_v63  ;;  %v15023_v27 = vunpack.i.l.bf16 %v9749_v62  ;;  %v9756_v26 = vpop.permute.xlu0 %7278  ;;  %v9758_v18 = vpack.c.bf16 %v194_v41, %v145_v8  ;;  %v15282_v63 = vunpack.i.l.bf16 %v9524_v0  ;;  %vm15284_vm7 = vmmov %vm15283_vm6  ;;  %v7196_v8 = vunpack.i.h.bf16 %v9454_v2 }
 0x138   :  { %v15025_v28 = vunpack.i.l.bf16 %v9756_v26  ;;  %7473 = vrot.lane.b32.xlu1 %v9559_v22, %s15188_s18 }
 0x139   :  { %v981_v41 = vsel %vm15283_vm6, %v15282_v63, %v7211_v39  ;;  %7468 = vrot.lane.b32.xlu0 %v9559_v22, %s15187_s17  ;;  %1397 = vmatprep.subr.bf16.mxu0 %v9758_v18  ;;  %v980_v57 = vsel %vm15284_vm7, %v7211_v39, %v15023_v27  ;;  %v15285_v27 = vunpack.i.l.bf16 %v9392_v35  ;;  %vm15286_vm6 = vcmp.lt.s32.totalorder %v8381_v15, 124 }
 0x13a   :  { %1398 = vmatpush1.bf16.msra.mxu0 %v1013_v17  ;;  %v9780_v60 = vpop.permute.xlu1 %7293  ;;  %v931_v0 = vsel %vm15281_vm5, %v7206_v3, %v15025_v28  ;;  %v1139_v39 = vpack.c.bf16 %v981_v41, %v932_v13  ;;  %v15287_v3 = vunpack.i.l.bf16 %v9434_v42  ;;  %vm15288_vm7 = vcmp.lt.s32.totalorder %v8381_v15, 96 }
 0x13b   :  { %v15027_v21 = vunpack.i.l.bf16 %v9780_v60  ;;  %v9787_v11 = vpop.permute.xlu0 %7288  ;;  %v1140_v22 = vpack.c.bf16 %v980_v57, %v931_v0  ;;  %v244_v47 = vsel %vm15286_vm6, %v15285_v27, %v7176_v6  ;;  %v7201_v57 = vunpack.i.h.bf16 %v9496_v58  ;;  %vm15289_vm5 = vmmov %vm15288_vm7 }
 0x13c   :  { %v15026_v63 = vunpack.i.l.bf16 %v9787_v11  ;;  %480 = vrot.lane.b32.xlu1 %v9294_v61, %s15177_s12  ;;  %v293_v28 = vsel %vm15288_vm7, %v15287_v3, %v7181_v5  ;;  %vm15291_vm7 = vcmp.lt.s32.totalorder %v8381_v15, 95  ;;  %s8144_s12 = smov 56  }
 0x13d   :  { %431 = vrot.lane.b32.xlu0 %v9294_v61, %s15178_s13  ;;  %1372 = vmatprep.subr.bf16.mxu1 %v1140_v22  ;;  %v292_v13 = vsel %vm15289_vm5, %v7181_v5, %v15027_v21  ;;  %v15290_v22 = vunpack.i.l.bf16 %v9454_v2  ;;  %v1029_v3 = vpack.c.bf16 %v293_v28, %v244_v47  ;;  %vm15293_vm5 = vcmp.lt.s32.totalorder %v8381_v15, 94 }
 0x13e   :  { %1373 = vmatpush1.bf16.msra.mxu1 %v1139_v39  ;;  %v9808_v35 = vpop.permute.xlu1 %7303  ;;  %v9814_v42 = vsel %vm15286_vm6, %v7176_v6, %v15026_v63  ;;  %v15292_v6 = vunpack.i.l.bf16 %v9496_v58  ;;  %vm15294_vm6 = vmmov %vm15293_vm5 }
 0x13f   :  { %v15028_v27 = vunpack.i.l.bf16 %v9808_v35  ;;  %v9817_v41 = vpop.permute.xlu0 %7298  ;;  %1374 = vmatprep.subr.bf16.mxu1 %v997_v23  ;;  %v1030_v0 = vpack.c.bf16 %v292_v13, %v9814_v42  ;;  %v342_v5 = vsel %vm15291_vm7, %v15290_v22, %v7196_v8  ;;  %v7216_v23 = vunpack.i.h.bf16 %v9514_v46 }
 0x140   :  { %v15029_v39 = vunpack.i.l.bf16 %v9817_v41  ;;  %578 = vrot.lane.b32.xlu1 %v9294_v61, %s8130_s19  ;;  %v391_v63 = vsel %vm15293_vm5, %v15292_v6, %v7201_v57  ;;  %v7221_v13 = vunpack.i.h.bf16 %v9552_v16  ;;  %vm15297_vm5 = vcmp.lt.s32.totalorder %v8381_v15, 64 }
 0x141   :  { %529 = vrot.lane.b32.xlu0 %v9294_v61, %s15197_s15  ;;  %1399 = vmatprep.subr.bf16.mxu0 %v1030_v0  ;;  %v390_v2 = vsel %vm15294_vm6, %v7201_v57, %v15028_v27  ;;  %v1156_v57 = vpack.c.bf16 %v244_v47, %v244_v47  ;;  %v15295_v27 = vunpack.i.l.bf16 %v9514_v46  ;;  %v7231_v46 = vunpack.i.h.bf16 %v9584_v7  ;;  %vm15298_vm6 = vmmov %vm15297_vm5 }
 0x142   :  { %1375 = vmatpush1.bf16.msra.mxu1 %v9340_v37  ;;  %1400 = vmatpush1.bf16.msra.mxu0 %v1029_v3  ;;  %v9840_v58 = vpop.permute.xlu1 %7313  ;;  %v341_v28 = vsel %vm15291_vm7, %v7196_v8, %v15029_v39  ;;  %v1045_v37 = vpack.c.bf16 %v391_v63, %v342_v5  ;;  %v1155_v3 = vpack.c.bf16 %v9460_v54, %v9460_v54  ;;  %v15296_v39 = vunpack.i.l.bf16 %v9552_v16 }
 0x143   :  { %v7315_v22 = vunpack.i.l.bf16 %v9840_v58  ;;  %v9847_v6 = vpop.permute.xlu0 %7308  ;;  %1376 = vmatprep.subr.bf16.mxu1 %v1013_v17  ;;  %v1046_v0 = vpack.c.bf16 %v390_v2, %v341_v28  ;;  %v440_v8 = vsel %vm433_vm8, %v15295_v27, %v7216_v23  ;;  %v7226_v54 = vunpack.i.h.bf16 %v9542_v40 }
 0x144   :  { %v15041_v21 = vunpack.i.l.bf16 %v9847_v6  ;;  %676 = vrot.lane.b32.xlu1 %v9294_v61, %s8133_s22  ;;  %v489_v17 = vsel %vm482_vm9, %v15296_v39, %v7221_v13  ;;  %v7256_v2 = vunpack.i.h.bf16 %v9639_v52  ;;  %v7241_v7 = vunpack.i.h.bf16 %v9614_v48  ;;  %s8142_s22 = smov 120  }
 0x145   :  { %627 = vrot.lane.b32.xlu0 %v9294_v61, %s15199_s20  ;;  %1401 = vmatprep.subr.bf16.mxu0 %v1046_v0  ;;  %v488_v47 = vsel %vm482_vm9, %v7221_v13, %v7315_v22  ;;  %v538_v0 = vsel %vm15297_vm5, %v7225_v34, %v7226_v54  ;;  %v7236_v34 = vunpack.i.h.bf16 %v9574_v29  ;;  %vm15304_vm7 = vcmp.lt.s32.totalorder %v8381_v15, 96 }
 0x146   :  { %1377 = vmatpush1.bf16.msra.mxu1 %v9404_v43  ;;  %1402 = vmatpush1.bf16.msra.mxu0 %v1045_v37  ;;  %v9871_v16 = vpop.permute.xlu1 %7323  ;;  %v439_v63 = vsel %vm433_vm8, %v7216_v23, %v15041_v21  ;;  %v1061_v43 = vpack.c.bf16 %v489_v17, %v440_v8  ;;  %v1202_v23 = vsel %vm15142_vm10, %v1155_v3, 0  ;;  %v587_v37 = vsel %vm580_vm11, %v7230_v1, %v7231_v46 }
 0x147   :  { %v15040_v27 = vunpack.i.l.bf16 %v9871_v16  ;;  %v9878_v5 = vpop.permute.xlu0 %7318  ;;  %6381 = vmatprep.subr.msk.bf16.mxu1 %vm15142_vm10, %v1156_v57  ;;  %v1062_v39 = vpack.c.bf16 %v488_v47, %v439_v63  ;;  %v95_v1 = vsel %vm90_vm1, %v7255_v31, %v7256_v2  ;;  %v1077_v47 = vpack.c.bf16 %v587_v37, %v538_v0  ;;  %v8113_v31 = vld [vmem:[%s14884_s0 + $0x58] sm:$0xff] }
 0x148   :  { %v15035_v13 = vunpack.i.l.bf16 %v9878_v5  ;;  %774 = vrot.lane.b32.xlu1 %v9294_v61, %s15235_s26  ;;  %v15299_v0 = vunpack.i.l.bf16 %v9614_v48  ;;  %vm15306_vm5 = vcmp.lt.s32.totalorder %v8381_v15, 124  ;;  %v15312_v21 = vunpack.i.l.bf16 %v9808_v35 }
 0x149   :  { %725 = vrot.lane.b32.xlu0 %v9294_v61, %s15270_s27  ;;  %1403 = vmatprep.subr.bf16.mxu0 %v1062_v39  ;;  %v586_v28 = vsel %vm580_vm11, %v7231_v46, %v15040_v27  ;;  %v7281_v27 = vunpack.i.h.bf16 %v9756_v26 }
 0x14a   :  { %1379 = vmatpush1.bf16.msra.mxu1 %v1202_v23  ;;  %1404 = vmatpush1.bf16.msra.mxu0 %v1061_v43  ;;  %v9900_v57 = vpop.permute.xlu1 %7333  ;;  %v537_v3 = vsel %vm15298_vm6, %v7226_v54, %v15035_v13  ;;  %v685_v37 = vsel %vm678_vm13, %v15299_v0, %v7241_v7  ;;  %v7246_v0 = vunpack.i.h.bf16 %v9604_v56  ;;  %v15303_v13 = vunpack.i.l.bf16 %v9780_v60  ;;  %vm15307_vm6 = vmmov %vm15306_vm5 }
 0x14b   :  { %v9906_v8 = vpop.permute.xlu0 %7328  ;;  %v1078_v40 = vpack.c.bf16 %v586_v28, %v537_v3  ;;  %v15031_v54 = vunpack.i.l.bf16 %v9900_v57  ;;  %v636_v28 = vsel %vm629_vm12, %v7235_v4, %v7236_v34  ;;  %v7276_v3 = vunpack.i.h.bf16 %v9719_v30  ;;  %v1166_v4 = vld [vmem:[%s14886_s2] sm:$0xff] }
 0x14c   :  { %v15030_v17 = vunpack.i.l.bf16 %v9906_v8  ;;  %872 = vrot.lane.b32.xlu1 %v9294_v61, %s15185_s16 }
 0x14d   :  { %823 = vrot.lane.b32.xlu0 %v9294_v61, %s15212_s21  ;;  %1387 = vmatmul.mubr.bf16.vlgmr.msra.gmra.mrb[4].mxu1 %v9035_v10  ;;  %v635_v48 = vsel %vm629_vm12, %v7236_v34, %v15031_v54  ;;  %v193_v34 = vsel %vm188_vm3, %v7275_v55, %v7276_v3  ;;  %v15300_v54 = vunpack.i.l.bf16 %v9726_v25 }
 0x14e   :  { %1405 = vmatprep.subr.bf16.mxu0 %v1078_v40  ;;  %v9921_v46 = vpop.permute.xlu1 %7343  ;;  %v94_v63 = vsel %vm90_vm1, %v7256_v2, %v15030_v17  ;;  %6386 = vmatprep.mubr.msk.bf16.mxu1 %vm1178_vm0, %v8360_v12  ;;  %v8114_v2 = vld [vmem:[%s14884_s0 + $0x50] sm:$0xff]  ;;  %v7271_v40 = vunpack.i.h.bf16 %v9726_v25  ;;  %v7251_v17 = vunpack.i.h.bf16 %v9650_v44 }
 0x14f   :  { %1406 = vmatpush1.bf16.msra.mxu0 %v1077_v47  ;;  %v9929_v52 = vpop.permute.xlu0 %7338  ;;  %v9934_v39 = vpack.c.bf16 %v94_v63, %v8113_v31  ;;  %v9942_v23 = vpack.c.bf16 %v95_v1, %v8114_v2  ;;  %v15033_v1 = vunpack.i.l.bf16 %v9921_v46  ;;  %v1093_v2 = vpack.c.bf16 %v685_v37, %v636_v28 }
 0x150   :  { %v15034_v43 = vunpack.i.l.bf16 %v9929_v52  ;;  %970 = vrot.lane.b32.xlu1 %v9294_v61, %s15188_s18 }
 0x151   :  { %921 = vrot.lane.b32.xlu0 %v9294_v61, %s15187_s17  ;;  %1436 = vmatprep.subr.bf16.mxu1 %v9934_v39  ;;  %v143_v30 = vsel %vm15149_vm2, %v7271_v40, %v15033_v1  ;;  %v7266_v1 = vunpack.i.h.bf16 %v9677_v51 }
 0x152   :  { %1437 = vmatpush1.bf16.msra.mxu1 %v9942_v23  ;;  %v9959_v29 = vpop.permute.xlu1 %7353  ;;  %v684_v61 = vsel %vm678_vm13, %v7241_v7, %v15034_v43  ;;  %v144_v7 = vsel %vm15149_vm2, %v15300_v54, %v7271_v40  ;;  %v15302_v40 = vunpack.i.l.bf16 %v9650_v44  ;;  %v7261_v43 = vunpack.i.h.bf16 %v9693_v14 }
 0x153   :  { %v9972_v47 = vpop.permute.xlu0 %7348  ;;  %v1094_v63 = vpack.c.bf16 %v684_v61, %v635_v48  ;;  %v15036_v48 = vunpack.i.l.bf16 %v9959_v29  ;;  %v15301_v61 = vunpack.i.l.bf16 %v9604_v56 }
 0x154   :  { %v15032_v31 = vunpack.i.l.bf16 %v9972_v47 }
 0x155   :  { %1169 = vperm.xlu0 %7477, %v1166_v4   ;;  %1407 = vmatprep.subr.bf16.mxu0 %v1094_v63  ;;  %v10001_v4 = vpack.c.bf16 %v193_v34, %v144_v7  ;;  %v734_v63 = vsel %vm727_vm14, %v15301_v61, %v7246_v0  ;;  %v733_v56 = vsel %vm727_vm14, %v7246_v0, %v15036_v48  ;;  %v15305_v48 = vunpack.i.l.bf16 %v9787_v11 }
 0x156   :  { %1408 = vmatpush1.bf16.msra.mxu0 %v1093_v2  ;;  %v9986_v28 = vpop.permute.xlu1 %7363  ;;  %v192_v55 = vsel %vm188_vm3, %v7276_v3, %v15032_v31  ;;  %v783_v2 = vsel %vm776_vm15, %v15302_v40, %v7251_v17  ;;  %v7296_v3 = vunpack.i.h.bf16 %v9780_v60  ;;  %v7291_v31 = vunpack.i.h.bf16 %v9787_v11 }
 0x157   :  { %v9996_v25 = vpop.permute.xlu0 %7358  ;;  %v9998_v54 = vpack.c.bf16 %v192_v55, %v143_v30  ;;  %v15037_v30 = vunpack.i.l.bf16 %v9986_v28  ;;  %v1109_v40 = vpack.c.bf16 %v783_v2, %v734_v63 }
 0x158   :  { %v15039_v37 = vunpack.i.l.bf16 %v9996_v25  ;;  %v291_v0 = vsel %vm15304_vm7, %v15303_v13, %v7296_v3 }
 0x159   :  { %1438 = vmatprep.subr.bf16.mxu1 %v9998_v54  ;;  %v10048_v60 = vsel %vm15307_vm6, %v7291_v31, %v15037_v30 }
 0x15a   :  { %1439 = vmatpush1.bf16.msra.mxu1 %v10001_v4  ;;  %v10016_v34 = vpop.permute.xlu1 %7373  ;;  %v782_v44 = vsel %vm776_vm15, %v7251_v17, %v15039_v37  ;;  %v10039_v17 = vsel %vm15306_vm5, %v15305_v48, %v7291_v31  ;;  %v15309_v31 = vunpack.i.l.bf16 %v9693_v14  ;;  %vm15310_vm5 = vcmp.lt.s32.totalorder %v8381_v15, 31 }
 0x15b   :  { %v10026_v7 = vpop.permute.xlu0 %7368  ;;  %v1110_v55 = vpack.c.bf16 %v782_v44, %v733_v56  ;;  %v15042_v56 = vunpack.i.l.bf16 %v10016_v34  ;;  %v1031_v44 = vpack.c.bf16 %v291_v0, %v10039_v17  ;;  %vm15311_vm6 = vmmov %vm15310_vm5 }
 0x15c   :  { %v15038_v61 = vunpack.i.l.bf16 %v10026_v7  ;;  %v832_v30 = vsel %vm15310_vm5, %v15309_v31, %v7261_v43  ;;  %vm15315_vm5 = vcmp.lt.s32.totalorder %v8381_v15, 95 }
 0x15d   :  { %1409 = vmatprep.subr.bf16.mxu0 %v1110_v55  ;;  %v15308_v55 = vunpack.i.l.bf16 %v9677_v51  ;;  %v831_v51 = vsel %vm15311_vm6, %v7261_v43, %v15042_v56  ;;  %v15314_v56 = vunpack.i.l.bf16 %v9817_v41  ;;  %vm15316_vm6 = vmmov %vm15315_vm5 }
 0x15e   :  { %1410 = vmatpush1.bf16.msra.mxu0 %v1109_v40  ;;  %v10042_v63 = vpop.permute.xlu1 %7383  ;;  %v290_v11 = vsel %vm15304_vm7, %v7296_v3, %v15038_v61  ;;  %v7306_v3 = vunpack.i.h.bf16 %v9808_v35  ;;  %v7301_v61 = vunpack.i.h.bf16 %v9817_v41  ;;  %vm15313_vm7 = vcmp.lt.s32.totalorder %v8381_v15, 94 }
 0x15f   :  { %v10054_v13 = vpop.permute.xlu0 %7378  ;;  %v1032_v48 = vpack.c.bf16 %v290_v11, %v10048_v60  ;;  %v881_v40 = vsel %vm15048_vm4, %v15308_v55, %v7266_v1  ;;  %v15044_v11 = vunpack.i.l.bf16 %v10042_v63 }
 0x160   :  { %v15043_v2 = vunpack.i.l.bf16 %v10054_v13  ;;  %v1125_v31 = vpack.c.bf16 %v881_v40, %v832_v30  ;;  %v389_v43 = vsel %vm15313_vm7, %v15312_v21, %v7306_v3 }
 0x161   :  { %1440 = vmatprep.subr.bf16.mxu1 %v1032_v48  ;;  %v339_v30 = vsel %vm15316_vm6, %v7301_v61, %v15044_v11  ;;  %vm15320_vm6 = vcmp.lt.s32.totalorder %v8381_v15, 29  ;;  %v7316_v11 = vunpack.i.h.bf16 %v9840_v58 }
 0x162   :  { %1441 = vmatpush1.bf16.msra.mxu1 %v1031_v44  ;;  %v10070_v37 = vpop.permute.xlu1 %7393  ;;  %v880_v14 = vsel %vm15048_vm4, %v7266_v1, %v15043_v2  ;;  %v7286_v44 = vunpack.i.h.bf16 %v9749_v62  ;;  %v340_v1 = vsel %vm15315_vm5, %v15314_v56, %v7301_v61  ;;  %vm15318_vm5 = vcmp.lt.s32.totalorder %v8381_v15, 28 }
 0x163   :  { %v10080_v0 = vpop.permute.xlu0 %7388  ;;  %v1126_v55 = vpack.c.bf16 %v880_v14, %v831_v51  ;;  %v15046_v51 = vunpack.i.l.bf16 %v10070_v37  ;;  %v1047_v40 = vpack.c.bf16 %v389_v43, %v340_v1  ;;  %v15319_v2 = vunpack.i.l.bf16 %v9756_v26 }
 0x164   :  { %v15045_v48 = vunpack.i.l.bf16 %v10080_v0 }
 0x165   :  { %1411 = vmatprep.subr.bf16.mxu0 %v1126_v55  ;;  %v15317_v55 = vunpack.i.l.bf16 %v9749_v62  ;;  %v930_v61 = vsel %vm15320_vm6, %v15319_v2, %v7281_v27  ;;  %v7321_v2 = vunpack.i.h.bf16 %v9878_v5 }
 0x166   :  { %1412 = vmatpush1.bf16.msra.mxu0 %v1125_v31  ;;  %v10094_v14 = vpop.permute.xlu1 %7403  ;;  %v388_v21 = vsel %vm15313_vm7, %v7306_v3, %v15045_v48  ;;  %v7311_v3 = vunpack.i.h.bf16 %v9847_v6  ;;  %vm15321_vm7 = vmmov %vm15320_vm6  ;;  %v487_v48 = vsel %vm482_vm9, %v7315_v22, %v7316_v11  ;;  %vm15325_vm6 = vcmp.lt.s32.totalorder %v8381_v15, 64 }
 0x167   :  { %v10104_v35 = vpop.permute.xlu0 %7398  ;;  %v1048_v41 = vpack.c.bf16 %v388_v21, %v339_v30  ;;  %v979_v31 = vsel %vm15318_vm5, %v15317_v55, %v7286_v44  ;;  %v7326_v30 = vunpack.i.h.bf16 %v9871_v16  ;;  %v7405_v21 = vunpack.i.l.bf16 %v10094_v14 }
 0x168   :  { %v15047_v56 = vunpack.i.l.bf16 %v10104_v35  ;;  %v929_v26 = vsel %vm15321_vm7, %v7281_v27, %v15046_v51  ;;  %v15322_v27 = vunpack.i.l.bf16 %v9847_v6  ;;  %v15324_v6 = vunpack.i.l.bf16 %v9878_v5  ;;  %vm15326_vm7 = vmmov %vm15325_vm6 }
 0x169   :  { %1442 = vmatprep.subr.bf16.mxu1 %v1048_v41  ;;  %v437_v58 = vsel %vm433_vm8, %v7311_v3, %v7405_v21  ;;  %v1157_v5 = vpack.c.bf16 %v9814_v42, %v9814_v42 }
 0x16a   :  { %1443 = vmatpush1.bf16.msra.mxu1 %v1047_v40  ;;  %v10119_v43 = vpop.permute.xlu1 %7413  ;;  %v978_v62 = vsel %vm15318_vm5, %v7286_v44, %v15047_v56  ;;  %v1141_v40 = vpack.c.bf16 %v979_v31, %v930_v61  ;;  %v438_v51 = vsel %vm433_vm8, %v15322_v27, %v7311_v3  ;;  %v15323_v44 = vunpack.i.l.bf16 %v9871_v16 }
 0x16b   :  { %v10130_v1 = vpop.permute.xlu0 %7408  ;;  %v1142_v41 = vpack.c.bf16 %v978_v62, %v929_v26  ;;  %v7415_v26 = vunpack.i.l.bf16 %v10119_v43  ;;  %v536_v16 = vsel %vm15325_vm6, %v15324_v6, %v7321_v2  ;;  %v7336_v61 = vunpack.i.h.bf16 %v9900_v57 }
 0x16c   :  { %v7410_v55 = vunpack.i.l.bf16 %v10130_v1  ;;  %v585_v56 = vsel %vm580_vm11, %v15323_v44, %v7326_v30  ;;  %v7341_v62 = vunpack.i.h.bf16 %v9929_v52  ;;  %v1063_v44 = vpack.c.bf16 %v487_v48, %v438_v51 }
 0x16d   :  { %1413 = vmatprep.subr.bf16.mxu0 %v1142_v41  ;;  %v1079_v48 = vpack.c.bf16 %v585_v56, %v536_v16  ;;  %v15327_v51 = vunpack.i.l.bf16 %v9900_v57  ;;  %v7361_v56 = vunpack.i.h.bf16 %v9996_v25  ;;  %v1158_v16 = vpack.c.bf16 %v10039_v17, %v10039_v17 }
 0x16e   :  { %1414 = vmatpush1.bf16.msra.mxu0 %v1141_v40  ;;  %v10146_v31 = vpop.permute.xlu1 %7423  ;;  %v486_v22 = vsel %vm482_vm9, %v7316_v11, %v7410_v55  ;;  %v1208_v17 = vsel %vm15142_vm10, %v1157_v5, 0  ;;  %v7376_v5 = vunpack.i.h.bf16 %v10016_v34  ;;  %vm15332_vm5 = vcmp.lt.s32.totalorder %v8381_v15, 31 }
 0x16f   :  { %v10162_v41 = vpop.permute.xlu0 %7418  ;;  %1415 = vmatprep.subr.bf16.mxu0 %v9942_v23  ;;  %v1064_v40 = vpack.c.bf16 %v486_v22, %v437_v58  ;;  %v15049_v3 = vunpack.i.l.bf16 %v10146_v31  ;;  %v535_v23 = vsel %vm15326_vm7, %v7321_v2, %v7415_v26  ;;  %v634_v42 = vsel %vm629_vm12, %v15327_v51, %v7336_v61  ;;  %vm15334_vm6 = vmmov %vm15332_vm5 }
 0x170   :  { %v7420_v27 = vunpack.i.l.bf16 %v10162_v41  ;;  %v15328_v22 = vunpack.i.l.bf16 %v9929_v52  ;;  %vm15339_vm7 = vcmp.lt.s32.totalorder %v8381_v15, 29 }
 0x171   :  { %1444 = vmatprep.subr.bf16.mxu1 %v1064_v40  ;;  %v633_v52 = vsel %vm629_vm12, %v7336_v61, %v15049_v3 }
 0x172   :  { %1416 = vmatpush1.bf16.msra.mxu0 %v9690_v36  ;;  %1445 = vmatpush1.bf16.msra.mxu1 %v1063_v44  ;;  %v10170_v11 = vpop.permute.xlu1 %719  ;;  %v584_v58 = vsel %vm580_vm11, %v7326_v30, %v7420_v27  ;;  %v7331_v36 = vunpack.i.h.bf16 %v9906_v8  ;;  %v683_v6 = vsel %vm678_vm13, %v15328_v22, %v7341_v62  ;;  %v7356_v30 = vunpack.i.h.bf16 %v9959_v29 }
 0x173   :  { %v10189_v40 = vpop.permute.xlu0 %670  ;;  %1417 = vmatprep.subr.bf16.mxu0 %v10001_v4  ;;  %v1080_v2 = vpack.c.bf16 %v584_v58, %v535_v23  ;;  %v15329_v23 = vunpack.i.l.bf16 %v9906_v8  ;;  %v1095_v61 = vpack.c.bf16 %v683_v6, %v634_v42  ;;  %v15331_v8 = vunpack.i.l.bf16 %v9996_v25 }
 0x174   :  { %v682_v57 = vsel %vm678_vm13, %v7341_v62, %v10189_v40 }
 0x175   :  { %1446 = vmatprep.subr.bf16.mxu1 %v1080_v2  ;;  %v1096_v44 = vpack.c.bf16 %v682_v57, %v633_v52  ;;  %v93_v62 = vsel %vm90_vm1, %v15329_v23, %v7331_v36  ;;  %v781_v22 = vsel %vm776_vm15, %v15331_v8, %v7361_v56  ;;  %v731_v2 = vsel %vm727_vm14, %v7356_v30, %v10170_v11 }
 0x176   :  { %1418 = vmatpush1.bf16.msra.mxu0 %v9758_v18  ;;  %1447 = vmatpush1.bf16.msra.mxu1 %v1079_v48  ;;  %v10204_v4 = vpop.permute.xlu1 %7428  ;;  %v15330_v18 = vunpack.i.l.bf16 %v9959_v29  ;;  %v7381_v29 = vunpack.i.h.bf16 %v10054_v13  ;;  %v15333_v8 = vunpack.i.l.bf16 %v10016_v34 }
 0x177   :  { %v7430_v58 = vunpack.i.l.bf16 %v10204_v4  ;;  %v10211_v51 = vpop.permute.xlu0 %768  ;;  %6383 = vmatprep.subr.msk.bf16.mxu0 %vm15142_vm10, %v1158_v16  ;;  %1448 = vmatprep.subr.bf16.mxu1 %v1096_v44  ;;  %v7346_v44 = vunpack.i.h.bf16 %v9921_v46 }
 0x178   :  { %v732_v48 = vsel %vm727_vm14, %v15330_v18, %v7356_v30  ;;  %v780_v57 = vsel %vm776_vm15, %v7361_v56, %v10211_v51  ;;  %v8115_v30 = vld [vmem:[%s14884_s0 + $0x68] sm:$0xff]  ;;  %v7351_v18 = vunpack.i.h.bf16 %v9972_v47 }
 0x179   :  { %v1112_v42 = vpack.c.bf16 %v780_v57, %v731_v2  ;;  %v92_v25 = vsel %vm90_vm1, %v7331_v36, %v7430_v58  ;;  %v1111_v23 = vpack.c.bf16 %v781_v22, %v732_v48  ;;  %v830_v2 = vsel %vm15334_vm6, %v15333_v8, %v7376_v5 }
 0x17a   :  { %1420 = vmatpush1.bf16.msra.mxu0 %v1208_v17  ;;  %1449 = vmatpush1.bf16.msra.mxu1 %v1095_v61  ;;  %v10235_v6 = vpop.permute.xlu1 %866  ;;  %v10240_v52 = vpack.c.bf16 %v92_v25, %v8115_v30  ;;  %v8116_v17 = vld [vmem:[%s14884_s0 + $0x60] sm:$0xff]  ;;  %v15335_v57 = vunpack.i.l.bf16 %v10054_v13  ;;  %v7401_v25 = vunpack.i.h.bf16 %v10104_v35  ;;  %v7366_v8 = vunpack.i.h.bf16 %v9986_v28 }
 0x17b   :  { %v878_v56 = vsel %vm15048_vm4, %v7381_v29, %v10235_v6  ;;  %v10245_v16 = vpop.permute.xlu0 %817  ;;  %1450 = vmatprep.subr.bf16.mxu1 %v1112_v42  ;;  %v1001_v61 = vpack.c.bf16 %v93_v62, %v8116_v17  ;;  %v7396_v62 = vunpack.i.h.bf16 %v10070_v37 }
 0x17c   :  { %v829_v36 = vsel %vm15332_vm5, %v7376_v5, %v10245_v16  ;;  %1477 = vmatprep.subr.bf16.mxu0 %v10240_v52  ;;  %v879_v42 = vsel %vm15048_vm4, %v15335_v57, %v7381_v29  ;;  %v15336_v29 = vunpack.i.l.bf16 %v9921_v46  ;;  %v7371_v57 = vunpack.i.h.bf16 %v10026_v7  ;;  %vm15343_vm4 = vmmov %vm15339_vm7 }
 0x17d   :  { %1428 = vmatmul.mubr.bf16.vlgmr.msra.gmra.mrb[8].mxu0 %v9035_v10  ;;  %v1128_v48 = vpack.c.bf16 %v878_v56, %v829_v36  ;;  %v1127_v5 = vpack.c.bf16 %v879_v42, %v830_v2  ;;  %v15337_v36 = vunpack.i.l.bf16 %v9972_v47  ;;  %v15338_v47 = vunpack.i.l.bf16 %v10070_v37 }
 0x17e   :  { %1451 = vmatpush1.bf16.msra.mxu1 %v1111_v23  ;;  %1478 = vmatpush1.bf16.msra.mxu0 %v1001_v61  ;;  %v10265_v22 = vpop.permute.xlu1 %7438  ;;  %v142_v56 = vsel %vm15149_vm2, %v15336_v29, %v7346_v44  ;;  %vm15341_vm5 = vcmp.lt.s32.totalorder %v8381_v15, 28 }
 0x17f   :  { %v7440_v34 = vunpack.i.l.bf16 %v10265_v22  ;;  %v10270_v30 = vpop.permute.xlu0 %7433  ;;  %1452 = vmatprep.subr.bf16.mxu1 %v1128_v48  ;;  %6388 = vmatprep.mubr.msk.bf16.mxu0 %vm1178_vm0, %v8360_v12  ;;  %v191_v23 = vsel %vm188_vm3, %v15337_v36, %v7351_v18  ;;  %v928_v42 = vsel %vm15339_vm7, %v15338_v47, %v7396_v62  ;;  %v15340_v48 = vunpack.i.l.bf16 %v10104_v35  ;;  %vm15342_vm6 = vmmov %vm15341_vm5 }
 0x180   :  { %v15050_v13 = vunpack.i.l.bf16 %v10270_v30  ;;  %v7386_v35 = vunpack.i.h.bf16 %v10042_v63  ;;  %vm15345_vm7 = vcmp.lt.s32.totalorder %v8381_v15, 124 }
 0x181   :  { %v190_v17 = vsel %vm188_vm3, %v7351_v18, %v7440_v34  ;;  %v977_v18 = vsel %vm15341_vm5, %v15340_v48, %v7401_v25  ;;  %vm15347_vm5 = vcmp.lt.s32.totalorder %v8381_v15, 96 }
 0x182   :  { %1453 = vmatpush1.bf16.msra.mxu1 %v1127_v5  ;;  %v10289_v2 = vpop.permute.xlu1 %964  ;;  %v141_v46 = vsel %vm15149_vm2, %v7346_v44, %v15050_v13  ;;  %v1017_v44 = vpack.c.bf16 %v191_v23, %v142_v56  ;;  %v1143_v3 = vpack.c.bf16 %v977_v18, %v928_v42  ;;  %v7391_v56 = vunpack.i.h.bf16 %v10080_v0 }
 0x183   :  { %v976_v5 = vsel %vm15342_vm6, %v7401_v25, %v10289_v2  ;;  %v10306_v29 = vpop.permute.xlu0 %915  ;;  %v10308_v36 = vpack.c.bf16 %v190_v17, %v141_v46  ;;  %v15344_v25 = vunpack.i.l.bf16 %v9986_v28  ;;  %v15346_v46 = vunpack.i.l.bf16 %v10026_v7  ;;  %vm15349_vm6 = vmmov %vm15345_vm7 }
 0x184   :  { %v927_v37 = vsel %vm15343_vm4, %v7396_v62, %v10306_v29  ;;  %vm15348_vm4 = vmmov %vm15347_vm5  ;;  %v15350_v42 = vunpack.i.l.bf16 %v10042_v63 }
 0x185   :  { %1479 = vmatprep.subr.bf16.mxu0 %v10308_v36  ;;  %v1144_v47 = vpack.c.bf16 %v976_v5, %v927_v37  ;;  %v240_v17 = vsel %vm15345_vm7, %v15344_v25, %v7366_v8  ;;  %v289_v62 = vsel %vm15347_vm5, %v15346_v46, %v7371_v57  ;;  %vm15351_vm7 = vcmp.lt.s32.totalorder %v8381_v15, 95 }
 0x186   :  { %1480 = vmatpush1.bf16.msra.mxu0 %v1017_v44  ;;  %v10315_v48 = vpop.permute.xlu1 %282  ;;  %v338_v18 = vsel %vm15351_vm7, %v15350_v42, %v7386_v35  ;;  %v15352_v25 = vunpack.i.l.bf16 %v10080_v0  ;;  %vm15353_vm5 = vcmp.lt.s32.totalorder %v8381_v15, 94  ;;  %v7431_v46 = vunpack.i.h.bf16 %v10204_v4 }
 0x187   :  { %v288_v23 = vsel %vm15348_vm4, %v7371_v57, %v10315_v48  ;;  %v10329_v5 = vpop.permute.xlu0 %233  ;;  %1454 = vmatprep.subr.bf16.mxu1 %v1144_v47  ;;  %v1033_v57 = vpack.c.bf16 %v289_v62, %v240_v17  ;;  %vm15354_vm4 = vmmov %vm15353_vm5 }
 0x188   :  { %v10334_v28 = vsel %vm15349_vm6, %v7366_v8, %v10329_v5  ;;  %1455 = vmatpush1.bf16.msra.mxu1 %v1143_v3  ;;  %v387_v47 = vsel %vm15353_vm5, %v15352_v25, %v7391_v56  ;;  %v7406_v8 = vunpack.i.h.bf16 %v10094_v14  ;;  %v7411_v3 = vunpack.i.h.bf16 %v10130_v1  ;;  %vm15355_vm6 = vmmov %vm15351_vm7 }
 0x189   :  { %1456 = vmatprep.subr.bf16.mxu1 %v1001_v61  ;;  %v1034_v7 = vpack.c.bf16 %v288_v23, %v10334_v28  ;;  %v7416_v23 = vunpack.i.h.bf16 %v10119_v43  ;;  %v1049_v25 = vpack.c.bf16 %v387_v47, %v338_v18  ;;  %v7436_v14 = vunpack.i.h.bf16 %v10270_v30 }
 0x18a   :  { %v10341_v37 = vpop.permute.xlu1 %380  ;;  %v436_v13 = vsel %vm433_vm8, %v7405_v21, %v7406_v8  ;;  %v15356_v1 = vunpack.i.l.bf16 %v8407_v24  ;;  %vm15357_vm7 = vcmp.lt.s32.totalorder %v8381_v15, 64 }
 0x18b   :  { %v386_v61 = vsel %vm15354_vm4, %v7391_v56, %v10341_v37  ;;  %v10352_v63 = vpop.permute.xlu0 %331  ;;  %1481 = vmatprep.subr.bf16.mxu0 %v1034_v7  ;;  %v1160_v56 = vpack.c.bf16 %v240_v17, %v240_v17  ;;  %v1159_v7 = vpack.c.bf16 %v10048_v60, %v10048_v60  ;;  %v7441_v60 = vunpack.i.h.bf16 %v10265_v22  ;;  %vm15358_vm5 = vmmov %vm15357_vm7 }
 0x18c   :  { %v337_v0 = vsel %vm15355_vm6, %v7386_v35, %v10352_v63  ;;  %1457 = vmatpush1.bf16.msra.mxu1 %v9934_v39  ;;  %1482 = vmatpush1.bf16.msra.mxu0 %v1033_v57  ;;  %v485_v39 = vsel %vm482_vm9, %v7410_v55, %v7411_v3  ;;  %v106_v55 = vsel %vm90_vm1, %v7431_v46, %v15356_v1  ;;  %vm15366_vm6 = vcmp.lt.s32.totalorder %v8381_v15, 124 }
 0x18d   :  { %1458 = vmatprep.subr.bf16.mxu1 %v1017_v44  ;;  %v1050_v62 = vpack.c.bf16 %v386_v61, %v337_v0  ;;  %v7421_v44 = vunpack.i.h.bf16 %v10162_v41  ;;  %v534_v57 = vsel %vm15357_vm7, %v7415_v26, %v7416_v23  ;;  %vm15368_vm7 = vmmov %vm15366_vm6 }
 0x18e   :  { %v10360_v42 = vpop.permute.xlu1 %478 }
 0x18f   :  { %v484_v35 = vsel %vm482_vm9, %v7411_v3, %v10360_v42  ;;  %v10376_v17 = vpop.permute.xlu0 %429  ;;  %1483 = vmatprep.subr.bf16.mxu0 %v1050_v62  ;;  %v1065_v3 = vpack.c.bf16 %v485_v39, %v436_v13  ;;  %v583_v24 = vsel %vm580_vm11, %v7420_v27, %v7421_v44  ;;  %v8117_v13 = vld [vmem:[%s14884_s0 + $0x78] sm:$0xff]  ;;  %v7426_v27 = vunpack.i.h.bf16 %v10146_v31 }
 0x190   :  { %v435_v21 = vsel %vm433_vm8, %v7406_v8, %v10376_v17  ;;  %1459 = vmatpush1.bf16.msra.mxu1 %v9998_v54  ;;  %1484 = vmatpush1.bf16.msra.mxu0 %v1049_v25  ;;  %v1214_v8 = vsel %vm15142_vm10, %v1159_v7, 0  ;;  %v91_v54 = vsel %vm90_vm1, %v7430_v58, %v7431_v46  ;;  %v10412_v41 = vpack.c.bf16 %v106_v55, %v8117_v13 }
 0x191   :  { %6385 = vmatprep.subr.msk.bf16.mxu1 %vm15142_vm10, %v1160_v56  ;;  %v1066_v18 = vpack.c.bf16 %v484_v35, %v435_v21  ;;  %v15359_v58 = vunpack.i.l.bf16 %v8435_v33  ;;  %v15360_v46 = vunpack.i.l.bf16 %v8433_v32  ;;  %v1081_v56 = vpack.c.bf16 %v583_v24, %v534_v57  ;;  %v8118_v33 = vld [vmem:[%s14884_s0 + $0x70] sm:$0xff]  ;;  %s8141_s0 = smov 122  }
 0x192   :  { %v10393_v47 = vpop.permute.xlu1 %576  ;;  %v10436_v7 = vpack.c.bf16 %v91_v54, %v8118_v33  ;;  %v15361_v32 = vunpack.i.l.bf16 %v10270_v30 }
 0x193   :  { %v582_v43 = vsel %vm580_vm11, %v7421_v44, %v10393_v47  ;;  %v10407_v26 = vpop.permute.xlu0 %527  ;;  %1485 = vmatprep.subr.bf16.mxu0 %v1066_v18  ;;  %v155_v61 = vsel %vm15149_vm2, %v7436_v14, %v15359_v58  ;;  %v204_v0 = vsel %vm188_vm3, %v7441_v60, %v15360_v46  ;;  %v15364_v58 = vunpack.i.l.bf16 %v8485_v49 }
 0x194   :  { %v533_v4 = vsel %vm15358_vm5, %v7416_v23, %v10407_v26  ;;  %1461 = vmatpush1.bf16.msra.mxu1 %v1214_v8  ;;  %1486 = vmatpush1.bf16.msra.mxu0 %v1065_v3  ;;  %v189_v23 = vsel %vm188_vm3, %v7440_v34, %v7441_v60  ;;  %v140_v39 = vsel %vm15149_vm2, %v15361_v32, %v7436_v14  ;;  %v15362_v60 = vunpack.i.l.bf16 %v10146_v31 }
 0x195   :  { %1518 = vmatprep.subr.bf16.mxu1 %v10412_v41  ;;  %v1082_v62 = vpack.c.bf16 %v582_v43, %v533_v4  ;;  %v10447_v34 = vpack.c.bf16 %v204_v0, %v155_v61  ;;  %v10469_v55 = vpack.c.bf16 %v189_v23, %v140_v39  ;;  %vm15363_vm3 = vcmp.lt.s32.totalorder %v8381_v15, 96 }
 0x196   :  { %v10431_v25 = vpop.permute.xlu1 %7443  ;;  %v632_v21 = vsel %vm629_vm12, %v15362_v60, %v7426_v27  ;;  %vm15365_vm4 = vmmov %vm15363_vm3  ;;  %v15367_v23 = vunpack.i.l.bf16 %v8487_v50  ;;  %vm15369_vm5 = vcmp.lt.s32.totalorder %v8381_v15, 30 }
 0x197   :  { %v7446_v44 = vunpack.i.h.bf16 %v10431_v25  ;;  %v7445_v22 = vunpack.i.l.bf16 %v10431_v25  ;;  %v10444_v35 = vpop.permute.xlu0 %625  ;;  %1469 = vmatmul.mubr.bf16.vlgmr.msra.gmra.mrb[8].mxu1 %v9035_v10  ;;  %1487 = vmatprep.subr.bf16.mxu0 %v1082_v62 }
 0x198   :  { %1488 = vmatpush1.bf16.msra.mxu0 %v1081_v56  ;;  %1519 = vmatpush1.bf16.msra.mxu1 %v10436_v7  ;;  %v631_v14 = vsel %vm629_vm12, %v7426_v27, %v10444_v35 }
 0x199   :  { %v681_v30 = vsel %vm678_vm13, %v10189_v40, %v7445_v22  ;;  %1520 = vmatprep.subr.bf16.mxu1 %v10447_v34  ;;  %v680_v31 = vsel %vm678_vm13, %v7445_v22, %v7446_v44  ;;  %6390 = vmatprep.mubr.msk.bf16.mxu1 %vm1178_vm0, %v8360_v12 }
 0x19a   :  { %v10467_v1 = vpop.permute.xlu1 %7453  ;;  %v1098_v18 = vpack.c.bf16 %v680_v31, %v631_v14  ;;  %v1097_v40 = vpack.c.bf16 %v681_v30, %v632_v21 }
 0x19b   :  { %v7456_v57 = vunpack.i.h.bf16 %v10467_v1  ;;  %v7455_v8 = vunpack.i.l.bf16 %v10467_v1  ;;  %v10473_v3 = vpop.permute.xlu0 %7448  ;;  %v15399_v1 = vunpack.i.l.bf16 %v8768_v9 }
 0x19c   :  { %v7451_v24 = vunpack.i.h.bf16 %v10473_v3  ;;  %v7450_v54 = vunpack.i.l.bf16 %v10473_v3  ;;  %1521 = vmatpush1.bf16.msra.mxu1 %v10469_v55  ;;  %1489 = vmatprep.subr.bf16.mxu0 %v1098_v18 }
 0x19d   :  { %v779_v12 = vsel %vm776_vm15, %v10211_v51, %v7455_v8  ;;  %1490 = vmatpush1.bf16.msra.mxu0 %v1097_v40  ;;  %v778_v43 = vsel %vm776_vm15, %v7455_v8, %v7456_v57 }
 0x19e   :  { %v730_v13 = vsel %vm727_vm14, %v10170_v11, %v7450_v54  ;;  %v285_v27 = vpop.permute.xlu1 %284  ;;  %v729_v4 = vsel %vm727_vm14, %v7450_v54, %v7451_v24 }
 0x19f   :  { %v287_v51 = vsel %vm15363_vm3, %v10315_v48, %v285_v27  ;;  %v302_v61 = vsel %vm15365_vm4, %v285_v27, %v15364_v58  ;;  %v236_v46 = vpop.permute.xlu0 %235  ;;  %v1114_v0 = vpack.c.bf16 %v778_v43, %v729_v4  ;;  %v1113_v62 = vpack.c.bf16 %v779_v12, %v730_v13  ;;  %vm15370_vm3 = vmmov %vm15369_vm5  ;;  %v15378_v13 = vld [vmem:[#allocation6_spill] sm:$0xff] }
 0x1a0   :  { %v10502_v11 = vsel %vm15366_vm6, %v10329_v5, %v236_v46  ;;  %v10508_v56 = vsel %vm15368_vm7, %v236_v46, %v15367_v23  ;;  %vm15371_vm4 = vcmp.lt.s32.totalorder %v8381_v15, 31  ;;  %vm15373_vm7 = vcmp.lt.s32.totalorder %v8381_v15, 94 }
 0x1a1   :  { %v1035_v48 = vpack.c.bf16 %v287_v51, %v10502_v11  ;;  %1491 = vmatprep.subr.bf16.mxu0 %v1114_v0  ;;  %v1036_v49 = vpack.c.bf16 %v302_v61, %v10508_v56  ;;  %vm15372_vm6 = vmmov %vm15371_vm4  ;;  %v15379_v27 = vunpack.i.l.bf16 %v15378_v13 }
 0x1a2   :  { %1492 = vmatpush1.bf16.msra.mxu0 %v1113_v62  ;;  %v10512_v33 = vpop.permute.xlu1 %7463 }
 0x1a3   :  { %v7466_v32 = vunpack.i.h.bf16 %v10512_v33  ;;  %v7465_v39 = vunpack.i.l.bf16 %v10512_v33  ;;  %v10516_v5 = vpop.permute.xlu0 %7458  ;;  %1522 = vmatprep.subr.bf16.mxu1 %v1036_v49 }
 0x1a4   :  { %v7461_v50 = vunpack.i.h.bf16 %v10516_v5  ;;  %v7460_v22 = vunpack.i.l.bf16 %v10516_v5  ;;  %1523 = vmatpush1.bf16.msra.mxu1 %v1035_v48  ;;  %v15406_v5 = vunpack.i.l.bf16 %v8948_v38  ;;  %v15410_v38 = vld [vmem:[#allocation2_spill] sm:$0xff] }
 0x1a5   :  { %v877_v60 = vsel %vm15369_vm5, %v10235_v6, %v7465_v39  ;;  %v876_v21 = vsel %vm15370_vm3, %v7465_v39, %v7466_v32  ;;  %v15374_v6 = vld [vmem:[#allocation5_spill] sm:$0xff]  ;;  %vm15376_vm5 = vmmov %vm15373_vm7  ;;  %vm15377_vm3 = vcmp.lt.s32.totalorder %v8381_v15, 95 }
 0x1a6   :  { %v828_v30 = vsel %vm15371_vm4, %v10245_v16, %v7460_v22  ;;  %v383_v14 = vpop.permute.xlu1 %382  ;;  %v827_v31 = vsel %vm15372_vm6, %v7460_v22, %v7461_v50  ;;  %v15375_v40 = vunpack.i.l.bf16 %v15374_v6  ;;  %vm15380_vm4 = vmmov %vm15377_vm3  ;;  %vm15381_vm6 = vcmp.lt.s32.totalorder %v8381_v15, 28  ;;  %v15387_v6 = vld [vmem:[#allocation8_spill] sm:$0xff] }
 0x1a7   :  { %v385_v18 = vsel %vm15373_vm7, %v10341_v37, %v383_v14  ;;  %v334_v54 = vpop.permute.xlu0 %333  ;;  %v1130_v12 = vpack.c.bf16 %v876_v21, %v827_v31  ;;  %v1129_v43 = vpack.c.bf16 %v877_v60, %v828_v30  ;;  %vm15382_vm7 = vmmov %vm15381_vm6 }
 0x1a8   :  { %v400_v8 = vsel %vm15376_vm5, %v383_v14, %v15375_v40  ;;  %v336_v16 = vsel %vm15377_vm3, %v10352_v63, %v334_v54  ;;  %v351_v4 = vsel %vm15380_vm4, %v334_v54, %v15379_v27  ;;  %vm15383_vm5 = vcmp.lt.s32.totalorder %v8381_v15, 29 }
 0x1a9   :  { %v1051_v51 = vpack.c.bf16 %v385_v18, %v336_v16  ;;  %1493 = vmatprep.subr.bf16.mxu0 %v1130_v12  ;;  %v1052_v37 = vpack.c.bf16 %v400_v8, %v351_v4  ;;  %vm15384_vm3 = vmmov %vm15383_vm5  ;;  %v15388_v40 = vunpack.i.l.bf16 %v15387_v6  ;;  %v15389_v16 = vld [vmem:[#allocation10_spill] sm:$0xff] }
 0x1aa   :  { %1494 = vmatpush1.bf16.msra.mxu0 %v1129_v43  ;;  %v10548_v58 = vpop.permute.xlu1 %7473  ;;  %v15390_v13 = vunpack.i.l.bf16 %v15389_v16 }
 0x1ab   :  { %v7476_v61 = vunpack.i.h.bf16 %v10548_v58  ;;  %v7475_v46 = vunpack.i.l.bf16 %v10548_v58  ;;  %v10552_v0 = vpop.permute.xlu0 %7468  ;;  %1524 = vmatprep.subr.bf16.mxu1 %v1052_v37 }
 0x1ac   :  { %v7471_v63 = vunpack.i.h.bf16 %v10552_v0  ;;  %v7470_v62 = vunpack.i.l.bf16 %v10552_v0  ;;  %1525 = vmatpush1.bf16.msra.mxu1 %v1051_v51  ;;  %v15392_v51 = vld [vmem:[#allocation9_spill] sm:$0xff]  ;;  %v15412_v0 = vld [vmem:[#allocation4_spill] sm:$0xff] }
 0x1ad   :  { %v975_v23 = vsel %vm15381_vm6, %v10289_v2, %v7475_v46  ;;  %v974_v48 = vsel %vm15382_vm7, %v7475_v46, %v7476_v61  ;;  %v15385_v2 = vld [vmem:[#allocation7_spill] sm:$0xff]  ;;  %v15393_v37 = vunpack.i.l.bf16 %v15392_v51  ;;  %vm15407_vm7 = vmmov %vm15381_vm6 }
 0x1ae   :  { %v926_v49 = vsel %vm15383_vm5, %v10306_v29, %v7470_v62  ;;  %v481_v39 = vpop.permute.xlu1 %480  ;;  %v925_v22 = vsel %vm15384_vm3, %v7470_v62, %v7471_v63  ;;  %v15386_v21 = vunpack.i.l.bf16 %v15385_v2  ;;  %vm15408_vm5 = vmmov %vm15384_vm3 }
 0x1af   :  { %v483_v60 = vsel %vm482_vm9, %v10360_v42, %v481_v39  ;;  %v432_v14 = vpop.permute.xlu0 %431  ;;  %v1146_v31 = vpack.c.bf16 %v974_v48, %v925_v22  ;;  %v1145_v18 = vpack.c.bf16 %v975_v23, %v926_v49  ;;  %v15395_v48 = vld [vmem:[#allocation11_spill] sm:$0xff] }
 0x1b0   :  { %v498_v30 = vsel %vm482_vm9, %v481_v39, %v15386_v21  ;;  %v434_v29 = vsel %vm433_vm8, %v10376_v17, %v432_v14  ;;  %v449_v8 = vsel %vm433_vm8, %v432_v14, %v15388_v40  ;;  %vm15391_vm8 = vcmp.lt.s32.totalorder %v8381_v15, 64 }
 0x1b1   :  { %v1067_v54 = vpack.c.bf16 %v483_v60, %v434_v29  ;;  %1495 = vmatprep.subr.bf16.mxu0 %v1146_v31  ;;  %v1068_v42 = vpack.c.bf16 %v498_v30, %v449_v8  ;;  %vm15394_vm9 = vmmov %vm15391_vm8  ;;  %v15396_v49 = vunpack.i.l.bf16 %v15395_v48  ;;  %v1162_v60 = vpack.c.bf16 %v10502_v11, %v10502_v11 }
 0x1b2   :  { %1496 = vmatpush1.bf16.msra.mxu0 %v1145_v18  ;;  %v579_v12 = vpop.permute.xlu1 %578 }
 0x1b3   :  { %v581_v43 = vsel %vm580_vm11, %v10393_v47, %v579_v12  ;;  %v596_v27 = vsel %vm580_vm11, %v579_v12, %v15390_v13  ;;  %v530_v17 = vpop.permute.xlu0 %529  ;;  %1497 = vmatprep.subr.bf16.mxu0 %v10436_v7  ;;  %1526 = vmatprep.subr.bf16.mxu1 %v1068_v42  ;;  %vm15400_vm11 = vcmp.lt.s32.totalorder %v8381_v15, 30  ;;  %v15404_v42 = vunpack.i.l.bf16 %v8842_v20 }
 0x1b4   :  { %v532_v4 = vsel %vm15391_vm8, %v10407_v26, %v530_v17  ;;  %v547_v46 = vsel %vm15394_vm9, %v530_v17, %v15393_v37  ;;  %1527 = vmatpush1.bf16.msra.mxu1 %v1067_v54  ;;  %v15409_v13 = vunpack.i.l.bf16 %v8910_v19  ;;  %v15411_v17 = vld [vmem:[#allocation3_spill] sm:$0xff]  ;;  %v1163_v19 = vpack.c.bf16 %v10508_v56, %v10508_v56 }
 0x1b5   :  { %v1083_v47 = vpack.c.bf16 %v581_v43, %v532_v4  ;;  %v1084_v62 = vpack.c.bf16 %v596_v27, %v547_v46  ;;  %v1164_v4 = vpack.c.bf16 %v15412_v0, %v15412_v0  ;;  %vm15413_vm8 = vcmp.lt.s32.totalorder %v8381_v15, 95 }
 0x1b6   :  { %1498 = vmatpush1.bf16.msra.mxu0 %v10240_v52  ;;  %v677_v23 = vpop.permute.xlu1 %676  ;;  %v15397_v52 = vunpack.i.l.bf16 %v8686_v53  ;;  %vm15414_vm9 = vmmov %vm15413_vm8 }
 0x1b7   :  { %v679_v7 = vsel %vm678_vm13, %v7446_v44, %v677_v23  ;;  %v694_v26 = vsel %vm678_vm13, %v677_v23, %v15396_v49  ;;  %v628_v39 = vpop.permute.xlu0 %627  ;;  %1499 = vmatprep.subr.bf16.mxu0 %v10469_v55  ;;  %1528 = vmatprep.subr.bf16.mxu1 %v1084_v62  ;;  %v1161_v44 = vpack.c.bf16 %v10334_v28, %v10334_v28  ;;  %vm15402_vm13 = vmmov %vm15400_vm11 }
 0x1b8   :  { %v630_v22 = vsel %vm629_vm12, %v10444_v35, %v628_v39  ;;  %v645_v25 = vsel %vm629_vm12, %v628_v39, %v15397_v52  ;;  %1529 = vmatpush1.bf16.msra.mxu1 %v1083_v47  ;;  %v15398_v35 = vunpack.i.l.bf16 %v8800_v45 }
 0x1b9   :  { %v1099_v2 = vpack.c.bf16 %v679_v7, %v630_v22  ;;  %v1100_v21 = vpack.c.bf16 %v694_v26, %v645_v25  ;;  %v1220_v18 = vsel %vm15142_vm10, %v1161_v44, 0 }
 0x1ba   :  { %1500 = vmatpush1.bf16.msra.mxu0 %v10308_v36  ;;  %v775_v55 = vpop.permute.xlu1 %774  ;;  %v1265_v30 = vpop.f32.mrb[0].mxu0 }
 0x1bb   :  { %v777_v53 = vsel %vm776_vm15, %v7456_v57, %v775_v55  ;;  %v792_v14 = vsel %vm776_vm15, %v775_v55, %v15398_v35  ;;  %v726_v28 = vpop.permute.xlu0 %725  ;;  %6387 = vmatprep.subr.msk.bf16.mxu0 %vm15142_vm10, %v1162_v60  ;;  %1530 = vmatprep.subr.bf16.mxu1 %v1100_v21  ;;  %v1267_v11 = vpop.f32.mrb[1].mxu0  ;;  %vm15403_vm15 = vcmp.lt.s32.totalorder %v8381_v15, 31 }
 0x1bc   :  { %v728_v36 = vsel %vm727_vm14, %v7451_v24, %v726_v28  ;;  %v743_v57 = vsel %vm727_vm14, %v726_v28, %v15399_v1  ;;  %1531 = vmatpush1.bf16.msra.mxu1 %v1099_v2  ;;  %v1269_v45 = vpop.f32.mrb[2].mxu0  ;;  %v15401_v24 = vunpack.i.l.bf16 %v8870_v59  ;;  %vm15405_vm4 = vmmov %vm15403_vm15 }
 0x1bd   :  { %v1115_v31 = vpack.c.bf16 %v777_v53, %v728_v36  ;;  %v1116_v29 = vpack.c.bf16 %v792_v14, %v743_v57  ;;  %v1270_v6 = vpop.f32.mrb[3].mxu0 }
 0x1be   :  { %1502 = vmatpush1.bf16.msra.mxu0 %v1220_v18  ;;  %v873_v40 = vpop.permute.xlu1 %872 }
 0x1bf   :  { %v875_v3 = vsel %vm15400_vm11, %v7466_v32, %v873_v40  ;;  %v890_v9 = vsel %vm15402_vm13, %v873_v40, %v15401_v24  ;;  %v824_v8 = vpop.permute.xlu0 %823  ;;  %1532 = vmatprep.subr.bf16.mxu1 %v1116_v29  ;;  %vm15415_vm11 = vcmp.lt.s32.totalorder %v8381_v15, 96 }
 0x1c0   :  { %v826_v54 = vsel %vm15403_vm15, %v7461_v50, %v824_v8  ;;  %v841_v33 = vsel %vm15405_vm4, %v824_v8, %v15404_v42  ;;  %1533 = vmatpush1.bf16.msra.mxu1 %v1115_v31  ;;  %vm15416_vm13 = vmmov %vm15415_vm11 }
 0x1c1   :  { %v1131_v12 = vpack.c.bf16 %v875_v3, %v826_v54  ;;  %1510 = vmatmul.mubr.bf16.vlgmr.msra.gmra.mrb[12].mxu0 %v9035_v10  ;;  %v1132_v59 = vpack.c.bf16 %v890_v9, %v841_v33  ;;  %vm15417_vm15 = vmmov %vm15413_vm8 }
 0x1c2   :  { %v971_v32 = vpop.permute.xlu1 %970  ;;  %vm15418_vm4 = vmmov %vm15415_vm11 }
 0x1c3   :  { %v973_v43 = vsel %vm15381_vm6, %v7476_v61, %v971_v32  ;;  %v988_v50 = vsel %vm15407_vm7, %v971_v32, %v15406_v5  ;;  %v922_v20 = vpop.permute.xlu0 %921  ;;  %1534 = vmatprep.subr.bf16.mxu1 %v1132_v59  ;;  %vm15419_vm6 = vmmov %vm15418_vm4 }
 0x1c4   :  { %v924_v16 = vsel %vm15408_vm5, %v7471_v63, %v922_v20  ;;  %v939_v58 = vsel %vm15384_vm3, %v922_v20, %v15409_v13  ;;  %1535 = vmatpush1.bf16.msra.mxu1 %v1131_v12  ;;  %v1226_v63 = vsel %vm15142_vm10, %v1163_v19, 0  ;;  %vm15420_vm7 = vmmov %vm15413_vm8 }
 0x1c5   :  { %v1147_v27 = vpack.c.bf16 %v973_v43, %v924_v16  ;;  %v1148_v61 = vpack.c.bf16 %v988_v50, %v939_v58  ;;  %vm15421_vm5 = vmmov %vm15420_vm7 }
 0x1c6   :  { %vm15422_vm3 = vmmov %vm15421_vm5 }
 0x1c7   :  { %1536 = vmatprep.subr.bf16.mxu1 %v1148_v61 }
 0x1c8   :  { %1537 = vmatpush1.bf16.msra.mxu1 %v1147_v27 }
 0x1c9   :  { %1538 = vmatprep.subr.bf16.mxu1 %v15410_v38 }
 0x1cc   :  { %1539 = vmatpush1.bf16.msra.mxu1 %v10412_v41 }
 0x1cd   :  { %1540 = vmatprep.subr.bf16.mxu1 %v15411_v17 }
 0x1d0   :  { %1541 = vmatpush1.bf16.msra.mxu1 %v10447_v34 }
 0x1d1   :  { %6389 = vmatprep.subr.msk.bf16.mxu1 %vm15142_vm10, %v1164_v4 }
 0x1d4   :  { %v10682_v51 = vpop.permute.xlu0 %1169  ;;  %v1306_v37 = vpop.f32.mrb[0].mxu1  ;;  %1543 = vmatpush1.bf16.msra.mxu1 %v1226_v63 }
 0x1d5   :  { %v10685_v41 = vadd.f32 %v1306_v37, %v10682_v51  ;;  %v1308_v46 = vpop.f32.mrb[1].mxu1  ;;  %v10688_v47 = vadd.f32 %v1267_v11, %v10682_v51  ;;  %v10691_v62 = vadd.f32 %v1265_v30, %v10682_v51 }
 0x1d6   :  { %v10694_v34 = vadd.f32 %v1308_v46, %v10682_v51  ;;  %v1310_v56 = vpop.f32.mrb[2].mxu1 }
 0x1d7   :  { %v1561_v23 = vmax.f32 %v10685_v41, 0.0  ;;  %1551 = vmatmul.mubr.bf16.vlgmr.msra.gmra.mrb[12].mxu1 %v9035_v10  ;;  %v1560_v7 = vmax.f32 %v10688_v47, 0.0  ;;  %v1311_v48 = vpop.f32.mrb[3].mxu1  ;;  %v1559_v39 = vmax.f32 %v10691_v62, 0.0 }
 0x1d8   :  { %v1562_v49 = vmax.f32 %v10694_v34, 0.0 }
 0x1d9   :  { %v7488_v26 = vpack.i.bf16 %v1561_v23, %v1560_v7 }
 0x1da   :  { %v7483_v10 = vpack.i.bf16 %v1559_v39, %v1562_v49 }
 0x1db   :  { %7489 = vrot.lane.b32.xlu0 %v7488_v26, %s15171_s1  ;;  %7479 = vrot.lane.b32.xlu1 %v7488_v26, %s15232_s24 }
 0x1df   :  { %7499 = vrot.lane.b32.xlu0 %v7488_v26, %s15175_s30  ;;  %7484 = vrot.lane.b32.xlu1 %v7483_v10, %s15232_s24 }
 0x1e3   :  { %7494 = vrot.lane.b32.xlu1 %v7483_v10, %s15171_s1 }
 0x1e7   :  { %7504 = vrot.lane.b32.xlu1 %v7483_v10, %s15175_s30 }
 0x204   :  { %v1347_v22 = vpop.f32.mrb[4].mxu0 }
 0x205   :  { %v10716_v52 = vadd.f32 %v1347_v22, %v10682_v51  ;;  %v1349_v25 = vpop.f32.mrb[5].mxu0 }
 0x206   :  { %v10719_v44 = vadd.f32 %v1349_v25, %v10682_v51  ;;  %v1351_v60 = vpop.f32.mrb[6].mxu0 }
 0x207   :  { %v1563_v2 = vmax.f32 %v10716_v52, 0.0  ;;  %v1352_v21 = vpop.f32.mrb[7].mxu0  ;;  %v10942_v52 = vld [vmem:[%s14887_s3 + $0x4] ss:$8 sps:$4 sm:$0xff]  }
 0x208   :  { %v1564_v55 = vmax.f32 %v10719_v44, 0.0  ;;  %6394 = vmatprep.mubr.msk.bf16.mxu0 %vm1178_vm0, %v10942_v52  ;;  %6396 = vmatprep.mubr.msk.bf16.mxu1 %vm1178_vm0, %v10942_v52 }
 0x20a   :  { %v7508_v30 = vpack.i.bf16 %v1564_v55, %v1563_v2 }
 0x20c   :  { %7509 = vrot.lane.b32.xlu0 %v7508_v30, %s15232_s24  ;;  %7514 = vrot.lane.b32.xlu1 %v7508_v30, %s15171_s1 }
 0x210   :  { %7519 = vrot.lane.b32.xlu0 %v7508_v30, %s15175_s30 }
 0x220   :  { %v1388_v53 = vpop.f32.mrb[4].mxu1 }
 0x221   :  { %v10731_v35 = vadd.f32 %v1388_v53, %v10682_v51  ;;  %v1390_v14 = vpop.f32.mrb[5].mxu1 }
 0x222   :  { %v10734_v28 = vadd.f32 %v1390_v14, %v10682_v51  ;;  %v1392_v11 = vpop.f32.mrb[6].mxu1 }
 0x223   :  { %v1565_v36 = vmax.f32 %v10731_v35, 0.0  ;;  %v1393_v1 = vpop.f32.mrb[7].mxu1 }
 0x224   :  { %v1566_v57 = vmax.f32 %v10734_v28, 0.0 }
 0x226   :  { %v7528_v45 = vpack.i.bf16 %v1566_v57, %v1565_v36 }
 0x228   :  { %7529 = vrot.lane.b32.xlu0 %v7528_v45, %s15171_s1  ;;  %7524 = vrot.lane.b32.xlu1 %v7528_v45, %s15232_s24 }
 0x22c   :  { %7534 = vrot.lane.b32.xlu1 %v7528_v45, %s15175_s30 }
 0x24d   :  { %v10745_v31 = vpop.permute.xlu1 %7479  ;;  %v7490_v12 = vpop.permute.xlu0 %7489 }
 0x24e   :  { %v7492_v13 = vunpack.i.h.bf16 %v7490_v12  ;;  %v7491_v58 = vunpack.i.l.bf16 %v7490_v12  ;;  %v7482_v27 = vunpack.i.h.bf16 %v10745_v31  ;;  %v7481_v61 = vunpack.i.l.bf16 %v10745_v31 }
 0x250   :  { %v1429_v18 = vpop.f32.mrb[8].mxu0  ;;  %v1684_v26 = vsel %vm15416_vm13, %v7491_v58, %v7492_v13  ;;  %v1620_v10 = vsel %vm90_vm1, %v7481_v61, %v7482_v27  ;;  %vm15426_vm13 = vmmov %vm15418_vm4 }
 0x251   :  { %v10748_v29 = vadd.f32 %v1429_v18, %v10682_v51  ;;  %v1431_v6 = vpop.f32.mrb[9].mxu0  ;;  %v10755_v54 = vpop.permute.xlu1 %7484  ;;  %v1624_v53 = vmax.f32 %v1560_v7, %v1620_v10 }
 0x252   :  { %v10751_v40 = vadd.f32 %v1431_v6, %v10682_v51  ;;  %v1433_v3 = vpop.f32.mrb[10].mxu0  ;;  %v7500_v32 = vpop.permute.xlu0 %7499  ;;  %v7486_v20 = vunpack.i.l.bf16 %v10755_v54  ;;  %v15052_v45 = vunpack.i.h.bf16 %v10755_v54 }
 0x253   :  { %v1567_v24 = vmax.f32 %v10748_v29, 0.0  ;;  %v1434_v9 = vpop.f32.mrb[11].mxu0  ;;  %v7502_v5 = vunpack.i.h.bf16 %v7500_v32  ;;  %v7501_v50 = vunpack.i.l.bf16 %v7500_v32 }
 0x254   :  { %v15069_v8 = vmax.f32 %v10751_v40, 0.0  ;;  %v1619_v4 = vsel %vm90_vm1, %v7482_v27, %v7486_v20 }
 0x255   :  { %v10763_v33 = vpop.permute.xlu1 %7494  ;;  %v1732_v0 = vsel %vm15414_vm9, %v7501_v50, %v7502_v5  ;;  %v1625_v21 = vmax.f32 %v1561_v23, %v1619_v4  ;;  %vm15424_vm9 = vmmov %vm15418_vm4 }
 0x256   :  { %v7538_v42 = vpack.i.bf16 %v15069_v8, %v1567_v24  ;;  %v7496_v16 = vunpack.i.l.bf16 %v10763_v33  ;;  %v1736_v60 = vmax.f32 %v1684_v26, %v1732_v0  ;;  %v15053_v31 = vunpack.i.h.bf16 %v10763_v33 }
 0x258   :  { %7539 = vrot.lane.b32.xlu0 %v7538_v42, %s15232_s24  ;;  %7544 = vrot.lane.b32.xlu1 %v7538_v42, %s15171_s1  ;;  %v1683_v19 = vsel %vm15415_vm11, %v7492_v13, %v7496_v16  ;;  %v10803_v1 = vmax.f32 %v1624_v53, %v1736_v60  ;;  %v1685_v12 = vsel %vm15418_vm4, %v15053_v31, %v7491_v58  ;;  %vm15425_vm11 = vmmov %vm15422_vm3 }
 0x259   :  { %v10766_v59 = vpop.permute.xlu1 %7504 }
 0x25a   :  { %v7506_v43 = vunpack.i.l.bf16 %v10766_v59  ;;  %v15054_v47 = vunpack.i.h.bf16 %v10766_v59 }
 0x25c   :  { %7549 = vrot.lane.b32.xlu0 %v7538_v42, %s15175_s30  ;;  %v1731_v38 = vsel %vm15413_vm8, %v7502_v5, %v7506_v43  ;;  %v1733_v6 = vsel %vm15417_vm15, %v15054_v47, %v7501_v50  ;;  %v1621_v42 = vsel %vm90_vm1, %v15052_v45, %v7481_v61  ;;  %vm15423_vm8 = vmmov %vm15418_vm4 }
 0x25d   :  { %v1737_v46 = vmax.f32 %v1683_v19, %v1731_v38  ;;  %v1735_v50 = vmax.f32 %v1685_v12, %v1733_v6  ;;  %v1623_v61 = vmax.f32 %v1559_v39, %v1621_v42  ;;  %vm15427_vm15 = vmmov %vm15418_vm4 }
 0x25f   :  { %v10797_v14 = vmax.f32 %v1625_v21, %v1737_v46 }
 0x261   :  { %v7573_v41 = vpack.i.bf16 %v10797_v14, %v10803_v1 }
 0x26a   :  { %v1470_v17 = vpop.f32.mrb[8].mxu1 }
 0x26b   :  { %v10782_v63 = vadd.f32 %v1470_v17, %v10682_v51  ;;  %v1472_v37 = vpop.f32.mrb[9].mxu1 }
 0x26c   :  { %v10785_v56 = vadd.f32 %v1472_v37, %v10682_v51  ;;  %v1474_v48 = vpop.f32.mrb[10].mxu1 }
 0x26d   :  { %v15063_v22 = vmax.f32 %v10782_v63, 0.0  ;;  %v1475_v25 = vpop.f32.mrb[11].mxu1 }
 0x26e   :  { %v15059_v30 = vmax.f32 %v10785_v56, 0.0 }
 0x270   :  { %v7558_v11 = vpack.i.bf16 %v15059_v30, %v15063_v22 }
 0x272   :  { %7559 = vrot.lane.b32.xlu0 %v7558_v11, %s15171_s1  ;;  %7554 = vrot.lane.b32.xlu1 %v7558_v11, %s15232_s24 }
 0x276   :  { %7574 = vrot.lane.b32.xlu1 %v7573_v41, %s8141_s0  ;;  %7564 = vrot.lane.b32.xlu0 %v7573_v41, %s15190_s25 }
 0x27a   :  { %7584 = vrot.lane.b32.xlu1 %v7573_v41, %s15197_s15  ;;  %7569 = vrot.lane.b32.xlu0 %v7573_v41, %s15172_s28 }
 0x27e   :  { %v10814_v23 = vpop.permute.xlu0 %7509  ;;  %v10816_v7 = vpop.permute.xlu1 %7514  ;;  %7589 = vrot.lane.b32.xlu1 %v7573_v41, %s15199_s20  ;;  %7579 = vrot.lane.b32.xlu0 %v7573_v41, %s8142_s22 }
 0x27f   :  { %v7511_v18 = vunpack.i.l.bf16 %v10814_v23  ;;  %v7516_v3 = vunpack.i.l.bf16 %v10816_v7  ;;  %v7512_v53 = vunpack.i.h.bf16 %v10814_v23 }
 0x281   :  { %v1618_v32 = vsel %vm90_vm1, %v7486_v20, %v7511_v18  ;;  %v1682_v13 = vsel %vm15419_vm6, %v7496_v16, %v7516_v3  ;;  %v10853_v20 = vmax.f32 %v1623_v61, %v1735_v50  ;;  %vm15428_vm6 = vmmov %vm15422_vm3 }
 0x282   :  { %v7520_v9 = vpop.permute.xlu0 %7519  ;;  %7599 = vrot.lane.b32.xlu1 %v7573_v41, %s8143_s29  ;;  %7594 = vrot.lane.b32.xlu0 %v7573_v41, %s15270_s27  ;;  %v1626_v58 = vmax.f32 %v1562_v49, %v1618_v32 }
 0x283   :  { %v7521_v5 = vunpack.i.l.bf16 %v7520_v9  ;;  %v7522_v25 = vunpack.i.h.bf16 %v7520_v9 }
 0x285   :  { %v1730_v27 = vsel %vm15420_vm7, %v7506_v43, %v7521_v5  ;;  %v1729_v42 = vsel %vm15422_vm3, %v7521_v5, %v7522_v25  ;;  %v1617_v5 = vsel %vm90_vm1, %v7511_v18, %v7512_v53  ;;  %vm15429_vm7 = vmmov %vm15422_vm3  ;;  %vm15430_vm3 = vcmp.lt.s32.totalorder %v8381_v15, 124 }
 0x286   :  { %v1738_v38 = vmax.f32 %v1682_v13, %v1730_v27  ;;  %7604 = vrot.lane.b32.xlu0 %v7573_v41, %s8144_s12  ;;  %v7517_v41 = vunpack.i.h.bf16 %v10816_v7  ;;  %v1627_v23 = vmax.f32 %v1563_v2, %v1617_v5 }
 0x288   :  { %v10855_v17 = vmax.f32 %v1626_v58, %v1738_v38  ;;  %v1681_v58 = vsel %vm15424_vm9, %v7516_v3, %v7517_v41  ;;  %vm15431_vm9 = vmmov %vm15430_vm3 }
 0x28a   :  { %v7613_v16 = vpack.i.bf16 %v10855_v17, %v10853_v20 }
 0x28c   :  { %7614 = vrot.lane.b32.xlu0 %v7613_v16, %s15172_s28  ;;  %7609 = vrot.lane.b32.xlu1 %v7613_v16, %s15190_s25 }
 0x290   :  { %7629 = vrot.lane.b32.xlu0 %v7613_v16, %s15197_s15  ;;  %7619 = vrot.lane.b32.xlu1 %v7613_v16, %s8141_s0 }
 0x294   :  { %v1511_v62 = vpop.f32.mrb[12].mxu0  ;;  %7639 = vrot.lane.b32.xlu0 %v7613_v16, %s15270_s27  ;;  %7624 = vrot.lane.b32.xlu1 %v7613_v16, %s8142_s22 }
 0x295   :  { %v10866_v34 = vadd.f32 %v1511_v62, %v10682_v51  ;;  %v1513_v49 = vpop.f32.mrb[13].mxu0  ;;  %v1739_v62 = vmax.f32 %v1681_v58, %v1729_v42 }
 0x296   :  { %v10869_v39 = vadd.f32 %v1513_v49, %v10682_v51  ;;  %v1515_v43 = vpop.f32.mrb[14].mxu0 }
 0x297   :  { %v15058_v0 = vmax.f32 %v10866_v34, 0.0  ;;  %v1516_v4 = vpop.f32.mrb[15].mxu0  ;;  %v10929_v18 = vmax.f32 %v1627_v23, %v1739_v62 }
 0x298   :  { %v15057_v19 = vmax.f32 %v10869_v39, 0.0  ;;  %7659 = vrot.lane.b32.xlu0 %v7613_v16, %s8144_s12  ;;  %7634 = vrot.lane.b32.xlu1 %v7613_v16, %s15199_s20 }
 0x29a   :  { %v7663_v37 = vpack.i.bf16 %v15057_v19, %v15058_v0  ;;  %v10879_v46 = vpop.permute.xlu1 %7524  ;;  %v10886_v26 = vpop.permute.xlu0 %7529 }
 0x29b   :  { %v7531_v60 = vunpack.i.l.bf16 %v10886_v26  ;;  %v7526_v21 = vunpack.i.l.bf16 %v10879_v46  ;;  %v7527_v2 = vunpack.i.h.bf16 %v10879_v46  ;;  %v7532_v3 = vunpack.i.h.bf16 %v10886_v26 }
 0x29c   :  { %7664 = vrot.lane.b32.xlu0 %v7663_v37, %s15171_s1  ;;  %7644 = vrot.lane.b32.xlu1 %v7613_v16, %s8143_s29 }
 0x29d   :  { %v1680_v9 = vsel %vm15423_vm8, %v7517_v41, %v7531_v60  ;;  %v1616_v12 = vsel %vm90_vm1, %v7512_v53, %v7526_v21  ;;  %v1615_v41 = vsel %vm90_vm1, %v7526_v21, %v7527_v2  ;;  %v1679_v26 = vsel %vm15426_vm13, %v7531_v60, %v7532_v3 }
 0x29e   :  { %v10884_v48 = vpop.permute.xlu1 %7534  ;;  %v1628_v49 = vmax.f32 %v1564_v55, %v1616_v12  ;;  %v1629_v12 = vmax.f32 %v1565_v36, %v1615_v41  ;;  %vm1916_vm8 = vcmp.lt.s32.totalorder %v8381_v15, 120 }
 0x29f   :  { %v7536_v10 = vunpack.i.l.bf16 %v10884_v48  ;;  %v7537_v55 = vunpack.i.h.bf16 %v10884_v48 }
 0x2a0   :  { %7649 = vrot.lane.b32.xlu1 %v7558_v11, %s15175_s30 }
 0x2a1   :  { %v1728_v11 = vsel %vm15421_vm5, %v7522_v25, %v7536_v10  ;;  %vm1875_vm5 = vcmp.lt.s32.totalorder %v8381_v15, 122 }
 0x2a2   :  { %v1740_v13 = vmax.f32 %v1680_v9, %v1728_v11  ;;  %v1727_v11 = vsel %vm15425_vm11, %v7536_v10, %v7537_v55  ;;  %vm15432_vm11 = vcmp.lt.s32.totalorder %v8381_v15, 64 }
 0x2a3   :  { %vm15433_vm13 = vmmov %vm15432_vm11 }
 0x2a4   :  { %7654 = vrot.lane.b32.xlu1 %v7663_v37, %s15232_s24  ;;  %v10923_v43 = vmax.f32 %v1628_v49, %v1740_v13 }
 0x2a6   :  { %v7688_v44 = vpack.i.bf16 %v10923_v43, %v10929_v18 }
 0x2a8   :  { %7669 = vrot.lane.b32.xlu1 %v7663_v37, %s15175_s30 }
 0x2aa   :  { %v1552_v6 = vpop.f32.mrb[12].mxu1 }
 0x2ab   :  { %v10904_v32 = vadd.f32 %v1552_v6, %v10682_v51  ;;  %v1554_v50 = vpop.f32.mrb[13].mxu1 }
 0x2ac   :  { %v10907_v27 = vadd.f32 %v1554_v50, %v10682_v51  ;;  %v1556_v61 = vpop.f32.mrb[14].mxu1  ;;  %v1741_v50 = vmax.f32 %v1679_v26, %v1727_v11 }
 0x2ad   :  { %v15055_v38 = vmax.f32 %v10904_v32, 0.0  ;;  %v1557_v16 = vpop.f32.mrb[15].mxu1 }
 0x2ae   :  { %v15051_v51 = vmax.f32 %v10907_v27, 0.0  ;;  %v10999_v62 = vmax.f32 %v1629_v12, %v1741_v50 }
 0x2b0   :  { %v7678_v7 = vpack.i.bf16 %v15051_v51, %v15055_v38 }
 0x2b2   :  { %7679 = vrot.lane.b32.xlu0 %v7678_v7, %s15171_s1  ;;  %7674 = vrot.lane.b32.xlu1 %v7678_v7, %s15232_s24 }
 0x2b6   :  { %7689 = vrot.lane.b32.xlu0 %v7688_v44, %s15190_s25  ;;  %7684 = vrot.lane.b32.xlu1 %v7678_v7, %s15175_s30 }
 0x2ba   :  { %7694 = vrot.lane.b32.xlu0 %v7688_v44, %s15172_s28  ;;  %7699 = vrot.lane.b32.xlu1 %v7688_v44, %s8141_s0 }
 0x2be   :  { %7704 = vrot.lane.b32.xlu0 %v7688_v44, %s8142_s22  ;;  %7709 = vrot.lane.b32.xlu1 %v7688_v44, %s15197_s15 }
 0x2c2   :  { %7714 = vrot.lane.b32.xlu0 %v7688_v44, %s15199_s20  ;;  %7719 = vrot.lane.b32.xlu1 %v7688_v44, %s15270_s27 }
 0x2c6   :  { %7729 = vrot.lane.b32.xlu0 %v7688_v44, %s8144_s12  ;;  %7724 = vrot.lane.b32.xlu1 %v7688_v44, %s8143_s29 }
 0x2ca   :  { %v10957_v4 = vpop.permute.xlu0 %7539  ;;  %v10959_v37 = vpop.permute.xlu1 %7544 }
 0x2cb   :  { %v15074_v25 = vunpack.i.h.bf16 %v10957_v4  ;;  %v7541_v53 = vunpack.i.l.bf16 %v10957_v4  ;;  %v15073_v46 = vunpack.i.h.bf16 %v10959_v37  ;;  %v7546_v48 = vunpack.i.l.bf16 %v10959_v37 }
 0x2cd   :  { %v1613_v42 = vsel %vm90_vm1, %v7541_v53, %v15074_v25  ;;  %v1614_v21 = vsel %vm90_vm1, %v7527_v2, %v7541_v53  ;;  %v1677_v60 = vsel %vm15427_vm15, %v7546_v48, %v15073_v46  ;;  %v1678_v13 = vsel %vm15418_vm4, %v7532_v3, %v7546_v48 }
 0x2ce   :  { %v10971_v6 = vpop.permute.xlu0 %7549  ;;  %v1630_v35 = vmax.f32 %v1566_v57, %v1614_v21  ;;  %v1631_v36 = vmax.f32 %v1567_v24, %v1613_v42  ;;  %vm2118_vm15 = vcmp.lt.s32.totalorder %v8381_v15, 56  ;;  %vm2077_vm4 = vcmp.lt.s32.totalorder %v8381_v15, 58 }
 0x2cf   :  { %v15065_v9 = vunpack.i.h.bf16 %v10971_v6  ;;  %v7551_v10 = vunpack.i.l.bf16 %v10971_v6 }
 0x2d1   :  { %v1725_v61 = vsel %vm15428_vm6, %v7551_v10, %v15065_v9  ;;  %v1726_v5 = vsel %vm15429_vm7, %v7537_v55, %v7551_v10  ;;  %vm15435_vm6 = vcmp.lt.s32.totalorder %v8381_v15, 96 }
 0x2d2   :  { %v1742_v58 = vmax.f32 %v1678_v13, %v1726_v5  ;;  %v1743_v16 = vmax.f32 %v1677_v60, %v1725_v61  ;;  %vm15437_vm7 = vmmov %vm15435_vm6 }
 0x2d4   :  { %v11001_v49 = vmax.f32 %v1630_v35, %v1742_v58  ;;  %v11003_v23 = vmax.f32 %v1631_v36, %v1743_v16 }
 0x2d6   :  { %v7733_v7 = vpack.i.bf16 %v11001_v49, %v10999_v62 }
 0x2d8   :  { %7734 = vrot.lane.b32.xlu0 %v7733_v7, %s15190_s25  ;;  %7739 = vrot.lane.b32.xlu1 %v7733_v7, %s15172_s28 }
 0x2dc   :  { %7744 = vrot.lane.b32.xlu0 %v7733_v7, %s8141_s0  ;;  %7749 = vrot.lane.b32.xlu1 %v7733_v7, %s8142_s22 }
 0x2e0   :  { %7754 = vrot.lane.b32.xlu0 %v7733_v7, %s15197_s15  ;;  %7764 = vrot.lane.b32.xlu1 %v7733_v7, %s15270_s27 }
 0x2e4   :  { %v11013_v28 = vpop.permute.xlu0 %7559  ;;  %v11015_v57 = vpop.permute.xlu1 %7554  ;;  %7759 = vrot.lane.b32.xlu0 %v7733_v7, %s15199_s20  ;;  %7774 = vrot.lane.b32.xlu1 %v7733_v7, %s8144_s12 }
 0x2e5   :  { %v7557_v46 = vunpack.i.h.bf16 %v11015_v57 }
 0x2e8   :  { %v11019_v29 = vpop.permute.xlu1 %7574  ;;  %v11021_v24 = vpop.permute.xlu0 %7564  ;;  %7769 = vrot.lane.b32.xlu0 %v7733_v7, %s8143_s29 }
 0x2e9   :  { %v7567_v44 = vunpack.i.h.bf16 %v11021_v24  ;;  %v7566_v2 = vunpack.i.l.bf16 %v11021_v24  ;;  %v7576_v50 = vunpack.i.l.bf16 %v11019_v29 }
 0x2eb   :  { %v1805_v55 = vsel %vm15149_vm2, %v7566_v2, %v7567_v44 }
 0x2ec   :  { %v11030_v3 = vpop.permute.xlu0 %7569  ;;  %v11033_v53 = vpack.c.bf16 %v1805_v55, %v10803_v1  ;;  %v11035_v41 = vpop.permute.xlu1 %7584  ;;  %v15070_v1 = vunpack.i.h.bf16 %v11019_v29 }
 0x2ed   :  { %v15061_v10 = vunpack.i.h.bf16 %v11030_v3  ;;  %v7571_v12 = vunpack.i.l.bf16 %v11030_v3  ;;  %v15066_v7 = vunpack.i.h.bf16 %v11035_v41  ;;  %v7586_v55 = vunpack.i.l.bf16 %v11035_v41 }
 0x2ee   :  { %2341 = vmatprep.subr.bf16.mxu0 %v11033_v53  ;;  %v1886_v47 = vsel %vm1875_vm5, %v7576_v50, %v15070_v1 }
 0x2ef   :  { %v1845_v36 = vsel %vm15430_vm3, %v7571_v12, %v15061_v10  ;;  %vm15441_vm3 = vcmp.lt.s32.totalorder %v8381_v15, 95 }
 0x2f0   :  { %v11038_v11 = vpop.permute.xlu0 %7579  ;;  %v11040_v48 = vpop.permute.xlu1 %7589 }
 0x2f1   :  { %v15060_v5 = vunpack.i.h.bf16 %v11038_v11  ;;  %v7581_v35 = vunpack.i.l.bf16 %v11038_v11 }
 0x2f3   :  { %v1927_v0 = vsel %vm1916_vm8, %v7581_v35, %v15060_v5 }
 0x2f4   :  { %v11042_v26 = vpop.permute.xlu0 %7594  ;;  %v11044_v42 = vpop.permute.xlu1 %7599 }
 0x2f5   :  { %v7596_v19 = vunpack.i.l.bf16 %v11042_v26 }
 0x2f8   :  { %v11046_v21 = vpop.permute.xlu0 %7604 }
 0x2fe   :  { %v11052_v60 = vpop.permute.xlu0 %7614  ;;  %v11054_v13 = vpop.permute.xlu1 %7609 }
 0x2ff   :  { %v15056_v61 = vunpack.i.l.bf16 %v11054_v13  ;;  %v15062_v58 = vunpack.i.l.bf16 %v11052_v60  ;;  %v15076_v8 = vunpack.i.h.bf16 %v11054_v13 }
 0x301   :  { %v1806_v16 = vsel %vm15149_vm2, %v15056_v61, %v7566_v2  ;;  %v11082_v2 = vpack.c.bf16 %v1886_v47, %v1845_v36  ;;  %v15067_v61 = vunpack.i.h.bf16 %v11042_v26  ;;  %v7591_v36 = vunpack.i.l.bf16 %v11040_v48 }
 0x302   :  { %v11072_v51 = vpop.permute.xlu0 %7629  ;;  %v11074_v45 = vpop.permute.xlu1 %7619  ;;  %v2193_v31 = vpack.c.bf16 %v1806_v16, %v10853_v20  ;;  %v1846_v20 = vsel %vm15431_vm9, %v15062_v58, %v7571_v12  ;;  %v1967_v12 = vsel %vm15432_vm11, %v7586_v55, %v15066_v7  ;;  %vm15443_vm9 = vmmov %vm15441_vm3  ;;  %vm15446_vm11 = vcmp.lt.s32.totalorder %v8381_v15, 124 }
 0x303   :  { %v15064_v38 = vunpack.i.l.bf16 %v11074_v45  ;;  %v7631_v16 = vunpack.i.l.bf16 %v11072_v51  ;;  %v11111_v22 = vpack.c.bf16 %v1967_v12, %v1927_v0  ;;  %v2047_v9 = vsel %vm727_vm14, %v7596_v19, %v15067_v61 }
 0x304   :  { %2342 = vmatpush1.bf16.msra.mxu0 %v2193_v31  ;;  %v15071_v31 = vunpack.i.h.bf16 %v11040_v48  ;;  %v7601_v12 = vunpack.i.l.bf16 %v11044_v42 }
 0x305   :  { %v1887_v47 = vsel %vm1875_vm5, %v15064_v38, %v7576_v50  ;;  %2343 = vmatprep.subr.bf16.mxu0 %v11082_v2  ;;  %v15072_v50 = vunpack.i.h.bf16 %v11046_v21  ;;  %v7606_v38 = vunpack.i.l.bf16 %v11046_v21 }
 0x306   :  { %v11102_v30 = vpop.permute.xlu0 %7639  ;;  %v11104_v5 = vpop.permute.xlu1 %7624  ;;  %v2205_v10 = vpack.c.bf16 %v1887_v47, %v1846_v20  ;;  %v1968_v20 = vsel %vm15433_vm13, %v7631_v16, %v7586_v55  ;;  %v2007_v16 = vsel %vm629_vm12, %v7591_v36, %v15071_v31 }
 0x307   :  { %v15068_v58 = vunpack.i.l.bf16 %v11104_v5  ;;  %v7641_v47 = vunpack.i.l.bf16 %v11102_v30  ;;  %v2129_v1 = vsel %vm2118_vm15, %v7606_v38, %v15072_v50 }
 0x308   :  { %2344 = vmatpush1.bf16.msra.mxu0 %v2205_v10  ;;  %v15075_v10 = vunpack.i.h.bf16 %v11044_v42 }
 0x309   :  { %v1928_v0 = vsel %vm1916_vm8, %v15068_v58, %v7581_v35  ;;  %2345 = vmatprep.subr.bf16.mxu0 %v11111_v22  ;;  %v11139_v58 = vpack.c.bf16 %v2047_v9, %v2007_v16  ;;  %v7556_v9 = vunpack.i.l.bf16 %v11015_v57 }
 0x30a   :  { %v11130_v7 = vpop.permute.xlu0 %7659  ;;  %v11132_v61 = vpop.permute.xlu1 %7634  ;;  %v2217_v55 = vpack.c.bf16 %v1968_v20, %v1928_v0  ;;  %v2048_v20 = vsel %vm727_vm14, %v7641_v47, %v7596_v19  ;;  %v2088_v50 = vsel %vm2077_vm4, %v7601_v12, %v15075_v10  ;;  %v7617_v10 = vunpack.i.h.bf16 %v11052_v60 }
 0x30b   :  { %v7636_v35 = vunpack.i.l.bf16 %v11132_v61  ;;  %v7661_v0 = vunpack.i.l.bf16 %v11130_v7  ;;  %v11162_v47 = vpack.c.bf16 %v2129_v1, %v2088_v50  ;;  %v15434_v50 = vunpack.i.h.bf16 %v10957_v4 }
 0x30c   :  { %2346 = vmatpush1.bf16.msra.mxu0 %v2217_v55 }
 0x30d   :  { %v2008_v31 = vsel %vm629_vm12, %v7636_v35, %v7591_v36  ;;  %2347 = vmatprep.subr.bf16.mxu0 %v11139_v58  ;;  %v7562_v36 = vunpack.i.h.bf16 %v11013_v28  ;;  %v7561_v35 = vunpack.i.l.bf16 %v11013_v28  ;;  %v15454_v28 = vmax.f32 %v10785_v56, 0.0 }
 0x30e   :  { %v11154_v16 = vpop.permute.xlu1 %7644  ;;  %v2229_v55 = vpack.c.bf16 %v2048_v20, %v2008_v31  ;;  %v1804_v31 = vsel %vm15149_vm2, %v7567_v44, %v15076_v8  ;;  %v2130_v20 = vsel %vm2118_vm15, %v7661_v0, %v7606_v38  ;;  %v1611_v44 = vsel %vm90_vm1, %v7556_v9, %v7557_v46 }
 0x30f   :  { %v7646_v19 = vunpack.i.l.bf16 %v11154_v16  ;;  %v1675_v4 = vsel %vm15435_vm6, %v7561_v35, %v7562_v36  ;;  %vm15453_vm6 = vmmov %vm15441_vm3 }
 0x310   :  { %2348 = vmatpush1.bf16.msra.mxu0 %v2229_v55  ;;  %v1612_v55 = vsel %vm90_vm1, %v15434_v50, %v7556_v9  ;;  %v15439_v9 = vunpack.i.h.bf16 %v11019_v29  ;;  %v7627_v50 = vunpack.i.h.bf16 %v11104_v5  ;;  %v15444_v29 = vmax.f32 %v10782_v63, 0.0 }
 0x311   :  { %v2089_v1 = vsel %vm2077_vm4, %v7646_v19, %v7601_v12  ;;  %2349 = vmatprep.subr.bf16.mxu0 %v11162_v47  ;;  %v11188_v12 = vpack.c.bf16 %v1804_v31, %v10797_v14  ;;  %v15436_v19 = vunpack.i.h.bf16 %v10959_v37  ;;  %v15440_v14 = vmax.f32 %v10751_v40, 0.0 }
 0x312   :  { %v7650_v25 = vpop.permute.xlu1 %7649  ;;  %v2241_v24 = vpack.c.bf16 %v2130_v20, %v2089_v1  ;;  %v15438_v1 = vunpack.i.h.bf16 %v11074_v45  ;;  %v15442_v37 = vunpack.i.h.bf16 %v10971_v6  ;;  %v15445_v40 = vunpack.i.h.bf16 %v11030_v3 }
 0x313   :  { %v7652_v38 = vunpack.i.h.bf16 %v7650_v25  ;;  %v7651_v0 = vunpack.i.l.bf16 %v7650_v25  ;;  %v1676_v20 = vsel %vm15437_vm7, %v15436_v19, %v7561_v35  ;;  %v1632_v31 = vmax.f32 %v15440_v14, %v1612_v55 }
 0x314   :  { %2350 = vmatpush1.bf16.msra.mxu0 %v2241_v24  ;;  %v1885_v25 = vsel %vm1875_vm5, %v15439_v9, %v15438_v1  ;;  %v1633_v24 = vmax.f32 %v15444_v29, %v1611_v44  ;;  %v1844_v55 = vsel %vm15446_vm11, %v15445_v40, %v7617_v10  ;;  %v7632_v9 = vunpack.i.h.bf16 %v11072_v51 }
 0x315   :  { %v1723_v8 = vsel %vm15441_vm3, %v7651_v0, %v7652_v38  ;;  %v1724_v35 = vsel %vm15443_vm9, %v15442_v37, %v7651_v0  ;;  %2351 = vmatprep.subr.bf16.mxu0 %v11188_v12  ;;  %v11225_v14 = vpack.c.bf16 %v1885_v25, %v1844_v55  ;;  %v15447_v63 = vunpack.i.h.bf16 %v11038_v11  ;;  %vm15456_vm3 = vmmov %vm15446_vm11 }
 0x316   :  { %v1744_v19 = vmax.f32 %v1676_v20, %v1724_v35  ;;  %v1745_v1 = vmax.f32 %v1675_v4, %v1723_v8  ;;  %v11223_v6 = vpop.permute.xlu1 %7654  ;;  %v7637_v8 = vunpack.i.h.bf16 %v11132_v61  ;;  %v7642_v4 = vunpack.i.h.bf16 %v11102_v30  ;;  %vm15458_vm9 = vmmov %vm15433_vm13  ;;  %v11446_v61 = vld [vmem:[%s14887_s3] ss:$8 sps:$4 sm:$0xff]  }
 0x317   :  { %v11240_v3 = vsel %vm1916_vm8, %v15447_v63, %v7627_v50  ;;  %v7647_v25 = vunpack.i.h.bf16 %v11154_v16  ;;  %v15082_v29 = vunpack.i.h.bf16 %v11130_v7  ;;  %v15451_v40 = vunpack.i.h.bf16 %v11044_v42  ;;  %vm15459_vm11 = vmmov %vm15453_vm6 }
 0x318   :  { %v11227_v0 = vmax.f32 %v1632_v31, %v1744_v19  ;;  %v11229_v37 = vmax.f32 %v1633_v24, %v1745_v1  ;;  %2352 = vmatpush1.bf16.msra.mxu0 %v11033_v53  ;;  %v15448_v53 = vunpack.i.h.bf16 %v11035_v41  ;;  %v15449_v41 = vunpack.i.h.bf16 %v11040_v48  ;;  %v11272_v24 = vpop.permute.xlu0 %7664 }
 0x319   :  { %2353 = vmatprep.subr.bf16.mxu0 %v11225_v14  ;;  %v15450_v19 = vunpack.i.h.bf16 %v11042_v26  ;;  %v2087_v26 = vsel %vm2077_vm4, %v15451_v40, %v7647_v25  ;;  %v7666_v55 = vunpack.i.l.bf16 %v11272_v24  ;;  %v7656_v63 = vunpack.i.l.bf16 %v11223_v6 }
 0x31a   :  { %v11244_v44 = vpack.i.bf16 %v11229_v37, %v11227_v0  ;;  %v1966_v20 = vsel %vm15433_vm13, %v15448_v53, %v7632_v9  ;;  %v11261_v31 = vpop.permute.xlu1 %7669  ;;  %v2006_v35 = vsel %vm629_vm12, %v15449_v41, %v7637_v8  ;;  %v15452_v53 = vunpack.i.h.bf16 %v11046_v21  ;;  %vm15460_vm13 = vmmov %vm15437_vm7 }
 0x31b   :  { %v11258_v11 = vpack.c.bf16 %v1966_v20, %v11240_v3  ;;  %v7671_v1 = vunpack.i.l.bf16 %v11261_v31  ;;  %v1674_v21 = vsel %vm15437_vm7, %v7562_v36, %v7666_v55  ;;  %v15455_v40 = vunpack.i.h.bf16 %v11054_v13  ;;  %vm15469_vm7 = vmmov %vm15458_vm9 }
 0x31c   :  { %7789 = vrot.lane.b32.xlu1 %v11244_v44, %s8141_s0  ;;  %7779 = vrot.lane.b32.xlu0 %v11244_v44, %s15190_s25  ;;  %v15462_v16 = vmax.f32 %v10866_v34, 0.0 }
 0x31d   :  { %2354 = vmatpush1.bf16.msra.mxu0 %v11082_v2  ;;  %v2046_v2 = vsel %vm727_vm14, %v15450_v19, %v7642_v4  ;;  %v1722_v42 = vsel %vm15453_vm6, %v7652_v38, %v7671_v1  ;;  %v1610_v38 = vsel %vm90_vm1, %v7557_v46, %v7656_v63  ;;  %vm15465_vm6 = vmmov %vm15456_vm3 }
 0x31e   :  { %2355 = vmatprep.subr.bf16.mxu0 %v11258_v11  ;;  %v11285_v48 = vpack.c.bf16 %v2046_v2, %v2006_v35  ;;  %v1746_v19 = vmax.f32 %v1674_v21, %v1722_v42  ;;  %v1634_v36 = vmax.f32 %v15454_v28, %v1610_v38 }
 0x320   :  { %7799 = vrot.lane.b32.xlu1 %v11244_v44, %s15197_s15  ;;  %7784 = vrot.lane.b32.xlu0 %v11244_v44, %s15172_s28  ;;  %v11343_v46 = vmax.f32 %v1634_v36, %v1746_v19 }
 0x321   :  { %2356 = vmatpush1.bf16.msra.mxu0 %v11111_v22  ;;  %v2128_v22 = vsel %vm2118_vm15, %v15452_v53, %v15082_v29 }
 0x322   :  { %2357 = vmatprep.subr.bf16.mxu0 %v11285_v48  ;;  %v11315_v35 = vpack.c.bf16 %v2128_v22, %v2087_v26  ;;  %v7813_v21 = vpack.i.bf16 %v11343_v46, %v11003_v23 }
 0x324   :  { %v11307_v20 = vpop.permute.xlu0 %7679  ;;  %v11309_v41 = vpop.permute.xlu1 %7674  ;;  %1943 = vrot.lane.b32.xlu1 %v11003_v23, %s15197_s15  ;;  %7794 = vrot.lane.b32.xlu0 %v11244_v44, %s8142_s22 }
 0x325   :  { %2358 = vmatpush1.bf16.msra.mxu0 %v11139_v58 }
 0x326   :  { %2359 = vmatprep.subr.bf16.mxu0 %v11315_v35 }
 0x328   :  { %v11331_v2 = vpop.permute.xlu0 %7689  ;;  %v11333_v58 = vpop.permute.xlu1 %7684  ;;  %7809 = vrot.lane.b32.xlu1 %v11244_v44, %s15270_s27  ;;  %7804 = vrot.lane.b32.xlu0 %v11244_v44, %s15199_s20 }
 0x329   :  { %v15081_v57 = vunpack.i.l.bf16 %v11331_v2  ;;  %2360 = vmatpush1.bf16.msra.mxu0 %v11162_v47 }
 0x32b   :  { %v1803_v26 = vsel %vm15149_vm2, %v15455_v40, %v15081_v57 }
 0x32c   :  { %v11351_v53 = vpop.permute.xlu0 %7694  ;;  %v11353_v22 = vpop.permute.xlu1 %7699  ;;  %1983 = vrot.lane.b32.xlu1 %v11003_v23, %s15199_s20  ;;  %2023 = vrot.lane.b32.xlu0 %v11003_v23, %s15270_s27  ;;  %v11362_v42 = vpack.c.bf16 %v1803_v26, %v10855_v17  ;;  %v15457_v17 = vunpack.i.h.bf16 %v11074_v45 }
 0x32d   :  { %v15078_v56 = vunpack.i.l.bf16 %v11351_v53  ;;  %v15077_v47 = vunpack.i.l.bf16 %v11353_v22 }
 0x32e   :  { %2361 = vmatprep.subr.bf16.mxu0 %v11362_v42  ;;  %2384 = vmatprep.subr.bf16.mxu1 %v11362_v42 }
 0x32f   :  { %v1843_v28 = vsel %vm15456_vm3, %v7617_v10, %v15078_v56  ;;  %v1884_v36 = vsel %vm1875_vm5, %v15457_v17, %v15077_v47  ;;  %2362 = vmatpush1.bf16.msra.mxu0 %v11188_v12  ;;  %2385 = vmatpush1.bf16.msra.mxu1 %v11188_v12  ;;  %v2267_v47 = vpack.c.bf16 %v11240_v3, %v11240_v3  ;;  %v7667_v3 = vunpack.i.h.bf16 %v11272_v24  ;;  %vm15470_vm3 = vmmov %vm15459_vm11 }
 0x330   :  { %v11368_v38 = vpop.permute.xlu0 %7704  ;;  %v11370_v19 = vpop.permute.xlu1 %7709  ;;  %7814 = vrot.lane.b32.xlu1 %v7813_v21, %s15190_s25  ;;  %7819 = vrot.lane.b32.xlu0 %v7813_v21, %s15172_s28  ;;  %v11390_v10 = vpack.c.bf16 %v1884_v36, %v1843_v28 }
 0x331   :  { %v15079_v40 = vunpack.i.l.bf16 %v11368_v38  ;;  %v15080_v26 = vunpack.i.l.bf16 %v11370_v19 }
 0x332   :  { %2363 = vmatprep.subr.bf16.mxu0 %v11390_v10  ;;  %2386 = vmatprep.subr.bf16.mxu1 %v11390_v10 }
 0x333   :  { %v1925_v17 = vsel %vm1916_vm8, %v7627_v50, %v15079_v40  ;;  %v1965_v12 = vsel %vm15458_vm9, %v7632_v9, %v15080_v26  ;;  %v7672_v40 = vunpack.i.h.bf16 %v11261_v31  ;;  %2364 = vmatpush1.bf16.msra.mxu0 %v11225_v14  ;;  %2387 = vmatpush1.bf16.msra.mxu1 %v11225_v14  ;;  %v2306_v26 = vsel %vm15142_vm10, %v2267_v47, 0  ;;  %vm15471_vm9 = vmmov %vm15460_vm13 }
 0x334   :  { %v11408_v28 = vpop.permute.xlu0 %7714  ;;  %v11410_v36 = vpop.permute.xlu1 %7719  ;;  %v2268_v56 = vpack.c.bf16 %v1925_v17, %v1925_v17  ;;  %v11412_v50 = vpack.c.bf16 %v1965_v12, %v1925_v17  ;;  %7824 = vrot.lane.b32.xlu1 %v7813_v21, %s8141_s0  ;;  %7834 = vrot.lane.b32.xlu0 %v11244_v44, %s8144_s12  ;;  %v7657_v17 = vunpack.i.h.bf16 %v11223_v6  ;;  %v7692_v47 = vunpack.i.h.bf16 %v11331_v2 }
 0x335   :  { %v7716_v51 = vunpack.i.l.bf16 %v11408_v28  ;;  %v7721_v9 = vunpack.i.l.bf16 %v11410_v36  ;;  %v1721_v30 = vsel %vm15459_vm11, %v7671_v1, %v7672_v40  ;;  %v1673_v1 = vsel %vm15460_vm13, %v7666_v55, %v7667_v3  ;;  %vm15474_vm11 = vmmov %vm15465_vm6 }
 0x336   :  { %6393 = vmatprep.subr.msk.bf16.mxu0 %vm15142_vm10, %v2268_v56  ;;  %2388 = vmatprep.subr.bf16.mxu1 %v11412_v50  ;;  %v1747_v6 = vmax.f32 %v1673_v1, %v1721_v30  ;;  %v15084_v1 = vunpack.i.h.bf16 %v11368_v38  ;;  %vm15478_vm13 = vmmov %vm15469_vm7 }
 0x337   :  { %v2005_v14 = vsel %vm629_vm12, %v7637_v8, %v7716_v51  ;;  %v2045_v12 = vsel %vm727_vm14, %v7642_v4, %v7721_v9  ;;  %2366 = vmatpush1.bf16.msra.mxu0 %v2306_v26  ;;  %2389 = vmatpush1.bf16.msra.mxu1 %v11258_v11  ;;  %v1609_v11 = vsel %vm90_vm1, %v7656_v63, %v7657_v17  ;;  %v15461_v26 = vunpack.i.h.bf16 %v11130_v7 }
 0x338   :  { %v11439_v57 = vpop.permute.xlu0 %7729  ;;  %v11441_v56 = vpop.permute.xlu1 %7724  ;;  %v11448_v29 = vpack.c.bf16 %v2045_v12, %v2005_v14  ;;  %7829 = vrot.lane.b32.xlu1 %v11244_v44, %s8143_s29  ;;  %2104 = vrot.lane.b32.xlu0 %v11003_v23, %s8144_s12  ;;  %v15089_v14 = vunpack.i.h.bf16 %v11351_v53  ;;  %v15088_v7 = vunpack.i.h.bf16 %v11353_v22  ;;  %v15463_v12 = vunpack.i.l.bf16 %v11331_v2 }
 0x339   :  { %v7731_v8 = vunpack.i.l.bf16 %v11439_v57  ;;  %v7726_v4 = vunpack.i.l.bf16 %v11441_v56 }
 0x33a   :  { %2390 = vmatprep.subr.bf16.mxu1 %v11448_v29  ;;  %2374 = vmatmul.mubr.bf16.vlgmr.msra.gmra.mrb[16].mxu0 %v11446_v61 }
 0x33b   :  { %v2086_v44 = vsel %vm2077_vm4, %v7647_v25, %v7726_v4  ;;  %v2127_v55 = vsel %vm2118_vm15, %v15461_v26, %v7731_v8  ;;  %2391 = vmatpush1.bf16.msra.mxu1 %v11285_v48  ;;  %6398 = vmatprep.mubr.msk.bf16.mxu0 %vm1178_vm0, %v10942_v52  ;;  %v1635_v25 = vmax.f32 %v15462_v16, %v1609_v11  ;;  %v15464_v11 = vunpack.i.l.bf16 %v11351_v53 }
 0x33c   :  { %v11488_v63 = vpack.c.bf16 %v2127_v55, %v2086_v44  ;;  %2063 = vrot.lane.b32.xlu1 %v11003_v23, %s8143_s29  ;;  %7839 = vrot.lane.b32.xlu0 %v7813_v21, %s8142_s22  ;;  %v1802_v48 = vsel %vm15149_vm2, %v15463_v12, %v7692_v47  ;;  %v15083_v21 = vunpack.i.h.bf16 %v11370_v19  ;;  %v15085_v26 = vunpack.i.l.bf16 %v11309_v41 }
 0x33d   :  { %v11507_v34 = vmax.f32 %v1635_v25, %v1747_v6  ;;  %v11511_v30 = vpack.c.bf16 %v1802_v48, %v10929_v18  ;;  %v15466_v18 = vunpack.i.l.bf16 %v11353_v22  ;;  %v15086_v55 = vunpack.i.l.bf16 %v11333_v58 }
 0x33e   :  { %2392 = vmatprep.subr.bf16.mxu1 %v11488_v63  ;;  %v15087_v16 = vunpack.i.h.bf16 %v11408_v28  ;;  %v7722_v25 = vunpack.i.h.bf16 %v11410_v36  ;;  %v15467_v12 = vunpack.i.l.bf16 %v11368_v38 }
 0x33f   :  { %2393 = vmatpush1.bf16.msra.mxu1 %v11315_v35  ;;  %v1842_v35 = vsel %vm15465_vm6, %v15464_v11, %v15089_v14  ;;  %v1883_v44 = vsel %vm1875_vm5, %v15466_v18, %v15088_v7  ;;  %v7848_v18 = vpack.i.bf16 %v11507_v34, %v11343_v46  ;;  %vm15481_vm6 = vmmov %vm15470_vm3 }
 0x340   :  { %1829 = vrot.lane.b32.xlu1 %v11507_v34, %s15172_s28  ;;  %1789 = vrot.lane.b32.xlu0 %v11507_v34, %s15190_s25  ;;  %v11535_v6 = vpack.c.bf16 %v1883_v44, %v1842_v35  ;;  %v11549_v48 = vsel %vm1916_vm8, %v15467_v12, %v15084_v1  ;;  %v7681_v35 = vunpack.i.l.bf16 %v11307_v20  ;;  %v1608_v44 = vsel %vm90_vm1, %v7657_v17, %v15085_v26 }
 0x341   :  { %2394 = vmatprep.subr.bf16.mxu1 %v11511_v30  ;;  %v1720_v12 = vsel %vm15470_vm3, %v7672_v40, %v15086_v55  ;;  %v7727_v1 = vunpack.i.h.bf16 %v11441_v56  ;;  %v2004_v31 = vsel %vm629_vm12, %v7716_v51, %v15087_v16  ;;  %v2044_v40 = vsel %vm727_vm14, %v7721_v9, %v7722_v25  ;;  %vm15485_vm3 = vmmov %vm15474_vm11 }
 0x342   :  { %v15472_v51 = vmax.f32 %v10869_v39, 0.0  ;;  %v2233_v14 = vpack.c.bf16 %v2044_v40, %v2004_v31 }
 0x343   :  { %2395 = vmatpush1.bf16.msra.mxu1 %v11362_v42  ;;  %v15468_v42 = vunpack.i.l.bf16 %v11370_v19 }
 0x344   :  { %1910 = vrot.lane.b32.xlu1 %v11507_v34, %s8142_s22  ;;  %1869 = vrot.lane.b32.xlu0 %v11507_v34, %s8141_s0  ;;  %v1636_v16 = vmax.f32 %v15472_v51, %v1608_v44  ;;  %v15477_v51 = vunpack.i.h.bf16 %v11370_v19  ;;  %v15090_v19 = vunpack.i.h.bf16 %v11333_v58 }
 0x345   :  { %v1964_v11 = vsel %vm15469_vm7, %v15468_v42, %v15083_v21  ;;  %2396 = vmatprep.subr.bf16.mxu1 %v11535_v6  ;;  %v7732_v21 = vunpack.i.h.bf16 %v11439_v57  ;;  %vm15482_vm7 = vmmov %vm15471_vm9 }
 0x346   :  { %v2221_v42 = vpack.c.bf16 %v1964_v11, %v11549_v48 }
 0x347   :  { %2397 = vmatpush1.bf16.msra.mxu1 %v11390_v10  ;;  %v1672_v10 = vsel %vm15471_vm9, %v7667_v3, %v7681_v35  ;;  %v2126_v2 = vsel %vm2118_vm15, %v7731_v8, %v7732_v21  ;;  %v15473_v8 = vunpack.i.h.bf16 %v11351_v53  ;;  %vm15486_vm9 = vmmov %vm15478_vm13 }
 0x348   :  { %7849 = vrot.lane.b32.xlu1 %v7848_v18, %s15199_s20  ;;  %7844 = vrot.lane.b32.xlu0 %v7848_v18, %s15197_s15  ;;  %v1748_v55 = vmax.f32 %v1672_v10, %v1720_v12 }
 0x349   :  { %2398 = vmatprep.subr.bf16.mxu1 %v2221_v42 }
 0x34a   :  { %v11577_v17 = vpop.permute.xlu0 %7734  ;;  %v11579_v26 = vpop.permute.xlu1 %7739  ;;  %v11632_v44 = vmax.f32 %v1636_v16, %v1748_v55  ;;  %v15475_v55 = vunpack.i.h.bf16 %v11353_v22 }
 0x34b   :  { %v7736_v11 = vunpack.i.l.bf16 %v11577_v17  ;;  %v7741_v7 = vunpack.i.l.bf16 %v11579_v26  ;;  %2399 = vmatpush1.bf16.msra.mxu1 %v11412_v50  ;;  %v2085_v50 = vsel %vm2077_vm4, %v7726_v4, %v7727_v1 }
 0x34c   :  { %7859 = vrot.lane.b32.xlu1 %v7848_v18, %s8143_s29  ;;  %7854 = vrot.lane.b32.xlu0 %v7848_v18, %s15270_s27  ;;  %v2245_v4 = vpack.c.bf16 %v2126_v2, %v2085_v50 }
 0x34d   :  { %v1801_v24 = vsel %vm15149_vm2, %v7692_v47, %v7736_v11  ;;  %2400 = vmatprep.subr.bf16.mxu1 %v2233_v14 }
 0x34e   :  { %v11612_v9 = vpop.permute.xlu0 %7744  ;;  %v11614_v39 = vpop.permute.xlu1 %7749  ;;  %v11629_v3 = vpack.c.bf16 %v1801_v24, %v10923_v43  ;;  %v1841_v43 = vsel %vm15474_vm11, %v15473_v8, %v7741_v7  ;;  %vm15489_vm11 = vmmov %vm15481_vm6 }
 0x34f   :  { %v7746_v47 = vunpack.i.l.bf16 %v11612_v9  ;;  %v7751_v12 = vunpack.i.l.bf16 %v11614_v39  ;;  %2401 = vmatpush1.bf16.msra.mxu1 %v11448_v29 }
 0x350   :  { %2427 = vmatprep.subr.bf16.mxu0 %v11629_v3  ;;  %1791 = vrot.lane.b32.xlu1 %v11632_v44, %s15190_s25 }
 0x351   :  { %2428 = vmatpush1.bf16.msra.mxu0 %v11511_v30  ;;  %v1882_v16 = vsel %vm1875_vm5, %v15475_v55, %v7746_v47  ;;  %7864 = vrot.lane.b32.xlu0 %v7848_v18, %s8144_s12  ;;  %v15476_v18 = vunpack.i.h.bf16 %v11368_v38 }
 0x352   :  { %v11653_v29 = vpop.permute.xlu0 %7754  ;;  %v11655_v31 = vpop.permute.xlu1 %7764  ;;  %v11657_v53 = vpack.c.bf16 %v1882_v16, %v1841_v43  ;;  %2402 = vmatprep.subr.bf16.mxu1 %v2245_v4  ;;  %v15479_v43 = vunpack.i.h.bf16 %v11408_v28 }
 0x353   :  { %v7756_v40 = vunpack.i.l.bf16 %v11653_v29  ;;  %v7766_v22 = vunpack.i.l.bf16 %v11655_v31  ;;  %2403 = vmatpush1.bf16.msra.mxu1 %v11488_v63  ;;  %v1923_v10 = vsel %vm1916_vm8, %v15476_v18, %v7751_v12  ;;  %v7737_v18 = vunpack.i.h.bf16 %v11577_v17 }
 0x354   :  { %2429 = vmatprep.subr.bf16.mxu0 %v11657_v53  ;;  %1871 = vrot.lane.b32.xlu1 %v11632_v44, %s8141_s0 }
 0x355   :  { %2430 = vmatpush1.bf16.msra.mxu0 %v11535_v6  ;;  %v1963_v24 = vsel %vm15478_vm13, %v15477_v51, %v7756_v40  ;;  %1831 = vrot.lane.b32.xlu0 %v11632_v44, %s15172_s28  ;;  %v2043_v16 = vsel %vm727_vm14, %v7722_v25, %v7766_v22  ;;  %v7677_v51 = vunpack.i.h.bf16 %v11309_v41  ;;  %v15480_v25 = vunpack.i.l.bf16 %v11333_v58  ;;  %vm15491_vm13 = vmmov %vm15482_vm7 }
 0x356   :  { %v11680_v63 = vpop.permute.xlu0 %7759  ;;  %v11682_v50 = vpop.permute.xlu1 %7774  ;;  %v11684_v38 = vpack.c.bf16 %v1963_v24, %v1923_v10  ;;  %2404 = vmatprep.subr.bf16.mxu1 %v11629_v3  ;;  %v2136_v56 = vsel %vm15149_vm2, %v7736_v11, %v7737_v18 }
 0x357   :  { %v7761_v2 = vunpack.i.l.bf16 %v11680_v63  ;;  %v7776_v8 = vunpack.i.l.bf16 %v11682_v50  ;;  %2405 = vmatpush1.bf16.msra.mxu1 %v11511_v30  ;;  %v1719_v24 = vsel %vm15481_vm6, %v15480_v25, %v15090_v19  ;;  %v7747_v19 = vunpack.i.h.bf16 %v11612_v9  ;;  %vm15495_vm6 = vmmov %vm15486_vm9 }
 0x358   :  { %2431 = vmatprep.subr.bf16.mxu0 %v11684_v38  ;;  %1953 = vrot.lane.b32.xlu1 %v11632_v44, %s15197_s15 }
 0x359   :  { %2432 = vmatpush1.bf16.msra.mxu0 %v2221_v42  ;;  %v2003_v55 = vsel %vm629_vm12, %v15479_v43, %v7761_v2  ;;  %1912 = vrot.lane.b32.xlu0 %v11632_v44, %s8142_s22  ;;  %v7682_v42 = vunpack.i.h.bf16 %v11307_v20  ;;  %v2269_v43 = vpack.c.bf16 %v11549_v48, %v11549_v48  ;;  %v2125_v25 = vsel %vm2118_vm15, %v7732_v21, %v7776_v8 }
 0x35a   :  { %v11709_v30 = vpop.permute.xlu0 %7769  ;;  %v11711_v28 = vpack.c.bf16 %v2043_v16, %v2003_v55  ;;  %2406 = vmatprep.subr.bf16.mxu1 %v11657_v53  ;;  %v2270_v55 = vpack.c.bf16 %v1923_v10, %v1923_v10  ;;  %v7742_v48 = vunpack.i.h.bf16 %v11579_v26  ;;  %v11764_v10 = vpack.c.bf16 %v2136_v56, %v10999_v62 }
 0x35b   :  { %v7771_v36 = vunpack.i.l.bf16 %v11709_v30  ;;  %2407 = vmatpush1.bf16.msra.mxu1 %v11535_v6  ;;  %v1671_v57 = vsel %vm15482_vm7, %v7681_v35, %v7682_v42  ;;  %v2312_v11 = vsel %vm15142_vm10, %v2269_v43, 0  ;;  %v15484_v35 = vmax.f32 %v10904_v32, 0.0 }
 0x35c   :  { %2433 = vmatprep.subr.bf16.mxu0 %v11711_v28  ;;  %2033 = vrot.lane.b32.xlu1 %v11632_v44, %s15270_s27  ;;  %v1749_v6 = vmax.f32 %v1671_v57, %v1719_v24  ;;  %v7752_v32 = vunpack.i.h.bf16 %v11614_v39  ;;  %v2142_v24 = vsel %vm15485_vm3, %v7741_v7, %v7742_v48  ;;  %v15488_v56 = vunpack.i.h.bf16 %v11333_v58 }
 0x35d   :  { %2434 = vmatpush1.bf16.msra.mxu0 %v2233_v14  ;;  %v2084_v16 = vsel %vm2077_vm4, %v7727_v1, %v7771_v36  ;;  %1993 = vrot.lane.b32.xlu0 %v11632_v44, %s15199_s20  ;;  %v15483_v1 = vunpack.i.l.bf16 %v11309_v41  ;;  %v15492_v58 = vunpack.i.h.bf16 %v10755_v54  ;;  %v15493_v20 = vmax.f32 %v10907_v27, 0.0  ;;  %v2281_v27 = vld [vmem:[%s14888_s4] sm:$0xff]  ;;  %v2282_v41 = vld [vmem:[%s14888_s4 + $0x8] sm:$0xff] }
 0x35e   :  { %v2246_v14 = vpack.c.bf16 %v2125_v25, %v2084_v16  ;;  %6395 = vmatprep.subr.msk.bf16.mxu1 %vm15142_vm10, %v2270_v55  ;;  %v7757_v25 = vunpack.i.h.bf16 %v11653_v29  ;;  %v7772_v29 = vunpack.i.h.bf16 %v11709_v30  ;;  %v15487_v30 = vunpack.i.h.bf16 %v10766_v59 }
 0x35f   :  { %v1607_v21 = vsel %vm90_vm1, %v15483_v1, %v7677_v51  ;;  %2409 = vmatpush1.bf16.msra.mxu1 %v2312_v11 }
 0x360   :  { %2435 = vmatprep.subr.bf16.mxu0 %v2246_v14  ;;  %v1637_v16 = vmax.f32 %v15484_v35, %v1607_v21  ;;  %2114 = vrot.lane.b32.xlu1 %v11632_v44, %s8144_s12  ;;  %v2160_v7 = vsel %vm15486_vm9, %v7756_v40, %v7757_v25  ;;  %v1734_v57 = vsel %vm15489_vm11, %v15488_v56, %v15487_v30  ;;  %vm15498_vm9 = vmmov %vm15495_vm6 }
 0x361   :  { %2436 = vmatpush1.bf16.msra.mxu0 %v2245_v4  ;;  %2073 = vrot.lane.b32.xlu0 %v11632_v44, %s8143_s29  ;;  %v2148_v4 = vsel %vm1875_vm5, %v7746_v47, %v7747_v19  ;;  %v7762_v47 = vunpack.i.h.bf16 %v11680_v63 }
 0x362   :  { %2437 = vmatprep.subr.bf16.mxu0 %v11764_v10  ;;  %v11780_v62 = vmax.f32 %v1637_v16, %v1749_v6  ;;  %2417 = vmatmul.mubr.bf16.vlgmr.msra.gmra.mrb[16].mxu1 %v11446_v61  ;;  %v11791_v43 = vpack.c.bf16 %v2148_v4, %v2142_v24 }
 0x363   :  { %6400 = vmatprep.mubr.msk.bf16.mxu1 %vm1178_vm0, %v10942_v52  ;;  %v11812_v52 = vsel %vm1916_vm8, %v7751_v12, %v7752_v32  ;;  %v2166_v40 = vsel %vm629_vm12, %v7761_v2, %v7762_v47  ;;  %v7777_v12 = vunpack.i.h.bf16 %v11682_v50 }
 0x364   :  { %1833 = vrot.lane.b32.xlu1 %v11780_v62, %s15172_s28  ;;  %v2257_v55 = vpack.c.bf16 %v2160_v7, %v11812_v52 }
 0x365   :  { %2438 = vmatpush1.bf16.msra.mxu0 %v11629_v3  ;;  %1793 = vrot.lane.b32.xlu0 %v11780_v62, %s15190_s25  ;;  %v7767_v3 = vunpack.i.h.bf16 %v11655_v31  ;;  %v2178_v31 = vsel %vm2077_vm4, %v7771_v36, %v7772_v29  ;;  %v2184_v36 = vsel %vm2118_vm15, %v7776_v8, %v7777_v12 }
 0x366   :  { %2439 = vmatprep.subr.bf16.mxu0 %v11791_v43 }
 0x368   :  { %1914 = vrot.lane.b32.xlu1 %v11780_v62, %s8142_s22 }
 0x369   :  { %2440 = vmatpush1.bf16.msra.mxu0 %v11657_v53  ;;  %1873 = vrot.lane.b32.xlu0 %v11780_v62, %s8141_s0  ;;  %v2172_v53 = vsel %vm727_vm14, %v7766_v22, %v7767_v3  ;;  %v15490_v22 = vunpack.i.h.bf16 %v10763_v33  ;;  %v2261_v33 = vpack.c.bf16 %v2184_v36, %v2178_v31 }
 0x36a   :  { %2441 = vmatprep.subr.bf16.mxu0 %v2257_v55  ;;  %v2259_v63 = vpack.c.bf16 %v2172_v53, %v2166_v40 }
 0x36b   :  { %v1686_v59 = vsel %vm15491_vm13, %v7682_v42, %v15490_v22 }
 0x36c   :  { %1995 = vrot.lane.b32.xlu1 %v11780_v62, %s15199_s20  ;;  %v1750_v2 = vmax.f32 %v1686_v59, %v1734_v57 }
 0x36d   :  { %2442 = vmatpush1.bf16.msra.mxu0 %v11684_v38  ;;  %1955 = vrot.lane.b32.xlu0 %v11780_v62, %s15197_s15  ;;  %v1622_v38 = vsel %vm90_vm1, %v7677_v51, %v15492_v58  ;;  %vm15494_vm1 = vmmov %vm15485_vm3 }
 0x36e   :  { %2443 = vmatprep.subr.bf16.mxu0 %v2259_v63  ;;  %v1638_v42 = vmax.f32 %v15493_v20, %v1622_v38  ;;  %vm15496_vm7 = vmmov %vm15494_vm1 }
 0x36f   :  { %vm15497_vm3 = vmmov %vm15494_vm1 }
 0x370   :  { %2075 = vrot.lane.b32.xlu1 %v11780_v62, %s8143_s29  ;;  %v11866_v54 = vmax.f32 %v1638_v42, %v1750_v2  ;;  %vm15499_vm11 = vmmov %vm15494_vm1 }
 0x371   :  { %2444 = vmatpush1.bf16.msra.mxu0 %v11711_v28  ;;  %2035 = vrot.lane.b32.xlu0 %v11780_v62, %s15270_s27  ;;  %vm15500_vm13 = vmmov %vm15494_vm1 }
 0x372   :  { %2445 = vmatprep.subr.bf16.mxu0 %v2261_v33 }
 0x374   :  { %2133 = vrot.lane.b32.xlu1 %v11866_v54, %s15190_s25 }
 0x375   :  { %2446 = vmatpush1.bf16.msra.mxu0 %v2246_v14  ;;  %2116 = vrot.lane.b32.xlu0 %v11780_v62, %s8144_s12 }
 0x378   :  { %2145 = vrot.lane.b32.xlu1 %v11866_v54, %s8141_s0 }
 0x379   :  { %2139 = vrot.lane.b32.xlu0 %v11866_v54, %s15172_s28 }
 0x37c   :  { %2157 = vrot.lane.b32.xlu1 %v11866_v54, %s15197_s15 }
 0x37d   :  { %2151 = vrot.lane.b32.xlu0 %v11866_v54, %s8142_s22 }
 0x380   :  { %2169 = vrot.lane.b32.xlu1 %v11866_v54, %s15270_s27 }
 0x381   :  { %2163 = vrot.lane.b32.xlu0 %v11866_v54, %s15199_s20 }
 0x384   :  { %2181 = vrot.lane.b32.xlu1 %v11866_v54, %s8144_s12 }
 0x385   :  { %2175 = vrot.lane.b32.xlu0 %v11866_v54, %s8143_s29 }
 0x388   :  { %2290 = vperm.xlu1 %7868, %v2282_v41  }
 0x389   :  { %2285 = vperm.xlu0 %7477, %v2281_v27  }
 0x38e   :  { %v11894_v50 = vpop.permute.xlu1 %7789  ;;  %v11896_v8 = vpop.permute.xlu0 %7779 }
 0x38f   :  { %v7782_v28 = vunpack.i.h.bf16 %v11896_v8  ;;  %v7781_v51 = vunpack.i.l.bf16 %v11896_v8  ;;  %v7791_v3 = vunpack.i.l.bf16 %v11894_v50 }
 0x391   :  { %v1799_v14 = vsel %vm15149_vm2, %v7781_v51, %v7782_v28 }
 0x392   :  { %v11904_v1 = vpop.permute.xlu1 %7799  ;;  %v11906_v21 = vpop.permute.xlu0 %7784  ;;  %v11909_v6 = vpack.c.bf16 %v1799_v14, %v11227_v0  ;;  %v7792_v0 = vunpack.i.h.bf16 %v11894_v50 }
 0x393   :  { %v7787_v47 = vunpack.i.h.bf16 %v11906_v21  ;;  %v7786_v7 = vunpack.i.l.bf16 %v11906_v21  ;;  %v7802_v40 = vunpack.i.h.bf16 %v11904_v1  ;;  %v7801_v12 = vunpack.i.l.bf16 %v11904_v1 }
 0x394   :  { %2470 = vmatprep.subr.bf16.mxu1 %v11909_v6  ;;  %v1880_v2 = vsel %vm1875_vm5, %v7791_v3, %v7792_v0 }
 0x395   :  { %v1839_v57 = vsel %vm15494_vm1, %v7786_v7, %v7787_v47  ;;  %v1961_v20 = vsel %vm15495_vm6, %v7801_v12, %v7802_v40  ;;  %vm15501_vm1 = vmmov %vm15495_vm6 }
 0x396   :  { %v1944_v11 = vpop.permute.xlu1 %1943  ;;  %v11912_v35 = vpop.permute.xlu0 %7794  ;;  %v11956_v33 = vpack.c.bf16 %v1880_v2, %v1839_v57  ;;  %vm15502_vm6 = vmmov %vm15501_vm1 }
 0x397   :  { %v7797_v30 = vunpack.i.h.bf16 %v11912_v35  ;;  %v7796_v56 = vunpack.i.l.bf16 %v11912_v35 }
 0x399   :  { %v1921_v42 = vsel %vm1916_vm8, %v7796_v56, %v7797_v30 }
 0x39a   :  { %v11914_v16 = vpop.permute.xlu1 %7809  ;;  %v11916_v25 = vpop.permute.xlu0 %7804  ;;  %v11987_v26 = vpack.c.bf16 %v1961_v20, %v1921_v42  ;;  %v1962_v20 = vsel %vm15498_vm9, %v1944_v11, %v7801_v12 }
 0x39b   :  { %v7812_v17 = vunpack.i.h.bf16 %v11914_v16  ;;  %v7807_v14 = vunpack.i.h.bf16 %v11916_v25 }
 0x39e   :  { %v11918_v4 = vpop.permute.xlu1 %1983  ;;  %v11920_v24 = vpop.permute.xlu0 %2023 }
 0x3a2   :  { %v11926_v55 = vpop.permute.xlu1 %7814  ;;  %v11928_v29 = vpop.permute.xlu0 %7819 }
 0x3a3   :  { %v7816_v53 = vunpack.i.l.bf16 %v11926_v55  ;;  %v7821_v31 = vunpack.i.l.bf16 %v11928_v29 }
 0x3a5   :  { %v1800_v63 = vsel %vm15149_vm2, %v7816_v53, %v7781_v51  ;;  %v2185_v58 = vsel %vm15149_vm2, %v7737_v18, %v7816_v53  ;;  %v7811_v18 = vunpack.i.l.bf16 %v11914_v16  ;;  %v1840_v27 = vsel %vm15496_vm7, %v7821_v31, %v7786_v7  ;;  %vm15503_vm7 = vmmov %vm15497_vm3 }
 0x3a6   :  { %v11942_v22 = vpop.permute.xlu1 %7824  ;;  %v11944_v59 = vpop.permute.xlu0 %7834  ;;  %v2199_v38 = vpack.c.bf16 %v1800_v63, %v11003_v23  ;;  %v2263_v23 = vpack.c.bf16 %v2185_v58, %v11001_v49  ;;  %v2187_v51 = vsel %vm15497_vm3, %v7742_v48, %v7821_v31  ;;  %v7806_v53 = vunpack.i.l.bf16 %v11916_v25  ;;  %vm15504_vm3 = vmmov %vm15501_vm1 }
 0x3a7   :  { %v7826_v36 = vunpack.i.l.bf16 %v11942_v22  ;;  %v2041_v31 = vsel %vm727_vm14, %v7811_v18, %v7812_v17  ;;  %v7837_v42 = vunpack.i.h.bf16 %v11944_v59  ;;  %v2042_v39 = vsel %vm727_vm14, %v11920_v24, %v7811_v18  ;;  %vm15505_vm9 = vmmov %vm15503_vm7 }
 0x3a8   :  { %2471 = vmatpush1.bf16.msra.mxu1 %v2199_v38  ;;  %2447 = vmatprep.subr.bf16.mxu0 %v2263_v23  ;;  %v2001_v48 = vsel %vm629_vm12, %v7806_v53, %v7807_v14  ;;  %v2002_v12 = vsel %vm629_vm12, %v11918_v4, %v7806_v53 }
 0x3a9   :  { %v1881_v41 = vsel %vm1875_vm5, %v7826_v36, %v7791_v3  ;;  %2472 = vmatprep.subr.bf16.mxu1 %v11956_v33  ;;  %v2189_v49 = vsel %vm1875_vm5, %v7747_v19, %v7826_v36  ;;  %2448 = vmatpush1.bf16.msra.mxu0 %v11764_v10  ;;  %v7817_v10 = vunpack.i.h.bf16 %v11926_v55  ;;  %v2271_v36 = vpack.c.bf16 %v11812_v52, %v11812_v52 }
 0x3aa   :  { %v11984_v7 = vpop.permute.xlu1 %7829  ;;  %v2105_v3 = vpop.permute.xlu0 %2104  ;;  %v2265_v57 = vpack.c.bf16 %v2189_v49, %v2187_v51  ;;  %v2211_v63 = vpack.c.bf16 %v1881_v41, %v1840_v27  ;;  %v12015_v55 = vpack.c.bf16 %v2041_v31, %v2001_v48  ;;  %v7836_v27 = vunpack.i.l.bf16 %v11944_v59 }
 0x3ab   :  { %v7832_v38 = vunpack.i.h.bf16 %v11984_v7  ;;  %v7831_v2 = vunpack.i.l.bf16 %v11984_v7  ;;  %v7827_v49 = vunpack.i.h.bf16 %v11942_v22  ;;  %v2318_v4 = vsel %vm15142_vm10, %v2271_v36, 0 }
 0x3ac   :  { %2449 = vmatprep.subr.bf16.mxu0 %v2265_v57  ;;  %2473 = vmatpush1.bf16.msra.mxu1 %v2211_v63  ;;  %v2235_v24 = vpack.c.bf16 %v2042_v39, %v2002_v12 }
 0x3ad   :  { %2474 = vmatprep.subr.bf16.mxu1 %v11987_v26  ;;  %2450 = vmatpush1.bf16.msra.mxu0 %v11791_v43  ;;  %v2082_v8 = vsel %vm2077_vm4, %v7831_v2, %v7832_v38 }
 0x3ae   :  { %v2064_v9 = vpop.permute.xlu1 %2063  ;;  %v11990_v19 = vpop.permute.xlu0 %7839 }
 0x3af   :  { %v7841_v58 = vunpack.i.l.bf16 %v11990_v19 }
 0x3b1   :  { %v1922_v23 = vsel %vm1916_vm8, %v7841_v58, %v7796_v56  ;;  %v2191_v43 = vsel %vm1916_vm8, %v7752_v32, %v7841_v58  ;;  %v1798_v32 = vsel %vm15149_vm2, %v7782_v28, %v7817_v10  ;;  %v7822_v28 = vunpack.i.h.bf16 %v11928_v29 }
 0x3b2   :  { %v12019_v41 = vpop.permute.xlu1 %1829  ;;  %v12021_v52 = vpop.permute.xlu0 %1789  ;;  %v2272_v51 = vpack.c.bf16 %v2191_v43, %v2191_v43  ;;  %v2223_v11 = vpack.c.bf16 %v1962_v20, %v1922_v23  ;;  %v12058_v57 = vpack.c.bf16 %v1798_v32, %v11229_v37  ;;  %v2083_v29 = vsel %vm2077_vm4, %v2064_v9, %v7831_v2 }
 0x3b3   :  { %v1797_v56 = vsel %vm15149_vm2, %v7817_v10, %v12021_v52  ;;  %v1837_v63 = vsel %vm15499_vm11, %v7822_v28, %v12019_v41  ;;  %v1879_v10 = vsel %vm1875_vm5, %v7792_v0, %v7827_v49  ;;  %v7842_v37 = vunpack.i.h.bf16 %v11990_v19  ;;  %vm15506_vm11 = vmmov %vm15501_vm1 }
 0x3b4   :  { %6397 = vmatprep.subr.msk.bf16.mxu0 %vm15142_vm10, %v2272_v51  ;;  %2475 = vmatpush1.bf16.msra.mxu1 %v2223_v11  ;;  %v12040_v53 = vpack.c.bf16 %v1797_v56, %v11343_v46  ;;  %v2123_v46 = vsel %vm2118_vm15, %v7836_v27, %v7837_v42  ;;  %v2124_v58 = vsel %vm2118_vm15, %v2105_v3, %v7836_v27  ;;  %v12094_v3 = vld [vmem:[%s14887_s3 + $0x4] ss:$8 sps:$4 sm:$0xff]  }
 0x3b5   :  { %2452 = vmatpush1.bf16.msra.mxu0 %v2318_v4  ;;  %2476 = vmatprep.subr.bf16.mxu1 %v12015_v55  ;;  %v12068_v31 = vpack.c.bf16 %v2123_v46, %v2082_v8  ;;  %v1838_v50 = vsel %vm15500_vm13, %v7787_v47, %v7822_v28  ;;  %v2247_v0 = vpack.c.bf16 %v2124_v58, %v2083_v29  ;;  %vm15509_vm13 = vmmov %vm15501_vm1 }
 0x3b6   :  { %v12048_v22 = vpop.permute.xlu1 %1910  ;;  %v12050_v18 = vpop.permute.xlu0 %1869  ;;  %2513 = vmatprep.subr.bf16.mxu0 %v12040_v53  ;;  %v12100_v47 = vpack.c.bf16 %v1879_v10, %v1838_v50  ;;  %v12106_v20 = vsel %vm1916_vm8, %v7797_v30, %v7842_v37 }
 0x3b7   :  { %v1878_v48 = vsel %vm1875_vm5, %v7827_v49, %v12050_v18  ;;  %v12112_v43 = vsel %vm1916_vm8, %v7842_v37, %v12048_v22 }
 0x3b8   :  { %2460 = vmatmul.mubr.bf16.vlgmr.msra.gmra.mrb[20].mxu0 %v11446_v61  ;;  %2477 = vmatpush1.bf16.msra.mxu1 %v2235_v24  ;;  %v12076_v9 = vpack.c.bf16 %v1878_v48, %v1837_v63 }
 0x3b9   :  { %2478 = vmatprep.subr.bf16.mxu1 %v12068_v31  ;;  %2514 = vmatpush1.bf16.msra.mxu0 %v12058_v57 }
 0x3ba   :  { %v12086_v2 = vpop.permute.xlu1 %7849  ;;  %v12088_v19 = vpop.permute.xlu0 %7844  ;;  %2515 = vmatprep.subr.bf16.mxu0 %v12076_v9  ;;  %6402 = vmatprep.mubr.msk.bf16.mxu0 %vm1178_vm0, %v12094_v3 }
 0x3bb   :  { %v7847_v21 = vunpack.i.h.bf16 %v12088_v19  ;;  %v7846_v36 = vunpack.i.l.bf16 %v12088_v19  ;;  %v7851_v23 = vunpack.i.l.bf16 %v12086_v2  ;;  %v7852_v27 = vunpack.i.h.bf16 %v12086_v2 }
 0x3bc   :  { %2479 = vmatpush1.bf16.msra.mxu1 %v2247_v0 }
 0x3bd   :  { %v1960_v51 = vsel %vm15501_vm1, %v7802_v40, %v7846_v36  ;;  %2480 = vmatprep.subr.bf16.mxu1 %v12058_v57  ;;  %2516 = vmatpush1.bf16.msra.mxu0 %v12100_v47  ;;  %v1959_v35 = vsel %vm15502_vm6, %v7846_v36, %v7847_v21  ;;  %v2000_v40 = vsel %vm629_vm12, %v7807_v14, %v7851_v23 }
 0x3be   :  { %v12123_v30 = vpop.permute.xlu1 %7859  ;;  %v7855_v11 = vpop.permute.xlu0 %7854  ;;  %v12126_v12 = vpack.c.bf16 %v1959_v35, %v12112_v43  ;;  %v2225_v39 = vpack.c.bf16 %v1960_v51, %v12106_v20  ;;  %v1999_v25 = vsel %vm629_vm12, %v7851_v23, %v7852_v27  ;;  %v2273_v51 = vpack.c.bf16 %v12106_v20, %v12106_v20 }
 0x3bf   :  { %v7857_v32 = vunpack.i.h.bf16 %v7855_v11  ;;  %v7856_v1 = vunpack.i.l.bf16 %v7855_v11  ;;  %v7862_v56 = vunpack.i.h.bf16 %v12123_v30  ;;  %v7861_v49 = vunpack.i.l.bf16 %v12123_v30 }
 0x3c0   :  { %2481 = vmatpush1.bf16.msra.mxu1 %v11909_v6  ;;  %2517 = vmatprep.subr.bf16.mxu0 %v12126_v12 }
 0x3c1   :  { %v2040_v4 = vsel %vm727_vm14, %v7812_v17, %v7856_v1  ;;  %2482 = vmatprep.subr.bf16.mxu1 %v12100_v47  ;;  %2518 = vmatpush1.bf16.msra.mxu0 %v2225_v39  ;;  %v2039_v14 = vsel %vm727_vm14, %v7856_v1, %v7857_v32  ;;  %v2081_v17 = vsel %vm2077_vm4, %v7832_v38, %v7861_v49 }
 0x3c2   :  { %v1792_v8 = vpop.permute.xlu1 %1791  ;;  %v2238_v28 = vpack.c.bf16 %v2039_v14, %v1999_v25  ;;  %v2237_v24 = vpack.c.bf16 %v2040_v4, %v2000_v40  ;;  %v2080_v29 = vsel %vm2077_vm4, %v7861_v49, %v7862_v56 }
 0x3c3   :  { %v7865_v6 = vpop.permute.xlu0 %7864  ;;  %v1796_v63 = vsel %vm15149_vm2, %v12021_v52, %v1792_v8 }
 0x3c4   :  { %v7867_v46 = vunpack.i.h.bf16 %v7865_v6  ;;  %v7866_v16 = vunpack.i.l.bf16 %v7865_v6  ;;  %2483 = vmatpush1.bf16.msra.mxu1 %v11956_v33  ;;  %2519 = vmatprep.subr.bf16.mxu0 %v2238_v28  ;;  %v2203_v58 = vpack.c.bf16 %v1796_v63, %v11507_v34 }
 0x3c5   :  { %2484 = vmatprep.subr.bf16.mxu1 %v2225_v39  ;;  %2520 = vmatpush1.bf16.msra.mxu0 %v2237_v24 }
 0x3c6   :  { %v2122_v48 = vsel %vm2118_vm15, %v7837_v42, %v7866_v16  ;;  %v2121_v7 = vsel %vm2118_vm15, %v7866_v16, %v7867_v46  ;;  %v1872_v38 = vpop.permute.xlu1 %1871 }
 0x3c7   :  { %v1832_v33 = vpop.permute.xlu0 %1831  ;;  %v2250_v10 = vpack.c.bf16 %v2121_v7, %v2080_v29  ;;  %v2249_v37 = vpack.c.bf16 %v2122_v48, %v2081_v17  ;;  %v1877_v59 = vsel %vm1875_vm5, %v12050_v18, %v1872_v38  ;;  %v15507_v48 = vmov 0  }
 0x3c8   :  { %2485 = vmatpush1.bf16.msra.mxu1 %v11987_v26  ;;  %v1836_v42 = vsel %vm15503_vm7, %v12019_v41, %v1832_v33 }
 0x3c9   :  { %2521 = vmatprep.subr.bf16.mxu0 %v2250_v10  ;;  %2486 = vmatprep.subr.bf16.mxu1 %v2237_v24  ;;  %v2215_v0 = vpack.c.bf16 %v1877_v59, %v1836_v42 }
 0x3ca   :  { %2522 = vmatpush1.bf16.msra.mxu0 %v2249_v37  ;;  %v1954_v52 = vpop.permute.xlu1 %1953 }
 0x3cb   :  { %v1913_v50 = vpop.permute.xlu0 %1912  ;;  %2523 = vmatprep.subr.bf16.mxu0 %v2203_v58  ;;  %v1958_v26 = vsel %vm15504_vm3, %v7847_v21, %v1954_v52 }
 0x3cc   :  { %2487 = vmatpush1.bf16.msra.mxu1 %v12015_v55  ;;  %v12178_v34 = vsel %vm1916_vm8, %v12048_v22, %v1913_v50 }
 0x3cd   :  { %2488 = vmatprep.subr.bf16.mxu1 %v2249_v37  ;;  %v2227_v19 = vpack.c.bf16 %v1958_v26, %v12178_v34  ;;  %v2275_v25 = vpack.c.bf16 %v12178_v34, %v12178_v34 }
 0x3ce   :  { %2524 = vmatpush1.bf16.msra.mxu0 %v12040_v53  ;;  %v2034_v41 = vpop.permute.xlu1 %2033 }
 0x3cf   :  { %v1994_v18 = vpop.permute.xlu0 %1993  ;;  %2525 = vmatprep.subr.bf16.mxu0 %v2215_v0  ;;  %v2038_v55 = vsel %vm727_vm14, %v7857_v32, %v2034_v41  ;;  %v2330_v16 = vsel %vm15142_vm10, %v2275_v25, 0 }
 0x3d0   :  { %2489 = vmatpush1.bf16.msra.mxu1 %v12068_v31  ;;  %v1998_v21 = vsel %vm629_vm12, %v7852_v27, %v1994_v18 }
 0x3d1   :  { %2490 = vmatprep.subr.bf16.mxu1 %v12040_v53  ;;  %v12192_v31 = vpack.c.bf16 %v2038_v55, %v1998_v21 }
 0x3d2   :  { %2526 = vmatpush1.bf16.msra.mxu0 %v12076_v9  ;;  %v2115_v22 = vpop.permute.xlu1 %2114 }
 0x3d3   :  { %v2074_v36 = vpop.permute.xlu0 %2073  ;;  %2527 = vmatprep.subr.bf16.mxu0 %v2227_v19  ;;  %v2120_v23 = vsel %vm2118_vm15, %v7867_v46, %v2115_v22 }
 0x3d4   :  { %2491 = vmatpush1.bf16.msra.mxu1 %v12058_v57  ;;  %v2079_v2 = vsel %vm2077_vm4, %v7862_v56, %v2074_v36  ;;  %v2274_v57 = vpack.c.bf16 %v12112_v43, %v12112_v43 }
 0x3d5   :  { %2492 = vmatprep.subr.bf16.mxu1 %v12076_v9  ;;  %v2251_v30 = vpack.c.bf16 %v2120_v23, %v2079_v2  ;;  %v15511_v2 = vunpack.i.l.bf16 %v11074_v45 }
 0x3d6   :  { %2528 = vmatpush1.bf16.msra.mxu0 %v12126_v12  ;;  %v12200_v53 = vpop.permute.xlu1 %1833  ;;  %v2324_v12 = vsel %vm15142_vm10, %v2273_v51, 0  ;;  %v15514_v51 = vunpack.i.l.bf16 %v11104_v5 }
 0x3d7   :  { %v1794_v27 = vpop.permute.xlu0 %1793  ;;  %2529 = vmatprep.subr.bf16.mxu0 %v12192_v31 }
 0x3d8   :  { %v1795_v35 = vsel %vm15149_vm2, %v1792_v8, %v1794_v27  ;;  %2493 = vmatpush1.bf16.msra.mxu1 %v12100_v47  ;;  %v1835_v47 = vsel %vm15505_vm9, %v1832_v33, %v12200_v53 }
 0x3d9   :  { %6399 = vmatprep.subr.msk.bf16.mxu1 %vm15142_vm10, %v2274_v57  ;;  %v2204_v39 = vpack.c.bf16 %v1795_v35, %v11632_v44 }
 0x3da   :  { %2530 = vmatpush1.bf16.msra.mxu0 %v2238_v28  ;;  %v1915_v9 = vpop.permute.xlu1 %1914 }
 0x3db   :  { %v1874_v11 = vpop.permute.xlu0 %1873  ;;  %2531 = vmatprep.subr.bf16.mxu0 %v2251_v30  ;;  %v1917_v44 = vsel %vm1916_vm8, %v1913_v50, %v1915_v9 }
 0x3dc   :  { %v1876_v43 = vsel %vm1875_vm5, %v1872_v38, %v1874_v11  ;;  %2495 = vmatpush1.bf16.msra.mxu1 %v2324_v12  ;;  %v2276_v14 = vpack.c.bf16 %v1917_v44, %v1917_v44 }
 0x3dd   :  { %2556 = vmatprep.subr.bf16.mxu1 %v2204_v39  ;;  %v2216_v1 = vpack.c.bf16 %v1876_v43, %v1835_v47 }
 0x3de   :  { %2532 = vmatpush1.bf16.msra.mxu0 %v2250_v10  ;;  %v1996_v20 = vpop.permute.xlu1 %1995 }
 0x3df   :  { %v1956_v32 = vpop.permute.xlu0 %1955  ;;  %2533 = vmatprep.subr.bf16.mxu0 %v2204_v39  ;;  %2503 = vmatmul.mubr.bf16.vlgmr.msra.gmra.mrb[20].mxu1 %v11446_v61 }
 0x3e0   :  { %v1957_v40 = vsel %vm15506_vm11, %v1954_v52, %v1956_v32  ;;  %2557 = vmatpush1.bf16.msra.mxu1 %v2203_v58  ;;  %6404 = vmatprep.mubr.msk.bf16.mxu1 %vm1178_vm0, %v12094_v3  ;;  %v1997_v3 = vsel %vm629_vm12, %v1994_v18, %v1996_v20  ;;  %vm15508_vm0 = vmmov %vm15503_vm7 }
 0x3e1   :  { %2558 = vmatprep.subr.bf16.mxu1 %v2216_v1  ;;  %v2228_v4 = vpack.c.bf16 %v1957_v40, %v1917_v44 }
 0x3e2   :  { %2534 = vmatpush1.bf16.msra.mxu0 %v2203_v58  ;;  %v2076_v56 = vpop.permute.xlu1 %2075 }
 0x3e3   :  { %v2036_v49 = vpop.permute.xlu0 %2035  ;;  %2535 = vmatprep.subr.bf16.mxu0 %v2216_v1  ;;  %v2078_v17 = vsel %vm2077_vm4, %v2074_v36, %v2076_v56  ;;  %v15510_v36 = vunpack.i.l.bf16 %v11054_v13 }
 0x3e4   :  { %v2037_v8 = vsel %vm727_vm14, %v2034_v41, %v2036_v49  ;;  %2559 = vmatpush1.bf16.msra.mxu1 %v2215_v0 }
 0x3e5   :  { %2560 = vmatprep.subr.bf16.mxu1 %v2228_v4  ;;  %v2240_v24 = vpack.c.bf16 %v2037_v8, %v1997_v3 }
 0x3e6   :  { %2536 = vmatpush1.bf16.msra.mxu0 %v2215_v0  ;;  %v2134_v6 = vpop.permute.xlu1 %2133 }
 0x3e7   :  { %v2117_v28 = vpop.permute.xlu0 %2116  ;;  %6401 = vmatprep.subr.msk.bf16.mxu0 %vm15142_vm10, %v2276_v14  ;;  %v2135_v38 = vsel %vm15149_vm2, %v1794_v27, %v2134_v6  ;;  %v15512_v27 = vunpack.i.l.bf16 %v11052_v60 }
 0x3e8   :  { %v2119_v46 = vsel %vm2118_vm15, %v2115_v22, %v2117_v28  ;;  %2561 = vmatpush1.bf16.msra.mxu1 %v2227_v19  ;;  %v2254_v37 = vpack.c.bf16 %v2135_v38, %v11780_v62 }
 0x3e9   :  { %2562 = vmatprep.subr.bf16.mxu1 %v2240_v24  ;;  %v2252_v7 = vpack.c.bf16 %v2119_v46, %v2078_v17 }
 0x3ea   :  { %2538 = vmatpush1.bf16.msra.mxu0 %v2330_v16  ;;  %v2146_v29 = vpop.permute.xlu1 %2145 }
 0x3eb   :  { %v2140_v63 = vpop.permute.xlu0 %2139  ;;  %3978 = vmatprep.subr.bf16.mxu0 %v15507_v48  ;;  %v2147_v58 = vsel %vm1875_vm5, %v1874_v11, %v2146_v29 }
 0x3ec   :  { %2563 = vmatpush1.bf16.msra.mxu1 %v12192_v31  ;;  %v2141_v59 = vsel %vm15508_vm0, %v12200_v53, %v2140_v63  ;;  %v2186_v31 = vsel %vm15149_vm2, %v2134_v6, %v15510_v36  ;;  %v2190_v53 = vsel %vm1875_vm5, %v2146_v29, %v15511_v2  ;;  %v15515_v29 = vlaneseq }
 0x3ed   :  { %2546 = vmatmul.mubr.bf16.vlgmr.msra.gmra.mrb[24].mxu0 %v11446_v61  ;;  %2564 = vmatprep.subr.bf16.mxu1 %v2252_v7  ;;  %v2256_v50 = vpack.c.bf16 %v2147_v58, %v2141_v59  ;;  %v2264_v23 = vpack.c.bf16 %v2186_v31, %v11866_v54 }
 0x3ee   :  { %v2158_v33 = vpop.permute.xlu1 %2157 }
 0x3ef   :  { %v2152_v10 = vpop.permute.xlu0 %2151  ;;  %v2159_v61 = vsel %vm15509_vm13, %v1956_v32, %v2158_v33 }
 0x3f0   :  { %2565 = vmatpush1.bf16.msra.mxu1 %v2251_v30  ;;  %v2153_v0 = vsel %vm1916_vm8, %v1915_v9, %v2152_v10  ;;  %v2192_v35 = vsel %vm1916_vm8, %v2152_v10, %v15514_v51 }
 0x3f1   :  { %2566 = vmatprep.subr.bf16.mxu1 %v2254_v37  ;;  %v2258_v62 = vpack.c.bf16 %v2159_v61, %v2153_v0  ;;  %v2277_v54 = vpack.c.bf16 %v2153_v0, %v2153_v0  ;;  %v2278_v45 = vpack.c.bf16 %v2192_v35, %v2192_v35  ;;  %v15113_v35 = vmov 1.0|1.0  }
 0x3f2   :  { %v2170_v42 = vpop.permute.xlu1 %2169 }
 0x3f3   :  { %v2164_v52 = vpop.permute.xlu0 %2163  ;;  %v2171_v26 = vsel %vm727_vm14, %v2036_v49, %v2170_v42  ;;  %vm15513_vm14 = vmmov %vm15508_vm0  ;;  %v2336_v43 = vsel %vm15142_vm10, %v2277_v54, 0  ;;  %v8120_v49 = vld [vmem:[%s14887_s3] ss:$8 sps:$4 sm:$0xff]  }
 0x3f4   :  { %2567 = vmatpush1.bf16.msra.mxu1 %v2204_v39  ;;  %v2165_v34 = vsel %vm629_vm12, %v1996_v20, %v2164_v52  ;;  %v2188_v57 = vsel %vm15513_vm14, %v2140_v63, %v15512_v27  ;;  %v12338_v63 = vshrl.u32 %v15515_v29, 7  ;;  %vm8148_vm14 = vmmov 1  }
 0x3f5   :  { %2568 = vmatprep.subr.bf16.mxu1 %v2256_v50  ;;  %v2260_v19 = vpack.c.bf16 %v2171_v26, %v2165_v34  ;;  %v2266_v13 = vpack.c.bf16 %v2190_v53, %v2188_v57 }
 0x3f6   :  { %v2182_v41 = vpop.permute.xlu1 %2181  ;;  %v3378_v38 = vshra.s32 %v12338_v63, 7  ;;  %v2978_v61 = vand.u32 3, %v12338_v63 }
 0x3f7   :  { %v2176_v18 = vpop.permute.xlu0 %2175  ;;  %v2183_v55 = vsel %vm2118_vm15, %v2117_v28, %v2182_v41 }
 0x3f8   :  { %2569 = vmatpush1.bf16.msra.mxu1 %v2216_v1  ;;  %v2177_v21 = vsel %vm2077_vm4, %v2076_v56, %v2176_v18  ;;  %vm3058_vm5 = vcmp.eq.s32.totalorder %v2978_v61, 0 }
 0x3f9   :  { %2570 = vmatprep.subr.bf16.mxu1 %v2258_v62  ;;  %v2262_v22 = vpack.c.bf16 %v2183_v55, %v2177_v21  ;;  %v3458_v62 = vmul.u32 5, %v3378_v38  ;;  %v12356_v21 = vadd.s32 16, %v12338_v63 }
 0x3fb   :  { %15516 = vst [vmem:[#allocation5_spill] sm:$0xff] %v12356_v21  ;;  %v3140_v2 = vand.u32 127, %v12356_v21  ;;  %v3380_v53 = vshra.s32 %v12356_v21, 7 }
 0x3fc   :  { %2571 = vmatpush1.bf16.msra.mxu1 %v2228_v4 }
 0x3fd   :  { %2572 = vmatprep.subr.bf16.mxu1 %v2260_v19  ;;  %vm12369_vm3 = vcmp.lt.s32.totalorder %v3140_v2, 20  ;;  %v3540_v51 = vshra.s32 %v3140_v2, 2 }
 0x400   :  { %2573 = vmatpush1.bf16.msra.mxu1 %v2240_v24 }
 0x401   :  { %2574 = vmatprep.subr.bf16.mxu1 %v2262_v22 }
 0x404   :  { %2575 = vmatpush1.bf16.msra.mxu1 %v2252_v7  ;;  %v12341_v7 = vadd.s32 8, %v12338_v63 }
 0x405   :  { %2576 = vmatprep.subr.bf16.mxu1 %v2264_v23  ;;  %v2980_v23 = vand.u32 3, %v12356_v21 }
 0x406   :  { %v3139_v58 = vand.u32 127, %v12341_v7  ;;  %v3379_v59 = vshra.s32 %v12341_v7, 7  ;;  %v2979_v0 = vand.u32 3, %v12341_v7 }
 0x407   :  { %v12280_v60 = vpop.permute.xlu1 %2290  ;;  %vm12365_vm7 = vcmp.eq.s32.totalorder %v2980_v23, 0 }
 0x408   :  { %2577 = vmatpush1.bf16.msra.mxu1 %v2254_v37  ;;  %v12277_v30 = vpop.permute.xlu0 %2285  ;;  %v3138_v37 = vand.u32 127, %v12338_v63  ;;  %v3459_v34 = vmul.u32 5, %v3379_v59  ;;  %v3539_v18 = vshra.s32 %v3139_v58, 2  ;;  %vm3059_vm8 = vcmp.eq.s32.totalorder %v2979_v0, 0  ;;  %vm3300_vm11 = vmand %vm12365_vm7, %vm12369_vm3 }
 0x409   :  { %2578 = vmatprep.subr.bf16.mxu1 %v2266_v13  ;;  %v3460_v13 = vmul.u32 5, %v3380_v53 }
 0x40a   :  { %v3538_v41 = vshra.s32 %v3138_v37, 2  ;;  %v3619_v31 = vadd.s32 %v3539_v18, %v3459_v34 }
 0x40b   :  { %v3620_v54 = vadd.s32 %v3540_v51, %v3460_v13 }
 0x40c   :  { %2579 = vmatpush1.bf16.msra.mxu1 %v2256_v50  ;;  %v3618_v22 = vadd.s32 %v3538_v41, %v3458_v62  ;;  %vm3699_vm4 = vcmp.eq.s32.totalorder %v8381_v15, %v3619_v31 }
 0x40d   :  { %v2375_v9 = vpop.f32.mrb[16].mxu0  ;;  %6403 = vmatprep.subr.msk.bf16.mxu1 %vm15142_vm10, %v2278_v45  ;;  %vm3779_vm6 = vmand %vm3059_vm8, %vm3699_vm4  ;;  %v15091_v45 = vmov 0.0   ;;  %vm3700_vm0 = vcmp.eq.s32.totalorder %v8381_v15, %v3620_v54  ;;  %vm15521_vm8 = vcmp.lt.s32.totalorder %v8381_v15, 64 }
 0x40e   :  { %v12283_v11 = vadd.f32 %v2375_v9, %v12277_v30  ;;  %v2377_v12 = vpop.f32.mrb[17].mxu0  ;;  %vm3698_vm15 = vcmp.eq.s32.totalorder %v8381_v15, %v3618_v22  ;;  %v8147_v9 = vmov 1.0   ;;  %vm3780_vm13 = vmand %vm3300_vm11, %vm3700_vm0 }
 0x40f   :  { %v12286_v5 = vadd.f32 %v2377_v12, %v12277_v30  ;;  %v2379_v39 = vpop.f32.mrb[18].mxu0  ;;  %vm3778_vm1 = vmand %vm3058_vm5, %vm3698_vm15  ;;  %v12381_v12 = vpack.c.bf16 %v15091_v45, %v8147_v9 }
 0x410   :  { %v12290_v47 = vadd.f32 %v2379_v39, %v12280_v60  ;;  %v2381_v20 = vpop.f32.mrb[19].mxu0  ;;  %2581 = vmatpush1.bf16.msra.mxu1 %v2336_v43  ;;  %v2599_v1 = vmax.f32 %v12283_v11, 0.0  ;;  %vm6405_vm9 = vmpackc.low %vm3779_vm6, %vm3778_vm1  ;;  %v15101_v39 = vmov 0.0|0.0  }
 0x411   :  { %v12293_v32 = vadd.f32 %v2381_v20, %v12280_v60  ;;  %4101 = vmatprep.subr.bf16.mxu1 %v15507_v48  ;;  %v2600_v44 = vmax.f32 %v12286_v5, 0.0  ;;  %6406 = vmatpush1.bf16.msk.msra.mxu0 %vm6405_vm9, %v15113_v35  ;;  %vm6407_vm5 = vmpackc.low %vm8148_vm14, %vm3780_vm13 }
 0x412   :  { %v15115_v40 = vmax.f32 %v12290_v47, 0.0  ;;  %3980 = vmatprep.subr.bf16.mxu0 %v15507_v48  ;;  %vm15522_vm15 = vmmov %vm15521_vm8 }
 0x413   :  { %v2612_v56 = vmax.f32 %v12293_v32, 0.0  ;;  %2589 = vmatmul.mubr.bf16.vlgmr.msra.gmra.mrb[24].mxu1 %v8120_v49 }
 0x414   :  { %v12307_v4 = vpack.i.bf16 %v15115_v40, %v2599_v1  ;;  %6431 = vmatpush1.bf16.msk.msra.mxu1 %vm6405_vm9, %v15113_v35 }
 0x415   :  { %v7874_v25 = vpack.i.bf16 %v2612_v56, %v2600_v44  ;;  %4103 = vmatprep.subr.bf16.mxu1 %v15507_v48  ;;  %6409 = vmatpush1.bf16.msk.msra.mxu0 %vm6407_vm5, %v12381_v12 }
 0x416   :  { %7870 = vrot.lane.b32.xlu1 %v12307_v4, %s15190_s25  ;;  %3982 = vmatprep.subr.bf16.mxu0 %v15507_v48 }
 0x417   :  { %7875 = vrot.lane.b32.xlu0 %v7874_v25, %s15190_s25 }
 0x418   :  { %6434 = vmatpush1.bf16.msk.msra.mxu1 %vm6407_vm5, %v12381_v12 }
 0x419   :  { %4105 = vmatprep.subr.bf16.mxu1 %v15507_v48  ;;  %3983 = vmatpush1.bf16.msra.mxu0 %v15101_v39 }
 0x41a   :  { %7880 = vrot.lane.b32.xlu1 %v7874_v25, %s15197_s15  ;;  %3984 = vmatprep.subr.bf16.mxu0 %v15507_v48 }
 0x41b   :  { %7885 = vrot.lane.b32.xlu0 %v7874_v25, %s15199_s20 }
 0x41c   :  { %4106 = vmatpush1.bf16.msra.mxu1 %v15101_v39 }
 0x41d   :  { %4107 = vmatprep.subr.bf16.mxu1 %v15507_v48  ;;  %3985 = vmatpush1.bf16.msra.mxu0 %v15101_v39 }
 0x41e   :  { %3986 = vmatprep.subr.bf16.mxu0 %v15507_v48 }
 0x420   :  { %4108 = vmatpush1.bf16.msra.mxu1 %v15101_v39 }
 0x421   :  { %4109 = vmatprep.subr.bf16.mxu1 %v15507_v48  ;;  %3987 = vmatpush1.bf16.msra.mxu0 %v15101_v39 }
 0x422   :  { %3988 = vmatprep.subr.bf16.mxu0 %v15507_v48 }
 0x424   :  { %4110 = vmatpush1.bf16.msra.mxu1 %v15101_v39 }
 0x425   :  { %4111 = vmatprep.subr.bf16.mxu1 %v15507_v48  ;;  %3989 = vmatpush1.bf16.msra.mxu0 %v15101_v39 }
 0x426   :  { %3990 = vmatprep.subr.bf16.mxu0 %v15507_v48 }
 0x428   :  { %4112 = vmatpush1.bf16.msra.mxu1 %v15101_v39 }
 0x429   :  { %4113 = vmatprep.subr.bf16.mxu1 %v15507_v48  ;;  %3991 = vmatpush1.bf16.msra.mxu0 %v15101_v39 }
 0x42a   :  { %3992 = vmatprep.subr.bf16.mxu0 %v15507_v48 }
 0x42c   :  { %4114 = vmatpush1.bf16.msra.mxu1 %v15101_v39 }
 0x42d   :  { %4115 = vmatprep.subr.bf16.mxu1 %v15507_v48  ;;  %3993 = vmatpush1.bf16.msra.mxu0 %v15101_v39 }
 0x42e   :  { %3994 = vmatprep.subr.bf16.mxu0 %v15507_v48 }
 0x430   :  { %4116 = vmatpush1.bf16.msra.mxu1 %v15101_v39 }
 0x431   :  { %4117 = vmatprep.subr.bf16.mxu1 %v15507_v48 }
 0x435   :  { %v2418_v14 = vpop.f32.mrb[16].mxu1 }
 0x436   :  { %v12319_v8 = vadd.f32 %v2418_v14, %v12277_v30  ;;  %v12321_v3 = vpop.f32.mrb[17].mxu1 }
 0x437   :  { %v2422_v6 = vpop.f32.mrb[18].mxu1 }
 0x438   :  { %v12324_v28 = vadd.f32 %v2422_v6, %v12280_v60  ;;  %v12326_v24 = vpop.f32.mrb[19].mxu1  ;;  %v15098_v46 = vmax.f32 %v12319_v8, 0.0 }
 0x43a   :  { %v15097_v16 = vmax.f32 %v12324_v28, 0.0 }
 0x43c   :  { %v7894_v17 = vpack.i.bf16 %v15097_v16, %v15098_v46 }
 0x43e   :  { %7895 = vrot.lane.b32.xlu0 %v7894_v17, %s15197_s15  ;;  %7890 = vrot.lane.b32.xlu1 %v7894_v17, %s15190_s25 }
 0x442   :  { %7900 = vrot.lane.b32.xlu1 %v7894_v17, %s15199_s20 }
 0x488   :  { %v12396_v43 = vpop.permute.xlu1 %7870 }
 0x489   :  { %v12398_v20 = vpop.permute.xlu0 %7875 }
 0x48a   :  { %v7878_v38 = vunpack.i.h.bf16 %v12398_v20  ;;  %v7877_v59 = vunpack.i.l.bf16 %v12398_v20 }
 0x48b   :  { %v12344_v33 = vpop.f32.mrb[20].mxu0 }
 0x48c   :  { %v2463_v10 = vpop.f32.mrb[21].mxu0  ;;  %v12406_v49 = vpop.permute.xlu1 %7880 }
 0x48d   :  { %v2464_v42 = vadd.f32 %v2463_v10, %v12277_v30  ;;  %v12350_v52 = vpop.f32.mrb[22].mxu0  ;;  %v12408_v25 = vpop.permute.xlu0 %7885 }
 0x48e   :  { %v2467_v50 = vpop.f32.mrb[23].mxu0  ;;  %v15117_v0 = vunpack.i.h.bf16 %v12408_v25  ;;  %v15116_v62 = vunpack.i.l.bf16 %v12408_v25 }
 0x48f   :  { %v2468_v26 = vadd.f32 %v2467_v50, %v12280_v60  ;;  %v2604_v19 = vmax.f32 %v2464_v42, 0.0  ;;  %v15118_v42 = vunpack.i.h.bf16 %v12406_v49  ;;  %v15119_v50 = vunpack.i.l.bf16 %v12406_v49 }
 0x491   :  { %v2616_v55 = vmax.f32 %v2468_v26, 0.0 }
 0x493   :  { %v12358_v36 = vpack.i.bf16 %v2616_v55, %v2604_v19 }
 0x4b0   :  { %v12414_v14 = vpop.permute.xlu0 %7895  ;;  %v12416_v6 = vpop.permute.xlu1 %7890 }
 0x4b1   :  { %v15099_v17 = vunpack.i.h.bf16 %v12416_v6  ;;  %v15100_v29 = vunpack.i.l.bf16 %v12416_v6  ;;  %v15095_v10 = vunpack.i.h.bf16 %v12414_v14  ;;  %v15094_v37 = vunpack.i.l.bf16 %v12414_v14 }
 0x4b2   :  { %v2504_v58 = vpop.f32.mrb[20].mxu1 }
 0x4b3   :  { %v2506_v61 = vpop.f32.mrb[21].mxu1  ;;  %v2688_v26 = vsel %vm15149_vm2, %v7878_v38, %v15099_v17  ;;  %v12439_v34 = vadd.f32 %v2504_v58, %v12277_v30  ;;  %v2687_v19 = vsel %vm15149_vm2, %v7877_v59, %v15100_v29  ;;  %v2775_v2 = vsel %vm15521_vm8, %v15119_v50, %v15094_v37 }
 0x4b4   :  { %v2508_v41 = vpop.f32.mrb[22].mxu1  ;;  %v12441_v18 = vpop.permute.xlu1 %7900  ;;  %v2776_v53 = vsel %vm15522_vm15, %v15118_v42, %v15095_v10  ;;  %v2692_v54 = vmax.f32 %v2600_v44, %v2687_v19  ;;  %v2702_v9 = vmax.f32 %v2612_v56, %v2688_v26  ;;  %v12502_v44 = vadd.s32 128, %v12338_v63 }
 0x4b5   :  { %v12450_v55 = vadd.f32 %v2508_v41, %v12280_v60  ;;  %v15093_v22 = vunpack.i.h.bf16 %v12441_v18  ;;  %v15096_v31 = vunpack.i.l.bf16 %v12441_v18  ;;  %v2510_v23 = vpop.f32.mrb[23].mxu1  ;;  %v15123_v27 = vmax.f32 %v12439_v34, 0.0 }
 0x4b6   :  { %v12489_v45 = vadd.f32 %v2510_v23, %v12280_v60  ;;  %15523 = vst [vmem:[#allocation6_spill] sm:$0xff] %v12502_v44  ;;  %v12505_v56 = vadd.s32 136, %v12338_v63  ;;  %v2994_v46 = vand.u32 3, %v12502_v44 }
 0x4b7   :  { %v15122_v57 = vmax.f32 %v12450_v55, 0.0  ;;  %v2844_v13 = vsel %vm629_vm12, %v15117_v0, %v15093_v22  ;;  %v2843_v51 = vsel %vm629_vm12, %v15116_v62, %v15096_v31  ;;  %v12496_v31 = vadd.f32 %v2506_v61, %v12277_v30 }
 0x4b8   :  { %v2848_v58 = vmax.f32 %v2775_v2, %v2843_v51  ;;  %v2858_v41 = vmax.f32 %v2776_v53, %v2844_v13  ;;  %v15120_v32 = vmax.f32 %v12489_v45, 0.0  ;;  %15524 = vst [vmem:[#allocation7_spill] sm:$0xff] %v12505_v56  ;;  %v3394_v2 = vshra.s32 %v12502_v44, 7 }
 0x4b9   :  { %v7904_v22 = vpack.i.bf16 %v15122_v57, %v15123_v27  ;;  %v15121_v26 = vmax.f32 %v12496_v31, 0.0  ;;  %v3395_v51 = vshra.s32 %v12505_v56, 7  ;;  %v2995_v17 = vand.u32 3, %v12505_v56 }
 0x4ba   :  { %v2868_v37 = vmax.f32 %v2692_v54, %v2848_v58  ;;  %v2878_v10 = vmax.f32 %v2702_v9, %v2858_v41  ;;  %v3474_v9 = vmul.u32 5, %v3394_v2  ;;  %vm3074_vm4 = vcmp.eq.s32.totalorder %v2994_v46, 0 }
 0x4bb   :  { %7905 = vrot.lane.b32.xlu0 %v7904_v22, %s15190_s25  ;;  %7910 = vrot.lane.b32.xlu1 %v7904_v22, %s15197_s15  ;;  %v7919_v13 = vpack.i.bf16 %v15120_v32, %v15121_v26  ;;  %vm3075_vm1 = vcmp.eq.s32.totalorder %v2995_v17, 0 }
 0x4bc   :  { %v2888_v5 = vpack.c.bf16 %v2878_v10, %v2868_v37  ;;  %v3154_v10 = vand.u32 127, %v12502_v44  ;;  %v3155_v37 = vand.u32 127, %v12505_v56 }
 0x4be   :  { %4010 = vmatprep.mubr.bf16.mxu0 %v2888_v5  ;;  %v3554_v58 = vshra.s32 %v3154_v10, 2  ;;  %v3475_v5 = vmul.u32 5, %v3395_v51  ;;  %v12543_v51 = vadd.f32 %v12326_v24, %v12280_v60 }
 0x4bf   :  { %7915 = vrot.lane.b32.xlu0 %v7904_v22, %s15199_s20 }
 0x4c0   :  { %v2547_v19 = vpop.f32.mrb[24].mxu0  ;;  %v3634_v29 = vadd.s32 %v3554_v58, %v3474_v9  ;;  %v12556_v9 = vadd.f32 %v12321_v3, %v12277_v30  ;;  %v15111_v58 = vmax.f32 %v12543_v51, 0.0 }
 0x4c1   :  { %v12510_v61 = vadd.f32 %v2547_v19, %v12277_v30  ;;  %v2549_v23 = vpop.f32.mrb[25].mxu0  ;;  %v3555_v19 = vshra.s32 %v3155_v37, 2 }
 0x4c2   :  { %v2551_v53 = vpop.f32.mrb[26].mxu0  ;;  %vm3714_vm6 = vcmp.eq.s32.totalorder %v8381_v15, %v3634_v29 }
 0x4c3   :  { %v12521_v22 = vadd.f32 %v2551_v53, %v12280_v60  ;;  %v2553_v54 = vpop.f32.mrb[27].mxu0  ;;  %v15108_v41 = vmax.f32 %v12510_v61, 0.0  ;;  %7920 = vrot.lane.b32.xlu0 %v7919_v13, %s15190_s25  ;;  %v3635_v39 = vadd.s32 %v3555_v19, %v3475_v5  ;;  %v12529_v53 = vadd.s32 144, %v12338_v63  ;;  %vm3794_vm3 = vmand %vm3074_vm4, %vm3714_vm6 }
 0x4c4   :  { %v15112_v5 = vmax.f32 %v12556_v9, 0.0  ;;  %v12579_v19 = vadd.f32 %v12344_v33, %v12277_v30  ;;  %v12594_v33 = vadd.f32 %v2549_v23, %v12277_v30 }
 0x4c5   :  { %v15107_v16 = vmax.f32 %v12521_v22, 0.0  ;;  %15525 = vst [vmem:[#allocation8_spill] sm:$0xff] %v12529_v53  ;;  %vm3715_vm7 = vcmp.eq.s32.totalorder %v8381_v15, %v3635_v39  ;;  %v2996_v37 = vand.u32 3, %v12529_v53  ;;  %v3156_v2 = vand.u32 127, %v12529_v53 }
 0x4c6   :  { %v3396_v46 = vshra.s32 %v12529_v53, 7  ;;  %vm3795_vm9 = vmand %vm3075_vm1, %vm3715_vm7  ;;  %v15106_v23 = vmax.f32 %v12594_v33, 0.0 }
 0x4c7   :  { %v7939_v10 = vpack.i.bf16 %v15107_v16, %v15108_v41  ;;  %7925 = vrot.lane.b32.xlu0 %v7919_v13, %s15197_s15  ;;  %vm12546_vm11 = vcmp.eq.s32.totalorder %v2996_v37, 0  ;;  %vm12550_vm0 = vcmp.lt.s32.totalorder %v3156_v2, 20  ;;  %v3556_v39 = vshra.s32 %v3156_v2, 2  ;;  %vm6410_vm13 = vmpackc.low %vm3795_vm9, %vm3794_vm3 }
 0x4c8   :  { %v3476_v24 = vmul.u32 5, %v3396_v46  ;;  %6436 = vmatpush1.bf16.msk.msra.mxu1 %vm6410_vm13, %v15113_v35  ;;  %6411 = vmatpush1.bf16.msk.msra.mxu0 %vm6410_vm13, %v15113_v35  ;;  %vm3316_vm5 = vmand %vm12546_vm11, %vm12550_vm0  ;;  %v12583_v37 = vadd.f32 %v2553_v54, %v12280_v60  ;;  %v15104_v54 = vmax.f32 %v12579_v19, 0.0  ;;  %vm15539_vm9 = vcmp.lt.s32.totalorder %v8381_v15, 64 }
 0x4c9   :  { %7940 = vrot.lane.b32.xlu1 %v7939_v10, %s15190_s25  ;;  %4119 = vmatprep.subr.bf16.mxu1 %v15507_v48  ;;  %vm15540_vm11 = vmmov %vm15539_vm9 }
 0x4ca   :  { %v3636_v3 = vadd.s32 %v3556_v39, %v3476_v24  ;;  %3996 = vmatprep.subr.bf16.mxu0 %v15507_v48  ;;  %vm15544_vm0 = vmmov %vm15539_vm9 }
 0x4cb   :  { %7930 = vrot.lane.b32.xlu0 %v7919_v13, %s15199_s20  ;;  %v12570_v13 = vadd.f32 %v12350_v52, %v12280_v60  ;;  %v7959_v52 = vpack.i.bf16 %v15111_v58, %v15112_v5  ;;  %vm15546_vm13 = vmmov %vm15544_vm0 }
 0x4cc   :  { %vm3716_vm8 = vcmp.eq.s32.totalorder %v8381_v15, %v3636_v3 }
 0x4cd   :  { %7945 = vrot.lane.b32.xlu1 %v7939_v10, %s15197_s15  ;;  %vm3796_vm15 = vmand %vm3316_vm5, %vm3716_vm8  ;;  %v15103_v2 = vmax.f32 %v12570_v13, 0.0 }
 0x4ce   :  { %vm6412_vm4 = vmpackc.low %vm8148_vm14, %vm3796_vm15 }
 0x4cf   :  { %7935 = vrot.lane.b32.xlu0 %v12307_v4, %s15197_s15  ;;  %6439 = vmatpush1.bf16.msk.msra.mxu1 %vm6412_vm4, %v12381_v12  ;;  %v7964_v46 = vpack.i.bf16 %v15103_v2, %v15104_v54 }
 0x4d0   :  { %6414 = vmatpush1.bf16.msk.msra.mxu0 %vm6412_vm4, %v12381_v12  ;;  %4142 = vmatprep.subr.bf16.mxu1 %v15507_v48  ;;  %vm15557_vm4 = vmmov %vm15544_vm0 }
 0x4d1   :  { %7950 = vrot.lane.b32.xlu1 %v7939_v10, %s15199_s20  ;;  %4019 = vmatprep.subr.bf16.mxu0 %v15507_v48  ;;  %v15105_v10 = vmax.f32 %v12583_v37, 0.0 }
 0x4d3   :  { %7960 = vrot.lane.b32.xlu0 %v7959_v52, %s15190_s25 }
 0x4d5   :  { %7955 = vrot.lane.b32.xlu1 %v12307_v4, %s15199_s20  ;;  %v7979_v4 = vpack.i.bf16 %v15105_v10, %v15106_v23 }
 0x4d7   :  { %7970 = vrot.lane.b32.xlu0 %v7959_v52, %s15197_s15 }
 0x4d9   :  { %7965 = vrot.lane.b32.xlu1 %v7964_v46, %s15190_s25 }
 0x4db   :  { %7980 = vrot.lane.b32.xlu0 %v7979_v4, %s15190_s25 }
 0x4dd   :  { %7975 = vrot.lane.b32.xlu1 %v7964_v46, %s15197_s15 }
 0x4df   :  { %7985 = vrot.lane.b32.xlu0 %v7979_v4, %s15197_s15 }
 0x4e3   :  { %7990 = vrot.lane.b32.xlu0 %v7979_v4, %s15199_s20 }
 0x4e6   :  { %v2590_v17 = vpop.f32.mrb[24].mxu1 }
 0x4e7   :  { %v12619_v29 = vadd.f32 %v2590_v17, %v12277_v30  ;;  %v2592_v39 = vpop.f32.mrb[25].mxu1  ;;  %7995 = vrot.lane.b32.xlu0 %v7959_v52, %s15199_s20 }
 0x4e8   :  { %v2593_v24 = vadd.f32 %v2592_v39, %v12277_v30  ;;  %v2594_v3 = vpop.f32.mrb[26].mxu1 }
 0x4e9   :  { %v12624_v2 = vadd.f32 %v2594_v3, %v12280_v60  ;;  %v2596_v54 = vpop.f32.mrb[27].mxu1  ;;  %v15110_v23 = vmax.f32 %v12619_v29, 0.0 }
 0x4ea   :  { %v2597_v10 = vadd.f32 %v2596_v54, %v12280_v60  ;;  %v2610_v16 = vmax.f32 %v2593_v24, 0.0  ;;  %v12647_v60 = vadd.s32 256, %v12338_v63 }
 0x4eb   :  { %v15109_v4 = vmax.f32 %v12624_v2, 0.0 }
 0x4ec   :  { %v2622_v41 = vmax.f32 %v2597_v10, 0.0  ;;  %15530 = vst [vmem:[#allocation10_spill] sm:$0xff] %v12647_v60  ;;  %v3170_v54 = vand.u32 127, %v12647_v60  ;;  %v3410_v10 = vshra.s32 %v12647_v60, 7  ;;  %v3010_v42 = vand.u32 3, %v12647_v60 }
 0x4ed   :  { %v7999_v52 = vpack.i.bf16 %v15109_v4, %v15110_v23  ;;  %v7873_v23 = vunpack.i.h.bf16 %v12396_v43 }
 0x4ee   :  { %v8034_v17 = vpack.i.bf16 %v2622_v41, %v2610_v16  ;;  %v12650_v16 = vadd.s32 264, %v12338_v63  ;;  %vm12688_vm1 = vcmp.eq.s32.totalorder %v3010_v42, 0 }
 0x4ef   :  { %8000 = vrot.lane.b32.xlu1 %v7999_v52, %s15190_s25 }
 0x4f0   :  { %8025 = vrot.lane.b32.xlu0 %v8034_v17, %s15190_s25  ;;  %15531 = vst [vmem:[#allocation9_spill] sm:$0xff] %v12650_v16  ;;  %v3171_v39 = vand.u32 127, %v12650_v16  ;;  %v3411_v24 = vshra.s32 %v12650_v16, 7 }
 0x4f2   :  { %v3491_v5 = vmul.u32 5, %v3411_v24  ;;  %v3571_v35 = vshra.s32 %v3171_v39, 2 }
 0x4f3   :  { %8005 = vrot.lane.b32.xlu1 %v7999_v52, %s15197_s15 }
 0x4f4   :  { %8035 = vrot.lane.b32.xlu0 %v8034_v17, %s15199_s20  ;;  %v12683_v24 = vadd.s32 %v3571_v35, %v3491_v5 }
 0x4f6   :  { %vm3731_vm3 = vcmp.eq.s32.totalorder %v8381_v15, %v12683_v24  ;;  %v12811_v24 = vadd.s32 384, %v12338_v63 }
 0x4f7   :  { %8010 = vrot.lane.b32.xlu1 %v7999_v52, %s15199_s20  ;;  %v3490_v52 = vmul.u32 5, %v3410_v10 }
 0x4f8   :  { %8040 = vrot.lane.b32.xlu0 %v12358_v36, %s15197_s15  ;;  %15565 = vst [vmem:[#allocation2_spill] sm:$0xff] %v12811_v24 }
 0x4fb   :  { %8015 = vrot.lane.b32.xlu1 %v7964_v46, %s15199_s20  ;;  %v7872_v46 = vunpack.i.l.bf16 %v12396_v43  ;;  %v3011_v43 = vand.u32 3, %v12650_v16 }
 0x4fd   :  { %v2689_v58 = vsel %vm15149_vm2, %v7872_v46, %v7877_v59  ;;  %v12677_v59 = vsel %vm15149_vm2, %v7873_v23, %v7878_v38  ;;  %vm12696_vm7 = vcmp.eq.s32.totalorder %v3011_v43, 0  ;;  %v15561_v23 = vunpack.i.l.bf16 %v12408_v25 }
 0x4fe   :  { %v12681_v10 = vmax.f32 %v2599_v1, %v2689_v58 }
 0x4ff   :  { %8020 = vrot.lane.b32.xlu1 %v12358_v36, %s15190_s25 }
 0x503   :  { %8030 = vrot.lane.b32.xlu1 %v8034_v17, %s15197_s15  ;;  %v3570_v17 = vshra.s32 %v3170_v54, 2 }
 0x505   :  { %v12668_v50 = vadd.s32 %v3570_v17, %v3490_v52 }
 0x507   :  { %8045 = vrot.lane.b32.xlu1 %v12358_v36, %s15199_s20  ;;  %v12658_v36 = vadd.s32 272, %v12338_v63  ;;  %vm3730_vm6 = vcmp.eq.s32.totalorder %v8381_v15, %v12668_v50 }
 0x508   :  { %vm12771_vm15 = vmand %vm12688_vm1, %vm3730_vm6 }
 0x509   :  { %15532 = vst [vmem:[#allocation11_spill] sm:$0xff] %v12658_v36  ;;  %v15124_v40 = vand.u32 127, %v12658_v36  ;;  %v3412_v62 = vshra.s32 %v12658_v36, 7  ;;  %v3012_v52 = vand.u32 3, %v12658_v36  ;;  %vm12798_vm1 = vmand %vm12696_vm7, %vm3731_vm3 }
 0x50a   :  { %vm6415_vm7 = vmpackc.low %vm12798_vm1, %vm12771_vm15 }
 0x50b   :  { %v3492_v17 = vmul.u32 5, %v3412_v62  ;;  %v3572_v32 = vshra.s32 %v15124_v40, 2  ;;  %vm12756_vm5 = vcmp.eq.s32.totalorder %v3012_v52, 0 }
 0x52d   :  { %v7906_v30 = vpop.permute.xlu0 %7905  ;;  %v7911_v4 = vpop.permute.xlu1 %7910 }
 0x52e   :  { %v7908_v26 = vunpack.i.h.bf16 %v7906_v30  ;;  %v7907_v20 = vunpack.i.l.bf16 %v7906_v30  ;;  %v7913_v40 = vunpack.i.h.bf16 %v7911_v4 }
 0x531   :  { %v7916_v41 = vpop.permute.xlu0 %7915 }
 0x532   :  { %v7918_v57 = vunpack.i.h.bf16 %v7916_v41  ;;  %v7917_v27 = vunpack.i.l.bf16 %v7916_v41  ;;  %v15537_v41 = vmax.f32 %v12439_v34, 0.0 }
 0x535   :  { %v7921_v3 = vpop.permute.xlu0 %7920 }
 0x536   :  { %v7923_v46 = vunpack.i.h.bf16 %v7921_v3  ;;  %v7922_v39 = vunpack.i.l.bf16 %v7921_v3 }
 0x538   :  { %v2679_v30 = vsel %vm15149_vm2, %v7907_v20, %v7922_v39  ;;  %v2680_v42 = vsel %vm15149_vm2, %v7908_v26, %v7923_v46  ;;  %v3652_v26 = vadd.s32 %v3572_v32, %v3492_v17 }
 0x539   :  { %v7926_v0 = vpop.permute.xlu0 %7925  ;;  %v2696_v3 = vmax.f32 %v15537_v41, %v2679_v30 }
 0x53a   :  { %v7928_v11 = vunpack.i.h.bf16 %v7926_v0  ;;  %v7927_v1 = vunpack.i.l.bf16 %v7926_v0  ;;  %v7912_v0 = vunpack.i.l.bf16 %v7911_v4  ;;  %v15538_v4 = vmax.f32 %v12450_v55, 0.0 }
 0x53b   :  { %v12670_v54 = vpop.permute.xlu1 %7940 }
 0x53c   :  { %v2706_v53 = vmax.f32 %v15538_v4, %v2680_v42  ;;  %v2767_v16 = vsel %vm15539_vm9, %v7912_v0, %v7927_v1  ;;  %v15542_v32 = vunpack.i.l.bf16 %v12670_v54  ;;  %vm15559_vm9 = vmmov %vm15544_vm0 }
 0x53d   :  { %v7931_v38 = vpop.permute.xlu0 %7930 }
 0x53e   :  { %v7933_v35 = vunpack.i.h.bf16 %v7931_v38  ;;  %v7932_v58 = vunpack.i.l.bf16 %v7931_v38  ;;  %v2677_v34 = vsel %vm15149_vm2, %v7922_v39, %v15542_v32 }
 0x53f   :  { %v12694_v62 = vpop.permute.xlu1 %7945 }
 0x540   :  { %v2835_v43 = vsel %vm629_vm12, %v7917_v27, %v7932_v58  ;;  %v2836_v60 = vsel %vm629_vm12, %v7918_v57, %v7933_v35  ;;  %v2768_v27 = vsel %vm15540_vm11, %v7913_v40, %v7928_v11  ;;  %v15541_v57 = vunpack.i.h.bf16 %v12670_v54 }
 0x541   :  { %v7936_v20 = vpop.permute.xlu0 %7935  ;;  %v2852_v30 = vmax.f32 %v2767_v16, %v2835_v43  ;;  %v2862_v42 = vmax.f32 %v2768_v27, %v2836_v60  ;;  %v15543_v40 = vunpack.i.h.bf16 %v12694_v62  ;;  %v15545_v0 = vunpack.i.l.bf16 %v12694_v62 }
 0x542   :  { %v2678_v56 = vsel %vm15149_vm2, %v7923_v46, %v15541_v57  ;;  %v7938_v4 = vunpack.i.h.bf16 %v7936_v20  ;;  %v7937_v57 = vunpack.i.l.bf16 %v7936_v20  ;;  %v15547_v43 = vmax.f32 %v12496_v31, 0.0 }
 0x543   :  { %v12722_v38 = vpop.permute.xlu1 %7950  ;;  %v2766_v41 = vsel %vm15544_vm0, %v7928_v11, %v15543_v40  ;;  %v2765_v46 = vsel %vm15546_vm13, %v7927_v1, %v15545_v0  ;;  %v15548_v1 = vmax.f32 %v12489_v45, 0.0  ;;  %vm3732_vm11 = vcmp.eq.s32.totalorder %v8381_v15, %v3652_v26 }
 0x544   :  { %v15135_v55 = vunpack.i.h.bf16 %v12722_v38  ;;  %v15136_v17 = vunpack.i.l.bf16 %v12722_v38  ;;  %v2697_v27 = vmax.f32 %v15547_v43, %v2677_v34  ;;  %v2872_v34 = vmax.f32 %v2696_v3, %v2852_v30 }
 0x545   :  { %v12750_v16 = vpop.permute.xlu0 %7960  ;;  %v2707_v32 = vmax.f32 %v15548_v1, %v2678_v56  ;;  %v2882_v43 = vmax.f32 %v2706_v53, %v2862_v42  ;;  %v15556_v56 = vunpack.i.l.bf16 %v12406_v49  ;;  %v15560_v53 = vunpack.i.h.bf16 %v12408_v25 }
 0x546   :  { %v2834_v39 = vsel %vm629_vm12, %v7933_v35, %v15135_v55  ;;  %v2833_v60 = vsel %vm629_vm12, %v7932_v58, %v15136_v17  ;;  %v15551_v55 = vand.u32 127, %v12658_v36  ;;  %v12850_v35 = vadd.s32 512, %v12338_v63 }
 0x547   :  { %v7956_v11 = vpop.permute.xlu1 %7955  ;;  %v2853_v20 = vmax.f32 %v2765_v46, %v2833_v60  ;;  %v2863_v40 = vmax.f32 %v2766_v41, %v2834_v39  ;;  %v2777_v52 = vsel %vm15557_vm4, %v7937_v57, %v15556_v56  ;;  %v15564_v41 = vmax.f32 %v12290_v47, 0.0 }
 0x548   :  { %v7958_v0 = vunpack.i.h.bf16 %v7956_v11  ;;  %v7957_v44 = vunpack.i.l.bf16 %v7956_v11  ;;  %vm12762_vm8 = vcmp.lt.s32.totalorder %v15551_v55, 20  ;;  %v15558_v55 = vunpack.i.h.bf16 %v12406_v49 }
 0x549   :  { %v2873_v17 = vmax.f32 %v2697_v27, %v2853_v20  ;;  %v2883_v31 = vmax.f32 %v2707_v32, %v2863_v40  ;;  %v12791_v42 = vpop.permute.xlu0 %7970  ;;  %v2701_v46 = vmax.f32 %v15564_v41, %v12677_v59  ;;  %vm3332_vm6 = vmand %vm12756_vm5, %vm12762_vm8  ;;  %v2892_v5 = vpack.c.bf16 %v2882_v43, %v2872_v34 }
 0x54a   :  { %v2778_v3 = vsel %vm15559_vm9, %v7938_v4, %v15558_v55  ;;  %v2846_v50 = vsel %vm629_vm12, %v7958_v0, %v15560_v53  ;;  %v2845_v30 = vsel %vm629_vm12, %v7957_v44, %v15561_v23  ;;  %vm3812_vm3 = vmand %vm3332_vm6, %vm3732_vm11  ;;  %v12819_v39 = vadd.s32 392, %v12338_v63 }
 0x54b   :  { %v2847_v4 = vmax.f32 %v2777_v52, %v2845_v30  ;;  %v2857_v25 = vmax.f32 %v2778_v3, %v2846_v50  ;;  %v2893_v44 = vpack.c.bf16 %v2883_v31, %v2873_v17  ;;  %v15567_v17 = vmov 1.0|1.0   ;;  %vm6417_vm0 = vmpackc.low %vm8148_vm14, %vm3812_vm3  ;;  %v12862_v56 = vpop.permute.xlu1 %7965 }
 0x54c   :  { %15566 = vst [vmem:[#allocation3_spill] sm:$0xff] %v12819_v39  ;;  %v3186_v60 = vand.u32 127, %v12811_v24  ;;  %v12834_v11 = vadd.s32 400, %v12338_v63  ;;  %v3187_v27 = vand.u32 127, %v12819_v39  ;;  %v3427_v1 = vshra.s32 %v12819_v39, 7 }
 0x54d   :  { %v2867_v47 = vmax.f32 %v12681_v10, %v2847_v4  ;;  %v2877_v59 = vmax.f32 %v2701_v46, %v2857_v25  ;;  %4133 = vmatprep.mubr.bf16.mxu1 %v2893_v44  ;;  %v12821_v26 = vpop.permute.xlu0 %7980  ;;  %v3426_v10 = vshra.s32 %v12811_v24, 7  ;;  %v12856_v31 = vadd.s32 520, %v12338_v63 }
 0x54e   :  { %4134 = vmatmul.mubr.bf16.vlgmr.msra.gmra.mrb[28].mxu1 %v2892_v5  ;;  %15568 = vst [vmem:[#allocation4_spill] sm:$0xff] %v12834_v11  ;;  %v3586_v20 = vshra.s32 %v3186_v60, 2  ;;  %v3188_v40 = vand.u32 127, %v12834_v11  ;;  %v3428_v0 = vshra.s32 %v12834_v11, 7  ;;  %v12859_v34 = vadd.s32 528, %v12338_v63 }
 0x54f   :  { %v2887_v57 = vpack.c.bf16 %v2877_v59, %v2867_v47  ;;  %6441 = vmatpush1.bf16.msk.msra.mxu1 %vm6415_vm7, %v15567_v17  ;;  %v3506_v32 = vmul.u32 5, %v3426_v10  ;;  %v3507_v43 = vmul.u32 5, %v3427_v1  ;;  %v3587_v45 = vshra.s32 %v3187_v27, 2 }
 0x550   :  { %4144 = vmatprep.subr.bf16.mxu1 %v15507_v48  ;;  %v15569_v52 = vmov 0.0|0.0   ;;  %v3026_v55 = vand.u32 3, %v12811_v24  ;;  %v3027_v3 = vand.u32 3, %v12819_v39  ;;  %v3508_v50 = vmul.u32 5, %v3428_v0 }
 0x551   :  { %4011 = vmatmul.mubr.bf16.vlgmr.msra.gmra.mrb[28].mxu0 %v2887_v57  ;;  %v12852_v58 = vpop.permute.xlu0 %7985  ;;  %v12867_v53 = vadd.s32 %v3586_v20, %v3506_v32  ;;  %v3588_v23 = vshra.s32 %v3188_v40, 2  ;;  %v3202_v30 = vand.u32 127, %v12850_v35  ;;  %v3442_v49 = vshra.s32 %v12850_v35, 7  ;;  %v12895_v32 = vpop.permute.xlu1 %7975 }
 0x552   :  { %6416 = vmatpush1.bf16.msk.msra.mxu0 %vm6415_vm7, %v15567_v17  ;;  %v3203_v41 = vand.u32 127, %v12856_v31  ;;  %v3443_v46 = vshra.s32 %v12856_v31, 7  ;;  %v15137_v4 = vand.u32 127, %v12859_v34  ;;  %v3444_v25 = vshra.s32 %v12859_v34, 7 }
 0x553   :  { %4021 = vmatprep.subr.bf16.mxu0 %v15507_v48  ;;  %6444 = vmatpush1.bf16.msk.msra.mxu1 %vm6417_vm0, %v12381_v12  ;;  %v12878_v44 = vadd.s32 %v3587_v45, %v3507_v43  ;;  %v3028_v5 = vand.u32 3, %v12834_v11  ;;  %v7962_v47 = vunpack.i.l.bf16 %v12750_v16  ;;  %v7963_v57 = vunpack.i.h.bf16 %v12750_v16 }
 0x554   :  { %4146 = vmatprep.subr.bf16.mxu1 %v15507_v48  ;;  %vm12887_vm13 = vcmp.eq.s32.totalorder %v3026_v55, 0  ;;  %vm3746_vm5 = vcmp.eq.s32.totalorder %v8381_v15, %v12867_v53  ;;  %v12893_v10 = vadd.s32 %v3588_v23, %v3508_v50  ;;  %v3522_v27 = vmul.u32 5, %v3442_v49 }
 0x555   :  { %v12882_v59 = vpop.permute.xlu0 %7990  ;;  %v3602_v1 = vshra.s32 %v3202_v30, 2  ;;  %vm12898_vm8 = vcmp.eq.s32.totalorder %v3027_v3, 0  ;;  %v3523_v16 = vmul.u32 5, %v3443_v46  ;;  %v3603_v0 = vshra.s32 %v3203_v41, 2  ;;  %vm13040_vm10 = vmand %vm12887_vm13, %vm3746_vm5 }
 0x556   :  { %6419 = vmatpush1.bf16.msk.msra.mxu0 %vm6417_vm0, %v12381_v12  ;;  %v3524_v43 = vmul.u32 5, %v3444_v25  ;;  %v3604_v45 = vshra.s32 %v15137_v4, 2  ;;  %vm3747_vm15 = vcmp.eq.s32.totalorder %v8381_v15, %v12878_v44  ;;  %vm12908_vm4 = vcmp.eq.s32.totalorder %v3028_v5, 0 }
 0x557   :  { %4023 = vmatprep.subr.bf16.mxu0 %v15507_v48  ;;  %4147 = vmatpush1.bf16.msra.mxu1 %v15569_v52  ;;  %vm12912_vm9 = vcmp.lt.s32.totalorder %v3188_v40, 20  ;;  %v15578_v23 = vunpack.i.l.bf16 %v12416_v6  ;;  %v3042_v41 = vand.u32 3, %v12850_v35  ;;  %v3043_v46 = vand.u32 3, %v12856_v31  ;;  %vm13080_vm13 = vmand %vm12898_vm8, %vm3747_vm15 }
 0x558   :  { %4148 = vmatprep.subr.bf16.mxu1 %v15507_v48  ;;  %v15579_v25 = vunpack.i.h.bf16 %v12416_v6  ;;  %v7982_v49 = vunpack.i.l.bf16 %v12821_v26  ;;  %vm3748_vm1 = vcmp.eq.s32.totalorder %v8381_v15, %v12893_v10  ;;  %v12941_v6 = vadd.s32 %v3603_v0, %v3523_v16  ;;  %vm3348_vm8 = vmand %vm12908_vm4, %vm12912_vm9 }
 0x559   :  { %v2685_v30 = vsel %vm15149_vm2, %v15578_v23, %v7962_v47  ;;  %v12931_v23 = vadd.s32 %v3602_v1, %v3522_v27  ;;  %v12934_v55 = vpop.permute.xlu0 %7995  ;;  %v3044_v31 = vand.u32 3, %v12859_v34  ;;  %v15580_v27 = vmax.f32 %v12319_v8, 0.0 }
 0x55a   :  { %4024 = vmatpush1.bf16.msra.mxu0 %v15569_v52  ;;  %v2686_v40 = vsel %vm15149_vm2, %v15579_v25, %v7963_v57  ;;  %v12944_v25 = vadd.s32 %v3604_v45, %v3524_v43  ;;  %v15581_v4 = vunpack.i.l.bf16 %v12862_v56  ;;  %v7983_v11 = vunpack.i.h.bf16 %v12821_v26 }
 0x55b   :  { %4025 = vmatprep.subr.bf16.mxu0 %v15507_v48  ;;  %4149 = vmatpush1.bf16.msra.mxu1 %v15569_v52  ;;  %v12948_v1 = vmax.f32 %v15580_v27, %v2685_v30  ;;  %v15582_v16 = vmax.f32 %v12324_v28, 0.0  ;;  %v15583_v43 = vunpack.i.h.bf16 %v12791_v42  ;;  %v15584_v8 = vunpack.i.h.bf16 %v12414_v14 }
 0x55c   :  { %4150 = vmatprep.subr.bf16.mxu1 %v15507_v48  ;;  %v2683_v5 = vsel %vm15149_vm2, %v7962_v47, %v15581_v4  ;;  %vm15585_vm6 = vcmp.lt.s32.totalorder %v8381_v15, 64  ;;  %v7987_v4 = vunpack.i.l.bf16 %v12852_v58  ;;  %v7993_v26 = vunpack.i.h.bf16 %v12882_v59 }
 0x55d   :  { %v12959_v0 = vmax.f32 %v15582_v16, %v2686_v40  ;;  %v12967_v45 = vsel %vm15585_vm6, %v15584_v8, %v15583_v43  ;;  %v15586_v47 = vunpack.i.l.bf16 %v12791_v42  ;;  %v15587_v28 = vunpack.i.l.bf16 %v12414_v14  ;;  %vm15588_vm11 = vmmov %vm15585_vm6 }
 0x55e   :  { %4026 = vmatpush1.bf16.msra.mxu0 %v15569_v52  ;;  %v15589_v40 = vunpack.i.h.bf16 %v12862_v56  ;;  %v15590_v8 = vunpack.i.l.bf16 %v12670_v54  ;;  %vm13000_vm7 = vcmp.eq.s32.totalorder %v3042_v41, 0  ;;  %vm3762_vm3 = vcmp.eq.s32.totalorder %v8381_v15, %v12931_v23 }
 0x55f   :  { %4027 = vmatprep.subr.bf16.mxu0 %v15507_v48  ;;  %4151 = vmatpush1.bf16.msra.mxu1 %v15569_v52  ;;  %v12978_v30 = vsel %vm15588_vm11, %v15587_v28, %v15586_v47  ;;  %v7988_v47 = vunpack.i.h.bf16 %v12852_v58  ;;  %v15595_v39 = vunpack.i.l.bf16 %v12882_v59  ;;  %v15596_v43 = vunpack.i.l.bf16 %v12722_v38  ;;  %vm15600_vm11 = vmmov %vm15585_vm6 }
 0x560   :  { %4152 = vmatprep.subr.bf16.mxu1 %v15507_v48  ;;  %v2684_v27 = vsel %vm15149_vm2, %v7963_v57, %v15589_v40  ;;  %v2675_v14 = vsel %vm15149_vm2, %v15590_v8, %v7982_v49  ;;  %v15591_v57 = vmax.f32 %v12556_v9, 0.0  ;;  %v15594_v8 = vunpack.i.h.bf16 %v12670_v54  ;;  %vm13198_vm9 = vmand %vm13000_vm7, %vm3762_vm3 }
 0x561   :  { %v12936_v35 = vpop.permute.xlu1 %8000  ;;  %v2831_v9 = vsel %vm629_vm12, %v15596_v43, %v15595_v39  ;;  %vm13019_vm0 = vcmp.eq.s32.totalorder %v3043_v46, 0  ;;  %v15601_v43 = vunpack.i.h.bf16 %v12722_v38  ;;  %v15604_v54 = vmax.f32 %v12543_v51, 0.0 }
 0x562   :  { %4028 = vmatpush1.bf16.msra.mxu0 %v15569_v52  ;;  %v12998_v40 = vmax.f32 %v15591_v57, %v2683_v5  ;;  %v2676_v58 = vsel %vm15149_vm2, %v15594_v8, %v7983_v11  ;;  %v15599_v8 = vunpack.i.l.bf16 %v12694_v62  ;;  %v15610_v53 = vunpack.i.l.bf16 %v12934_v55 }
 0x563   :  { %4029 = vmatprep.subr.bf16.mxu0 %v15507_v48  ;;  %4153 = vmatpush1.bf16.msra.mxu1 %v15569_v52  ;;  %v2832_v5 = vsel %vm629_vm12, %v15601_v43, %v7993_v26  ;;  %v13046_v41 = vmax.f32 %v15604_v54, %v2684_v27  ;;  %v15611_v60 = vunpack.i.l.bf16 %v12441_v18  ;;  %v15612_v51 = vunpack.i.h.bf16 %v12934_v55  ;;  %v13070_v54 = vpop.permute.xlu0 %8025 }
 0x564   :  { %4154 = vmatprep.subr.bf16.mxu1 %v15507_v48  ;;  %v2763_v39 = vsel %vm15600_vm11, %v15599_v8, %v7987_v4  ;;  %vm13048_vm11 = vcmp.eq.s32.totalorder %v3044_v31, 0  ;;  %v15607_v8 = vand.u32 127, %v12859_v34  ;;  %v15613_v31 = vunpack.i.h.bf16 %v12441_v18 }
 0x565   :  { %v12993_v28 = vpop.permute.xlu1 %8005  ;;  %v2841_v24 = vsel %vm629_vm12, %v15611_v60, %v15610_v53  ;;  %v15616_v18 = vmax.f32 %v12510_v61, 0.0  ;;  %v15618_v34 = vunpack.i.h.bf16 %v12694_v62  ;;  %vm15619_vm5 = vcmp.lt.s32.totalorder %v8381_v15, 64 }
 0x566   :  { %4030 = vmatpush1.bf16.msra.mxu0 %v15569_v52  ;;  %vm13054_vm6 = vcmp.lt.s32.totalorder %v15607_v8, 20  ;;  %v2842_v27 = vsel %vm629_vm12, %v15613_v31, %v15612_v51  ;;  %v15617_v51 = vmax.f32 %v12521_v22, 0.0  ;;  %v2854_v36 = vmax.f32 %v2763_v39, %v2831_v9  ;;  %vm15624_vm15 = vmmov %vm15619_vm5 }
 0x567   :  { %4031 = vmatprep.subr.bf16.mxu0 %v15507_v48  ;;  %4155 = vmatpush1.bf16.msra.mxu1 %v15569_v52  ;;  %v2698_v60 = vmax.f32 %v15616_v18, %v2675_v14  ;;  %v2764_v8 = vsel %vm15619_vm5, %v15618_v34, %v7988_v47  ;;  %v15620_v61 = vunpack.i.h.bf16 %v12936_v35  ;;  %v15621_v62 = vunpack.i.l.bf16 %v12936_v35  ;;  %vm6420_vm5 = vmpackc.low %vm13080_vm13, %vm13040_vm10 }
 0x568   :  { %4156 = vmatprep.subr.bf16.mxu1 %v15507_v48  ;;  %v2708_v31 = vmax.f32 %v15617_v51, %v2676_v58  ;;  %v15622_v58 = vunpack.i.h.bf16 %v12895_v32  ;;  %v15623_v9 = vunpack.i.h.bf16 %v12791_v42  ;;  %v2864_v34 = vmax.f32 %v2764_v8, %v2832_v5  ;;  %vm3364_vm10 = vmand %vm13048_vm11, %vm13054_vm6 }
 0x569   :  { %v13092_v21 = vpop.permute.xlu1 %8010  ;;  %v2674_v22 = vsel %vm15149_vm2, %v7983_v11, %v15620_v61  ;;  %v2673_v44 = vsel %vm15149_vm2, %v7982_v49, %v15621_v62  ;;  %v2849_v11 = vmax.f32 %v12978_v30, %v2841_v24  ;;  %v2859_v18 = vmax.f32 %v12967_v45, %v2842_v27  ;;  %vm15626_vm2 = vmmov %vm15624_vm15 }
 0x56a   :  { %4032 = vmatpush1.bf16.msra.mxu0 %v15569_v52  ;;  %v8013_v20 = vunpack.i.h.bf16 %v13092_v21  ;;  %v8012_v14 = vunpack.i.l.bf16 %v13092_v21  ;;  %v2772_v39 = vsel %vm15624_vm15, %v15623_v9, %v15622_v58  ;;  %v15625_v49 = vunpack.i.h.bf16 %v12993_v28  ;;  %vm15628_vm15 = vmmov %vm15626_vm2  ;;  %v8036_v58 = vpop.permute.xlu0 %8035 }
 0x56b   :  { %4033 = vmatprep.subr.bf16.mxu0 %v15507_v48  ;;  %4157 = vmatpush1.bf16.msra.mxu1 %v15569_v52  ;;  %v15627_v61 = vunpack.i.l.bf16 %v12993_v28  ;;  %v15629_v45 = vunpack.i.l.bf16 %v12882_v59  ;;  %v15630_v59 = vmax.f32 %v12594_v33, 0.0  ;;  %v15632_v10 = vunpack.i.l.bf16 %v12895_v32  ;;  %vm15652_vm6 = vmmov %vm15628_vm15 }
 0x56c   :  { %v2762_v51 = vsel %vm15626_vm2, %v7988_v47, %v15625_v49  ;;  %v2830_v24 = vsel %vm629_vm12, %v7993_v26, %v8013_v20  ;;  %4158 = vmatprep.subr.bf16.mxu1 %v15507_v48  ;;  %vm3828_vm2 = vmand %vm3348_vm8, %vm3748_vm1  ;;  %v15631_v47 = vmax.f32 %v12583_v37, 0.0  ;;  %v15633_v50 = vunpack.i.l.bf16 %v12791_v42 }
 0x56d   :  { %v2761_v5 = vsel %vm15628_vm15, %v7987_v4, %v15627_v61  ;;  %v2829_v30 = vsel %vm629_vm12, %v15629_v45, %v8012_v14  ;;  %v13150_v4 = vpop.permute.xlu1 %8015  ;;  %v2699_v26 = vmax.f32 %v15630_v59, %v2673_v44  ;;  %v2865_v62 = vmax.f32 %v2762_v51, %v2830_v24  ;;  %vm13173_vm4 = vmpackc.low %vm8148_vm14, %vm3828_vm2 }
 0x56e   :  { %4034 = vmatpush1.bf16.msra.mxu0 %v15569_v52  ;;  %v2709_v27 = vmax.f32 %v15631_v47, %v2674_v22  ;;  %v2855_v8 = vmax.f32 %v2761_v5, %v2829_v30  ;;  %v2771_v3 = vsel %vm15628_vm15, %v15633_v50, %v15632_v10  ;;  %v8018_v9 = vunpack.i.h.bf16 %v13150_v4  ;;  %vm15654_vm11 = vmmov %vm15652_vm6 }
 0x56f   :  { %v8017_v52 = vunpack.i.l.bf16 %v13150_v4  ;;  %4035 = vmatprep.subr.bf16.mxu0 %v15507_v48  ;;  %v2874_v33 = vmax.f32 %v2698_v60, %v2854_v36  ;;  %6446 = vmatpush1.bf16.msk.msra.mxu1 %vm6420_vm5, %v15567_v17  ;;  %v2884_v44 = vmax.f32 %v2708_v31, %v2864_v34  ;;  %v2869_v49 = vmax.f32 %v12948_v1, %v2849_v11 }
 0x570   :  { %v2875_v42 = vmax.f32 %v2699_v26, %v2855_v8  ;;  %v2885_v22 = vmax.f32 %v2709_v27, %v2865_v62  ;;  %v8027_v51 = vunpack.i.l.bf16 %v13070_v54  ;;  %v15636_v36 = vunpack.i.h.bf16 %v12934_v55  ;;  %4160 = vmatprep.subr.bf16.mxu1 %v15507_v48 }
 0x571   :  { %v15637_v61 = vunpack.i.l.bf16 %v12934_v55  ;;  %v2879_v1 = vmax.f32 %v12959_v0, %v2859_v18  ;;  %v8028_v34 = vunpack.i.h.bf16 %v13070_v54  ;;  %v8021_v11 = vpop.permute.xlu1 %8020  ;;  %vm15640_vm1 = vcmp.eq.s32.totalorder %v8381_v15, %v12941_v6  ;;  %v8041_v54 = vpop.permute.xlu0 %8040 }
 0x572   :  { %v2840_v60 = vsel %vm629_vm12, %v15636_v36, %v8018_v9  ;;  %6421 = vmatpush1.bf16.msk.msra.mxu0 %vm6420_vm5, %v15567_v17  ;;  %v2895_v55 = vpack.c.bf16 %v2885_v22, %v2875_v42  ;;  %vm13214_vm7 = vmand %vm13019_vm0, %vm15640_vm1  ;;  %vm3764_vm3 = vcmp.eq.s32.totalorder %v8381_v15, %v12944_v25  ;;  %v15643_v57 = vunpack.i.l.bf16 %v12936_v35 }
 0x573   :  { %v2839_v5 = vsel %vm629_vm12, %v15637_v61, %v8017_v52  ;;  %v2860_v18 = vmax.f32 %v2772_v39, %v2840_v60  ;;  %4037 = vmatprep.subr.bf16.mxu0 %v15507_v48  ;;  %6449 = vmatpush1.bf16.msk.msra.mxu1 %vm13173_vm4, %v12381_v12  ;;  %vm15644_vm0 = vcmp.lt.s32.totalorder %v8381_v15, 126  ;;  %v2894_v53 = vpack.c.bf16 %v2884_v44, %v2874_v33  ;;  %vm6425_vm13 = vmpackc.low %vm13214_vm7, %vm13198_vm9 }
 0x574   :  { %v2850_v0 = vmax.f32 %v2771_v3, %v2839_v5  ;;  %4174 = vmatprep.mubr.bf16.mxu1 %v2895_v55  ;;  %v2671_v46 = vsel %vm15644_vm0, %v15643_v57, %v8027_v51  ;;  %v2889_v39 = vpack.c.bf16 %v2879_v1, %v2869_v49  ;;  %v15645_v24 = vmov 0.0   ;;  %vm15647_vm8 = vmmov %vm15644_vm0 }
 0x575   :  { %v2880_v16 = vmax.f32 %v13046_v41, %v2860_v18  ;;  %6696 = vmatprep.subr.bf16.mxu1 %v15645_v24  ;;  %v15646_v45 = vunpack.i.h.bf16 %v12936_v35  ;;  %v8038_v41 = vunpack.i.h.bf16 %v8036_v58  ;;  %v8037_v30 = vunpack.i.l.bf16 %v8036_v58  ;;  %v8031_v59 = vpop.permute.xlu1 %8030  ;;  %vm13254_vm5 = vmand %vm3364_vm10, %vm3764_vm3 }
 0x576   :  { %v2870_v6 = vmax.f32 %v12998_v40, %v2850_v0  ;;  %6424 = vmatpush1.bf16.msk.msra.mxu0 %vm13173_vm4, %v12381_v12  ;;  %v8023_v47 = vunpack.i.h.bf16 %v8021_v11  ;;  %v8022_v27 = vunpack.i.l.bf16 %v8021_v11  ;;  %4175 = vmatmul.mubr.bf16.vlgmr.msra.gmra.mrb[28].mxu1 %v2894_v53  ;;  %v8033_v8 = vunpack.i.h.bf16 %v8031_v59  ;;  %vm13287_vm2 = vmpackc.low %vm8148_vm14, %vm13254_vm5 }
 0x577   :  { %v2672_v40 = vsel %vm15647_vm8, %v15646_v45, %v8028_v34  ;;  %v8032_v62 = vunpack.i.l.bf16 %v8031_v59  ;;  %6688 = vmatprep.subr.bf16.mxu0 %v15645_v24  ;;  %v15650_v10 = vmax.f32 %v12619_v29, 0.0  ;;  %v2828_v25 = vsel %vm629_vm12, %v8013_v20, %v8038_v41  ;;  %6697 = vmatpush3.bf16.msk.msra.mxu1 %vm6425_vm13, %v15567_v17  ;;  %vm15659_vm14 = vmmov %vm15644_vm0 }
 0x578   :  { %v2890_v26 = vpack.c.bf16 %v2880_v16, %v2870_v6  ;;  %v8043_v38 = vunpack.i.h.bf16 %v8041_v54  ;;  %v2827_v29 = vsel %vm629_vm12, %v8012_v14, %v8037_v30  ;;  %v8042_v43 = vunpack.i.l.bf16 %v8041_v54  ;;  %6698 = vmatprep.subr.bf16.mxu1 %v15645_v24  ;;  %vm15661_vm4 = vmmov %vm15644_vm0 }
 0x579   :  { %v2700_v50 = vmax.f32 %v15650_v10, %v2671_v46  ;;  %v15651_v3 = vunpack.i.l.bf16 %v12993_v28  ;;  %v15653_v58 = vunpack.i.h.bf16 %v12993_v28  ;;  %v15657_v14 = vmax.f32 %v12624_v2, 0.0  ;;  %v8046_v44 = vpop.permute.xlu1 %8045  ;;  %vm15663_vm9 = vmmov %vm15652_vm6 }
 0x57a   :  { %4051 = vmatprep.mubr.bf16.mxu0 %v2890_v26  ;;  %vm8150_vm15 = vmmov 0   ;;  %v15658_v28 = vunpack.i.l.bf16 %v12862_v56  ;;  %v15660_v49 = vunpack.i.h.bf16 %v12862_v56  ;;  %v8048_v36 = vunpack.i.h.bf16 %v8046_v44  ;;  %vm15665_vm1 = vmmov %vm15652_vm6 }
 0x57b   :  { %v2759_v20 = vsel %vm15652_vm6, %v15651_v3, %v8032_v62  ;;  %v2760_v33 = vsel %vm15654_vm11, %v15653_v58, %v8033_v8  ;;  %4052 = vmatmul.mubr.bf16.vlgmr.msra.gmra.mrb[28].mxu0 %v2889_v39  ;;  %v2710_v37 = vmax.f32 %v15657_v14, %v2672_v40  ;;  %6700 = vmatprep.mubr.msk.bf16.mxu1 %vm8150_vm15, %v15645_v24  ;;  %v8047_v60 = vunpack.i.l.bf16 %v8046_v44 }
 0x57c   :  { %v2856_v42 = vmax.f32 %v2759_v20, %v2827_v29  ;;  %v2866_v22 = vmax.f32 %v2760_v33, %v2828_v25  ;;  %6689 = vmatpush3.bf16.msk.msra.mxu0 %vm6425_vm13, %v15567_v17  ;;  %v2681_v2 = vsel %vm15659_vm14, %v15658_v28, %v8022_v27  ;;  %v2682_v51 = vsel %vm15661_vm4, %v15660_v49, %v8023_v47  ;;  %v15668_v47 = vld [vmem:[#allocation5_spill] sm:$0xff] }
 0x57d   :  { %6690 = vmatprep.subr.bf16.mxu0 %v15645_v24  ;;  %6692 = vmatprep.mubr.msk.bf16.mxu0 %vm8150_vm15, %v15645_v24  ;;  %v15662_v5 = vunpack.i.l.bf16 %v12895_v32  ;;  %v15664_v1 = vunpack.i.h.bf16 %v12895_v32  ;;  %v2837_v34 = vsel %vm629_vm12, %v8017_v52, %v8047_v60  ;;  %v2838_v11 = vsel %vm629_vm12, %v8018_v9, %v8048_v36 }
 0x57e   :  { %6699 = vmatpush3.bf16.msk.msra.mxu1 %vm13287_vm2, %v12381_v12  ;;  %v2876_v17 = vmax.f32 %v2700_v50, %v2856_v42  ;;  %v2886_v61 = vmax.f32 %v2710_v37, %v2866_v22  ;;  %v15666_v55 = vmax.f32 %v12579_v19, 0.0  ;;  %v15667_v18 = vmax.f32 %v12570_v13, 0.0 }
 0x57f   :  { %v2769_v56 = vsel %vm15663_vm9, %v15662_v5, %v8042_v43  ;;  %v2770_v31 = vsel %vm15665_vm1, %v15664_v1, %v8043_v38  ;;  %v13341_v19 = vadd.s32 416, %v12338_v63  ;;  %v13344_v13 = vadd.s32 424, %v12338_v63 }
 0x580   :  { %v2695_v0 = vmax.f32 %v15666_v55, %v2681_v2  ;;  %v2705_v23 = vmax.f32 %v15667_v18, %v2682_v51  ;;  %v2851_v32 = vmax.f32 %v2769_v56, %v2837_v34  ;;  %v2861_v6 = vmax.f32 %v2770_v31, %v2838_v11  ;;  %6691 = vmatpush3.bf16.msk.msra.mxu0 %vm13287_vm2, %v12381_v12 }
 0x581   :  { %v2896_v16 = vpack.c.bf16 %v2886_v61, %v2876_v17  ;;  %v4224_v4 = vshra.s32 %v12338_v63, 5  ;;  %v4225_v12 = vshra.s32 %v12341_v7, 5  ;;  %v4276_v9 = vshra.s32 %v13341_v19, 5 }
 0x582   :  { %v2871_v57 = vmax.f32 %v2695_v0, %v2851_v32  ;;  %v2881_v52 = vmax.f32 %v2705_v23, %v2861_v6  ;;  %v4277_v54 = vshra.s32 %v13344_v13, 5  ;;  %v13353_v53 = vadd.s32 24, %v12338_v63 }
 0x583   :  { %6701 = vmatmul.mubr.bf16.vlgmr.msra.gmra.mrb[28].mxu1 %v2896_v16  ;;  %vm4288_vm12 = vcmp.eq.s32.totalorder %v8381_v15, %v4224_v4  ;;  %vm4289_vm7 = vcmp.eq.s32.totalorder %v8381_v15, %v4225_v12  ;;  %vm4340_vm10 = vcmp.eq.s32.totalorder %v8381_v15, %v4276_v9  ;;  %v13358_v45 = vadd.s32 432, %v12338_v63 }
 0x584   :  { %v2891_v46 = vpack.c.bf16 %v2881_v52, %v2871_v57  ;;  %4839 = vmatprep.mubr.bf16.mxu1 %v15507_v48  ;;  %vm4341_vm3 = vcmp.eq.s32.totalorder %v8381_v15, %v4277_v54  ;;  %v13361_v40 = vadd.s32 440, %v12338_v63  ;;  %v4352_v26 = vsel %vm4288_vm12, 1.0, %v15645_v24 }
 0x585   :  { %v4353_v35 = vsel %vm4289_vm7, 1.0, %v15645_v24  ;;  %v4226_v27 = vshra.s32 %v15668_v47, 5  ;;  %v4404_v50 = vsel %vm4340_vm10, 1.0, %v15645_v24  ;;  %v4405_v25 = vsel %vm4341_vm3, 1.0, %v15645_v24 }
 0x586   :  { %v4227_v38 = vshra.s32 %v13353_v53, 5  ;;  %v4278_v43 = vshra.s32 %v13358_v45, 5  ;;  %v4279_v3 = vshra.s32 %v13361_v40, 5  ;;  %v4416_v33 = vpack.c.bf16 %v4353_v35, %v4352_v26 }
 0x587   :  { %6693 = vmatmul.mubr.bf16.vlgmr.msra.gmra.mrb[28].mxu0 %v2891_v46  ;;  %vm4450_vm0 = vcmask 130048   ;;  %v4442_v21 = vpack.c.bf16 %v4405_v25, %v4404_v50  ;;  %vm4290_vm13 = vcmp.eq.s32.totalorder %v8381_v15, %v4226_v27  ;;  %v13374_v14 = vadd.s32 32, %v12338_v63 }
 0x588   :  { %4579 = vmatprep.mubr.bf16.mxu0 %v15507_v48  ;;  %vm4291_vm8 = vcmp.eq.s32.totalorder %v8381_v15, %v4227_v38  ;;  %v13377_v37 = vadd.s32 40, %v12338_v63  ;;  %vm4342_vm5 = vcmp.eq.s32.totalorder %v8381_v15, %v4278_v43  ;;  %vm4343_vm6 = vcmp.eq.s32.totalorder %v8381_v15, %v4279_v3 }
 0x589   :  { %v13382_v42 = vadd.s32 448, %v12338_v63  ;;  %v13385_v22 = vadd.s32 456, %v12338_v63  ;;  %v4354_v44 = vsel %vm4290_vm13, 1.0, %v15645_v24  ;;  %v4355_v28 = vsel %vm4291_vm8, 1.0, %v15645_v24 }
 0x58a   :  { %v4406_v2 = vsel %vm4342_vm5, 1.0, %v15645_v24  ;;  %v4407_v49 = vsel %vm4343_vm6, 1.0, %v15645_v24  ;;  %v4228_v51 = vshra.s32 %v13374_v14, 5  ;;  %v4229_v36 = vshra.s32 %v13377_v37, 5 }
 0x58b   :  { %v4280_v60 = vshra.s32 %v13382_v42, 5  ;;  %v4281_v17 = vshra.s32 %v13385_v22, 5  ;;  %v4417_v61 = vpack.c.bf16 %v4355_v28, %v4354_v44  ;;  %v4443_v5 = vpack.c.bf16 %v4407_v49, %v4406_v2 }
 0x58c   :  { %vm4292_vm11 = vcmp.eq.s32.totalorder %v8381_v15, %v4228_v51  ;;  %vm4293_vm2 = vcmp.eq.s32.totalorder %v8381_v15, %v4229_v36  ;;  %v13402_v56 = vadd.s32 48, %v12338_v63  ;;  %v13405_v1 = vadd.s32 56, %v12338_v63 }
 0x58d   :  { %vm4344_vm14 = vcmp.eq.s32.totalorder %v8381_v15, %v4280_v60  ;;  %vm4345_vm4 = vcmp.eq.s32.totalorder %v8381_v15, %v4281_v17  ;;  %v13410_v31 = vadd.s32 464, %v12338_v63  ;;  %v13413_v34 = vadd.s32 472, %v12338_v63 }
 0x58e   :  { %v4356_v11 = vsel %vm4292_vm11, 1.0, %v15645_v24  ;;  %v4357_v55 = vsel %vm4293_vm2, 1.0, %v15645_v24  ;;  %v4408_v0 = vsel %vm4344_vm14, 1.0, %v15645_v24  ;;  %v4409_v18 = vsel %vm4345_vm4, 1.0, %v15645_v24 }
 0x58f   :  { %v4230_v23 = vshra.s32 %v13402_v56, 5  ;;  %v4231_v32 = vshra.s32 %v13405_v1, 5  ;;  %v4282_v6 = vshra.s32 %v13410_v31, 5  ;;  %v4283_v16 = vshra.s32 %v13413_v34, 5 }
 0x590   :  { %v4418_v57 = vpack.c.bf16 %v4357_v55, %v4356_v11  ;;  %v4444_v52 = vpack.c.bf16 %v4409_v18, %v4408_v0  ;;  %v13430_v46 = vadd.s32 64, %v12338_v63  ;;  %v13433_v4 = vadd.s32 72, %v12338_v63 }
 0x591   :  { %vm4294_vm9 = vcmp.eq.s32.totalorder %v8381_v15, %v4230_v23  ;;  %vm4295_vm1 = vcmp.eq.s32.totalorder %v8381_v15, %v4231_v32  ;;  %vm4346_vm12 = vcmp.eq.s32.totalorder %v8381_v15, %v4282_v6  ;;  %vm4347_vm7 = vcmp.eq.s32.totalorder %v8381_v15, %v4283_v16  ;;  %v15669_v32 = vld [vmem:[#allocation6_spill] sm:$0xff]  ;;  %v15670_v16 = vld [vmem:[#allocation7_spill] sm:$0xff] }
 0x592   :  { %v13438_v12 = vadd.s32 480, %v12338_v63  ;;  %v13441_v9 = vadd.s32 488, %v12338_v63  ;;  %v4358_v54 = vsel %vm4294_vm9, 1.0, %v15645_v24  ;;  %v4411_v26 = vsel %vm4347_vm7, 1.0, %v15645_v24 }
 0x593   :  { %v13461_v50 = vadd.s32 88, %v12338_v63  ;;  %v13481_v44 = vadd.s32 104, %v12338_v63  ;;  %v13494_v60 = vadd.s32 112, %v12338_v63  ;;  %v13497_v17 = vadd.s32 120, %v12338_v63 }
 0x594   :  { %v4284_v35 = vshra.s32 %v13438_v12, 5  ;;  %v4285_v27 = vshra.s32 %v13441_v9, 5  ;;  %v4240_v6 = vshra.s32 %v15669_v32, 5 }
 0x595   :  { %v4237_v51 = vshra.s32 %v13481_v44, 5  ;;  %v4238_v11 = vshra.s32 %v13494_v60, 5  ;;  %v4239_v55 = vshra.s32 %v13497_v17, 5 }
 0x596   :  { %vm4348_vm13 = vcmp.eq.s32.totalorder %v8381_v15, %v4284_v35  ;;  %vm4349_vm8 = vcmp.eq.s32.totalorder %v8381_v15, %v4285_v27  ;;  %vm4304_vm9 = vcmp.eq.s32.totalorder %v8381_v15, %v4240_v6  ;;  %v13527_v27 = vadd.s32 160, %v12338_v63 }
 0x597   :  { %v4413_v43 = vsel %vm4349_vm8, 1.0, %v15645_v24  ;;  %vm4301_vm2 = vcmp.eq.s32.totalorder %v8381_v15, %v4237_v51  ;;  %vm4302_vm14 = vcmp.eq.s32.totalorder %v8381_v15, %v4238_v11  ;;  %vm4303_vm4 = vcmp.eq.s32.totalorder %v8381_v15, %v4239_v55 }
 0x598   :  { %v4366_v18 = vsel %vm4302_vm14, 1.0, %v15645_v24  ;;  %v4367_v23 = vsel %vm4303_vm4, 1.0, %v15645_v24  ;;  %v13555_v51 = vadd.s32 192, %v12338_v63 }
 0x59a   :  { %v4248_v11 = vshra.s32 %v13555_v51, 5 }
 0x656   :  { %v4217_v39 = vpop.f32.mrb[28].mxu1 }
 0x657   :  { %v6702_v41 = vpop.f32.mrb[29].mxu1 }
 0x658   :  { %v4220_v30 = vpop.f32.mrb[30].mxu1  ;;  %v4232_v41 = vshra.s32 %v13430_v46, 5 }
 0x659   :  { %v4449_v8 = vpack.c.bf16 %v4220_v30, %v4217_v39  ;;  %v6703_v62 = vpop.f32.mrb[31].mxu1  ;;  %v4359_v39 = vsel %vm4295_vm1, 1.0, %v15645_v24  ;;  %v4233_v30 = vshra.s32 %v13433_v4, 5 }
 0x65a   :  { %v4094_v59 = vpop.f32.mrb[28].mxu0  ;;  %vm4296_vm10 = vcmp.eq.s32.totalorder %v8381_v15, %v4232_v41 }
 0x65b   :  { %v6694_v10 = vpop.f32.mrb[29].mxu0  ;;  %4547 = vmatprep.subr.bf16.mxu0 %v4449_v8  ;;  %6748 = vmatprep.subr.bf16.mxu1 %v4449_v8  ;;  %v4419_v8 = vpack.c.bf16 %v4359_v39, %v4358_v54  ;;  %vm4297_vm3 = vcmp.eq.s32.totalorder %v8381_v15, %v4233_v30  ;;  %v4360_v25 = vsel %vm4296_vm10, 1.0, %v15645_v24  ;;  %v13516_v54 = vadd.s32 152, %v12338_v63  ;;  %v15671_v30 = vld [vmem:[#allocation8_spill] sm:$0xff] }
 0x65c   :  { %v4097_v29 = vpop.f32.mrb[30].mxu0  ;;  %v13458_v10 = vadd.s32 80, %v12338_v63  ;;  %v4361_v38 = vsel %vm4297_vm3, 1.0, %v15645_v24  ;;  %v4368_v39 = vsel %vm4304_vm9, 1.0, %v15645_v24 }
 0x65d   :  { %v4448_v20 = vpack.c.bf16 %v4097_v29, %v4094_v59  ;;  %v6695_v58 = vpop.f32.mrb[31].mxu0  ;;  %v4410_v59 = vsel %vm4346_vm12, 1.0, %v15645_v24  ;;  %v4412_v29 = vsel %vm4348_vm13, 1.0, %v15645_v24 }
 0x65e   :  { %v4445_v62 = vpack.c.bf16 %v4411_v26, %v4410_v59  ;;  %v4234_v3 = vshra.s32 %v13458_v10, 5  ;;  %v4420_v58 = vpack.c.bf16 %v4361_v38, %v4360_v25  ;;  %v4242_v59 = vshra.s32 %v15671_v30, 5 }
 0x65f   :  { %4548 = vmatpush1.bf16.msra.mxu0 %v4448_v20  ;;  %6749 = vmatpush1.bf16.msra.mxu1 %v4448_v20  ;;  %v4235_v20 = vshra.s32 %v13461_v50, 5  ;;  %v4243_v26 = vshra.s32 %v13516_v54, 5  ;;  %v4244_v38 = vshra.s32 %v13527_v27, 5 }
 0x660   :  { %vm4298_vm5 = vcmp.eq.s32.totalorder %v8381_v15, %v4234_v3  ;;  %vm4306_vm12 = vcmp.eq.s32.totalorder %v8381_v15, %v4242_v59  ;;  %v13541_v3 = vadd.s32 176, %v12338_v63  ;;  %v13583_v59 = vadd.s32 224, %v12338_v63 }
 0x661   :  { %vm4299_vm6 = vcmp.eq.s32.totalorder %v8381_v15, %v4235_v20  ;;  %v4362_v28 = vsel %vm4298_vm5, 1.0, %v15645_v24  ;;  %vm4307_vm7 = vcmp.eq.s32.totalorder %v8381_v15, %v4243_v26  ;;  %vm4308_vm10 = vcmp.eq.s32.totalorder %v8381_v15, %v4244_v38 }
 0x662   :  { %6455 = vmatmul.mubr.msk.bf16.vlgmr.msra.gmra.mrb[32].mxu0 %vm4450_vm0, %v4416_v33  ;;  %6481 = vmatmul.mubr.msk.bf16.vlgmr.msra.gmra.mrb[32].mxu1 %vm4450_vm0, %v4442_v21  ;;  %v4446_v33 = vpack.c.bf16 %v4413_v43, %v4412_v29  ;;  %v13478_v21 = vadd.s32 96, %v12338_v63  ;;  %v4363_v2 = vsel %vm4299_vm6, 1.0, %v15645_v24  ;;  %v4371_v25 = vsel %vm4307_vm7, 1.0, %v15645_v24 }
 0x663   :  { %4589 = vmatprep.mubr.bf16.mxu0 %v15507_v48  ;;  %4849 = vmatprep.mubr.bf16.mxu1 %v15507_v48  ;;  %v4421_v36 = vpack.c.bf16 %v4363_v2, %v4362_v28  ;;  %v13544_v20 = vadd.s32 184, %v12338_v63  ;;  %v4246_v28 = vshra.s32 %v13541_v3, 5  ;;  %vm4312_vm5 = vcmp.eq.s32.totalorder %v8381_v15, %v4248_v11 }
 0x664   :  { %v4236_v49 = vshra.s32 %v13478_v21, 5  ;;  %v4376_v6 = vsel %vm4312_vm5, 1.0, %v15645_v24  ;;  %v13586_v26 = vadd.s32 232, %v12338_v63 }
 0x665   :  { %v4247_v2 = vshra.s32 %v13544_v20, 5  ;;  %vm4310_vm13 = vcmp.eq.s32.totalorder %v8381_v15, %v4246_v28  ;;  %v13607_v28 = vadd.s32 504, %v12338_v63 }
 0x666   :  { %vm4300_vm11 = vcmp.eq.s32.totalorder %v8381_v15, %v4236_v49  ;;  %15672 = vst [vmem:[#allocation5_spill] sm:$0xff] %v13586_v26  ;;  %v4253_v38 = vshra.s32 %v13586_v26, 5 }
 0x667   :  { %vm4311_vm8 = vcmp.eq.s32.totalorder %v8381_v15, %v4247_v2  ;;  %15676 = vst [vmem:[#allocation12_spill] sm:$0xff] %v13607_v28 }
 0x668   :  { %vm4317_vm4 = vcmp.eq.s32.totalorder %v8381_v15, %v4253_v38 }
 0x66a   :  { %6456 = vmatmul.mubr.msk.bf16.gmra.mrb[36].mxu0 %vm4450_vm0, %v4417_v61  ;;  %6482 = vmatmul.mubr.msk.bf16.gmra.mrb[36].mxu1 %vm4450_vm0, %v4443_v5  ;;  %v4364_v61 = vsel %vm4300_vm11, 1.0, %v15645_v24  ;;  %v4365_v5 = vsel %vm4301_vm2, 1.0, %v15645_v24 }
 0x66b   :  { %4599 = vmatprep.mubr.bf16.mxu0 %v15507_v48  ;;  %4859 = vmatprep.mubr.bf16.mxu1 %v15507_v48  ;;  %v4422_v0 = vpack.c.bf16 %v4365_v5, %v4364_v61  ;;  %v4374_v61 = vsel %vm4310_vm13, 1.0, %v15645_v24  ;;  %v4375_v5 = vsel %vm4311_vm8, 1.0, %v15645_v24 }
 0x672   :  { %6457 = vmatmul.mubr.msk.bf16.gmra.mrb[40].mxu0 %vm4450_vm0, %v4418_v57  ;;  %6483 = vmatmul.mubr.msk.bf16.gmra.mrb[40].mxu1 %vm4450_vm0, %v4444_v52  ;;  %v4241_v57 = vshra.s32 %v15670_v16, 5  ;;  %v4423_v52 = vpack.c.bf16 %v4367_v23, %v4366_v18  ;;  %v13569_v18 = vadd.s32 208, %v12338_v63  ;;  %v13572_v23 = vadd.s32 216, %v12338_v63 }
 0x673   :  { %4609 = vmatprep.mubr.bf16.mxu0 %v15507_v48  ;;  %4869 = vmatprep.mubr.bf16.mxu1 %v15507_v48 }
 0x674   :  { %vm4305_vm1 = vcmp.eq.s32.totalorder %v8381_v15, %v4241_v57 }
 0x675   :  { %v4369_v41 = vsel %vm4305_vm1, 1.0, %v15645_v24 }
 0x676   :  { %v4424_v35 = vpack.c.bf16 %v4369_v41, %v4368_v39  ;;  %v4251_v39 = vshra.s32 %v13572_v23, 5 }
 0x678   :  { %vm4315_vm2 = vcmp.eq.s32.totalorder %v8381_v15, %v4251_v39 }
 0x67a   :  { %6458 = vmatmul.mubr.msk.bf16.gmra.mrb[44].mxu0 %vm4450_vm0, %v4419_v8  ;;  %6484 = vmatmul.mubr.msk.bf16.gmra.mrb[44].mxu1 %vm4450_vm0, %v4445_v62  ;;  %v13530_v8 = vadd.s32 168, %v12338_v63  ;;  %v4370_v62 = vsel %vm4306_vm12, 1.0, %v15645_v24 }
 0x67b   :  { %4619 = vmatprep.mubr.bf16.mxu0 %v15507_v48  ;;  %4879 = vmatprep.mubr.bf16.mxu1 %v15507_v48  ;;  %v4425_v43 = vpack.c.bf16 %v4371_v25, %v4370_v62  ;;  %v4379_v62 = vsel %vm4315_vm2, 1.0, %v15645_v24  ;;  %v4252_v25 = vshra.s32 %v13583_v59, 5 }
 0x67c   :  { %v4245_v29 = vshra.s32 %v13530_v8, 5 }
 0x67d   :  { %vm4316_vm14 = vcmp.eq.s32.totalorder %v8381_v15, %v4252_v25  ;;  %v15678_v25 = vld [vmem:[#allocation9_spill] sm:$0xff] }
 0x67e   :  { %vm4309_vm3 = vcmp.eq.s32.totalorder %v8381_v15, %v4245_v29  ;;  %v4380_v2 = vsel %vm4316_vm14, 1.0, %v15645_v24  ;;  %v4257_v38 = vshra.s32 %v15678_v25, 5 }
 0x682   :  { %6459 = vmatmul.mubr.msk.bf16.gmra.mrb[48].mxu0 %vm4450_vm0, %v4420_v58  ;;  %6485 = vmatmul.mubr.msk.bf16.gmra.mrb[48].mxu1 %vm4450_vm0, %v4446_v33  ;;  %v4372_v58 = vsel %vm4308_vm10, 1.0, %v15645_v24  ;;  %v4373_v33 = vsel %vm4309_vm3, 1.0, %v15645_v24  ;;  %vm4321_vm3 = vcmp.eq.s32.totalorder %v8381_v15, %v4257_v38 }
 0x683   :  { %4629 = vmatprep.mubr.bf16.mxu0 %v15507_v48  ;;  %4889 = vmatprep.mubr.bf16.mxu1 %v15507_v48  ;;  %v4426_v49 = vpack.c.bf16 %v4373_v33, %v4372_v58  ;;  %v13600_v58 = vadd.s32 248, %v12338_v63  ;;  %v13604_v33 = vadd.s32 496, %v12338_v63 }
 0x685   :  { %15674 = vst [vmem:[#allocation7_spill] sm:$0xff] %v13600_v58  ;;  %15675 = vst [vmem:[#allocation8_spill] sm:$0xff] %v13604_v33  ;;  %v4286_v11 = vshra.s32 %v13604_v33, 5 }
 0x687   :  { %vm4350_vm9 = vcmp.eq.s32.totalorder %v8381_v15, %v4286_v11 }
 0x68a   :  { %6460 = vmatmul.mubr.msk.bf16.gmra.mrb[52].mxu0 %vm4450_vm0, %v4421_v36  ;;  %v13558_v36 = vadd.s32 200, %v12338_v63 }
 0x68b   :  { %4639 = vmatprep.mubr.bf16.mxu0 %v15507_v48 }
 0x68c   :  { %v4249_v55 = vshra.s32 %v13558_v36, 5 }
 0x68e   :  { %vm4313_vm6 = vcmp.eq.s32.totalorder %v8381_v15, %v4249_v55  ;;  %v4287_v55 = vshra.s32 %v13607_v28, 5 }
 0x68f   :  { %v4377_v57 = vsel %vm4313_vm6, 1.0, %v15645_v24 }
 0x690   :  { %v4428_v41 = vpack.c.bf16 %v4377_v57, %v4376_v6  ;;  %vm4351_vm1 = vcmp.eq.s32.totalorder %v8381_v15, %v4287_v55  ;;  %v4414_v6 = vsel %vm4350_vm9, 1.0, %v15645_v24 }
 0x691   :  { %v4415_v57 = vsel %vm4351_vm1, 1.0, %v15645_v24 }
 0x692   :  { %6461 = vmatmul.mubr.msk.bf16.gmra.mrb[56].mxu0 %vm4450_vm0, %v4422_v0  ;;  %v4427_v0 = vpack.c.bf16 %v4375_v5, %v4374_v61  ;;  %v4255_v5 = vshra.s32 %v13600_v58, 5 }
 0x693   :  { %4649 = vmatprep.mubr.bf16.mxu0 %v15507_v48 }
 0x694   :  { %vm4319_vm7 = vcmp.eq.s32.totalorder %v8381_v15, %v4255_v5  ;;  %v15680_v5 = vld [vmem:[#allocation11_spill] sm:$0xff] }
 0x695   :  { %v4258_v11 = vshra.s32 %v15680_v5, 5 }
 0x697   :  { %vm4322_vm13 = vcmp.eq.s32.totalorder %v8381_v15, %v4258_v11 }
 0x69a   :  { %6462 = vmatmul.mubr.msk.bf16.gmra.mrb[60].mxu0 %vm4450_vm0, %v4423_v52  ;;  %v4250_v52 = vshra.s32 %v13569_v18, 5 }
 0x69b   :  { %4659 = vmatprep.mubr.bf16.mxu0 %v15507_v48 }
 0x69c   :  { %vm4314_vm11 = vcmp.eq.s32.totalorder %v8381_v15, %v4250_v52  ;;  %v4447_v52 = vpack.c.bf16 %v4415_v57, %v4414_v6  ;;  %v13643_v6 = vadd.s32 288, %v12338_v63  ;;  %v13646_v57 = vadd.s32 296, %v12338_v63 }
 0x69e   :  { %6486 = vmatmul.mubr.msk.bf16.gmra.mrb[52].mxu1 %vm4450_vm0, %v4447_v52  ;;  %15681 = vst [vmem:[#allocation14_spill] sm:$0xff] %v13643_v6  ;;  %15682 = vst [vmem:[#allocation15_spill] sm:$0xff] %v13646_v57  ;;  %v4386_v52 = vsel %vm4322_vm13, 1.0, %v15645_v24 }
 0x6a2   :  { %6463 = vmatmul.mubr.msk.bf16.gmra.mrb[64].mxu0 %vm4450_vm0, %v4424_v35  ;;  %v4378_v35 = vsel %vm4314_vm11, 1.0, %v15645_v24 }
 0x6a3   :  { %4669 = vmatprep.mubr.bf16.mxu0 %v15507_v48  ;;  %v4429_v29 = vpack.c.bf16 %v4379_v62, %v4378_v35  ;;  %v15677_v35 = vld [vmem:[#allocation10_spill] sm:$0xff] }
 0x6a4   :  { %v4256_v62 = vshra.s32 %v15677_v35, 5 }
 0x6a6   :  { %vm4320_vm10 = vcmp.eq.s32.totalorder %v8381_v15, %v4256_v62  ;;  %v4261_v62 = vshra.s32 %v13646_v57, 5 }
 0x6a8   :  { %vm4325_vm6 = vcmp.eq.s32.totalorder %v8381_v15, %v4261_v62 }
 0x6a9   :  { %v4389_v11 = vsel %vm4325_vm6, 1.0, %v15645_v24 }
 0x6aa   :  { %6464 = vmatmul.mubr.msk.bf16.gmra.mrb[68].mxu0 %vm4450_vm0, %v4425_v43  ;;  %v13597_v43 = vadd.s32 240, %v12338_v63 }
 0x6ab   :  { %4679 = vmatprep.mubr.bf16.mxu0 %v15507_v48 }
 0x6ac   :  { %15673 = vst [vmem:[#allocation6_spill] sm:$0xff] %v13597_v43  ;;  %v4254_v61 = vshra.s32 %v13597_v43, 5 }
 0x6ae   :  { %vm4318_vm12 = vcmp.eq.s32.totalorder %v8381_v15, %v4254_v61  ;;  %v4385_v61 = vsel %vm4321_vm3, 1.0, %v15645_v24 }
 0x6af   :  { %v4382_v39 = vsel %vm4318_vm12, 1.0, %v15645_v24 }
 0x6b2   :  { %6465 = vmatmul.mubr.msk.bf16.gmra.mrb[72].mxu0 %vm4450_vm0, %v4426_v49  ;;  %v4381_v49 = vsel %vm4317_vm4, 1.0, %v15645_v24 }
 0x6b3   :  { %4689 = vmatprep.mubr.bf16.mxu0 %v15507_v48 }
 0x6ba   :  { %6466 = vmatmul.mubr.msk.bf16.gmra.mrb[76].mxu0 %vm4450_vm0, %v4427_v0  ;;  %v4430_v0 = vpack.c.bf16 %v4381_v49, %v4380_v2  ;;  %v13632_v2 = vadd.s32 280, %v12338_v63  ;;  %v4384_v49 = vsel %vm4320_vm10, 1.0, %v15645_v24 }
 0x6bb   :  { %4699 = vmatprep.mubr.bf16.mxu0 %v15507_v48 }
 0x6bc   :  { %15679 = vst [vmem:[#allocation13_spill] sm:$0xff] %v13632_v2  ;;  %v4259_v55 = vshra.s32 %v13632_v2, 5  ;;  %v4907_v2 = vand.u32 31, %v13374_v14 }
 0x6be   :  { %vm4323_vm8 = vcmp.eq.s32.totalorder %v8381_v15, %v4259_v55 }
 0x6c2   :  { %6467 = vmatmul.mubr.msk.bf16.gmra.mrb[80].mxu0 %vm4450_vm0, %v4428_v41  ;;  %v4383_v41 = vsel %vm4319_vm7, 1.0, %v15645_v24 }
 0x6c3   :  { %4709 = vmatprep.mubr.bf16.mxu0 %v15507_v48 }
 0x6ca   :  { %6468 = vmatmul.mubr.msk.bf16.gmra.mrb[84].mxu0 %vm4450_vm0, %v4429_v29  ;;  %v4431_v29 = vpack.c.bf16 %v4383_v41, %v4382_v39  ;;  %v4387_v39 = vsel %vm4323_vm8, 1.0, %v15645_v24  ;;  %v4260_v41 = vshra.s32 %v13643_v6, 5 }
 0x6cb   :  { %4719 = vmatprep.mubr.bf16.mxu0 %v15507_v48  ;;  %v4433_v38 = vpack.c.bf16 %v4387_v39, %v4386_v52  ;;  %v13671_v39 = vadd.s32 320, %v12338_v63 }
 0x6cc   :  { %vm4324_vm5 = vcmp.eq.s32.totalorder %v8381_v15, %v4260_v41  ;;  %v13674_v41 = vadd.s32 328, %v12338_v63 }
 0x6cd   :  { %15685 = vst [vmem:[#allocation18_spill] sm:$0xff] %v13671_v39 }
 0x6ce   :  { %15686 = vst [vmem:[#allocation19_spill] sm:$0xff] %v13674_v41 }
 0x6d2   :  { %6469 = vmatmul.mubr.msk.bf16.gmra.mrb[88].mxu0 %vm4450_vm0, %v4430_v0  ;;  %v4432_v0 = vpack.c.bf16 %v4385_v61, %v4384_v49  ;;  %v13660_v49 = vadd.s32 312, %v12338_v63  ;;  %v4388_v61 = vsel %vm4324_vm5, 1.0, %v15645_v24 }
 0x6d3   :  { %4729 = vmatprep.mubr.bf16.mxu0 %v15507_v48  ;;  %v4434_v52 = vpack.c.bf16 %v4389_v11, %v4388_v61  ;;  %v4264_v61 = vshra.s32 %v13671_v39, 5  ;;  %v4265_v11 = vshra.s32 %v13674_v41, 5  ;;  %v15694_v39 = vld [vmem:[#allocation3_spill] sm:$0xff] }
 0x6d4   :  { %15684 = vst [vmem:[#allocation17_spill] sm:$0xff] %v13660_v49  ;;  %v4273_v57 = vshra.s32 %v15694_v39, 5 }
 0x6d5   :  { %vm4328_vm14 = vcmp.eq.s32.totalorder %v8381_v15, %v4264_v61  ;;  %vm4329_vm4 = vcmp.eq.s32.totalorder %v8381_v15, %v4265_v11  ;;  %v13699_v11 = vadd.s32 352, %v12338_v63 }
 0x6d6   :  { %v4392_v28 = vsel %vm4328_vm14, 1.0, %v15645_v24  ;;  %v4393_v33 = vsel %vm4329_vm4, 1.0, %v15645_v24  ;;  %vm4337_vm8 = vcmp.eq.s32.totalorder %v8381_v15, %v4273_v57 }
 0x6d7   :  { %v4436_v61 = vpack.c.bf16 %v4393_v33, %v4392_v28  ;;  %15689 = vst [vmem:[#allocation22_spill] sm:$0xff] %v13699_v11  ;;  %v4268_v33 = vshra.s32 %v13699_v11, 5 }
 0x6d9   :  { %vm4332_vm12 = vcmp.eq.s32.totalorder %v8381_v15, %v4268_v33 }
 0x6da   :  { %6470 = vmatmul.mubr.msk.bf16.gmra.mrb[92].mxu0 %vm4450_vm0, %v4431_v29  ;;  %v13657_v29 = vadd.s32 304, %v12338_v63 }
 0x6db   :  { %4739 = vmatprep.mubr.bf16.mxu0 %v15507_v48 }
 0x6dc   :  { %15683 = vst [vmem:[#allocation16_spill] sm:$0xff] %v13657_v29  ;;  %v4262_v55 = vshra.s32 %v13657_v29, 5 }
 0x6de   :  { %vm4326_vm11 = vcmp.eq.s32.totalorder %v8381_v15, %v4262_v55 }
 0x6df   :  { %v4390_v62 = vsel %vm4326_vm11, 1.0, %v15645_v24 }
 0x6e2   :  { %6471 = vmatmul.mubr.msk.bf16.gmra.mrb[96].mxu0 %vm4450_vm0, %v4432_v0  ;;  %v4263_v0 = vshra.s32 %v13660_v49, 5 }
 0x6e3   :  { %4749 = vmatprep.mubr.bf16.mxu0 %v15507_v48 }
 0x6e4   :  { %vm4327_vm2 = vcmp.eq.s32.totalorder %v8381_v15, %v4263_v0  ;;  %v13685_v0 = vadd.s32 336, %v12338_v63 }
 0x6e6   :  { %15687 = vst [vmem:[#allocation20_spill] sm:$0xff] %v13685_v0 }
 0x6ea   :  { %6472 = vmatmul.mubr.msk.bf16.gmra.mrb[100].mxu0 %vm4450_vm0, %v4433_v38  ;;  %v4391_v38 = vsel %vm4327_vm2, 1.0, %v15645_v24 }
 0x6eb   :  { %4759 = vmatprep.mubr.bf16.mxu0 %v15507_v48  ;;  %v4435_v55 = vpack.c.bf16 %v4391_v38, %v4390_v62  ;;  %v4266_v62 = vshra.s32 %v13685_v0, 5 }
 0x6ed   :  { %vm4330_vm9 = vcmp.eq.s32.totalorder %v8381_v15, %v4266_v62 }
 0x6ee   :  { %v4394_v41 = vsel %vm4330_vm9, 1.0, %v15645_v24 }
 0x6f2   :  { %6473 = vmatmul.mubr.msk.bf16.gmra.mrb[104].mxu0 %vm4450_vm0, %v4434_v52  ;;  %v13688_v52 = vadd.s32 344, %v12338_v63 }
 0x6f3   :  { %4769 = vmatprep.mubr.bf16.mxu0 %v15507_v48 }
 0x6f4   :  { %15688 = vst [vmem:[#allocation21_spill] sm:$0xff] %v13688_v52  ;;  %v4267_v38 = vshra.s32 %v13688_v52, 5  ;;  %v4396_v52 = vsel %vm4332_vm12, 1.0, %v15645_v24 }
 0x6f6   :  { %vm4331_vm1 = vcmp.eq.s32.totalorder %v8381_v15, %v4267_v38  ;;  %v13713_v38 = vadd.s32 368, %v12338_v63 }
 0x6f7   :  { %v4395_v0 = vsel %vm4331_vm1, 1.0, %v15645_v24 }
 0x6f8   :  { %v4437_v62 = vpack.c.bf16 %v4395_v0, %v4394_v41  ;;  %15691 = vst [vmem:[#allocation24_spill] sm:$0xff] %v13713_v38  ;;  %v4270_v41 = vshra.s32 %v13713_v38, 5 }
 0x6fa   :  { %6474 = vmatmul.mubr.msk.bf16.gmra.mrb[108].mxu0 %vm4450_vm0, %v4435_v55  ;;  %v13702_v55 = vadd.s32 360, %v12338_v63  ;;  %vm4334_vm10 = vcmp.eq.s32.totalorder %v8381_v15, %v4270_v41  ;;  %v4401_v41 = vsel %vm4337_vm8, 1.0, %v15645_v24 }
 0x6fb   :  { %4779 = vmatprep.mubr.bf16.mxu0 %v15507_v48 }
 0x6fc   :  { %15690 = vst [vmem:[#allocation23_spill] sm:$0xff] %v13702_v55  ;;  %v4269_v28 = vshra.s32 %v13702_v55, 5  ;;  %v15693_v55 = vld [vmem:[#allocation2_spill] sm:$0xff] }
 0x6fd   :  { %v4272_v49 = vshra.s32 %v15693_v55, 5 }
 0x6fe   :  { %vm4333_vm7 = vcmp.eq.s32.totalorder %v8381_v15, %v4269_v28  ;;  %v4398_v28 = vsel %vm4334_vm10, 1.0, %v15645_v24 }
 0x6ff   :  { %v4397_v11 = vsel %vm4333_vm7, 1.0, %v15645_v24  ;;  %vm4336_vm13 = vcmp.eq.s32.totalorder %v8381_v15, %v4272_v49 }
 0x700   :  { %v4438_v33 = vpack.c.bf16 %v4397_v11, %v4396_v52  ;;  %v13735_v52 = vadd.s32 408, %v12338_v63  ;;  %v4400_v11 = vsel %vm4336_vm13, 1.0, %v15645_v24 }
 0x702   :  { %6475 = vmatmul.mubr.msk.bf16.gmra.mrb[112].mxu0 %vm4450_vm0, %v4436_v61  ;;  %v13716_v61 = vadd.s32 376, %v12338_v63  ;;  %15695 = vst [vmem:[#allocation26_spill] sm:$0xff] %v13735_v52 }
 0x703   :  { %4789 = vmatprep.mubr.bf16.mxu0 %v15507_v48 }
 0x704   :  { %15692 = vst [vmem:[#allocation25_spill] sm:$0xff] %v13716_v61  ;;  %v4271_v0 = vshra.s32 %v13716_v61, 5  ;;  %v4275_v61 = vshra.s32 %v13735_v52, 5  ;;  %v4955_v52 = vand.u32 31, %v13341_v19 }
 0x706   :  { %vm4335_vm3 = vcmp.eq.s32.totalorder %v8381_v15, %v4271_v0  ;;  %v15696_v0 = vld [vmem:[#allocation4_spill] sm:$0xff]  ;;  %vm4339_vm6 = vcmp.eq.s32.totalorder %v8381_v15, %v4275_v61  ;;  %v4900_v61 = vadd.s32 128, %v8381_v15  ;;  %vm13756_vm2 = vcmp.eq.s32.totalorder %v8381_v15, %v4955_v52 }
 0x707   :  { %v4403_v49 = vsel %vm4339_vm6, 1.0, %v15645_v24 }
 0x70a   :  { %6476 = vmatmul.mubr.msk.bf16.gmra.mrb[116].mxu0 %vm4450_vm0, %v4437_v62  ;;  %v4399_v62 = vsel %vm4335_vm3, 1.0, %v15645_v24 }
 0x70b   :  { %4799 = vmatprep.mubr.bf16.mxu0 %v15507_v48  ;;  %v4439_v38 = vpack.c.bf16 %v4399_v62, %v4398_v28  ;;  %v4440_v28 = vpack.c.bf16 %v4401_v41, %v4400_v11  ;;  %v4903_v62 = vand.u32 31, %v12338_v63  ;;  %v4904_v11 = vand.u32 31, %v12341_v7 }
 0x70d   :  { %vm4967_vm11 = vcmp.eq.s32.totalorder %v8381_v15, %v4903_v62  ;;  %vm4969_vm14 = vcmp.eq.s32.totalorder %v8381_v15, %v4904_v11 }
 0x712   :  { %6477 = vmatmul.mubr.msk.bf16.gmra.mrb[120].mxu0 %vm4450_vm0, %v4438_v33  ;;  %v4274_v33 = vshra.s32 %v15696_v0, 5 }
 0x713   :  { %4809 = vmatprep.mubr.bf16.mxu0 %v15507_v48 }
 0x714   :  { %vm4338_vm5 = vcmp.eq.s32.totalorder %v8381_v15, %v4274_v33 }
 0x715   :  { %v4402_v57 = vsel %vm4338_vm5, 1.0, %v15645_v24 }
 0x71a   :  { %6478 = vmatmul.mubr.msk.bf16.gmra.mrb[124].mxu0 %vm4450_vm0, %v4439_v38  ;;  %v4441_v38 = vpack.c.bf16 %v4403_v49, %v4402_v57  ;;  %v13762_v49 = vand.u32 127, %v4900_v61 }
 0x71b   :  { %4819 = vmatprep.mubr.bf16.mxu0 %v15507_v48 }
 0x71c   :  { %vm4968_vm4 = vcmp.eq.s32.totalorder %v13762_v49, %v4903_v62  ;;  %vm13769_vm9 = vcmp.eq.s32.totalorder %v13762_v49, %v4904_v11  ;;  %vm5072_vm1 = vcmp.eq.s32.totalorder %v13762_v49, %v4955_v52 }
 0x722   :  { %6479 = vmatmul.mubr.msk.bf16.gmra.mrb[128].mxu0 %vm4450_vm0, %v4440_v28  ;;  %v4956_v28 = vand.u32 31, %v13344_v13 }
 0x723   :  { %4829 = vmatprep.mubr.bf16.mxu0 %v15507_v48  ;;  %v4905_v48 = vand.u32 31, %v15668_v47  ;;  %v4906_v47 = vand.u32 31, %v13353_v53 }
 0x724   :  { %vm5074_vm12 = vcmp.eq.s32.totalorder %v13762_v49, %v4956_v28 }
 0x725   :  { %vm4971_vm7 = vcmp.eq.s32.totalorder %v8381_v15, %v4905_v48  ;;  %vm13782_vm10 = vcmp.eq.s32.totalorder %v8381_v15, %v4906_v47  ;;  %vm4972_vm8 = vcmp.eq.s32.totalorder %v13762_v49, %v4905_v48  ;;  %vm13809_vm5 = vcmp.eq.s32.totalorder %v13762_v49, %v4906_v47 }
 0x72a   :  { %6480 = vmatmul.mubr.msk.bf16.gmra.mrb[132].mxu0 %vm4450_vm0, %v4441_v38  ;;  %vm5073_vm0 = vcmp.eq.s32.totalorder %v8381_v15, %v4956_v28  ;;  %v4958_v28 = vand.u32 31, %v13361_v40 }
 0x72c   :  { %vm5077_vm13 = vcmp.eq.s32.totalorder %v8381_v15, %v4958_v28 }
 0x735   :  { %v4581_v41 = vpop.f32.mrb[32].mxu0  ;;  %v4841_v33 = vpop.f32.mrb[32].mxu1 }
 0x736   :  { %v5095_v63 = vsel %vm4967_vm11, %v4581_v41, 0.0  ;;  %v4583_v57 = vpop.f32.mrb[33].mxu0  ;;  %v4843_v19 = vpop.f32.mrb[33].mxu1  ;;  %v5199_v24 = vsel %vm13756_vm2, %v4841_v33, 0.0  ;;  %vm5078_vm11 = vcmp.eq.s32.totalorder %v13762_v49, %v4958_v28  ;;  %vm13836_vm2 = vcmp.eq.s32.totalorder %v8381_v15, %v4907_v2 }
 0x737   :  { %5223 = vadd.xlane.f32.xlu1 %v5095_v63  ;;  %v4585_v7 = vpop.f32.mrb[34].mxu0  ;;  %v4845_v38 = vpop.f32.mrb[34].mxu1  ;;  %v5096_v63 = vsel %vm4968_vm4, %v4583_v57, 0.0  ;;  %v4957_v57 = vand.u32 31, %v13358_v45  ;;  %v15709_v28 = vand.u32 31, %v13438_v12 }
 0x738   :  { %v5097_v39 = vsel %vm4969_vm14, %v4585_v7, 0.0  ;;  %v4587_v0 = vpop.f32.mrb[35].mxu0  ;;  %v4847_v55 = vpop.f32.mrb[35].mxu1  ;;  %v5201_v13 = vsel %vm5073_vm0, %v4845_v38, 0.0 }
 0x739   :  { %5225 = vadd.xlane.f32.xlu0 %v5097_v39  ;;  %v5202_v52 = vsel %vm5074_vm12, %v4847_v55, 0.0  ;;  %vm13787_vm3 = vcmp.eq.s32.totalorder %v8381_v15, %v4957_v57  ;;  %vm5076_vm6 = vcmp.eq.s32.totalorder %v13762_v49, %v4957_v57  ;;  %vm13848_vm14 = vcmp.eq.s32.totalorder %v13762_v49, %v15709_v28 }
 0x73a   :  { %vm4976_vm12 = vcmp.eq.s32.totalorder %v13762_v49, %v4907_v2 }
 0x73b   :  { %5327 = vadd.xlane.f32.xlu1 %v5199_v24  ;;  %v5098_v24 = vsel %vm13769_vm9, %v4587_v0, 0.0 }
 0x73d   :  { %5329 = vadd.xlane.f32.xlu0 %v5201_v13  ;;  %v4591_v41 = vpop.f32.mrb[36].mxu0  ;;  %v4851_v33 = vpop.f32.mrb[36].mxu1  ;;  %v5200_v13 = vsel %vm5072_vm1, %v4843_v19, 0.0 }
 0x73e   :  { %v4593_v7 = vpop.f32.mrb[37].mxu0  ;;  %v4853_v29 = vpop.f32.mrb[37].mxu1 }
 0x73f   :  { %5351 = vadd.xlane.f32.xlu1 %v5096_v63  ;;  %v4595_v39 = vpop.f32.mrb[38].mxu0  ;;  %v4855_v62 = vpop.f32.mrb[38].mxu1  ;;  %v5099_v63 = vsel %vm4971_vm7, %v4591_v41, 0.0  ;;  %v5100_v0 = vsel %vm4972_vm8, %v4593_v7, 0.0 }
 0x740   :  { %v4597_v11 = vpop.f32.mrb[39].mxu0  ;;  %v4857_v38 = vpop.f32.mrb[39].mxu1  ;;  %v5205_v40 = vsel %vm5077_vm13, %v4855_v62, 0.0 }
 0x741   :  { %5353 = vadd.xlane.f32.xlu0 %v5098_v24  ;;  %v5101_v24 = vsel %vm13782_vm10, %v4595_v39, 0.0  ;;  %v5102_v47 = vsel %vm13809_vm5, %v4597_v11, 0.0  ;;  %v15169_v11 = vand.u32 31, %v13441_v9  ;;  %v5206_v5 = vsel %vm5078_vm11, %v4857_v38, 0.0 }
 0x743   :  { %5455 = vadd.xlane.f32.xlu1 %v5200_v13  ;;  %v5203_v13 = vsel %vm13787_vm3, %v4851_v33, 0.0  ;;  %vm13874_vm9 = vcmp.eq.s32.totalorder %v13762_v49, %v15169_v11 }
 0x745   :  { %5457 = vadd.xlane.f32.xlu0 %v5202_v52  ;;  %v4601_v53 = vpop.f32.mrb[40].mxu0  ;;  %v13792_v61 = vpop.f32.mrb[40].mxu1 }
 0x746   :  { %v13794_v45 = vpop.f32.mrb[41].mxu0  ;;  %v13796_v55 = vpop.f32.mrb[41].mxu1  ;;  %v5103_v7 = vsel %vm13836_vm2, %v4601_v53, 0.0 }
 0x747   :  { %5227 = vadd.xlane.f32.xlu1 %v5099_v63  ;;  %v4605_v19 = vpop.f32.mrb[42].mxu0  ;;  %v4865_v41 = vpop.f32.mrb[42].mxu1  ;;  %v5204_v63 = vsel %vm5076_vm6, %v4853_v29, 0.0  ;;  %v4960_v29 = vand.u32 31, %v13385_v22 }
 0x748   :  { %v13802_v52 = vpop.f32.mrb[43].mxu0  ;;  %v13804_v6 = vpop.f32.mrb[43].mxu1 }
 0x749   :  { %5229 = vadd.xlane.f32.xlu0 %v5101_v24  ;;  %vm5081_vm1 = vcmp.eq.s32.totalorder %v8381_v15, %v4960_v29  ;;  %vm5082_vm3 = vcmp.eq.s32.totalorder %v13762_v49, %v4960_v29 }
 0x74b   :  { %5331 = vadd.xlane.f32.xlu1 %v5203_v13 }
 0x74d   :  { %5333 = vadd.xlane.f32.xlu0 %v5205_v40  ;;  %v13814_v33 = vpop.f32.mrb[44].mxu0  ;;  %v13816_v39 = vpop.f32.mrb[44].mxu1  ;;  %v4908_v40 = vand.u32 31, %v13377_v37  ;;  %v5209_v37 = vsel %vm5081_vm1, %v4865_v41, 0.0 }
 0x74e   :  { %v13818_v25 = vpop.f32.mrb[45].mxu0  ;;  %v13820_v24 = vpop.f32.mrb[45].mxu1 }
 0x74f   :  { %5355 = vadd.xlane.f32.xlu1 %v5100_v0  ;;  %v13823_v48 = vpop.f32.mrb[46].mxu0  ;;  %v13825_v62 = vpop.f32.mrb[46].mxu1  ;;  %v4959_v0 = vand.u32 31, %v13382_v42  ;;  %vm13853_vm0 = vcmp.eq.s32.totalorder %v8381_v15, %v4908_v40  ;;  %vm4978_vm7 = vcmp.eq.s32.totalorder %v13762_v49, %v4908_v40  ;;  %v5104_v42 = vsel %vm4976_vm12, %v13794_v45, 0.0 }
 0x750   :  { %v13829_v14 = vpop.f32.mrb[47].mxu0  ;;  %v13831_v13 = vpop.f32.mrb[47].mxu1  ;;  %v5105_v35 = vsel %vm13853_vm0, %v4605_v19, 0.0  ;;  %v5106_v2 = vsel %vm4978_vm7, %v13802_v52, 0.0  ;;  %v4961_v45 = vand.u32 31, %v13410_v31  ;;  %v5210_v40 = vsel %vm5082_vm3, %v13804_v6, 0.0 }
 0x751   :  { %5357 = vadd.xlane.f32.xlu0 %v5102_v47  ;;  %vm13858_vm4 = vcmp.eq.s32.totalorder %v8381_v15, %v4959_v0  ;;  %vm5080_vm10 = vcmp.eq.s32.totalorder %v13762_v49, %v4959_v0  ;;  %v4962_v52 = vand.u32 31, %v13413_v34 }
 0x752   :  { %v5207_v26 = vsel %vm13858_vm4, %v13792_v61, 0.0  ;;  %v4909_v61 = vand.u32 31, %v13402_v56  ;;  %v4910_v56 = vand.u32 31, %v13405_v1  ;;  %v5208_v41 = vsel %vm5080_vm10, %v13796_v55, 0.0 }
 0x753   :  { %5459 = vadd.xlane.f32.xlu1 %v5204_v63  ;;  %vm5083_vm5 = vcmp.eq.s32.totalorder %v8381_v15, %v4961_v45  ;;  %vm5085_vm6 = vcmp.eq.s32.totalorder %v8381_v15, %v4962_v52  ;;  %vm5084_vm0 = vcmp.eq.s32.totalorder %v13762_v49, %v4961_v45  ;;  %vm5086_vm4 = vcmp.eq.s32.totalorder %v13762_v49, %v4962_v52 }
 0x754   :  { %vm4979_vm13 = vcmp.eq.s32.totalorder %v8381_v15, %v4909_v61  ;;  %vm4981_vm8 = vcmp.eq.s32.totalorder %v8381_v15, %v4910_v56  ;;  %v5211_v6 = vsel %vm5083_vm5, %v13816_v39, 0.0  ;;  %vm4980_vm11 = vcmp.eq.s32.totalorder %v13762_v49, %v4909_v61 }
 0x755   :  { %5461 = vadd.xlane.f32.xlu0 %v5206_v5  ;;  %v13863_v38 = vpop.f32.mrb[48].mxu0  ;;  %v13865_v53 = vpop.f32.mrb[48].mxu1  ;;  %v5107_v0 = vsel %vm4979_vm13, %v13814_v33, 0.0  ;;  %v5109_v31 = vsel %vm4981_vm8, %v13823_v48, 0.0  ;;  %v5213_v34 = vsel %vm5085_vm6, %v13825_v62, 0.0  ;;  %vm4982_vm2 = vcmp.eq.s32.totalorder %v13762_v49, %v4910_v56  ;;  %v15764_v5 = vld [vmem:[#allocation12_spill] sm:$0xff] }
 0x756   :  { %v13867_v57 = vpop.f32.mrb[49].mxu0  ;;  %v13869_v63 = vpop.f32.mrb[49].mxu1  ;;  %v4911_v39 = vand.u32 31, %v13430_v46  ;;  %v5110_v61 = vsel %vm4982_vm2, %v13829_v14, 0.0  ;;  %v4912_v62 = vand.u32 31, %v13433_v4  ;;  %v5214_v56 = vsel %vm5086_vm4, %v13831_v13, 0.0 }
 0x757   :  { %5231 = vadd.xlane.f32.xlu1 %v5103_v7  ;;  %v13878_v28 = vpop.f32.mrb[50].mxu0  ;;  %v13883_v58 = vpop.f32.mrb[50].mxu1  ;;  %v15718_v46 = vand.u32 31, %v13438_v12  ;;  %v15719_v52 = vand.u32 31, %v13441_v9  ;;  %v4913_v12 = vand.u32 31, %v13458_v10 }
 0x758   :  { %v13890_v11 = vpop.f32.mrb[51].mxu0  ;;  %v13892_v43 = vpop.f32.mrb[51].mxu1  ;;  %vm4983_vm1 = vcmp.eq.s32.totalorder %v8381_v15, %v4911_v39  ;;  %vm4985_vm12 = vcmp.eq.s32.totalorder %v8381_v15, %v4912_v62  ;;  %vm4984_vm3 = vcmp.eq.s32.totalorder %v13762_v49, %v4911_v39  ;;  %vm4986_vm13 = vcmp.eq.s32.totalorder %v13762_v49, %v4912_v62 }
 0x759   :  { %5233 = vadd.xlane.f32.xlu0 %v5105_v35  ;;  %v5218_v7 = vsel %vm13874_vm9, %v13892_v43, 0.0  ;;  %vm5087_vm7 = vcmp.eq.s32.totalorder %v8381_v15, %v15718_v46  ;;  %v5111_v45 = vsel %vm4983_vm1, %v13863_v38, 0.0  ;;  %vm5089_vm10 = vcmp.eq.s32.totalorder %v8381_v15, %v15719_v52 }
 0x75a   :  { %v5215_v13 = vsel %vm5087_vm7, %v13865_v53, 0.0  ;;  %v5217_v38 = vsel %vm5089_vm10, %v13883_v58, 0.0  ;;  %vm4987_vm8 = vcmp.eq.s32.totalorder %v8381_v15, %v4913_v12  ;;  %v5114_v10 = vsel %vm4986_vm13, %v13890_v11, 0.0 }
 0x75b   :  { %5335 = vadd.xlane.f32.xlu1 %v5207_v26  ;;  %vm4988_vm6 = vcmp.eq.s32.totalorder %v13762_v49, %v4913_v12  ;;  %v4915_v58 = vand.u32 31, %v13478_v21 }
 0x75d   :  { %5337 = vadd.xlane.f32.xlu0 %v5209_v37  ;;  %v13901_v19 = vpop.f32.mrb[52].mxu0  ;;  %vm4991_vm2 = vcmp.eq.s32.totalorder %v8381_v15, %v4915_v58  ;;  %vm4992_vm4 = vcmp.eq.s32.totalorder %v13762_v49, %v4915_v58 }
 0x75e   :  { %v13904_v22 = vpop.f32.mrb[53].mxu0 }
 0x75f   :  { %5359 = vadd.xlane.f32.xlu1 %v5104_v42  ;;  %v13907_v35 = vpop.f32.mrb[54].mxu0  ;;  %v5108_v42 = vsel %vm4980_vm11, %v13818_v25, 0.0  ;;  %v5212_v25 = vsel %vm5084_vm0, %v13820_v24, 0.0  ;;  %v5116_v39 = vsel %vm4988_vm6, %v13904_v22, 0.0  ;;  %v4917_v22 = vand.u32 31, %v13494_v60 }
 0x760   :  { %v13910_v26 = vpop.f32.mrb[55].mxu0 }
 0x761   :  { %5361 = vadd.xlane.f32.xlu0 %v5106_v2  ;;  %vm4996_vm10 = vcmp.eq.s32.totalorder %v13762_v49, %v4917_v22 }
 0x763   :  { %5463 = vadd.xlane.f32.xlu1 %v5208_v41 }
 0x765   :  { %5465 = vadd.xlane.f32.xlu0 %v5210_v40  ;;  %v13922_v29 = vpop.f32.mrb[56].mxu0  ;;  %v5113_v40 = vsel %vm4985_vm12, %v13878_v28, 0.0  ;;  %v4914_v28 = vand.u32 31, %v13461_v50  ;;  %v5115_v50 = vsel %vm4987_vm8, %v13901_v19, 0.0  ;;  %vm4995_vm12 = vcmp.eq.s32.totalorder %v8381_v15, %v4917_v22 }
 0x766   :  { %v13924_v37 = vpop.f32.mrb[57].mxu0 }
 0x767   :  { %5235 = vadd.xlane.f32.xlu1 %v5107_v0  ;;  %v13926_v1 = vpop.f32.mrb[58].mxu0  ;;  %vm4989_vm5 = vcmp.eq.s32.totalorder %v8381_v15, %v4914_v28  ;;  %vm4990_vm11 = vcmp.eq.s32.totalorder %v13762_v49, %v4914_v28  ;;  %v4923_v28 = vand.u32 31, %v13527_v27 }
 0x768   :  { %v13930_v55 = vpop.f32.mrb[59].mxu0  ;;  %v5118_v21 = vsel %vm4990_vm11, %v13910_v26, 0.0 }
 0x769   :  { %5237 = vadd.xlane.f32.xlu0 %v5109_v31  ;;  %v5112_v31 = vsel %vm4984_vm3, %v13867_v57, 0.0  ;;  %v5117_v57 = vsel %vm4989_vm5, %v13907_v35, 0.0 }
 0x76b   :  { %5339 = vadd.xlane.f32.xlu1 %v5211_v6 }
 0x76d   :  { %5341 = vadd.xlane.f32.xlu0 %v5213_v34  ;;  %v13936_v33 = vpop.f32.mrb[60].mxu0 }
 0x76e   :  { %v13939_v48 = vpop.f32.mrb[61].mxu0 }
 0x76f   :  { %5363 = vadd.xlane.f32.xlu1 %v5108_v42  ;;  %v13943_v2 = vpop.f32.mrb[62].mxu0  ;;  %v4916_v42 = vand.u32 31, %v13481_v44  ;;  %v5119_v44 = vsel %vm4991_vm2, %v13922_v29, 0.0 }
 0x770   :  { %v13946_v41 = vpop.f32.mrb[63].mxu0 }
 0x771   :  { %5365 = vadd.xlane.f32.xlu0 %v5110_v61  ;;  %vm4993_vm0 = vcmp.eq.s32.totalorder %v8381_v15, %v4916_v42  ;;  %vm4994_vm1 = vcmp.eq.s32.totalorder %v13762_v49, %v4916_v42 }
 0x772   :  { %v5121_v35 = vsel %vm4993_vm0, %v13926_v1, 0.0  ;;  %v5122_v60 = vsel %vm4994_vm1, %v13930_v55, 0.0  ;;  %vm5007_vm0 = vcmp.eq.s32.totalorder %v8381_v15, %v4923_v28  ;;  %vm5008_vm1 = vcmp.eq.s32.totalorder %v13762_v49, %v4923_v28 }
 0x773   :  { %5467 = vadd.xlane.f32.xlu1 %v5212_v25  ;;  %v4918_v25 = vand.u32 31, %v13497_v17  ;;  %v5123_v17 = vsel %vm4995_vm12, %v13936_v33, 0.0  ;;  %v4921_v33 = vand.u32 31, %v15671_v30 }
 0x775   :  { %5469 = vadd.xlane.f32.xlu0 %v5214_v56  ;;  %v13957_v14 = vpop.f32.mrb[64].mxu0  ;;  %v5120_v56 = vsel %vm4992_vm4, %v13924_v37, 0.0  ;;  %vm4997_vm7 = vcmp.eq.s32.totalorder %v8381_v15, %v4918_v25  ;;  %v4920_v37 = vand.u32 31, %v15670_v16  ;;  %vm4998_vm3 = vcmp.eq.s32.totalorder %v13762_v49, %v4918_v25 }
 0x776   :  { %v13960_v4 = vpop.f32.mrb[65].mxu0  ;;  %v5125_v1 = vsel %vm4997_vm7, %v13943_v2, 0.0  ;;  %v5126_v2 = vsel %vm4998_vm3, %v13946_v41, 0.0  ;;  %vm5003_vm5 = vcmp.eq.s32.totalorder %v8381_v15, %v4921_v33  ;;  %vm5004_vm11 = vcmp.eq.s32.totalorder %v13762_v49, %v4921_v33 }
 0x777   :  { %5239 = vadd.xlane.f32.xlu1 %v5111_v45  ;;  %v13962_v24 = vpop.f32.mrb[66].mxu0  ;;  %vm5001_vm13 = vcmp.eq.s32.totalorder %v8381_v15, %v4920_v37  ;;  %vm5002_vm2 = vcmp.eq.s32.totalorder %v13762_v49, %v4920_v37 }
 0x778   :  { %v13966_v0 = vpop.f32.mrb[67].mxu0 }
 0x779   :  { %5241 = vadd.xlane.f32.xlu0 %v5113_v40  ;;  %v4919_v40 = vand.u32 31, %v15669_v32  ;;  %v5129_v32 = vsel %vm5001_vm13, %v13962_v24, 0.0 }
 0x77b   :  { %5343 = vadd.xlane.f32.xlu1 %v5215_v13  ;;  %v5124_v13 = vsel %vm4996_vm10, %v13939_v48, 0.0  ;;  %vm4999_vm8 = vcmp.eq.s32.totalorder %v8381_v15, %v4919_v40  ;;  %vm5000_vm6 = vcmp.eq.s32.totalorder %v13762_v49, %v4919_v40 }
 0x77c   :  { %v5127_v48 = vsel %vm4999_vm8, %v13957_v14, 0.0  ;;  %v4922_v14 = vand.u32 31, %v13516_v54 }
 0x77d   :  { %5345 = vadd.xlane.f32.xlu0 %v5217_v38  ;;  %v13976_v53 = vpop.f32.mrb[68].mxu0 }
 0x77e   :  { %v13979_v9 = vpop.f32.mrb[69].mxu0  ;;  %v5131_v38 = vsel %vm5003_vm5, %v13976_v53, 0.0  ;;  %vm5005_vm4 = vcmp.eq.s32.totalorder %v8381_v15, %v4922_v14  ;;  %vm5006_vm12 = vcmp.eq.s32.totalorder %v13762_v49, %v4922_v14 }
 0x77f   :  { %5367 = vadd.xlane.f32.xlu1 %v5112_v31  ;;  %v13982_v6 = vpop.f32.mrb[70].mxu0  ;;  %v5128_v31 = vsel %vm5000_vm6, %v13960_v4, 0.0  ;;  %v5132_v53 = vsel %vm5004_vm11, %v13979_v9, 0.0  ;;  %v14067_v4 = vpop.f32.mrb[52].mxu1  ;;  %v4925_v9 = vand.u32 31, %v13541_v3 }
 0x780   :  { %v13985_v34 = vpop.f32.mrb[71].mxu0  ;;  %v14072_v54 = vpop.f32.mrb[53].mxu1 }
 0x781   :  { %5369 = vadd.xlane.f32.xlu0 %v5114_v10  ;;  %vm5011_vm7 = vcmp.eq.s32.totalorder %v8381_v15, %v4925_v9  ;;  %v5134_v3 = vsel %vm5006_vm12, %v13985_v34, 0.0  ;;  %vm5012_vm3 = vcmp.eq.s32.totalorder %v13762_v49, %v4925_v9 }
 0x783   :  { %5243 = vadd.xlane.f32.xlu1 %v5115_v50  ;;  %v5130_v50 = vsel %vm5002_vm2, %v13966_v0, 0.0  ;;  %v5133_v0 = vsel %vm5005_vm4, %v13982_v6, 0.0 }
 0x785   :  { %5245 = vadd.xlane.f32.xlu0 %v5117_v57  ;;  %v13994_v11 = vpop.f32.mrb[72].mxu0 }
 0x786   :  { %v13997_v61 = vpop.f32.mrb[73].mxu0  ;;  %v5135_v58 = vsel %vm5007_vm0, %v13994_v11, 0.0 }
 0x787   :  { %5371 = vadd.xlane.f32.xlu1 %v5116_v39  ;;  %v14000_v19 = vpop.f32.mrb[74].mxu0  ;;  %v5136_v11 = vsel %vm5008_vm1, %v13997_v61, 0.0  ;;  %v4927_v61 = vand.u32 31, %v13555_v51 }
 0x788   :  { %v14003_v62 = vpop.f32.mrb[75].mxu0 }
 0x789   :  { %5373 = vadd.xlane.f32.xlu0 %v5118_v21  ;;  %v4924_v21 = vand.u32 31, %v13530_v8  ;;  %vm5015_vm8 = vcmp.eq.s32.totalorder %v8381_v15, %v4927_v61  ;;  %vm5016_vm6 = vcmp.eq.s32.totalorder %v13762_v49, %v4927_v61 }
 0x78b   :  { %5247 = vadd.xlane.f32.xlu1 %v5119_v44  ;;  %v14084_v44 = vpop.f32.mrb[54].mxu1  ;;  %vm5009_vm10 = vcmp.eq.s32.totalorder %v8381_v15, %v4924_v21  ;;  %vm5010_vm13 = vcmp.eq.s32.totalorder %v13762_v49, %v4924_v21 }
 0x78c   :  { %v14091_v22 = vpop.f32.mrb[55].mxu1  ;;  %v5137_v34 = vsel %vm5009_vm10, %v14000_v19, 0.0 }
 0x78d   :  { %5249 = vadd.xlane.f32.xlu0 %v5121_v35  ;;  %v14012_v26 = vpop.f32.mrb[76].mxu0 }
 0x78e   :  { %v14015_v46 = vpop.f32.mrb[77].mxu0  ;;  %v5139_v35 = vsel %vm5011_vm7, %v14012_v26, 0.0 }
 0x78f   :  { %5375 = vadd.xlane.f32.xlu1 %v5120_v56  ;;  %v14018_v29 = vpop.f32.mrb[78].mxu0  ;;  %v5140_v26 = vsel %vm5012_vm3, %v14015_v46, 0.0 }
 0x790   :  { %v14021_v45 = vpop.f32.mrb[79].mxu0 }
 0x791   :  { %5377 = vadd.xlane.f32.xlu0 %v5122_v60  ;;  %v4926_v60 = vand.u32 31, %v13544_v20  ;;  %v4929_v20 = vand.u32 31, %v13569_v18 }
 0x793   :  { %5251 = vadd.xlane.f32.xlu1 %v5123_v17  ;;  %v5138_v17 = vsel %vm5010_vm13, %v14003_v62, 0.0  ;;  %vm5013_vm5 = vcmp.eq.s32.totalorder %v8381_v15, %v4926_v60  ;;  %vm5014_vm11 = vcmp.eq.s32.totalorder %v13762_v49, %v4926_v60  ;;  %v4928_v62 = vand.u32 31, %v13558_v36  ;;  %v15726_v60 = vld [vmem:[#allocation10_spill] sm:$0xff] }
 0x794   :  { %vm5019_vm2 = vcmp.eq.s32.totalorder %v8381_v15, %v4929_v20  ;;  %vm5020_vm4 = vcmp.eq.s32.totalorder %v13762_v49, %v4929_v20  ;;  %v4931_v36 = vand.u32 31, %v13583_v59  ;;  %vm5479_vm13 = vcmask 7168  }
 0x795   :  { %5253 = vadd.xlane.f32.xlu0 %v5125_v1  ;;  %v14030_v55 = vpop.f32.mrb[80].mxu0  ;;  %v5141_v1 = vsel %vm5013_vm5, %v14018_v29, 0.0  ;;  %vm5017_vm0 = vcmp.eq.s32.totalorder %v8381_v15, %v4928_v62  ;;  %vm5018_vm1 = vcmp.eq.s32.totalorder %v13762_v49, %v4928_v62 }
 0x796   :  { %v14033_v52 = vpop.f32.mrb[81].mxu0  ;;  %v5143_v19 = vsel %vm5015_vm8, %v14030_v55, 0.0  ;;  %vm5023_vm12 = vcmp.eq.s32.totalorder %v8381_v15, %v4931_v36  ;;  %vm5024_vm10 = vcmp.eq.s32.totalorder %v13762_v49, %v4931_v36 }
 0x797   :  { %5379 = vadd.xlane.f32.xlu1 %v5124_v13  ;;  %v14037_v16 = vpop.f32.mrb[82].mxu0  ;;  %v5144_v55 = vsel %vm5016_vm6, %v14033_v52, 0.0  ;;  %v5142_v13 = vsel %vm5014_vm11, %v14021_v45, 0.0  ;;  %v4930_v45 = vand.u32 31, %v13572_v23  ;;  %v15720_v23 = vld [vmem:[#allocation6_spill] sm:$0xff] }
 0x798   :  { %v14040_v12 = vpop.f32.mrb[83].mxu0 }
 0x799   :  { %5381 = vadd.xlane.f32.xlu0 %v5126_v2  ;;  %v5145_v2 = vsel %vm5017_vm0, %v14037_v16, 0.0  ;;  %vm5021_vm7 = vcmp.eq.s32.totalorder %v8381_v15, %v4930_v45  ;;  %vm5022_vm3 = vcmp.eq.s32.totalorder %v13762_v49, %v4930_v45 }
 0x79b   :  { %5257 = vadd.xlane.f32.xlu1 %v5129_v32 }
 0x79d   :  { %5255 = vadd.xlane.f32.xlu0 %v5127_v48  ;;  %v14047_v30 = vpop.f32.mrb[84].mxu0 }
 0x79e   :  { %v14050_v41 = vpop.f32.mrb[85].mxu0  ;;  %v5147_v29 = vsel %vm5019_vm2, %v14047_v30, 0.0  ;;  %v5146_v30 = vsel %vm5018_vm1, %v14040_v12, 0.0 }
 0x79f   :  { %5259 = vadd.xlane.f32.xlu1 %v5131_v38  ;;  %v14054_v24 = vpop.f32.mrb[86].mxu0  ;;  %v5148_v48 = vsel %vm5020_vm4, %v14050_v41, 0.0  ;;  %v4933_v41 = vand.u32 31, %v15720_v23  ;;  %v15728_v23 = vld [vmem:[#allocation11_spill] sm:$0xff] }
 0x7a0   :  { %v14057_v10 = vpop.f32.mrb[87].mxu0  ;;  %v5149_v12 = vsel %vm5021_vm7, %v14054_v24, 0.0 }
 0x7a1   :  { %5383 = vadd.xlane.f32.xlu0 %v5128_v31  ;;  %vm5027_vm8 = vcmp.eq.s32.totalorder %v8381_v15, %v4933_v41  ;;  %v5150_v21 = vsel %vm5022_vm3, %v14057_v10, 0.0  ;;  %vm14176_vm6 = vcmp.eq.s32.totalorder %v13762_v49, %v4933_v41  ;;  %v4937_v41 = vand.u32 31, %v15728_v23 }
 0x7a3   :  { %5387 = vadd.xlane.f32.xlu1 %v5132_v53 }
 0x7a5   :  { %5385 = vadd.xlane.f32.xlu0 %v5130_v50  ;;  %v14065_v27 = vpop.f32.mrb[88].mxu0 }
 0x7a6   :  { %v14070_v57 = vpop.f32.mrb[89].mxu0  ;;  %v5151_v16 = vsel %vm5023_vm12, %v14065_v27, 0.0  ;;  %vm5035_vm12 = vcmp.eq.s32.totalorder %v8381_v15, %v4937_v41 }
 0x7a7   :  { %5263 = vadd.xlane.f32.xlu1 %v5135_v58  ;;  %v14076_v42 = vpop.f32.mrb[90].mxu0  ;;  %v15721_v58 = vld [vmem:[#allocation5_spill] sm:$0xff]  ;;  %v5152_v27 = vsel %vm5024_vm10, %v14070_v57, 0.0  ;;  %vm14240_vm10 = vcmp.eq.s32.totalorder %v13762_v49, %v4937_v41 }
 0x7a8   :  { %v14079_v39 = vpop.f32.mrb[91].mxu0  ;;  %v4932_v9 = vand.u32 31, %v15721_v58 }
 0x7a9   :  { %5261 = vadd.xlane.f32.xlu0 %v5133_v0 }
 0x7aa   :  { %vm14163_vm5 = vcmp.eq.s32.totalorder %v8381_v15, %v4932_v9  ;;  %vm5026_vm11 = vcmp.eq.s32.totalorder %v13762_v49, %v4932_v9  ;;  %v15729_v9 = vld [vmem:[#allocation9_spill] sm:$0xff] }
 0x7ab   :  { %5391 = vadd.xlane.f32.xlu1 %v5136_v11  ;;  %v5154_v45 = vsel %vm5026_vm11, %v14079_v39, 0.0 }
 0x7ad   :  { %5389 = vadd.xlane.f32.xlu0 %v5134_v3  ;;  %v14089_v6 = vpop.f32.mrb[92].mxu0 }
 0x7ae   :  { %v14094_v8 = vpop.f32.mrb[93].mxu0  ;;  %v5155_v57 = vsel %vm5027_vm8, %v14089_v6, 0.0  ;;  %v5153_v6 = vsel %vm14163_vm5, %v14076_v42, 0.0 }
 0x7af   :  { %5267 = vadd.xlane.f32.xlu1 %v5139_v35  ;;  %v14098_v25 = vpop.f32.mrb[94].mxu0  ;;  %v5156_v36 = vsel %vm14176_vm6, %v14094_v8, 0.0 }
 0x7b0   :  { %v14101_v56 = vpop.f32.mrb[95].mxu0 }
 0x7b1   :  { %5265 = vadd.xlane.f32.xlu0 %v5137_v34 }
 0x7b3   :  { %5395 = vadd.xlane.f32.xlu1 %v5140_v26  ;;  %v4935_v26 = vand.u32 31, %v15726_v60  ;;  %v15734_v60 = vld [vmem:[#allocation14_spill] sm:$0xff] }
 0x7b5   :  { %5393 = vadd.xlane.f32.xlu0 %v5138_v17  ;;  %v14109_v51 = vpop.f32.mrb[96].mxu0  ;;  %vm5031_vm2 = vcmp.eq.s32.totalorder %v8381_v15, %v4935_v26  ;;  %vm5032_vm4 = vcmp.eq.s32.totalorder %v13762_v49, %v4935_v26  ;;  %v4939_v26 = vand.u32 31, %v15734_v60 }
 0x7b6   :  { %v14112_v37 = vpop.f32.mrb[97].mxu0  ;;  %v5159_v8 = vsel %vm5031_vm2, %v14109_v51, 0.0 }
 0x7b7   :  { %5271 = vadd.xlane.f32.xlu1 %v5143_v19  ;;  %v14116_v46 = vpop.f32.mrb[98].mxu0  ;;  %v5160_v51 = vsel %vm5032_vm4, %v14112_v37, 0.0  ;;  %vm5039_vm8 = vcmp.eq.s32.totalorder %v8381_v15, %v4939_v26  ;;  %vm5040_vm6 = vcmp.eq.s32.totalorder %v13762_v49, %v4939_v26 }
 0x7b8   :  { %v14119_v40 = vpop.f32.mrb[99].mxu0 }
 0x7b9   :  { %5269 = vadd.xlane.f32.xlu0 %v5141_v1 }
 0x7bb   :  { %5399 = vadd.xlane.f32.xlu1 %v5144_v55  ;;  %v15727_v55 = vld [vmem:[#allocation7_spill] sm:$0xff] }
 0x7bd   :  { %5397 = vadd.xlane.f32.xlu0 %v5142_v13  ;;  %v14127_v18 = vpop.f32.mrb[100].mxu0  ;;  %v4934_v13 = vand.u32 31, %v15727_v55 }
 0x7be   :  { %v14130_v33 = vpop.f32.mrb[101].mxu0  ;;  %v5163_v37 = vsel %vm5035_vm12, %v14127_v18, 0.0 }
 0x7bf   :  { %5275 = vadd.xlane.f32.xlu1 %v5147_v29  ;;  %v14134_v52 = vpop.f32.mrb[102].mxu0  ;;  %vm5029_vm0 = vcmp.eq.s32.totalorder %v8381_v15, %v4934_v13  ;;  %vm5030_vm1 = vcmp.eq.s32.totalorder %v13762_v49, %v4934_v13 }
 0x7c0   :  { %v14137_v32 = vpop.f32.mrb[103].mxu0 }
 0x7c1   :  { %5273 = vadd.xlane.f32.xlu0 %v5145_v2 }
 0x7c3   :  { %5403 = vadd.xlane.f32.xlu1 %v5148_v48  ;;  %v15755_v48 = vld [vmem:[#allocation21_spill] sm:$0xff] }
 0x7c4   :  { %v5224_v59 = vpop.xlane.xlu1 %5223 }
 0x7c5   :  { %5401 = vadd.xlane.f32.xlu0 %v5146_v30  ;;  %v14145_v38 = vpop.f32.mrb[104].mxu0 }
 0x7c6   :  { %v5226_v28 = vpop.xlane.xlu0 %5225  ;;  %v14148_v31 = vpop.f32.mrb[105].mxu0 }
 0x7c7   :  { %5279 = vadd.xlane.f32.xlu1 %v5151_v16  ;;  %v14152_v14 = vpop.f32.mrb[106].mxu0 }
 0x7c8   :  { %v5328_v53 = vpop.xlane.xlu1 %5327  ;;  %v14155_v50 = vpop.f32.mrb[107].mxu0 }
 0x7c9   :  { %5277 = vadd.xlane.f32.xlu0 %v5149_v12  ;;  %v5157_v12 = vsel %vm5029_vm0, %v14098_v25, 0.0 }
 0x7ca   :  { %v5330_v0 = vpop.xlane.xlu0 %5329 }
 0x7cb   :  { %5407 = vadd.xlane.f32.xlu1 %v5152_v27  ;;  %v4936_v27 = vand.u32 31, %v15729_v9 }
 0x7cc   :  { %v5352_v11 = vpop.xlane.xlu1 %5351 }
 0x7cd   :  { %v14168_v3 = vsel %vm5479_vm13, %v5224_v59, %v5352_v11  ;;  %5405 = vadd.xlane.f32.xlu0 %v5150_v21  ;;  %v14170_v35 = vpop.f32.mrb[108].mxu0  ;;  %v5158_v21 = vsel %vm5030_vm1, %v14101_v56, 0.0  ;;  %vm14227_vm7 = vcmp.eq.s32.totalorder %v8381_v15, %v4936_v27  ;;  %vm5034_vm3 = vcmp.eq.s32.totalorder %v13762_v49, %v4936_v27 }
 0x7ce   :  { %v5354_v61 = vpop.xlane.xlu0 %5353  ;;  %v14173_v34 = vpop.f32.mrb[109].mxu0  ;;  %v5161_v18 = vsel %vm14227_vm7, %v14116_v46, 0.0  ;;  %v5162_v23 = vsel %vm5034_vm3, %v14119_v40, 0.0 }
 0x7cf   :  { %v14182_v17 = vsel %vm5479_vm13, %v5226_v28, %v5354_v61  ;;  %5283 = vadd.xlane.f32.xlu1 %v5155_v57  ;;  %v14184_v19 = vpop.f32.mrb[110].mxu0 }
 0x7d0   :  { %v5574_v20 = vpack.c.bf16 %v14182_v17, %v14168_v3  ;;  %v5456_v1 = vpop.xlane.xlu1 %5455  ;;  %v14191_v62 = vpop.f32.mrb[111].mxu0  ;;  %v5608_v17 = vld [vmem:[%s14890_s6 + $0x10] sm:$0xff] }
 0x7d1   :  { %v14196_v29 = vsel %vm5479_vm13, %v5328_v53, %v5456_v1  ;;  %5281 = vadd.xlane.f32.xlu0 %v5153_v6 }
 0x7d2   :  { %v5458_v2 = vpop.xlane.xlu0 %5457 }
 0x7d3   :  { %v14203_v42 = vsel %vm5479_vm13, %v5330_v0, %v5458_v2  ;;  %5411 = vadd.xlane.f32.xlu1 %v5156_v36  ;;  %v15735_v2 = vld [vmem:[#allocation13_spill] sm:$0xff] }
 0x7d4   :  { %v5228_v30 = vpop.xlane.xlu1 %5227 }
 0x7d5   :  { %5409 = vadd.xlane.f32.xlu0 %v5154_v45  ;;  %v14209_v59 = vpop.f32.mrb[112].mxu0  ;;  %v4938_v45 = vand.u32 31, %v15735_v2 }
 0x7d6   :  { %v5230_v16 = vpop.xlane.xlu0 %5229  ;;  %v14212_v28 = vpop.f32.mrb[113].mxu0 }
 0x7d7   :  { %5287 = vadd.xlane.f32.xlu1 %v5159_v8  ;;  %v14216_v39 = vpop.f32.mrb[114].mxu0  ;;  %v5164_v8 = vsel %vm14240_vm10, %v14130_v33, 0.0  ;;  %vm5037_vm5 = vcmp.eq.s32.totalorder %v8381_v15, %v4938_v45  ;;  %v5167_v33 = vsel %vm5039_vm8, %v14145_v38, 0.0  ;;  %vm5038_vm11 = vcmp.eq.s32.totalorder %v13762_v49, %v4938_v45 }
 0x7d8   :  { %v5332_v53 = vpop.xlane.xlu1 %5331  ;;  %v14219_v58 = vpop.f32.mrb[115].mxu0  ;;  %v5168_v38 = vsel %vm5040_vm6, %v14148_v31, 0.0  ;;  %v5166_v60 = vsel %vm5038_vm11, %v14137_v32, 0.0 }
 0x7d9   :  { %5285 = vadd.xlane.f32.xlu0 %v5157_v12 }
 0x7da   :  { %v5334_v0 = vpop.xlane.xlu0 %5333 }
 0x7db   :  { %5415 = vadd.xlane.f32.xlu1 %v5160_v51  ;;  %v15736_v51 = vld [vmem:[#allocation16_spill] sm:$0xff] }
 0x7dc   :  { %v5356_v11 = vpop.xlane.xlu1 %5355 }
 0x7dd   :  { %v14232_v24 = vsel %vm5479_vm13, %v5228_v30, %v5356_v11  ;;  %5413 = vadd.xlane.f32.xlu0 %v5158_v21  ;;  %v14234_v57 = vpop.f32.mrb[116].mxu0  ;;  %v5165_v21 = vsel %vm5037_vm5, %v14134_v52, 0.0 }
 0x7de   :  { %v5358_v61 = vpop.xlane.xlu0 %5357  ;;  %v14237_v10 = vpop.f32.mrb[117].mxu0 }
 0x7df   :  { %v14246_v6 = vsel %vm5479_vm13, %v5230_v16, %v5358_v61  ;;  %5291 = vadd.xlane.f32.xlu1 %v5163_v37  ;;  %v14248_v1 = vpop.f32.mrb[118].mxu0  ;;  %v15737_v37 = vld [vmem:[#allocation15_spill] sm:$0xff] }
 0x7e0   :  { %v5575_v55 = vpack.c.bf16 %v14246_v6, %v14232_v24  ;;  %v5460_v13 = vpop.xlane.xlu1 %5459  ;;  %v14255_v36 = vpop.f32.mrb[119].mxu0  ;;  %v4940_v61 = vand.u32 31, %v15737_v37 }
 0x7e1   :  { %v14260_v30 = vsel %vm5479_vm13, %v5332_v53, %v5460_v13  ;;  %5289 = vadd.xlane.f32.xlu0 %v5161_v18 }
 0x7e2   :  { %v5462_v16 = vpop.xlane.xlu0 %5461  ;;  %vm14291_vm0 = vcmp.eq.s32.totalorder %v8381_v15, %v4940_v61  ;;  %vm5042_vm1 = vcmp.eq.s32.totalorder %v13762_v49, %v4940_v61 }
 0x7e3   :  { %v14267_v46 = vsel %vm5479_vm13, %v5334_v0, %v5462_v16  ;;  %5419 = vadd.xlane.f32.xlu1 %v5164_v8  ;;  %v4941_v0 = vand.u32 31, %v15736_v51  ;;  %v15742_v8 = vld [vmem:[#allocation18_spill] sm:$0xff]  ;;  %v5170_v61 = vsel %vm5042_vm1, %v14155_v50, 0.0  ;;  %v15748_v50 = vld [vmem:[#allocation20_spill] sm:$0xff] }
 0x7e4   :  { %v5232_v12 = vpop.xlane.xlu1 %5231  ;;  %v4943_v16 = vand.u32 31, %v15742_v8 }
 0x7e5   :  { %5417 = vadd.xlane.f32.xlu0 %v5162_v23  ;;  %v14273_v53 = vpop.f32.mrb[120].mxu0  ;;  %vm5043_vm2 = vcmp.eq.s32.totalorder %v8381_v15, %v4941_v0  ;;  %vm14304_vm4 = vcmp.eq.s32.totalorder %v13762_v49, %v4941_v0 }
 0x7e6   :  { %v5234_v9 = vpop.xlane.xlu0 %5233  ;;  %v14276_v27 = vpop.f32.mrb[121].mxu0  ;;  %v5171_v31 = vsel %vm5043_vm2, %v14170_v35, 0.0  ;;  %v5169_v35 = vsel %vm14291_vm0, %v14152_v14, 0.0  ;;  %vm14330_vm12 = vcmp.eq.s32.totalorder %v8381_v15, %v4943_v16  ;;  %vm5048_vm10 = vcmp.eq.s32.totalorder %v13762_v49, %v4943_v16  ;;  %v15749_v14 = vld [vmem:[#allocation19_spill] sm:$0xff] }
 0x7e7   :  { %5295 = vadd.xlane.f32.xlu1 %v5167_v33  ;;  %v14280_v40 = vpop.f32.mrb[122].mxu0 }
 0x7e8   :  { %v5336_v11 = vpop.xlane.xlu1 %5335  ;;  %v14283_v25 = vpop.f32.mrb[123].mxu0 }
 0x7e9   :  { %5293 = vadd.xlane.f32.xlu0 %v5165_v21  ;;  %v15743_v21 = vld [vmem:[#allocation17_spill] sm:$0xff] }
 0x7ea   :  { %v5338_v56 = vpop.xlane.xlu0 %5337  ;;  %v4942_v37 = vand.u32 31, %v15743_v21 }
 0x7eb   :  { %5423 = vadd.xlane.f32.xlu1 %v5168_v38  ;;  %v5172_v38 = vsel %vm14304_vm4, %v14173_v34, 0.0 }
 0x7ec   :  { %v5360_v26 = vpop.xlane.xlu1 %5359  ;;  %vm14344_vm7 = vcmp.eq.s32.totalorder %v8381_v15, %v4942_v37  ;;  %vm5046_vm3 = vcmp.eq.s32.totalorder %v13762_v49, %v4942_v37 }
 0x7ed   :  { %v14296_v18 = vsel %vm5479_vm13, %v5232_v12, %v5360_v26  ;;  %5421 = vadd.xlane.f32.xlu0 %v5166_v60  ;;  %v14298_v13 = vpop.f32.mrb[124].mxu0  ;;  %v5173_v21 = vsel %vm14344_vm7, %v14184_v19, 0.0 }
 0x7ee   :  { %v5362_v2 = vpop.xlane.xlu0 %5361  ;;  %v14301_v45 = vpop.f32.mrb[125].mxu0 }
 0x7ef   :  { %v14310_v23 = vsel %vm5479_vm13, %v5234_v9, %v5362_v2  ;;  %5299 = vadd.xlane.f32.xlu1 %v5171_v31  ;;  %v14312_v12 = vpop.f32.mrb[126].mxu0  ;;  %v15752_v31 = vld [vmem:[#allocation2_spill] sm:$0xff] }
 0x7f0   :  { %v5576_v33 = vpack.c.bf16 %v14310_v23, %v14296_v18  ;;  %v5464_v51 = vpop.xlane.xlu1 %5463  ;;  %v14319_v0 = vpop.f32.mrb[127].mxu0  ;;  %v4951_v37 = vand.u32 31, %v15752_v31  ;;  %v5613_v18 = vld [vmem:[%s14890_s6 + $0x38] sm:$0xff] }
 0x7f1   :  { %v14324_v9 = vsel %vm5479_vm13, %v5336_v11, %v5464_v51  ;;  %5297 = vadd.xlane.f32.xlu0 %v5169_v35  ;;  %v8056_v11 = vld [vmem:[%s14889_s5 + $0x4] ss:$16 sps:$4 sm:$0xff]   ;;  %v4945_v35 = vand.u32 31, %v15748_v50 }
 0x7f2   :  { %v5466_v60 = vpop.xlane.xlu0 %5465  ;;  %5882 = vmatprep.mubr.bf16.mxu1 %v8056_v11  ;;  %v5176_v11 = vsel %vm5048_vm10, %v14212_v28, 0.0  ;;  %vm5063_vm2 = vcmp.eq.s32.totalorder %v8381_v15, %v4951_v37  ;;  %vm5064_vm4 = vcmp.eq.s32.totalorder %v13762_v49, %v4951_v37 }
 0x7f3   :  { %v14335_v26 = vsel %vm5479_vm13, %v5338_v56, %v5466_v60  ;;  %5427 = vadd.xlane.f32.xlu1 %v5172_v38  ;;  %v5175_v56 = vsel %vm14330_vm12, %v14209_v59, 0.0  ;;  %v4944_v59 = vand.u32 31, %v15749_v14  ;;  %vm5051_vm8 = vcmp.eq.s32.totalorder %v8381_v15, %v4945_v35 }
 0x7f4   :  { %v5236_v34 = vpop.xlane.xlu1 %5235  ;;  %vm14373_vm6 = vcmp.eq.s32.totalorder %v13762_v49, %v4945_v35 }
 0x7f5   :  { %5425 = vadd.xlane.f32.xlu0 %v5170_v61  ;;  %v4821_v2 = vpop.f32.mrb[128].mxu0  ;;  %v5174_v61 = vsel %vm5046_vm3, %v14191_v62, 0.0  ;;  %vm14366_vm5 = vcmp.eq.s32.totalorder %v8381_v15, %v4944_v59  ;;  %vm5050_vm11 = vcmp.eq.s32.totalorder %v13762_v49, %v4944_v59 }
 0x7f6   :  { %v5238_v32 = vpop.xlane.xlu0 %5237  ;;  %v4823_v8 = vpop.f32.mrb[129].mxu0  ;;  %v5177_v31 = vsel %vm14366_vm5, %v14216_v39, 0.0 }
 0x7f7   :  { %5303 = vadd.xlane.f32.xlu1 %v5175_v56  ;;  %v14353_v51 = vpop.f32.mrb[130].mxu0 }
 0x7f8   :  { %v5340_v38 = vpop.xlane.xlu1 %5339  ;;  %v14358_v60 = vpop.f32.mrb[131].mxu0 }
 0x7f9   :  { %5301 = vadd.xlane.f32.xlu0 %v5173_v21  ;;  %v5179_v21 = vsel %vm5051_vm8, %v14234_v57, 0.0 }
 0x7fa   :  { %v5342_v16 = vpop.xlane.xlu0 %5341 }
 0x7fb   :  { %5431 = vadd.xlane.f32.xlu1 %v5176_v11 }
 0x7fc   :  { %v5364_v56 = vpop.xlane.xlu1 %5363 }
 0x7fd   :  { %5429 = vadd.xlane.f32.xlu0 %v5174_v61  ;;  %v4831_v50 = vpop.f32.mrb[132].mxu0  ;;  %v14378_v62 = vsel %vm5479_vm13, %v5236_v34, %v5364_v56  ;;  %v4946_v34 = vand.u32 31, %v15755_v48 }
 0x7fe   :  { %v5366_v14 = vpop.xlane.xlu0 %5365  ;;  %v4833_v28 = vpop.f32.mrb[133].mxu0 }
 0x7ff   :  { %v14381_v11 = vsel %vm5479_vm13, %v5238_v32, %v5366_v14  ;;  %5307 = vadd.xlane.f32.xlu1 %v5179_v21  ;;  %v4835_v61 = vpop.f32.mrb[134].mxu0  ;;  %v5180_v32 = vsel %vm14373_vm6, %v14237_v10, 0.0  ;;  %v5178_v21 = vsel %vm5050_vm11, %v14219_v58, 0.0  ;;  %v5191_v14 = vsel %vm5063_vm2, %v4821_v2, 0.0  ;;  %v15756_v10 = vld [vmem:[#allocation4_spill] sm:$0xff] }
 0x800   :  { %v5577_v57 = vpack.c.bf16 %v14381_v11, %v14378_v62  ;;  %v5468_v41 = vpop.xlane.xlu1 %5467  ;;  %v14388_v35 = vpop.f32.mrb[135].mxu0  ;;  %vm5053_vm0 = vcmp.eq.s32.totalorder %v8381_v15, %v4946_v34  ;;  %v5192_v58 = vsel %vm5064_vm4, %v4823_v8, 0.0  ;;  %vm5054_vm1 = vcmp.eq.s32.totalorder %v13762_v49, %v4946_v34 }
 0x801   :  { %5305 = vadd.xlane.f32.xlu0 %v5177_v31  ;;  %v14397_v39 = vsel %vm5479_vm13, %v5340_v38, %v5468_v41  ;;  %v4953_v41 = vand.u32 31, %v15756_v10  ;;  %v5181_v38 = vsel %vm5053_vm0, %v14248_v1, 0.0  ;;  %v15757_v31 = vld [vmem:[#allocation3_spill] sm:$0xff]  ;;  %v5182_v37 = vsel %vm5054_vm1, %v14255_v36, 0.0  ;;  %v15758_v36 = vld [vmem:[#allocation26_spill] sm:$0xff] }
 0x802   :  { %v5470_v56 = vpop.xlane.xlu0 %5469  ;;  %v4952_v2 = vand.u32 31, %v15757_v31  ;;  %v4954_v10 = vand.u32 31, %v15758_v36 }
 0x803   :  { %v14400_v19 = vsel %vm5479_vm13, %v5342_v16, %v5470_v56  ;;  %5435 = vadd.xlane.f32.xlu1 %v5180_v32  ;;  %vm5067_vm12 = vcmp.eq.s32.totalorder %v8381_v15, %v4953_v41  ;;  %vm5068_vm10 = vcmp.eq.s32.totalorder %v13762_v49, %v4953_v41 }
 0x804   :  { %v5603_v48 = vpack.c.bf16 %v14400_v19, %v14397_v39  ;;  %v14405_v59 = vpop.xlane.xlu1 %5239  ;;  %vm5065_vm7 = vcmp.eq.s32.totalorder %v8381_v15, %v4952_v2  ;;  %vm5066_vm3 = vcmp.eq.s32.totalorder %v13762_v49, %v4952_v2  ;;  %vm5069_vm8 = vcmp.eq.s32.totalorder %v8381_v15, %v4954_v10 }
 0x805   :  { %5433 = vadd.xlane.f32.xlu0 %v5178_v21  ;;  %v5195_v21 = vsel %vm5067_vm12, %v4831_v50, 0.0  ;;  %v5193_v8 = vsel %vm5065_vm7, %v14353_v51, 0.0  ;;  %v15759_v50 = vld [vmem:[#allocation22_spill] sm:$0xff]  ;;  %v5194_v41 = vsel %vm5066_vm3, %v14358_v60, 0.0  ;;  %v5197_v2 = vsel %vm5069_vm8, %v4835_v61, 0.0  ;;  %v15761_v60 = vld [vmem:[#allocation8_spill] sm:$0xff] }
 0x806   :  { %v14410_v52 = vpop.xlane.xlu0 %5241  ;;  %vm5070_vm6 = vcmp.eq.s32.totalorder %v13762_v49, %v4954_v10  ;;  %vm15769_vm8 = vcmask 1043456  }
 0x807   :  { %5319 = vadd.xlane.f32.xlu1 %v5191_v14  ;;  %v5196_v14 = vsel %vm5068_vm10, %v4833_v28, 0.0  ;;  %v15760_v28 = vsel %vm13848_vm14, %v13869_v63, 0.0  ;;  %v5198_v47 = vsel %vm5070_vm6, %v14388_v35, 0.0  ;;  %v15762_v63 = vld [vmem:[#allocation23_spill] sm:$0xff]  ;;  %vm6308_vm6 = vcmask 687104  }
 0x808   :  { %v14413_v16 = vpop.xlane.xlu1 %5343  ;;  %v4948_v61 = vand.u32 31, %v15762_v63  ;;  %v15765_v63 = vld [vmem:[#allocation25_spill] sm:$0xff] }
 0x809   :  { %5309 = vadd.xlane.f32.xlu0 %v5181_v38 }
 0x80a   :  { %v14418_v32 = vpop.xlane.xlu0 %5345  ;;  %vm5057_vm2 = vcmp.eq.s32.totalorder %v8381_v15, %v4948_v61  ;;  %vm5058_vm4 = vcmp.eq.s32.totalorder %v13762_v49, %v4948_v61  ;;  %v4950_v61 = vand.u32 31, %v15765_v63 }
 0x80b   :  { %5447 = vadd.xlane.f32.xlu1 %v5192_v58  ;;  %v4947_v58 = vand.u32 31, %v15759_v50 }
 0x80c   :  { %v14421_v56 = vpop.xlane.xlu1 %5367  ;;  %vm5061_vm10 = vcmp.eq.s32.totalorder %v8381_v15, %v4950_v61  ;;  %vm5062_vm3 = vcmp.eq.s32.totalorder %v13762_v49, %v4950_v61  ;;  %v5609_v61 = vld [vmem:[%s14890_s6 + $0x18] sm:$0xff] }
 0x80d   :  { %5437 = vadd.xlane.f32.xlu0 %v5182_v37  ;;  %vm5055_vm5 = vcmp.eq.s32.totalorder %v8381_v15, %v4947_v58  ;;  %vm5056_vm11 = vcmp.eq.s32.totalorder %v13762_v49, %v4947_v58  ;;  %v15763_v58 = vld [vmem:[#allocation24_spill] sm:$0xff]  ;;  %v5488_v11 = vsel %vm5479_vm13, %v14405_v59, %v14421_v56  ;;  %v5614_v59 = vld [vmem:[%s14890_s6 + $0x40] sm:$0xff]  ;;  %v5619_v56 = vld [vmem:[%s14890_s6 + $0x68] sm:$0xff] }
 0x80e   :  { %v14425_v1 = vpop.xlane.xlu0 %5369  ;;  %v5184_v10 = vsel %vm5056_vm11, %v14276_v27, 0.0  ;;  %v4949_v27 = vand.u32 31, %v15763_v58  ;;  %vm6357_vm11 = vcmask 15360  }
 0x80f   :  { %5323 = vadd.xlane.f32.xlu1 %v5195_v21  ;;  %v4965_v21 = vand.u32 31, %v15761_v60  ;;  %v4966_v60 = vand.u32 31, %v15764_v5 }
 0x810   :  { %v14428_v34 = vpop.xlane.xlu1 %5243  ;;  %vm5059_vm9 = vcmp.eq.s32.totalorder %v8381_v15, %v4949_v27  ;;  %vm5060_vm12 = vcmp.eq.s32.totalorder %v13762_v49, %v4949_v27 }
 0x811   :  { %5321 = vadd.xlane.f32.xlu0 %v5193_v8  ;;  %v5183_v8 = vsel %vm5055_vm5, %v14273_v53, 0.0  ;;  %vm5091_vm14 = vcmp.eq.s32.totalorder %v8381_v15, %v4965_v21  ;;  %vm5092_vm0 = vcmp.eq.s32.totalorder %v13762_v49, %v4965_v21  ;;  %vm5093_vm1 = vcmp.eq.s32.totalorder %v8381_v15, %v4966_v60  ;;  %vm15770_vm5 = vmmov %vm15769_vm8 }
 0x812   :  { %v14432_v38 = vpop.xlane.xlu0 %5245  ;;  %vm5094_vm7 = vcmp.eq.s32.totalorder %v13762_v49, %v4966_v60  ;;  %v5190_v15 = vsel %vm5062_vm3, %v14319_v0, 0.0  ;;  %v5606_v49 = vld [vmem:[%s14890_s6] sm:$0xff] }
 0x813   :  { %5451 = vadd.xlane.f32.xlu1 %v5196_v14 }
 0x814   :  { %v14436_v31 = vpop.xlane.xlu1 %5371 }
 0x815   :  { %5449 = vadd.xlane.f32.xlu0 %v5194_v41  ;;  %v5219_v41 = vsel %vm5091_vm14, %v14067_v4, 0.0  ;;  %v5220_v4 = vsel %vm5092_vm0, %v14072_v54, 0.0  ;;  %v5221_v54 = vsel %vm5093_vm1, %v14084_v44, 0.0  ;;  %vm6359_vm14 = vcmask 9216  }
 0x816   :  { %v14439_v51 = vpop.xlane.xlu0 %5373 }
 0x817   :  { %5471 = vadd.xlane.f32.xlu1 %v15760_v28  ;;  %v5185_v28 = vsel %vm5057_vm2, %v14280_v40, 0.0  ;;  %v5187_v40 = vsel %vm5059_vm9, %v14298_v13, 0.0 }
 0x818   :  { %v14446_v37 = vpop.xlane.xlu1 %5247 }
 0x819   :  { %5325 = vadd.xlane.f32.xlu0 %v5197_v2 }
 0x81a   :  { %v14451_v14 = vpop.xlane.xlu0 %5249 }
 0x81b   :  { %5311 = vadd.xlane.f32.xlu1 %v5183_v8 }
 0x81c   :  { %v14455_v36 = vpop.xlane.xlu1 %5375 }
 0x81d   :  { %5453 = vadd.xlane.f32.xlu0 %v5198_v47 }
 0x81e   :  { %v14460_v50 = vpop.xlane.xlu0 %5377 }
 0x81f   :  { %5439 = vadd.xlane.f32.xlu1 %v5184_v10 }
 0x820   :  { %v14462_v53 = vpop.xlane.xlu1 %5251 }
 0x821   :  { %5473 = vadd.xlane.f32.xlu0 %v5218_v7  ;;  %v5186_v7 = vsel %vm5058_vm4, %v14283_v25, 0.0  ;;  %v5188_v25 = vsel %vm5060_vm12, %v14301_v45, 0.0 }
 0x822   :  { %v14471_v35 = vpop.xlane.xlu0 %5253 }
 0x823   :  { %5347 = vadd.xlane.f32.xlu1 %v5219_v41  ;;  %v5222_v41 = vsel %vm5094_vm7, %v14091_v22, 0.0 }
 0x824   :  { %v14475_v2 = vpop.xlane.xlu1 %5379 }
 0x825   :  { %5313 = vadd.xlane.f32.xlu0 %v5185_v28  ;;  %v5189_v28 = vsel %vm5061_vm10, %v14312_v12, 0.0 }
 0x826   :  { %v14480_v43 = vpop.xlane.xlu0 %5381 }
 0x827   :  { %5475 = vadd.xlane.f32.xlu1 %v5220_v4 }
 0x828   :  { %v5258_v21 = vpop.xlane.xlu1 %5257 }
 0x829   :  { %5441 = vadd.xlane.f32.xlu0 %v5186_v7 }
 0x82a   :  { %v5256_v8 = vpop.xlane.xlu0 %5255 }
 0x82b   :  { %5315 = vadd.xlane.f32.xlu1 %v5187_v40 }
 0x82c   :  { %v5260_v47 = vpop.xlane.xlu1 %5259 }
 0x82d   :  { %5349 = vadd.xlane.f32.xlu0 %v5221_v54 }
 0x82e   :  { %v5384_v10 = vpop.xlane.xlu0 %5383 }
 0x82f   :  { %5443 = vadd.xlane.f32.xlu1 %v5188_v25  ;;  %v5496_v27 = vsel %vm5479_vm13, %v5256_v8, %v5384_v10 }
 0x830   :  { %v5388_v58 = vpop.xlane.xlu1 %5387 }
 0x831   :  { %5477 = vadd.xlane.f32.xlu0 %v5222_v41  ;;  %v5498_v7 = vsel %vm5479_vm13, %v5260_v47, %v5388_v58 }
 0x832   :  { %v5386_v13 = vpop.xlane.xlu0 %5385 }
 0x833   :  { %v5497_v44 = vsel %vm5479_vm13, %v5258_v21, %v5386_v13 }
 0x834   :  { %v5582_v4 = vpack.c.bf16 %v5497_v44, %v5496_v27  ;;  %v5264_v5 = vpop.xlane.xlu1 %5263  ;;  %v5607_v27 = vld [vmem:[%s14890_s6 + $0x8] sm:$0xff]  ;;  %v5610_v44 = vld [vmem:[%s14890_s6 + $0x20] sm:$0xff] }
 0x835   :  { %5317 = vadd.xlane.f32.xlu0 %v5189_v28  ;;  %v5615_v28 = vld [vmem:[%s14890_s6 + $0x48] sm:$0xff] }
 0x836   :  { %6539 = vmatprep.subr.bf16.mxu1 %v5582_v4  ;;  %v5262_v45 = vpop.xlane.xlu0 %5261  ;;  %v5489_v4 = vsel %vm5479_vm13, %v14410_v52, %v14425_v1  ;;  %v5617_v52 = vld [vmem:[%s14890_s6 + $0x58] sm:$0xff] }
 0x837   :  { %6540 = vmatpush3.bf16.msra.mxu1 %v5574_v20 }
 0x838   :  { %v5392_v22 = vpop.xlane.xlu1 %5391 }
 0x839   :  { %5445 = vadd.xlane.f32.xlu0 %v5190_v15  ;;  %v5500_v0 = vsel %vm5479_vm13, %v5264_v5, %v5392_v22  ;;  %v5612_v22 = vld [vmem:[%s14890_s6 + $0x30] sm:$0xff] }
 0x83a   :  { %v5390_v60 = vpop.xlane.xlu0 %5389 }
 0x83b   :  { %v5499_v12 = vsel %vm5479_vm13, %v5262_v45, %v5390_v60  ;;  %v5578_v60 = vpack.c.bf16 %v5489_v4, %v5488_v11  ;;  %v6079_v4 = vld [vmem:[%s14891_s8 + $0x18] sm:$0xff]  ;;  %v6086_v11 = vld [vmem:[%s14891_s8 + $0x50] sm:$0xf] }
 0x83c   :  { %v5583_v21 = vpack.c.bf16 %v5499_v12, %v5498_v7  ;;  %v5268_v40 = vpop.xlane.xlu1 %5267  ;;  %v5491_v12 = vsel %vm5479_vm13, %v14432_v38, %v14439_v51  ;;  %v6076_v38 = vld [vmem:[%s14891_s8] sm:$0xff] }
 0x83e   :  { %6541 = vmatprep.subr.bf16.mxu1 %v5583_v21  ;;  %v5266_v8 = vpop.xlane.xlu0 %5265 }
 0x83f   :  { %6542 = vmatpush3.bf16.msra.mxu1 %v5575_v55  ;;  %v5611_v55 = vld [vmem:[%s14890_s6 + $0x28] sm:$0xff] }
 0x840   :  { %v5396_v3 = vpop.xlane.xlu1 %5395  ;;  %5623 = vperm.xlu1 %7868, %v5606_v49  }
 0x841   :  { %v5502_v10 = vsel %vm5479_vm13, %v5268_v40, %v5396_v3 }
 0x842   :  { %v5394_v20 = vpop.xlane.xlu0 %5393 }
 0x843   :  { %v5501_v54 = vsel %vm5479_vm13, %v5266_v8, %v5394_v20  ;;  %v5490_v8 = vsel %vm5479_vm13, %v14428_v34, %v14436_v31  ;;  %v5616_v20 = vld [vmem:[%s14890_s6 + $0x50] sm:$0xff]  ;;  %v5618_v34 = vld [vmem:[%s14890_s6 + $0x60] sm:$0xff] }
 0x844   :  { %v5584_v47 = vpack.c.bf16 %v5501_v54, %v5500_v0  ;;  %v5272_v63 = vpop.xlane.xlu1 %5271  ;;  %5633 = vperm.xlu1 %7868, %v5608_v17   ;;  %v5579_v0 = vpack.c.bf16 %v5491_v12, %v5490_v8  ;;  %v6078_v31 = vld [vmem:[%s14891_s8 + $0x10] sm:$0xff] }
 0x845   :  { %v8062_v8 = vld [vmem:[%s14889_s5 + $0x40] ss:$16 sps:$4 sm:$0xff]  }
 0x846   :  { %6543 = vmatprep.subr.bf16.mxu1 %v5584_v47  ;;  %v5270_v24 = vpop.xlane.xlu0 %5269  ;;  %v5493_v47 = vsel %vm5479_vm13, %v14451_v14, %v14460_v50  ;;  %v6080_v14 = vld [vmem:[%s14891_s8 + $0x20] sm:$0xff] }
 0x847   :  { %6544 = vmatpush3.bf16.msra.mxu1 %v5576_v33 }
 0x848   :  { %v5400_v6 = vpop.xlane.xlu1 %5399  ;;  %5638 = vperm.xlu1 %7868, %v5609_v61  }
 0x849   :  { %v5504_v45 = vsel %vm5479_vm13, %v5272_v63, %v5400_v6  ;;  %v5492_v6 = vsel %vm5479_vm13, %v14446_v37, %v14455_v36  ;;  %v6077_v37 = vld [vmem:[%s14891_s8 + $0x8] sm:$0xff]  ;;  %v6082_v36 = vld [vmem:[%s14891_s8 + $0x30] sm:$0xff] }
 0x84a   :  { %v5398_v25 = vpop.xlane.xlu0 %5397 }
 0x84b   :  { %v5503_v41 = vsel %vm5479_vm13, %v5270_v24, %v5398_v25 }
 0x84c   :  { %v5585_v58 = vpack.c.bf16 %v5503_v41, %v5502_v10  ;;  %v5276_v13 = vpop.xlane.xlu1 %5275  ;;  %5648 = vperm.xlu1 %7868, %v5611_v55   ;;  %v5620_v10 = vld [vmem:[%s14890_s6 + $0x70] sm:$0xff]  ;;  %v5580_v41 = vpack.c.bf16 %v5493_v47, %v5492_v6 }
 0x84e   :  { %6545 = vmatprep.subr.bf16.mxu1 %v5585_v58  ;;  %v5274_v23 = vpop.xlane.xlu0 %5273 }
 0x84f   :  { %6546 = vmatpush3.bf16.msra.mxu1 %v5577_v57  ;;  %5628 = vperm.xlu0 %7477, %v5607_v27  }
 0x850   :  { %v5404_v33 = vpop.xlane.xlu1 %5403  ;;  %5658 = vperm.xlu1 %7868, %v5613_v18  }
 0x851   :  { %v5506_v40 = vsel %vm5479_vm13, %v5276_v13, %v5404_v33  ;;  %v5495_v13 = vsel %vm5479_vm13, %v14471_v35, %v14480_v43  ;;  %v5494_v33 = vsel %vm5479_vm13, %v14462_v53, %v14475_v2  ;;  %v6084_v35 = vld [vmem:[%s14891_s8 + $0x40] sm:$0xff] }
 0x852   :  { %v5402_v5 = vpop.xlane.xlu0 %5401  ;;  %v8054_v53 = vld [vmem:[%s14889_s5] ss:$16 sps:$4 sm:$0xff]   ;;  %v8057_v2 = vld [vmem:[%s14889_s5 + $0x24] ss:$16 sps:$4 sm:$0xff]  }
 0x853   :  { %v5505_v62 = vsel %vm5479_vm13, %v5274_v23, %v5402_v5  ;;  %5643 = vperm.xlu0 %7477, %v5610_v44   ;;  %v5581_v5 = vpack.c.bf16 %v5495_v13, %v5494_v33 }
 0x854   :  { %v5586_v57 = vpack.c.bf16 %v5505_v62, %v5504_v45  ;;  %v5280_v15 = vpop.xlane.xlu1 %5279  ;;  %5668 = vperm.xlu1 %7868, %v5615_v28   ;;  %v6081_v62 = vld [vmem:[%s14891_s8 + $0x28] sm:$0xff] }
 0x856   :  { %6547 = vmatprep.subr.bf16.mxu1 %v5586_v57  ;;  %v5278_v1 = vpop.xlane.xlu0 %5277 }
 0x857   :  { %6548 = vmatpush3.bf16.msra.mxu1 %v5578_v60  ;;  %5653 = vperm.xlu0 %7477, %v5612_v22   ;;  %v6083_v22 = vld [vmem:[%s14891_s8 + $0x38] sm:$0xff]  ;;  %v6292_v60 = vld [vmem:[%s14892_s10 + $0x8] sm:$0x3] }
 0x858   :  { %v5408_v7 = vpop.xlane.xlu1 %5407  ;;  %5678 = vperm.xlu1 %7868, %v5617_v52  }
 0x859   :  { %v5508_v61 = vsel %vm5479_vm13, %v5280_v15, %v5408_v7  ;;  %v8060_v7 = vld [vmem:[%s14889_s5 + $0x44] ss:$16 sps:$4 sm:$0xff]  }
 0x85a   :  { %v5406_v21 = vpop.xlane.xlu0 %5405 }
 0x85b   :  { %v5507_v49 = vsel %vm5479_vm13, %v5278_v1, %v5406_v21  ;;  %5663 = vperm.xlu0 %7477, %v5614_v59   ;;  %v8059_v1 = vld [vmem:[%s14889_s5 + $0x20] ss:$16 sps:$4 sm:$0xff]  }
 0x85c   :  { %v5587_v3 = vpack.c.bf16 %v5507_v49, %v5506_v40  ;;  %v5284_v17 = vpop.xlane.xlu1 %5283  ;;  %5688 = vperm.xlu1 %7868, %v5619_v56   ;;  %v6085_v56 = vld [vmem:[%s14891_s8 + $0x48] sm:$0xff]  ;;  %v6291_v40 = vld [vmem:[%s14892_s10] sm:$0xff] }
 0x85e   :  { %6549 = vmatprep.subr.bf16.mxu1 %v5587_v3  ;;  %v5282_v51 = vpop.xlane.xlu0 %5281  ;;  %v8063_v3 = vld [vmem:[%s14889_s5 + $0x64] ss:$16 sps:$4 sm:$0xff]  }
 0x85f   :  { %6550 = vmatpush3.bf16.msra.mxu1 %v5579_v0  ;;  %5673 = vperm.xlu0 %7477, %v5616_v20  }
 0x860   :  { %v5412_v54 = vpop.xlane.xlu1 %5411  ;;  %6089 = vperm.xlu1 %7868, %v6076_v38  }
 0x861   :  { %v5510_v18 = vsel %vm5479_vm13, %v5284_v17, %v5412_v54  ;;  %v8066_v54 = vld [vmem:[%s14889_s5 + $0x84] ss:$16 sps:$4 sm:$0xff]  }
 0x862   :  { %v5410_v63 = vpop.xlane.xlu0 %5409 }
 0x863   :  { %v5509_v24 = vsel %vm5479_vm13, %v5282_v51, %v5410_v63  ;;  %5683 = vperm.xlu0 %7477, %v5618_v34   ;;  %v8065_v51 = vld [vmem:[%s14889_s5 + $0x60] ss:$16 sps:$4 sm:$0xff]  }
 0x864   :  { %v5588_v55 = vpack.c.bf16 %v5509_v24, %v5508_v61  ;;  %v14588_v25 = vpop.xlane.xlu1 %5287  ;;  %6099 = vperm.xlu1 %7868, %v6078_v31   ;;  %v8068_v61 = vld [vmem:[%s14889_s5 + $0x80] ss:$16 sps:$4 sm:$0xff]   ;;  %v8069_v24 = vld [vmem:[%s14889_s5 + $0xa4] ss:$16 sps:$4 sm:$0xff]  }
 0x866   :  { %6551 = vmatprep.subr.bf16.mxu1 %v5588_v55  ;;  %v5286_v50 = vpop.xlane.xlu0 %5285 }
 0x867   :  { %6552 = vmatpush3.bf16.msra.mxu1 %v5580_v41  ;;  %5693 = vperm.xlu0 %7477, %v5620_v10  }
 0x868   :  { %v14596_v58 = vpop.xlane.xlu1 %5415  ;;  %6109 = vperm.xlu1 %7868, %v6080_v14   ;;  %v8071_v14 = vld [vmem:[%s14889_s5 + $0xa0] ss:$16 sps:$4 sm:$0xff]  }
 0x86a   :  { %v5414_v27 = vpop.xlane.xlu0 %5413 }
 0x86b   :  { %v5511_v23 = vsel %vm5479_vm13, %v5286_v50, %v5414_v27  ;;  %6094 = vperm.xlu0 %7477, %v6077_v37   ;;  %v8072_v50 = vld [vmem:[%s14889_s5 + $0xc4] ss:$16 sps:$4 sm:$0xff]  }
 0x86c   :  { %v5589_v44 = vpack.c.bf16 %v5511_v23, %v5510_v18  ;;  %v14612_v28 = vpop.xlane.xlu1 %5291  ;;  %6119 = vperm.xlu1 %7868, %v6082_v36   ;;  %v5572_v27 = vld [vmem:[%s14889_s5 + $0xe0] sm:$0xff] }
 0x86d   :  { %v8074_v23 = vld [vmem:[%s14889_s5 + $0xc0] ss:$16 sps:$4 sm:$0xff]   ;;  %v6516_v33 = vcombine.high %v5572_v27, %v5572_v27 }
 0x86e   :  { %6553 = vmatprep.subr.bf16.mxu1 %v5589_v44  ;;  %v14620_v43 = vpop.xlane.xlu0 %5289 }
 0x86f   :  { %6554 = vmatpush3.bf16.msra.mxu1 %v5581_v5  ;;  %6104 = vperm.xlu0 %7477, %v6079_v4  }
 0x870   :  { %v14628_v45 = vpop.xlane.xlu1 %5419  ;;  %6129 = vperm.xlu1 %7868, %v6084_v35  }
 0x872   :  { %5883 = vmatmul.mubr.bf16.vlgmr.msra.gmra.mrb[56].mxu1 %v8054_v53  ;;  %v5418_v57 = vpop.xlane.xlu0 %5417 }
 0x873   :  { %6114 = vperm.xlu0 %7477, %v6081_v62   ;;  %5890 = vmatprep.mubr.bf16.mxu1 %v8057_v2  ;;  %v5513_v4 = vsel %vm5479_vm13, %v14620_v43, %v5418_v57  ;;  %v5512_v2 = vsel %vm5479_vm13, %v14588_v25, %v14596_v58  ;;  %v8079_v43 = vld [vmem:[%s14889_s5 + $0xc] ss:$16 sps:$4 sm:$0xff]   ;;  %v5514_v58 = vsel %vm5479_vm13, %v14612_v28, %v14628_v45 }
 0x874   :  { %v14636_v15 = vpop.xlane.xlu1 %5295  ;;  %6139 = vperm.xlu1 %7868, %v6086_v11  }
 0x876   :  { %v14644_v52 = vpop.xlane.xlu0 %5293 }
 0x877   :  { %6124 = vperm.xlu0 %7477, %v6083_v22   ;;  %v5590_v22 = vpack.c.bf16 %v5513_v4, %v5512_v2  ;;  %v8088_v4 = vld [vmem:[%s14889_s5 + $0x68] ss:$16 sps:$4 sm:$0xff]  }
 0x878   :  { %v14652_v59 = vpop.xlane.xlu1 %5423  ;;  %6300 = vperm.xlu1 %7868, %v6292_v60   ;;  %v8094_v2 = vld [vmem:[%s14889_s5 + $0xa8] ss:$16 sps:$4 sm:$0xff]  }
 0x87a   :  { %5891 = vmatmul.mubr.bf16.gmra.mrb[60].mxu1 %v8059_v1  ;;  %v5422_v12 = vpop.xlane.xlu0 %5421  ;;  %v6515_v1 = vcombine.low %v5572_v27, %v5572_v27  ;;  %v8080_v27 = vld [vmem:[%s14889_s5 + $0x2c] ss:$16 sps:$4 sm:$0xff]  }
 0x87b   :  { %6134 = vperm.xlu0 %7477, %v6085_v56   ;;  %5898 = vmatprep.mubr.bf16.mxu1 %v8060_v7  ;;  %v5515_v7 = vsel %vm5479_vm13, %v14644_v52, %v5422_v12  ;;  %v5516_v52 = vsel %vm5479_vm13, %v14636_v15, %v14652_v59  ;;  %v15766_v12 = vpack.c.bf16 %v14203_v42, %v14196_v29 }
 0x87c   :  { %v14657_v21 = vpop.xlane.xlu1 %5299 }
 0x87e   :  { %v14662_v49 = vpop.xlane.xlu0 %5297 }
 0x87f   :  { %6295 = vperm.xlu0 %7477, %v6291_v40  }
 0x880   :  { %v14670_v17 = vpop.xlane.xlu1 %5427 }
 0x882   :  { %5899 = vmatmul.mubr.bf16.gmra.mrb[64].mxu1 %v8062_v8  ;;  %v5426_v20 = vpop.xlane.xlu0 %5425 }
 0x883   :  { %5906 = vmatprep.mubr.bf16.mxu1 %v8063_v3 }
 0x884   :  { %v14672_v0 = vpop.xlane.xlu1 %5303 }
 0x886   :  { %v14674_v38 = vpop.xlane.xlu0 %5301 }
 0x888   :  { %v14682_v34 = vpop.xlane.xlu1 %5431 }
 0x889   :  { %v5520_v42 = vsel %vm5479_vm13, %v14672_v0, %v14682_v34 }
 0x88a   :  { %5907 = vmatmul.mubr.bf16.gmra.mrb[68].mxu1 %v8065_v51  ;;  %v5430_v31 = vpop.xlane.xlu0 %5429  ;;  %v5591_v51 = vpack.c.bf16 %v5515_v7, %v5514_v58 }
 0x88b   :  { %5914 = vmatprep.mubr.bf16.mxu1 %v8066_v54  ;;  %v5517_v54 = vsel %vm5479_vm13, %v14662_v49, %v5426_v20  ;;  %v5519_v28 = vsel %vm5479_vm13, %v14674_v38, %v5430_v31  ;;  %v5518_v49 = vsel %vm5479_vm13, %v14657_v21, %v14670_v17  ;;  %v15767_v20 = vpack.c.bf16 %v14267_v46, %v14260_v30 }
 0x88c   :  { %v14684_v47 = vpop.xlane.xlu1 %5307  ;;  %v5593_v15 = vpack.c.bf16 %v5519_v28, %v5518_v49  ;;  %v15768_v31 = vpack.c.bf16 %v14335_v26, %v14324_v9 }
 0x88e   :  { %v5306_v63 = vpop.xlane.xlu0 %5305 }
 0x890   :  { %v14692_v6 = vpop.xlane.xlu1 %5435 }
 0x891   :  { %v5522_v46 = vsel %vm5479_vm13, %v14684_v47, %v14692_v6 }
 0x892   :  { %5915 = vmatmul.mubr.bf16.gmra.mrb[72].mxu1 %v8068_v61  ;;  %v5434_v55 = vpop.xlane.xlu0 %5433 }
 0x893   :  { %5922 = vmatprep.mubr.bf16.mxu1 %v8069_v24  ;;  %v5592_v24 = vpack.c.bf16 %v5517_v54, %v5516_v52  ;;  %v5521_v59 = vsel %vm5479_vm13, %v5306_v63, %v5434_v55 }
 0x894   :  { %v5320_v10 = vpop.xlane.xlu1 %5319 }
 0x896   :  { %v5310_v41 = vpop.xlane.xlu0 %5309 }
 0x898   :  { %v5448_v37 = vpop.xlane.xlu1 %5447 }
 0x899   :  { %v5528_v35 = vsel %vm5479_vm13, %v5320_v10, %v5448_v37 }
 0x89a   :  { %5923 = vmatmul.mubr.bf16.gmra.mrb[76].mxu1 %v8071_v14  ;;  %v5438_v36 = vpop.xlane.xlu0 %5437  ;;  %v5594_v14 = vpack.c.bf16 %v5521_v59, %v5520_v42 }
 0x89b   :  { %5930 = vmatprep.mubr.bf16.mxu1 %v8072_v50  ;;  %v5523_v21 = vsel %vm5479_vm13, %v5310_v41, %v5438_v36 }
 0x89c   :  { %v5324_v13 = vpop.xlane.xlu1 %5323  ;;  %v5595_v0 = vpack.c.bf16 %v5523_v21, %v5522_v46 }
 0x89e   :  { %v5322_v18 = vpop.xlane.xlu0 %5321 }
 0x8a0   :  { %v5452_v44 = vpop.xlane.xlu1 %5451 }
 0x8a1   :  { %v5530_v40 = vsel %vm5479_vm13, %v5324_v13, %v5452_v44  ;;  %v8077_v13 = vld [vmem:[%s14889_s5 + $0x8] ss:$16 sps:$4 sm:$0xff]   ;;  %v8086_v44 = vld [vmem:[%s14889_s5 + $0x6c] ss:$16 sps:$4 sm:$0xff]  }
 0x8a2   :  { %5931 = vmatmul.mubr.bf16.gmra.mrb[80].mxu1 %v8074_v23  ;;  %v5450_v5 = vpop.xlane.xlu0 %5449  ;;  %v8083_v23 = vld [vmem:[%s14889_s5 + $0x4c] ss:$16 sps:$4 sm:$0xff]  }
 0x8a3   :  { %v5529_v53 = vsel %vm5479_vm13, %v5322_v18, %v5450_v5  ;;  %5938 = vmatprep.mubr.bf16.mxu1 %v6516_v33  ;;  %v8082_v18 = vld [vmem:[%s14889_s5 + $0x28] ss:$16 sps:$4 sm:$0xff]   ;;  %v8089_v5 = vld [vmem:[%s14889_s5 + $0x8c] ss:$16 sps:$4 sm:$0xff]  }
 0x8a4   :  { %v5598_v62 = vpack.c.bf16 %v5529_v53, %v5528_v35  ;;  %v5472_v11 = vpop.xlane.xlu1 %5471  ;;  %v8085_v33 = vld [vmem:[%s14889_s5 + $0x48] ss:$16 sps:$4 sm:$0xff]   ;;  %v8092_v53 = vld [vmem:[%s14889_s5 + $0xac] ss:$16 sps:$4 sm:$0xff]  }
 0x8a5   :  { %v5540_v9 = vsel %vm5479_vm13, %v14413_v16, %v5472_v11  ;;  %v8091_v35 = vld [vmem:[%s14889_s5 + $0x88] ss:$16 sps:$4 sm:$0xff]  }
 0x8a6   :  { %6603 = vmatprep.subr.bf16.mxu1 %v5598_v62  ;;  %v5326_v60 = vpop.xlane.xlu0 %5325  ;;  %v8095_v62 = vld [vmem:[%s14889_s5 + $0xcc] ss:$16 sps:$4 sm:$0xff]  }
 0x8a7   :  { %6604 = vmatpush3.bf16.msra.mxu1 %v5590_v22  ;;  %v5573_v11 = vld [vmem:[%s14889_s5 + $0xe8] sm:$0xff] }
 0x8a8   :  { %v5312_v57 = vpop.xlane.xlu1 %5311  ;;  %v8097_v22 = vld [vmem:[%s14889_s5 + $0xc8] ss:$16 sps:$4 sm:$0xff]  }
 0x8aa   :  { %5939 = vmatmul.mubr.bf16.gmra.mrb[84].mxu1 %v6515_v1  ;;  %v5454_v56 = vpop.xlane.xlu0 %5453  ;;  %v6517_v1 = vcombine.low %v5573_v11, %v5573_v11 }
 0x8ab   :  { %v5531_v25 = vsel %vm5479_vm13, %v5326_v60, %v5454_v56  ;;  %5978 = vmatprep.mubr.bf16.mxu1 %v8079_v43  ;;  %v6518_v60 = vcombine.high %v5573_v11, %v5573_v11 }
 0x8ac   :  { %v5599_v8 = vpack.c.bf16 %v5531_v25, %v5530_v40  ;;  %v5440_v3 = vpop.xlane.xlu1 %5439 }
 0x8ad   :  { %v5524_v41 = vsel %vm5479_vm13, %v5312_v57, %v5440_v3 }
 0x8ae   :  { %6605 = vmatprep.subr.bf16.mxu1 %v5599_v8  ;;  %v5474_v61 = vpop.xlane.xlu0 %5473 }
 0x8af   :  { %6606 = vmatpush3.bf16.msra.mxu1 %v5591_v51  ;;  %v5541_v30 = vsel %vm5479_vm13, %v14418_v32, %v5474_v61 }
 0x8b0   :  { %6607 = vmatprep.subr.bf16.mxu1 %v15766_v12  ;;  %v5348_v45 = vpop.xlane.xlu1 %5347  ;;  %v5604_v26 = vpack.c.bf16 %v5541_v30, %v5540_v9 }
 0x8b2   :  { %v5314_v10 = vpop.xlane.xlu0 %5313 }
 0x8b3   :  { %6608 = vmatpush3.bf16.msra.mxu1 %v5592_v24 }
 0x8b4   :  { %6609 = vmatprep.subr.bf16.mxu1 %v15767_v20  ;;  %v5476_v38 = vpop.xlane.xlu1 %5475 }
 0x8b5   :  { %v5542_v47 = vsel %vm5479_vm13, %v5348_v45, %v5476_v38  ;;  %v8100_v38 = vld [vmem:[%s14893_s7] sm:$0xff]  }
 0x8b6   :  { %v5442_v29 = vpop.xlane.xlu0 %5441 }
 0x8b7   :  { %6610 = vmatpush3.bf16.msra.mxu1 %v5593_v15  ;;  %v5525_v34 = vsel %vm5479_vm13, %v5314_v10, %v5442_v29 }
 0x8b8   :  { %6611 = vmatprep.subr.bf16.mxu1 %v15768_v31  ;;  %v5316_v63 = vpop.xlane.xlu1 %5315  ;;  %v5596_v6 = vpack.c.bf16 %v5525_v34, %v5524_v41 }
 0x8ba   :  { %v5350_v17 = vpop.xlane.xlu0 %5349 }
 0x8bb   :  { %6612 = vmatpush3.bf16.msra.mxu1 %v5594_v14 }
 0x8bc   :  { %6613 = vmatprep.subr.bf16.mxu1 %v5603_v48  ;;  %v5444_v48 = vpop.xlane.xlu1 %5443 }
 0x8bd   :  { %v5526_v50 = vsel %vm5479_vm13, %v5316_v63, %v5444_v48 }
 0x8be   :  { %v5478_v55 = vpop.xlane.xlu0 %5477 }
 0x8bf   :  { %v5543_v32 = vsel %vm5479_vm13, %v5350_v17, %v5478_v55  ;;  %6614 = vmatpush3.bf16.msra.mxu1 %v5595_v0 }
 0x8c0   :  { %6615 = vmatprep.subr.bf16.mxu1 %v5604_v26  ;;  %v5605_v39 = vpack.c.bf16 %v5543_v32, %v5542_v47 }
 0x8c2   :  { %v5318_v19 = vpop.xlane.xlu0 %5317 }
 0x8c3   :  { %6616 = vmatpush3.bf16.msra.mxu1 %v5596_v6 }
 0x8c4   :  { %6617 = vmatprep.subr.bf16.mxu1 %v5605_v39 }
 0x8c6   :  { %v5446_v16 = vpop.xlane.xlu0 %5445 }
 0x8c7   :  { %v5527_v37 = vsel %vm5479_vm13, %v5318_v19, %v5446_v16  ;;  %vm6170_vm13 = vcmask 982016  }
 0x8c8   :  { %v5597_v36 = vpack.c.bf16 %v5527_v37, %v5526_v50 }
 0x8ca   :  { %6618 = vmatpush3.bf16.msra.mxu1 %v5597_v36 }
 0x8cd   :  { %5979 = vmatmul.mubr.bf16.vlgmr.msra.gmra.mrb[88].mxu1 %v8077_v13  ;;  %v5624_v13 = vpop.permute.xlu1 %5623 }
 0x8ce   :  { %5986 = vmatprep.mubr.bf16.mxu1 %v8080_v27 }
 0x8d5   :  { %5987 = vmatmul.mubr.bf16.gmra.mrb[92].mxu1 %v8082_v18 }
 0x8d6   :  { %5994 = vmatprep.mubr.bf16.mxu1 %v8083_v23 }
 0x8dd   :  { %5995 = vmatmul.mubr.bf16.gmra.mrb[96].mxu1 %v8085_v33 }
 0x8de   :  { %6002 = vmatprep.mubr.bf16.mxu1 %v8086_v44 }
 0x8e5   :  { %6003 = vmatmul.mubr.bf16.gmra.mrb[100].mxu1 %v8088_v4  ;;  %v5629_v4 = vpop.permute.xlu0 %5628 }
 0x8e6   :  { %6010 = vmatprep.mubr.bf16.mxu1 %v8089_v5 }
 0x8ed   :  { %6011 = vmatmul.mubr.bf16.gmra.mrb[104].mxu1 %v8091_v35 }
 0x8ee   :  { %6018 = vmatprep.mubr.bf16.mxu1 %v8092_v53 }
 0x8f5   :  { %6019 = vmatmul.mubr.bf16.gmra.mrb[108].mxu1 %v8094_v2 }
 0x8f6   :  { %6026 = vmatprep.mubr.bf16.mxu1 %v8095_v62  ;;  %v5634_v62 = vpop.permute.xlu1 %5633 }
 0x8fd   :  { %6027 = vmatmul.mubr.bf16.gmra.mrb[112].mxu1 %v8097_v22 }
 0x8fe   :  { %6034 = vmatprep.mubr.bf16.mxu1 %v6518_v60 }
 0x905   :  { %6035 = vmatmul.mubr.bf16.gmra.mrb[116].mxu1 %v6517_v1 }
 0x906   :  { %6720 = vmatprep.mubr.msk.bf16.mxu1 %vm6170_vm13, %v8100_v38 }
 0x945   :  { %v6555_v43 = vpop.f32.mrb[56].mxu1 }
 0x946   :  { %v6556_v57 = vpop.f32.mrb[57].mxu1 }
 0x947   :  { %v6557_v7 = vadd.f32 %v6556_v57, %v6555_v43  ;;  %v6558_v56 = vpop.f32.mrb[58].mxu1 }
 0x948   :  { %v6559_v40 = vpop.f32.mrb[59].mxu1 }
 0x949   :  { %v6560_v25 = vadd.f32 %v6559_v40, %v6558_v56  ;;  %v5885_v23 = vadd.f32 %v6557_v7, %v5624_v13 }
 0x94b   :  { %v5888_v35 = vadd.f32 %v6560_v25, %v5629_v4 }
 0x94d   :  { %v6561_v58 = vpop.f32.mrb[60].mxu1 }
 0x94e   :  { %v6562_v8 = vpop.f32.mrb[61].mxu1 }
 0x94f   :  { %v6563_v3 = vadd.f32 %v6562_v8, %v6561_v58  ;;  %v6564_v51 = vpop.f32.mrb[62].mxu1  ;;  %v5639_v8 = vpop.permute.xlu1 %5638 }
 0x950   :  { %v6565_v54 = vpop.f32.mrb[63].mxu1 }
 0x951   :  { %v14805_v61 = vadd.f32 %v6565_v54, %v6564_v51  ;;  %v5893_v57 = vadd.f32 %v6563_v3, %v5634_v62 }
 0x953   :  { %v5896_v7 = vadd.f32 %v14805_v61, %v5639_v8 }
 0x955   :  { %v6567_v52 = vpop.f32.mrb[64].mxu1 }
 0x956   :  { %v6568_v12 = vpop.f32.mrb[65].mxu1 }
 0x957   :  { %v14807_v24 = vadd.f32 %v6568_v12, %v6567_v52  ;;  %v6570_v28 = vpop.f32.mrb[66].mxu1 }
 0x958   :  { %v6571_v45 = vpop.f32.mrb[67].mxu1 }
 0x959   :  { %v14809_v10 = vadd.f32 %v6571_v45, %v6570_v28 }
 0x95d   :  { %v6573_v49 = vpop.f32.mrb[68].mxu1 }
 0x95e   :  { %v6574_v20 = vpop.f32.mrb[69].mxu1 }
 0x95f   :  { %v14811_v15 = vadd.f32 %v6574_v20, %v6573_v49  ;;  %v6576_v59 = vpop.f32.mrb[70].mxu1  ;;  %v5644_v49 = vpop.permute.xlu0 %5643 }
 0x960   :  { %v6577_v29 = vpop.f32.mrb[71].mxu1 }
 0x961   :  { %v14813_v42 = vadd.f32 %v6577_v29, %v6576_v59  ;;  %v5901_v59 = vadd.f32 %v14807_v24, %v5644_v49 }
 0x965   :  { %v6579_v31 = vpop.f32.mrb[72].mxu1 }
 0x966   :  { %v6580_v14 = vpop.f32.mrb[73].mxu1 }
 0x967   :  { %v14819_v21 = vadd.f32 %v6580_v14, %v6579_v31  ;;  %v6582_v17 = vpop.f32.mrb[74].mxu1  ;;  %v5649_v31 = vpop.permute.xlu1 %5648 }
 0x968   :  { %v6583_v30 = vpop.f32.mrb[75].mxu1 }
 0x969   :  { %v14821_v46 = vadd.f32 %v6583_v30, %v6582_v17  ;;  %v5904_v17 = vadd.f32 %v14809_v10, %v5649_v31 }
 0x96d   :  { %v6585_v0 = vpop.f32.mrb[76].mxu1 }
 0x96e   :  { %v6586_v9 = vpop.f32.mrb[77].mxu1 }
 0x96f   :  { %v14823_v26 = vadd.f32 %v6586_v9, %v6585_v0  ;;  %v6588_v34 = vpop.f32.mrb[78].mxu1 }
 0x970   :  { %v6589_v63 = vpop.f32.mrb[79].mxu1 }
 0x971   :  { %v14825_v55 = vadd.f32 %v6589_v63, %v6588_v34 }
 0x975   :  { %v6591_v32 = vpop.f32.mrb[80].mxu1 }
 0x976   :  { %v6592_v41 = vpop.f32.mrb[81].mxu1 }
 0x977   :  { %v14827_v47 = vadd.f32 %v6592_v41, %v6591_v32  ;;  %v6594_v6 = vpop.f32.mrb[82].mxu1  ;;  %v5654_v32 = vpop.permute.xlu0 %5653 }
 0x978   :  { %v6595_v39 = vpop.f32.mrb[83].mxu1 }
 0x979   :  { %v14829_v19 = vadd.f32 %v6595_v39, %v6594_v6  ;;  %v5909_v6 = vadd.f32 %v14811_v15, %v5654_v32 }
 0x97d   :  { %v6597_v48 = vpop.f32.mrb[84].mxu1 }
 0x97e   :  { %v6598_v16 = vpop.f32.mrb[85].mxu1 }
 0x97f   :  { %v14831_v50 = vadd.f32 %v6598_v16, %v6597_v48  ;;  %v6600_v37 = vpop.f32.mrb[86].mxu1  ;;  %v5659_v16 = vpop.permute.xlu1 %5658 }
 0x980   :  { %v6601_v36 = vpop.f32.mrb[87].mxu1 }
 0x981   :  { %v5912_v36 = vadd.f32 %v14813_v42, %v5659_v16 }
 0x9a0   :  { %v6619_v27 = vpop.f32.mrb[88].mxu1 }
 0x9a1   :  { %v6620_v18 = vpop.f32.mrb[89].mxu1 }
 0x9a2   :  { %v6621_v33 = vadd.f32 %v6620_v18, %v6619_v27  ;;  %v6622_v44 = vpop.f32.mrb[90].mxu1 }
 0x9a3   :  { %v6623_v5 = vpop.f32.mrb[91].mxu1 }
 0x9a4   :  { %v5981_v53 = vadd.f32 %v6621_v33, %v5885_v23  ;;  %v6624_v2 = vadd.f32 %v6623_v5, %v6622_v44  ;;  %v5664_v44 = vpop.permute.xlu0 %5663 }
 0x9a5   :  { %v5917_v5 = vadd.f32 %v14819_v21, %v5664_v44 }
 0x9a6   :  { %v5984_v11 = vadd.f32 %v6624_v2, %v5888_v35  ;;  %v6042_v22 = vmax.f32 %v5981_v53, 0.0  ;;  %v5669_v2 = vpop.permute.xlu1 %5668 }
 0x9a8   :  { %v6043_v60 = vmax.f32 %v5984_v11, 0.0  ;;  %v6625_v1 = vpop.f32.mrb[92].mxu1  ;;  %v5920_v11 = vadd.f32 %v14821_v46, %v5669_v2 }
 0x9a9   :  { %v6626_v43 = vpop.f32.mrb[93].mxu1 }
 0x9aa   :  { %v6627_v56 = vadd.f32 %v6626_v43, %v6625_v1  ;;  %v6628_v40 = vpop.f32.mrb[94].mxu1  ;;  %v6068_v58 = vpack.c.bf16 %v6043_v60, %v6042_v22 }
 0x9ab   :  { %v6629_v51 = vpop.f32.mrb[95].mxu1 }
 0x9ac   :  { %v5989_v54 = vadd.f32 %v6627_v56, %v5893_v57  ;;  %v6630_v52 = vadd.f32 %v6629_v51, %v6628_v40  ;;  %6704 = vmatprep.subr.bf16.mxu1 %v6068_v58  ;;  %v5674_v56 = vpop.permute.xlu0 %5673 }
 0x9ad   :  { %6705 = vmatpush3.bf16.msra.mxu1 %v6068_v58  ;;  %v5925_v58 = vadd.f32 %v14823_v26, %v5674_v56 }
 0x9ae   :  { %v5992_v25 = vadd.f32 %v6630_v52, %v5896_v7  ;;  %v6044_v12 = vmax.f32 %v5989_v54, 0.0  ;;  %v5679_v7 = vpop.permute.xlu1 %5678 }
 0x9af   :  { %v5928_v52 = vadd.f32 %v14825_v55, %v5679_v7 }
 0x9b0   :  { %v6045_v28 = vmax.f32 %v5992_v25, 0.0  ;;  %v6631_v45 = vpop.f32.mrb[96].mxu1 }
 0x9b1   :  { %v6632_v20 = vpop.f32.mrb[97].mxu1 }
 0x9b2   :  { %v6633_v3 = vadd.f32 %v6632_v20, %v6631_v45  ;;  %v6634_v29 = vpop.f32.mrb[98].mxu1  ;;  %v6069_v38 = vpack.c.bf16 %v6045_v28, %v6044_v12  ;;  %v5684_v20 = vpop.permute.xlu0 %5683 }
 0x9b3   :  { %v6635_v14 = vpop.f32.mrb[99].mxu1  ;;  %v5689_v31 = vpop.permute.xlu1 %5688 }
 0x9b4   :  { %v5997_v61 = vadd.f32 %v6633_v3, %v5901_v59  ;;  %v6636_v30 = vadd.f32 %v6635_v14, %v6634_v29  ;;  %6706 = vmatprep.subr.bf16.mxu1 %v6069_v38  ;;  %v5933_v3 = vadd.f32 %v14827_v47, %v5684_v20 }
 0x9b5   :  { %6707 = vmatpush3.bf16.msra.mxu1 %v6069_v38 }
 0x9b6   :  { %v6000_v0 = vadd.f32 %v6636_v30, %v5904_v17  ;;  %v6046_v9 = vmax.f32 %v5997_v61, 0.0  ;;  %v5936_v17 = vadd.f32 %v14829_v19, %v5689_v31 }
 0x9b8   :  { %v6047_v34 = vmax.f32 %v6000_v0, 0.0  ;;  %v6637_v63 = vpop.f32.mrb[100].mxu1 }
 0x9b9   :  { %v6638_v41 = vpop.f32.mrb[101].mxu1 }
 0x9ba   :  { %v6639_v24 = vadd.f32 %v6638_v41, %v6637_v63  ;;  %v6640_v39 = vpop.f32.mrb[102].mxu1  ;;  %v6070_v48 = vpack.c.bf16 %v6047_v34, %v6046_v9  ;;  %v5694_v63 = vpop.permute.xlu0 %5693 }
 0x9bb   :  { %v6641_v37 = vpop.f32.mrb[103].mxu1  ;;  %v5941_v41 = vadd.f32 %v14831_v50, %v5694_v63  ;;  %v8102_v50 = vld [vmem:[%s14893_s7 + $0x10] sm:$0xff]  }
 0x9bc   :  { %v6005_v10 = vadd.f32 %v6639_v24, %v5909_v6  ;;  %v6642_v13 = vadd.f32 %v6641_v37, %v6640_v39  ;;  %6708 = vmatprep.subr.bf16.mxu1 %v6070_v48 }
 0x9bd   :  { %6709 = vmatpush3.bf16.msra.mxu1 %v6070_v48 }
 0x9be   :  { %v6008_v27 = vadd.f32 %v6642_v13, %v5912_v36  ;;  %v6048_v18 = vmax.f32 %v6005_v10, 0.0  ;;  %v8101_v36 = vld [vmem:[%s14893_s7 + $0x8] sm:$0xff]   ;;  %v15771_v10 = vmov 0.0   ;;  %v8103_v13 = vld [vmem:[%s14893_s7 + $0x18] sm:$0xff]   ;;  %v6095_v44 = vpop.permute.xlu0 %6094 }
 0x9c0   :  { %v6049_v23 = vmax.f32 %v6008_v27, 0.0  ;;  %v6643_v33 = vpop.f32.mrb[104].mxu1  ;;  %v8104_v27 = vld [vmem:[%s14893_s7 + $0x20] sm:$0xff]  }
 0x9c1   :  { %v6644_v4 = vpop.f32.mrb[105].mxu1 }
 0x9c2   :  { %v6645_v15 = vadd.f32 %v6644_v4, %v6643_v33  ;;  %v6646_v35 = vpop.f32.mrb[106].mxu1  ;;  %v6071_v53 = vpack.c.bf16 %v6049_v23, %v6048_v18  ;;  %v8105_v18 = vld [vmem:[%s14893_s7 + $0x28] ss:$0 sps:$4 sm:$0x33]   ;;  %v6090_v23 = vpop.permute.xlu1 %6089 }
 0x9c3   :  { %v6647_v62 = vpop.f32.mrb[107].mxu1 }
 0x9c4   :  { %v6013_v42 = vadd.f32 %v6645_v15, %v5917_v5  ;;  %v6648_v22 = vadd.f32 %v6647_v62, %v6646_v35  ;;  %6710 = vmatprep.subr.bf16.mxu1 %v6071_v53  ;;  %v6105_v5 = vpop.permute.xlu0 %6104 }
 0x9c5   :  { %6711 = vmatpush3.bf16.msra.mxu1 %v6071_v53 }
 0x9c6   :  { %v6016_v60 = vadd.f32 %v6648_v22, %v5920_v11  ;;  %v6050_v1 = vmax.f32 %v6013_v42, 0.0  ;;  %v6100_v33 = vpop.permute.xlu1 %6099 }
 0x9c8   :  { %v6051_v43 = vmax.f32 %v6016_v60, 0.0  ;;  %v6649_v57 = vpop.f32.mrb[108].mxu1  ;;  %v6115_v60 = vpop.permute.xlu0 %6114 }
 0x9c9   :  { %v6650_v40 = vpop.f32.mrb[109].mxu1 }
 0x9ca   :  { %v6651_v21 = vadd.f32 %v6650_v40, %v6649_v57  ;;  %v6652_v8 = vpop.f32.mrb[110].mxu1  ;;  %v6072_v51 = vpack.c.bf16 %v6051_v43, %v6050_v1  ;;  %v6110_v4 = vpop.permute.xlu1 %6109 }
 0x9cb   :  { %v6653_v54 = vpop.f32.mrb[111].mxu1 }
 0x9cc   :  { %v6021_v46 = vadd.f32 %v6651_v21, %v5925_v58  ;;  %v6654_v25 = vadd.f32 %v6653_v54, %v6652_v8  ;;  %6712 = vmatprep.subr.bf16.mxu1 %v6072_v51 }
 0x9cd   :  { %6713 = vmatpush3.bf16.msra.mxu1 %v6072_v51 }
 0x9ce   :  { %v6024_v12 = vadd.f32 %v6654_v25, %v5928_v52  ;;  %v6052_v28 = vmax.f32 %v6021_v46, 0.0  ;;  %v6120_v11 = vpop.permute.xlu1 %6119  ;;  %v6125_v52 = vpop.permute.xlu0 %6124 }
 0x9d0   :  { %v6053_v45 = vmax.f32 %v6024_v12, 0.0  ;;  %v6655_v49 = vpop.f32.mrb[112].mxu1 }
 0x9d1   :  { %v6656_v59 = vpop.f32.mrb[113].mxu1 }
 0x9d2   :  { %v6657_v26 = vadd.f32 %v6656_v59, %v6655_v49  ;;  %v6658_v29 = vpop.f32.mrb[114].mxu1  ;;  %v6073_v38 = vpack.c.bf16 %v6053_v45, %v6052_v28  ;;  %v6130_v51 = vpop.permute.xlu1 %6129 }
 0x9d3   :  { %v6659_v14 = vpop.f32.mrb[115].mxu1 }
 0x9d4   :  { %v6029_v55 = vadd.f32 %v6657_v26, %v5933_v3  ;;  %v6660_v61 = vadd.f32 %v6659_v14, %v6658_v29  ;;  %6714 = vmatprep.subr.bf16.mxu1 %v6073_v38 }
 0x9d5   :  { %6715 = vmatpush3.bf16.msra.mxu1 %v6073_v38 }
 0x9d6   :  { %v6032_v30 = vadd.f32 %v6660_v61, %v5936_v17  ;;  %v6054_v0 = vmax.f32 %v6029_v55, 0.0  ;;  %v6140_v29 = vpop.permute.xlu1 %6139 }
 0x9d8   :  { %v6055_v9 = vmax.f32 %v6032_v30, 0.0  ;;  %v6661_v34 = vpop.f32.mrb[116].mxu1  ;;  %v6135_v30 = vpop.permute.xlu0 %6134 }
 0x9d9   :  { %v6662_v32 = vpop.f32.mrb[117].mxu1 }
 0x9da   :  { %v6663_v47 = vadd.f32 %v6662_v32, %v6661_v34  ;;  %v6074_v6 = vpack.c.bf16 %v6055_v9, %v6054_v0  ;;  %v6664_v24 = vpop.f32.mrb[118].mxu1 }
 0x9db   :  { %v6665_v39 = vpop.f32.mrb[119].mxu1  ;;  %v8106_v24 = vld [vmem:[%s14894_s9] sm:$0x1f]  }
 0x9dc   :  { %v6037_v48 = vadd.f32 %v6663_v47, %v5941_v41  ;;  %6716 = vmatprep.subr.bf16.mxu1 %v6074_v6  ;;  %v6296_v39 = vpop.permute.xlu0 %6295 }
 0x9dd   :  { %6717 = vmatpush3.bf16.msra.mxu1 %v6074_v6 }
 0x9de   :  { %v6056_v19 = vmax.f32 %v6037_v48, 0.0 }
 0x9e0   :  { %v6075_v16 = vpack.c.bf16 %v6056_v19, %v6056_v19 }
 0x9e2   :  { %6766 = vmatprep.subr.msk.bf16.mxu1 %vm15769_vm8, %v6075_v16  ;;  %v6190_v37 = vsel %vm15770_vm5, %v6075_v16, 0 }
 0x9e3   :  { %6719 = vmatpush3.bf16.msra.mxu1 %v6190_v37  ;;  %v6301_v37 = vpop.permute.xlu1 %6300 }
 0x9e4   :  { %6732 = vmatprep.subr.bf16.mxu1 %v15771_v10 }
 0x9e6   :  { %6721 = vmatmul.mubr.msk.bf16.vlgmr.msra.gmra.mrb[120].mxu1 %vm6170_vm13, %v8101_v36 }
 0x9e7   :  { %6724 = vmatprep.mubr.msk.bf16.mxu1 %vm6170_vm13, %v8102_v50 }
 0x9ee   :  { %6725 = vmatmul.mubr.msk.bf16.gmra.mrb[124].mxu1 %vm6170_vm13, %v8103_v13 }
 0x9ef   :  { %6728 = vmatprep.mubr.msk.bf16.mxu1 %vm6170_vm13, %v8104_v27 }
 0x9f6   :  { %6729 = vmatmul.mubr.msk.bf16.gmra.mrb[128].mxu1 %vm6170_vm13, %v8105_v18 }
 0x9f7   :  { %6744 = vmatprep.mubr.msk.bf16.mxu1 %vm8150_vm15, %v15771_v10  ;;  %vm6312_vm15 = vcmask 1041408  }
 0xab9   :  { %v6722_v15 = vpop.f32.mrb[120].mxu1 }
 0xaba   :  { %v6235_v35 = vadd.f32 %v6722_v15, %v6100_v33  ;;  %v6226_v53 = vpop.f32.mrb[121].mxu1 }
 0xabb   :  { %v6227_v2 = vadd.f32 %v6226_v53, %v6090_v23  ;;  %v6723_v62 = vpop.f32.mrb[122].mxu1 }
 0xabc   :  { %v6238_v42 = vadd.f32 %v6723_v62, %v6105_v5  ;;  %v6229_v22 = vpop.f32.mrb[123].mxu1  ;;  %v6274_v43 = vmax.f32 %v6235_v35, 0.0 }
 0xabd   :  { %v6230_v1 = vadd.f32 %v6229_v22, %v6095_v44  ;;  %v6272_v56 = vmax.f32 %v6227_v2, 0.0 }
 0xabe   :  { %v6275_v57 = vmax.f32 %v6238_v42, 0.0 }
 0xabf   :  { %v6273_v40 = vmax.f32 %v6230_v1, 0.0 }
 0xac0   :  { %v6286_v58 = vpack.c.bf16 %v6275_v57, %v6274_v43 }
 0xac1   :  { %v6285_v21 = vpack.c.bf16 %v6273_v40, %v6272_v56  ;;  %v6726_v8 = vpop.f32.mrb[124].mxu1 }
 0xac2   :  { %v6251_v7 = vadd.f32 %v6726_v8, %v6120_v11  ;;  %v6242_v54 = vpop.f32.mrb[125].mxu1 }
 0xac3   :  { %v6243_v46 = vadd.f32 %v6242_v54, %v6110_v4  ;;  %v6727_v25 = vpop.f32.mrb[126].mxu1  ;;  %6733 = vmatpush3.bf16.msra.mxu1 %v6285_v21 }
 0xac4   :  { %v6254_v12 = vadd.f32 %v6727_v25, %v6125_v52  ;;  %v6245_v28 = vpop.f32.mrb[127].mxu1  ;;  %6734 = vmatprep.subr.bf16.mxu1 %v15771_v10  ;;  %v6278_v49 = vmax.f32 %v6251_v7, 0.0 }
 0xac5   :  { %v6246_v45 = vadd.f32 %v6245_v28, %v6115_v60  ;;  %v6276_v59 = vmax.f32 %v6243_v46, 0.0 }
 0xac6   :  { %v6279_v20 = vmax.f32 %v6254_v12, 0.0 }
 0xac7   :  { %v6277_v3 = vmax.f32 %v6246_v45, 0.0  ;;  %6735 = vmatpush3.bf16.msra.mxu1 %v6286_v58 }
 0xac8   :  { %v6288_v26 = vpack.c.bf16 %v6279_v20, %v6278_v49  ;;  %6736 = vmatprep.subr.bf16.mxu1 %v15771_v10 }
 0xac9   :  { %v6287_v38 = vpack.c.bf16 %v6277_v3, %v6276_v59  ;;  %v6730_v31 = vpop.f32.mrb[128].mxu1 }
 0xaca   :  { %v6267_v14 = vadd.f32 %v6730_v31, %v6140_v29  ;;  %v6258_v17 = vpop.f32.mrb[129].mxu1 }
 0xacb   :  { %v6259_v55 = vadd.f32 %v6258_v17, %v6130_v51  ;;  %v6731_v61 = vpop.f32.mrb[130].mxu1  ;;  %6737 = vmatpush3.bf16.msra.mxu1 %v6287_v38 }
 0xacc   :  { %v6261_v0 = vpop.f32.mrb[131].mxu1  ;;  %6738 = vmatprep.subr.bf16.mxu1 %v15771_v10  ;;  %v6282_v34 = vmax.f32 %v6267_v14, 0.0 }
 0xacd   :  { %v6262_v9 = vadd.f32 %v6261_v0, %v6135_v30  ;;  %v6280_v63 = vmax.f32 %v6259_v55, 0.0 }
 0xace   :  { %v6290_v47 = vpack.c.bf16 %v6282_v34, %v6282_v34 }
 0xacf   :  { %v6281_v32 = vmax.f32 %v6262_v9, 0.0  ;;  %6739 = vmatpush3.bf16.msra.mxu1 %v6288_v26 }
 0xad0   :  { %6740 = vmatprep.subr.bf16.mxu1 %v15771_v10  ;;  %v6314_v6 = vsel %vm6312_vm15, %v6290_v47, 0 }
 0xad1   :  { %v6289_v41 = vpack.c.bf16 %v6281_v32, %v6280_v63 }
 0xad3   :  { %6741 = vmatpush3.bf16.msra.mxu1 %v6289_v41 }
 0xad4   :  { %6742 = vmatprep.subr.bf16.mxu1 %v15771_v10 }
 0xad7   :  { %6743 = vmatpush3.bf16.msra.mxu1 %v6314_v6 }
 0xada   :  { %6745 = vmatmul.mubr.msk.bf16.vlgmr.msra.gmra.mrb[132].mxu1 %vm6308_vm6, %v8106_v24 }
 0xbad   :  { %v6350_v48 = vpop.f32.mrb[132].mxu1 }
 0xbae   :  { %v6351_v19 = vadd.f32 %v6350_v48, %v6296_v39  ;;  %v6746_v16 = vpop.f32.mrb[133].mxu1 }
 0xbaf   :  { %v6353_v36 = vpop.f32.mrb[134].mxu1 }
 0xbb0   :  { %6358 = vst.msk [vmem:[%s14895_s11] sm:$0xff] %vm6357_vm11, %v6351_v19  ;;  %v6354_v50 = vadd.f32 %v6353_v36, %v6301_v37  ;;  %v6747_v10 = vpop.f32.mrb[135].mxu1 }
 0xbb2   :  { %6360 = vst.msk [vmem:[%s14895_s11 + $0x8] sm:$0x3] %vm6359_vm14, %v6354_v50 }

</bundles_post_ra>
